<compile_context>
chip_gen: v7x
topology: tpu7x:2x2x1
jax: 0.10.0
libtpu: 0.0.40
codegen_flags: <defaults>
</compile_context>

<pallas_src>
import functools

import jax
import jax.numpy as jnp
import numpy as np
from jax.experimental import pallas as pl
from jax.experimental.pallas import tpu as pltpu


# ----------------------------------------------------------------------------
# Pallas kernel: full forward pass for one batch element.
# ----------------------------------------------------------------------------
def _self_attention_kernel(
    # data
    x_ref, idx_ref, ang_ref,
    # weights (folded / fused on the host)
    wxf_ref, wnei1_ref, ba1_ref, wa2_ref, ba2_ref,
    wc2c_ref, wc2n_ref,
    wb1f_ref, wb1n_ref, bb1_ref, wb2_ref, bb2_ref,
    we1_ref, be1_ref, we2_ref, be2_ref,
    wc3b_ref, wc3c_ref, wc3ob_ref, wc3oc_ref,
    # output
    out_ref,
    # scratch: 3 annular-window accumulators (reused by annu1 / angle / annu2)
    win_ref):
  f32, bf16 = jnp.float32, jnp.bfloat16

  x = x_ref[0]                            # (N, C) point features, f32
  n, c = x.shape
  k = idx_ref.shape[1] // n               # neighbours per point (9)
  kw = k // 3                             # annular windows (3)

  lane_iota = jax.lax.broadcasted_iota(jnp.int32, (n, n), 1)

  def split(a):                           # f32 -> (hi, lo) bf16, hi + lo ~= a
    hi = a.astype(bf16)
    lo = (a - hi.astype(f32)).astype(bf16)
    return hi, lo

  def dotp(a, b):
    return jnp.dot(a, b, preferred_element_type=f32)

  def dot_hp(a, b_hi, b_lo):
    # ~f32-accurate matmul from three native 1-pass bf16 MXU matmuls
    # (a_lo @ b_lo dropped) - bf16_3x accuracy, half the passes of HIGHEST.
    a_hi, a_lo = split(a)
    return dotp(a_hi, b_hi) + dotp(a_hi, b_lo) + dotp(a_lo, b_hi)

  def gather(j, rhs_hi, rhs_lo):
    # Row gather nei[i] = rhs[idx_j[i]] as a dense MXU matmul against an
    # on-the-fly one-hot built from the int32 KNN indices.  The one-hot is
    # exact in bf16, so two bf16 passes give an (almost) exact f32 gather.
    idx_j = idx_ref[0, j * n:(j + 1) * n, :]                 # (N, 1) int32
    oh = jnp.where(lane_iota == idx_j, 1.0, 0.0).astype(bf16)  # (N, N)
    return dotp(oh, rhs_hi) + dotp(oh, rhs_lo)

  leaky = lambda h: jnp.maximum(h, 0.2 * h)    # leaky_relu(slope=0.2)
  relu = lambda h: jnp.maximum(h, 0.0)
  colsum = lambda h: jnp.sum(h, axis=0, keepdims=True)

  def in_stats(s, ss, rows):
    # One-pass InstanceNorm2d(affine=False) stats: mean + rsqrt(var + eps).
    mu = s / rows
    return mu, jax.lax.rsqrt(ss / rows - mu * mu + 1e-5)

  def inorm1(h):                          # IN over a single (N, C) block
    mu, sc = in_stats(colsum(h), colsum(h * h), h.shape[0])
    return (h - mu) * sc

  def annular_tail(b2_ref, w2_ref):
    # Shared tail of annuconv / angle_enc: IN (over the kw windows) -> ReLU ->
    # (1,3) conv over windows -> IN -> ReLU.  Windows live in win_ref.
    s = jnp.zeros((1, c), f32)
    ss = jnp.zeros((1, c), f32)
    for w in range(kw):
      hw = win_ref[w]
      s += colsum(hw)
      ss += colsum(hw * hw)
    mu, sc = in_stats(s, ss, kw * n)
    out = b2_ref[...]
    for w in range(kw):
      out = out + dot_hp(relu((win_ref[w] - mu) * sc), *split(w2_ref[w]))
    return relu(inorm1(out))

  # ---- stage 0: all x-side matmuls fused into one 4C-lane-wide MXU call ------
  x_hi, x_lo = split(x)
  xw = dot_hp(x, *split(wxf_ref[...]))                       # (N, 4C)
  base1 = xw[:, 0 * c:1 * c]                                 # conv1 centroid
  base_a1 = xw[:, 1 * c:2 * c] + ba1_ref[...]                # annu1 fold + bias
  head3_x = xw[:, 2 * c:3 * c]                               # conv3     x-block
  head3o_x = xw[:, 3 * c:4 * c]                              # conv3_old x-block

  # ---- stage 1: shared gathers of x feed conv1(old) + annuconv1 --------------
  s1 = jnp.zeros((1, c), f32)
  ss1 = jnp.zeros((1, c), f32)
  m1 = None
  wnei1_hl = [split(wnei1_ref[t]) for t in range(3)]
  for j in range(k):
    w, t = divmod(j, 3)
    nei = gather(j, x_hi, x_lo)                              # (N, C)
    res = dot_hp(nei, *wnei1_hl[t])                          # (N, 2C) [conv1|annu1 tap]
    h1 = base1 + res[:, :c]
    s1 += colsum(h1)
    ss1 += colsum(h1 * h1)
    m1 = h1 if m1 is None else jnp.maximum(m1, h1)
    a_inc = res[:, c:]
    if t == 0:
      win_ref[w] = base_a1 + a_inc
    else:
      win_ref[w] += a_inc

  # conv1 -> IN -> leaky -> max over neighbours.  IN and leaky are monotone
  # per channel, so the max is taken first and normalised once on (N, C).
  mu1, sc1 = in_stats(s1, ss1, k * n)
  x1o = leaky((m1 - mu1) * sc1)                              # (N, C)
  x1 = annular_tail(ba2_ref, wa2_ref)                        # annuconv1 (N, C)

  # ---- angle encoder (both angle terms of the module are identical) ----------
  for w in range(kw):
    acc = be1_ref[...]
    for t in range(3):
      j = 3 * w + t
      acc = acc + ang_ref[0, j * n:(j + 1) * n, :] * we1_ref[t]
    win_ref[w] = acc
  f_ang = annular_tail(be2_ref, we2_ref)                     # (N, C)

  # ---- stage 2: gather [x1 | x1o] together, feed conv2(old) + annuconv2 ------
  pack_hi, pack_lo = split(jnp.concatenate([x1, x1o], axis=1))   # (N, 2C)
  base2 = dot_hp(x1o, *split(wc2c_ref[...]))                 # conv2 centroid (N, 2C)
  base_a2 = dot_hp(x1, *split(wb1f_ref[...])) + bb1_ref[...]
  wc2n_hl = split(wc2n_ref[...])
  wb1n_hl = [split(wb1n_ref[t]) for t in range(3)]

  c2 = 2 * c
  s2 = jnp.zeros((1, c2), f32)
  ss2 = jnp.zeros((1, c2), f32)
  m2 = None
  for j in range(k):
    w, t = divmod(j, 3)
    neip = gather(j, pack_hi, pack_lo)                       # (N, 2C) [nei(x1)|nei(x1o)]
    h2 = base2 + dot_hp(neip[:, c:], *wc2n_hl)               # conv2 (old branch)
    s2 += colsum(h2)
    ss2 += colsum(h2 * h2)
    m2 = h2 if m2 is None else jnp.maximum(m2, h2)
    a_inc = dot_hp(neip[:, :c], *wb1n_hl[t])                 # annuconv2 tap t
    if t == 0:
      win_ref[w] = base_a2 + a_inc
    else:
      win_ref[w] += a_inc

  mu2, sc2 = in_stats(s2, ss2, k * n)
  x2o = leaky((m2 - mu2) * sc2)                              # (N, 2C)
  x2 = annular_tail(bb2_ref, wb2_ref)                        # annuconv2 (N, C)

  # ---- heads ------------------------------------------------------------------
  x3 = leaky(inorm1(head3_x
                    + dot_hp(x1 + f_ang, *split(wc3b_ref[...]))
                    + dot_hp(x2 + f_ang, *split(wc3c_ref[...]))))
  x3o = leaky(inorm1(head3o_x
                     + dot_hp(x1o, *split(wc3ob_ref[...]))
                     + dot_hp(x2o, *split(wc3oc_ref[...]))))
  out_ref[0] = (x3 + x3o).astype(out_ref.dtype)


# ----------------------------------------------------------------------------
# Host-side helpers
# ----------------------------------------------------------------------------
def _knn_indices(coords, k):
  """square_distance + topk(k+1, smallest), dropping the self index."""
  pts = jnp.transpose(coords, (0, 2, 1)).astype(jnp.float32)   # (B, N, Cc)
  sq = jnp.sum(pts * pts, axis=-1)
  dist = (-2.0 * jnp.einsum('bnc,bmc->bnm', pts, pts,
                            precision=jax.lax.Precision.HIGHEST)
          + sq[:, :, None] + sq[:, None, :])
  dist = jnp.maximum(dist, 1e-12)
  _, idx = jax.lax.top_k(-dist, k + 1)
  return idx[:, :, 1:].astype(jnp.int32)                       # (B, N, k)


def _prep_weights(p):
  """Fold / fuse the PyTorch conv weights into the matmul operands used in-kernel."""
  f32 = jnp.float32

  def mat(w):                      # (Cout, Cin, 1, 1) -> (Cin, Cout)
    return jnp.asarray(w, f32)[:, :, 0, 0].T

  def taps(w):                     # (Cout, Cin, 1, 3) -> [(Cin, Cout)] * 3
    w = jnp.asarray(w, f32)
    return [w[:, :, 0, t].T for t in range(3)]

  def bias(b):
    return jnp.asarray(b, f32)[None, :]

  C = p['conv1_w'].shape[0]

  # 1x1 graph convs over [x, nei - x]: centroid fold + neighbour part.
  m1 = mat(p['conv1_w'])
  wc1c, wc1n = m1[:C] - m1[C:], m1[C:]                         # (C, C), (C, C)
  m2 = mat(p['conv2_w'])
  wc2c, wc2n = m2[:C] - m2[C:], m2[C:]                         # (C, 2C), (C, 2C)

  # Annular first layers: (1,3)/stride-3 conv over [x, nei - x].
  def annu_l1(w):
    ts = taps(w)
    ci = ts[0].shape[0] // 2
    fold = sum(t[:ci] - t[ci:] for t in ts)                    # centroid fold
    return fold, [t[ci:] for t in ts]                          # + 3 neighbour taps
  wa1f, wa1n = annu_l1(p['annu1_c1_w'])
  wb1f, wb1n = annu_l1(p['annu2_c1_w'])

  m3 = mat(p['conv3_w'])                                       # (3C, C)
  m3o = mat(p['conv3_old_w'])                                  # (4C, C)

  # Fuse every matmul whose LHS is x into one (C, 4C) weight (128 output lanes
  # at C=32), and conv1's neighbour weight with annuconv1's tap t (2C lanes).
  wxf = jnp.concatenate([wc1c, wa1f, m3[:C], m3o[:C]], axis=1)               # (C, 4C)
  wnei1 = jnp.stack([jnp.concatenate([wc1n, wa1n[t]], axis=1)
                     for t in range(3)])                                      # (3, C, 2C)

  we1 = jnp.stack([jnp.asarray(p['ang_c1_w'], f32)[:, 0, 0, t][None, :]
                   for t in range(3)])                                        # (3, 1, C)

  return [
      wxf, wnei1, bias(p['annu1_c1_b']),
      jnp.stack(taps(p['annu1_c2_w'])), bias(p['annu1_c2_b']),
      wc2c, wc2n,
      wb1f, jnp.stack(wb1n), bias(p['annu2_c1_b']),
      jnp.stack(taps(p['annu2_c2_w'])), bias(p['annu2_c2_b']),
      we1, bias(p['ang_c1_b']),
      jnp.stack(taps(p['ang_c2_w'])), bias(p['ang_c2_b']),
      m3[C:2 * C], m3[2 * C:],
      m3o[C:2 * C], m3o[2 * C:],
  ]


@functools.partial(jax.jit, static_argnames=('k',))
def self_attention_forward(coords, features, params, k=9):
  """coords: (B, 2, N), features: (B, C, N)  ->  (B, C, N)."""
  B, C, N = features.shape
  if k != 9:
    raise ValueError('the Pallas kernel requires k == 9 '
                     '(annular convs reduce the neighbour axis 9 -> 3 -> 1)')
  if N - 1 < k:
    raise ValueError('need N > k')

  # TODO(synk): top-k neighbour selection has no Pallas TPU primitive; the KNN
  # indices are computed here (XLA) and shipped to the kernel as int32 so the
  # in-kernel gathers become dense MXU matmuls against an on-the-fly one-hot.
  idx = _knn_indices(coords, k)                                          # (B, N, k)
  idx_jm = jnp.transpose(idx, (0, 2, 1)).reshape(B, k * N, 1)            # j-major

  # Angle (cosine-similarity) features depend only on coords + idx, so they are
  # hoisted out of the kernel.  No epsilon, matching the original module.
  pts = jnp.transpose(coords, (0, 2, 1)).astype(jnp.float32)             # (B, N, 2)
  nei_pts = jax.vmap(lambda p, i: p[i])(pts, idx)                        # (B, N, k, 2)
  num = jnp.sum(pts[:, :, None, :] * nei_pts, axis=-1)
  den = (jnp.sqrt(jnp.sum(pts * pts, axis=-1))[:, :, None]
         * jnp.sqrt(jnp.sum(nei_pts * nei_pts, axis=-1)))
  ang_jm = jnp.transpose(num / den, (0, 2, 1)).reshape(B, k * N, 1)

  feats_t = jnp.transpose(features, (0, 2, 1)).astype(jnp.float32)       # (B, N, C)

  weights = _prep_weights(params)

  def full_spec(shape):
    zero = (0,) * len(shape)
    return pl.BlockSpec(tuple(shape), lambda b, _z=zero: _z)

  in_specs = [
      pl.BlockSpec((1, N, C), lambda b: (b, 0, 0)),
      pl.BlockSpec((1, k * N, 1), lambda b: (b, 0, 0)),
      pl.BlockSpec((1, k * N, 1), lambda b: (b, 0, 0)),
  ] + [full_spec(w.shape) for w in weights]

  # Explicit scoped-VMEM budget sized from the resident blocks, with headroom.
  weight_bytes = sum(int(np.prod(w.shape)) * 4 for w in weights)
  data_bytes = 4 * (2 * N * C + 2 * k * N + 3 * N * C)
  vmem_limit = int(min(max(8 * (weight_bytes + data_bytes), 32 << 20), 64 << 20))

  out = pl.pallas_call(
      _self_attention_kernel,
      out_shape=jax.ShapeDtypeStruct((B, N, C), jnp.float32),
      grid=(B,),
      in_specs=in_specs,
      out_specs=pl.BlockSpec((1, N, C), lambda b: (b, 0, 0)),
      scratch_shapes=[pltpu.VMEM((k // 3, N, C), jnp.float32)],
      compiler_params=pltpu.CompilerParams(
          dimension_semantics=('parallel',),
          vmem_limit_bytes=vmem_limit),
  )(feats_t, idx_jm, ang_jm, *weights)

  return jnp.transpose(out, (0, 2, 1))


# ----------------------------------------------------------------------------
# Pure-JAX mirror of the PyTorch forward (for verification).
# ----------------------------------------------------------------------------
def reference_forward(coords, features, params, k=9):
  f32 = jnp.float32
  HIGHEST = jax.lax.Precision.HIGHEST
  coords = coords.astype(f32)
  features = features.astype(f32)
  B, C, N = features.shape

  def conv2d(x, w, b=None, stride=(1, 1)):
    y = jax.lax.conv_general_dilated(
        x, jnp.asarray(w, f32), window_strides=stride, padding='VALID',
        dimension_numbers=('NCHW', 'OIHW', 'NCHW'), precision=HIGHEST)
    if b is not None:
      y = y + jnp.asarray(b, f32)[None, :, None, None]
    return y

  def inorm(x):                       # InstanceNorm2d(affine=False, eps=1e-5)
    mu = jnp.mean(x, axis=(2, 3), keepdims=True)
    var = jnp.mean(jnp.square(x - mu), axis=(2, 3), keepdims=True)
    return (x - mu) / jnp.sqrt(var + 1e-5)

  leaky = lambda t: jnp.where(t >= 0, t, 0.2 * t)
  relu = lambda t: jnp.maximum(t, 0.0)

  idx = _knn_indices(coords, k)       # identical for every get_graph_feature call

  def gather(feats, ind):             # (B,C,N), (B,N,k) -> (B,C,N,k)
    return jax.vmap(lambda f, i: f[:, i])(feats, ind)

  def graph_feature(feats):
    nb = gather(feats, idx)
    rep = jnp.broadcast_to(feats[:, :, :, None], nb.shape)
    return jnp.concatenate([rep, nb - rep], axis=1)

  def annuconv(x, w1, b1, w2, b2):
    h = relu(inorm(conv2d(x, w1, b1, stride=(1, 3))))
    return relu(inorm(conv2d(h, w2, b2)))

  def cos_sim(a, b):
    dotp = jnp.sum(a * b, axis=1)
    na = jnp.sqrt(jnp.sum(a * a, axis=1))
    nb_ = jnp.sqrt(jnp.sum(b * b, axis=1))
    return (dotp / (na * nb_))[:, None]

  x0 = features[:, :, :, None]
  gf0 = graph_feature(features)                              # (B, 2C, N, k)

  # new branch
  x1 = annuconv(gf0, params['annu1_c1_w'], params['annu1_c1_b'],
                params['annu1_c2_w'], params['annu1_c2_b'])
  nei_c = gather(coords, idx)
  ang = cos_sim(jnp.broadcast_to(coords[:, :, :, None], nei_c.shape), nei_c)
  f_ang = annuconv(ang, params['ang_c1_w'], params['ang_c1_b'],
                   params['ang_c2_w'], params['ang_c2_b'])
  x2 = annuconv(graph_feature(x1[..., 0]),
                params['annu2_c1_w'], params['annu2_c1_b'],
                params['annu2_c2_w'], params['annu2_c2_b'])
  # The second angle term uses the same KNN indices and the same encoder
  # (angle_enc1), so f_ang2 == f_ang1 == f_ang.
  x3 = jnp.concatenate([x0, x1 + f_ang, x2 + f_ang], axis=1)
  x3 = leaky(inorm(conv2d(x3, params['conv3_w']))).reshape(B, -1, N)

  # old branch
  x1o = leaky(inorm(conv2d(gf0, params['conv1_w'])))
  x1o = jnp.max(x1o, axis=-1, keepdims=True)
  x2o = leaky(inorm(conv2d(graph_feature(x1o[..., 0]), params['conv2_w'])))
  x2o = jnp.max(x2o, axis=-1, keepdims=True)
  x3o = jnp.concatenate([x0, x1o, x2o], axis=1)
  x3o = leaky(inorm(conv2d(x3o, params['conv3_old_w']))).reshape(B, -1, N)

  return x3 + x3o


# ----------------------------------------------------------------------------
if __name__ == "__main__":
  # feature_dim == in_channel == 32 (required by the module's shape algebra),
  # 2-D coordinates (the module's coord gather / cosine-similarity only
  # type-checks for 2 coordinate channels), k = 9 neighbours.
  B, C, N, K = 2, 32, 16, 9

  key = jax.random.PRNGKey(0)
  ks = jax.random.split(key, 20)

  def w(kk, shape, scale=0.1):
    return scale * jax.random.normal(kk, shape, jnp.float32)

  params = {
      'conv1_w': w(ks[0], (C, 2 * C, 1, 1)),
      'conv2_w': w(ks[1], (2 * C, 2 * C, 1, 1)),
      'conv3_w': w(ks[2], (C, 3 * C, 1, 1)),
      'conv3_old_w': w(ks[3], (C, 4 * C, 1, 1)),
      'annu1_c1_w': w(ks[4], (C, 2 * C, 1, 3)), 'annu1_c1_b': w(ks[5], (C,)),
      'annu1_c2_w': w(ks[6], (C, C, 1, 3)),     'annu1_c2_b': w(ks[7], (C,)),
      'annu2_c1_w': w(ks[8], (C, 2 * C, 1, 3)), 'annu2_c1_b': w(ks[9], (C,)),
      'annu2_c2_w': w(ks[10], (C, C, 1, 3)),    'annu2_c2_b': w(ks[11], (C,)),
      'ang_c1_w': w(ks[12], (C, 1, 1, 3)),      'ang_c1_b': w(ks[13], (C,)),
      'ang_c2_w': w(ks[14], (C, C, 1, 3)),      'ang_c2_b': w(ks[15], (C,)),
  }

  coords = jax.random.normal(ks[16], (B, 2, N), jnp.float32)
  features = jax.random.normal(ks[17], (B, C, N), jnp.float32)

  out = self_attention_forward(coords, features, params, k=K)
  out = jax.block_until_ready(out)

  ref = jax.block_until_ready(reference_forward(coords, features, params, k=K))
  np.testing.assert_allclose(np.asarray(out), np.asarray(ref),
                             rtol=1e-3, atol=1e-3)
  print("KERNEL_OK")
</pallas_src>

<mosaic_0001>
module attributes {stable_mosaic.version = 11 : i64} {
  func.func @_self_attention_kernel(%arg0: i32, %arg1: memref<1x16x32xf32, #tpu.memory_space<vmem>>, %arg2: memref<1x144x1xi32, #tpu.memory_space<vmem>>, %arg3: memref<1x144x1xf32, #tpu.memory_space<vmem>>, %arg4: memref<32x128xf32, #tpu.memory_space<vmem>>, %arg5: memref<3x32x64xf32, #tpu.memory_space<vmem>>, %arg6: memref<1x32xf32, #tpu.memory_space<vmem>>, %arg7: memref<3x32x32xf32, #tpu.memory_space<vmem>>, %arg8: memref<1x32xf32, #tpu.memory_space<vmem>>, %arg9: memref<32x64xf32, #tpu.memory_space<vmem>>, %arg10: memref<32x64xf32, #tpu.memory_space<vmem>>, %arg11: memref<32x32xf32, #tpu.memory_space<vmem>>, %arg12: memref<3x32x32xf32, #tpu.memory_space<vmem>>, %arg13: memref<1x32xf32, #tpu.memory_space<vmem>>, %arg14: memref<3x32x32xf32, #tpu.memory_space<vmem>>, %arg15: memref<1x32xf32, #tpu.memory_space<vmem>>, %arg16: memref<3x1x32xf32, #tpu.memory_space<vmem>>, %arg17: memref<1x32xf32, #tpu.memory_space<vmem>>, %arg18: memref<3x32x32xf32, #tpu.memory_space<vmem>>, %arg19: memref<1x32xf32, #tpu.memory_space<vmem>>, %arg20: memref<32x32xf32, #tpu.memory_space<vmem>>, %arg21: memref<32x32xf32, #tpu.memory_space<vmem>>, %arg22: memref<32x32xf32, #tpu.memory_space<vmem>>, %arg23: memref<64x32xf32, #tpu.memory_space<vmem>>, %arg24: memref<1x16x32xf32, #tpu.memory_space<vmem>>, %arg25: memref<3x16x32xf32, #tpu.memory_space<vmem>>) attributes {dimension_semantics = [#tpu.dimension_semantics<parallel>], iteration_bounds = array<i64: 2>, scalar_prefetch = 0 : i64, scratch_operands = 1 : i64, tpu.core_type = #tpu.core_type<tc>, window_params = [{transform_indices = @transform_0, window_bounds = array<i64: 1, 16, 32>}, {transform_indices = @transform_1, window_bounds = array<i64: 1, 144, 1>}, {transform_indices = @transform_2, window_bounds = array<i64: 1, 144, 1>}, {pipeline_mode = #tpu.pipeline_mode<synchronous>, transform_indices = @transform_3, window_bounds = array<i64: 32, 128>}, {pipeline_mode = #tpu.pipeline_mode<synchronous>, transform_indices = @transform_4, window_bounds = array<i64: 3, 32, 64>}, {pipeline_mode = #tpu.pipeline_mode<synchronous>, transform_indices = @transform_5, window_bounds = array<i64: 1, 32>}, {pipeline_mode = #tpu.pipeline_mode<synchronous>, transform_indices = @transform_6, window_bounds = array<i64: 3, 32, 32>}, {pipeline_mode = #tpu.pipeline_mode<synchronous>, transform_indices = @transform_7, window_bounds = array<i64: 1, 32>}, {pipeline_mode = #tpu.pipeline_mode<synchronous>, transform_indices = @transform_8, window_bounds = array<i64: 32, 64>}, {pipeline_mode = #tpu.pipeline_mode<synchronous>, transform_indices = @transform_9, window_bounds = array<i64: 32, 64>}, {pipeline_mode = #tpu.pipeline_mode<synchronous>, transform_indices = @transform_10, window_bounds = array<i64: 32, 32>}, {pipeline_mode = #tpu.pipeline_mode<synchronous>, transform_indices = @transform_11, window_bounds = array<i64: 3, 32, 32>}, {pipeline_mode = #tpu.pipeline_mode<synchronous>, transform_indices = @transform_12, window_bounds = array<i64: 1, 32>}, {pipeline_mode = #tpu.pipeline_mode<synchronous>, transform_indices = @transform_13, window_bounds = array<i64: 3, 32, 32>}, {pipeline_mode = #tpu.pipeline_mode<synchronous>, transform_indices = @transform_14, window_bounds = array<i64: 1, 32>}, {pipeline_mode = #tpu.pipeline_mode<synchronous>, transform_indices = @transform_15, window_bounds = array<i64: 3, 1, 32>}, {pipeline_mode = #tpu.pipeline_mode<synchronous>, transform_indices = @transform_16, window_bounds = array<i64: 1, 32>}, {pipeline_mode = #tpu.pipeline_mode<synchronous>, transform_indices = @transform_17, window_bounds = array<i64: 3, 32, 32>}, {pipeline_mode = #tpu.pipeline_mode<synchronous>, transform_indices = @transform_18, window_bounds = array<i64: 1, 32>}, {pipeline_mode = #tpu.pipeline_mode<synchronous>, transform_indices = @transform_19, window_bounds = array<i64: 32, 32>}, {pipeline_mode = #tpu.pipeline_mode<synchronous>, transform_indices = @transform_20, window_bounds = array<i64: 32, 32>}, {pipeline_mode = #tpu.pipeline_mode<synchronous>, transform_indices = @transform_21, window_bounds = array<i64: 32, 32>}, {pipeline_mode = #tpu.pipeline_mode<synchronous>, transform_indices = @transform_22, window_bounds = array<i64: 64, 32>}, {transform_indices = @transform_23, window_bounds = array<i64: 1, 16, 32>}]} {
    %c0 = arith.constant 0 : index
    %c0_0 = arith.constant 0 : index
    %c0_1 = arith.constant 0 : index
    %0 = vector.load %arg1[%c0, %c0_0, %c0_1] : memref<1x16x32xf32, #tpu.memory_space<vmem>>, vector<1x16x32xf32>
    %1 = vector.shape_cast %0 : vector<1x16x32xf32> to vector<16x32xf32>
    %2 = tpu.iota {dimensions = array<i32: 1>} : vector<16x16xi32>
    %3 = arith.truncf %1 : vector<16x32xf32> to vector<16x32xbf16>
    %4 = arith.extf %3 : vector<16x32xbf16> to vector<16x32xf32>
    %5 = arith.subf %1, %4 : vector<16x32xf32>
    %6 = arith.truncf %5 : vector<16x32xf32> to vector<16x32xbf16>
    %c0_2 = arith.constant 0 : index
    %c0_3 = arith.constant 0 : index
    %7 = vector.load %arg4[%c0_2, %c0_3] : memref<32x128xf32, #tpu.memory_space<vmem>>, vector<32x128xf32>
    %8 = arith.truncf %7 : vector<32x128xf32> to vector<32x128xbf16>
    %9 = arith.extf %8 : vector<32x128xbf16> to vector<32x128xf32>
    %10 = arith.subf %7, %9 : vector<32x128xf32>
    %11 = arith.truncf %10 : vector<32x128xf32> to vector<32x128xbf16>
    %12 = arith.truncf %1 : vector<16x32xf32> to vector<16x32xbf16>
    %13 = arith.extf %12 : vector<16x32xbf16> to vector<16x32xf32>
    %14 = arith.subf %1, %13 : vector<16x32xf32>
    %15 = arith.truncf %14 : vector<16x32xf32> to vector<16x32xbf16>
    %cst = arith.constant dense<0.000000e+00> : vector<16x128xf32>
    %16 = tpu.matmul %12, %8, %cst {dimension_numbers = #tpu.dot_dimension_numbers<[1], [0], [0], [1], [0, 0, 1, 1], [], []>} : vector<16x32xbf16>, vector<32x128xbf16>, vector<16x128xf32> -> vector<16x128xf32>
    %cst_4 = arith.constant dense<0.000000e+00> : vector<16x128xf32>
    %17 = tpu.matmul %12, %11, %cst_4 {dimension_numbers = #tpu.dot_dimension_numbers<[1], [0], [0], [1], [0, 0, 1, 1], [], []>} : vector<16x32xbf16>, vector<32x128xbf16>, vector<16x128xf32> -> vector<16x128xf32>
    %18 = arith.addf %16, %17 : vector<16x128xf32>
    %cst_5 = arith.constant dense<0.000000e+00> : vector<16x128xf32>
    %19 = tpu.matmul %15, %8, %cst_5 {dimension_numbers = #tpu.dot_dimension_numbers<[1], [0], [0], [1], [0, 0, 1, 1], [], []>} : vector<16x32xbf16>, vector<32x128xbf16>, vector<16x128xf32> -> vector<16x128xf32>
    %20 = arith.addf %18, %19 : vector<16x128xf32>
    %21 = vector.extract_strided_slice %20 {offsets = [0, 0], sizes = [16, 32], strides = [1, 1]} : vector<16x128xf32> to vector<16x32xf32>
    %22 = vector.extract_strided_slice %20 {offsets = [0, 32], sizes = [16, 32], strides = [1, 1]} : vector<16x128xf32> to vector<16x32xf32>
    %c0_6 = arith.constant 0 : index
    %c0_7 = arith.constant 0 : index
    %23 = vector.load %arg6[%c0_6, %c0_7] : memref<1x32xf32, #tpu.memory_space<vmem>>, vector<1x32xf32>
    %24 = vector.broadcast %23 : vector<1x32xf32> to vector<16x32xf32>
    %25 = arith.addf %22, %24 : vector<16x32xf32>
    %26 = vector.extract_strided_slice %20 {offsets = [0, 64], sizes = [16, 32], strides = [1, 1]} : vector<16x128xf32> to vector<16x32xf32>
    %27 = vector.extract_strided_slice %20 {offsets = [0, 96], sizes = [16, 32], strides = [1, 1]} : vector<16x128xf32> to vector<16x32xf32>
    %cst_8 = arith.constant 0.000000e+00 : f32
    %28 = vector.broadcast %cst_8 : f32 to vector<1x32xf32>
    %cst_9 = arith.constant 0.000000e+00 : f32
    %29 = vector.broadcast %cst_9 : f32 to vector<1x32xf32>
    %c0_10 = arith.constant 0 : index
    %c0_11 = arith.constant 0 : index
    %c0_12 = arith.constant 0 : index
    %30 = vector.load %arg5[%c0_10, %c0_11, %c0_12] : memref<3x32x64xf32, #tpu.memory_space<vmem>>, vector<1x32x64xf32>
    %31 = vector.shape_cast %30 : vector<1x32x64xf32> to vector<32x64xf32>
    %32 = arith.truncf %31 : vector<32x64xf32> to vector<32x64xbf16>
    %33 = arith.extf %32 : vector<32x64xbf16> to vector<32x64xf32>
    %34 = arith.subf %31, %33 : vector<32x64xf32>
    %35 = arith.truncf %34 : vector<32x64xf32> to vector<32x64xbf16>
    %c1 = arith.constant 1 : index
    %c0_13 = arith.constant 0 : index
    %c0_14 = arith.constant 0 : index
    %36 = vector.load %arg5[%c1, %c0_13, %c0_14] : memref<3x32x64xf32, #tpu.memory_space<vmem>>, vector<1x32x64xf32>
    %37 = vector.shape_cast %36 : vector<1x32x64xf32> to vector<32x64xf32>
    %38 = arith.truncf %37 : vector<32x64xf32> to vector<32x64xbf16>
    %39 = arith.extf %38 : vector<32x64xbf16> to vector<32x64xf32>
    %40 = arith.subf %37, %39 : vector<32x64xf32>
    %41 = arith.truncf %40 : vector<32x64xf32> to vector<32x64xbf16>
    %c2 = arith.constant 2 : index
    %c0_15 = arith.constant 0 : index
    %c0_16 = arith.constant 0 : index
    %42 = vector.load %arg5[%c2, %c0_15, %c0_16] : memref<3x32x64xf32, #tpu.memory_space<vmem>>, vector<1x32x64xf32>
    %43 = vector.shape_cast %42 : vector<1x32x64xf32> to vector<32x64xf32>
    %44 = arith.truncf %43 : vector<32x64xf32> to vector<32x64xbf16>
    %45 = arith.extf %44 : vector<32x64xbf16> to vector<32x64xf32>
    %46 = arith.subf %43, %45 : vector<32x64xf32>
    %47 = arith.truncf %46 : vector<32x64xf32> to vector<32x64xbf16>
    %c0_17 = arith.constant 0 : index
    %c0_18 = arith.constant 0 : index
    %c0_19 = arith.constant 0 : index
    %48 = vector.load %arg2[%c0_17, %c0_18, %c0_19] : memref<1x144x1xi32, #tpu.memory_space<vmem>>, vector<1x16x1xi32>
    %49 = vector.shape_cast %48 : vector<1x16x1xi32> to vector<16x1xi32>
    %50 = vector.broadcast %49 : vector<16x1xi32> to vector<16x16xi32>
    %51 = arith.cmpi eq, %2, %50 : vector<16x16xi32>
    %cst_20 = arith.constant 1.000000e+00 : f32
    %cst_21 = arith.constant 0.000000e+00 : f32
    %52 = vector.broadcast %cst_20 : f32 to vector<16x16xf32>
    %53 = vector.broadcast %cst_21 : f32 to vector<16x16xf32>
    %54 = arith.select %51, %52, %53 : vector<16x16xi1>, vector<16x16xf32>
    %55 = arith.truncf %54 : vector<16x16xf32> to vector<16x16xbf16>
    %cst_22 = arith.constant dense<0.000000e+00> : vector<16x32xf32>
    %56 = tpu.matmul %55, %3, %cst_22 {dimension_numbers = #tpu.dot_dimension_numbers<[1], [0], [0], [1], [0, 0, 1, 1], [], []>} : vector<16x16xbf16>, vector<16x32xbf16>, vector<16x32xf32> -> vector<16x32xf32>
    %cst_23 = arith.constant dense<0.000000e+00> : vector<16x32xf32>
    %57 = tpu.matmul %55, %6, %cst_23 {dimension_numbers = #tpu.dot_dimension_numbers<[1], [0], [0], [1], [0, 0, 1, 1], [], []>} : vector<16x16xbf16>, vector<16x32xbf16>, vector<16x32xf32> -> vector<16x32xf32>
    %58 = arith.addf %56, %57 : vector<16x32xf32>
    %59 = arith.truncf %58 : vector<16x32xf32> to vector<16x32xbf16>
    %60 = arith.extf %59 : vector<16x32xbf16> to vector<16x32xf32>
    %61 = arith.subf %58, %60 : vector<16x32xf32>
    %62 = arith.truncf %61 : vector<16x32xf32> to vector<16x32xbf16>
    %cst_24 = arith.constant dense<0.000000e+00> : vector<16x64xf32>
    %63 = tpu.matmul %59, %32, %cst_24 {dimension_numbers = #tpu.dot_dimension_numbers<[1], [0], [0], [1], [0, 0, 1, 1], [], []>} : vector<16x32xbf16>, vector<32x64xbf16>, vector<16x64xf32> -> vector<16x64xf32>
    %cst_25 = arith.constant dense<0.000000e+00> : vector<16x64xf32>
    %64 = tpu.matmul %59, %35, %cst_25 {dimension_numbers = #tpu.dot_dimension_numbers<[1], [0], [0], [1], [0, 0, 1, 1], [], []>} : vector<16x32xbf16>, vector<32x64xbf16>, vector<16x64xf32> -> vector<16x64xf32>
    %65 = arith.addf %63, %64 : vector<16x64xf32>
    %cst_26 = arith.constant dense<0.000000e+00> : vector<16x64xf32>
    %66 = tpu.matmul %62, %32, %cst_26 {dimension_numbers = #tpu.dot_dimension_numbers<[1], [0], [0], [1], [0, 0, 1, 1], [], []>} : vector<16x32xbf16>, vector<32x64xbf16>, vector<16x64xf32> -> vector<16x64xf32>
    %67 = arith.addf %65, %66 : vector<16x64xf32>
    %68 = vector.extract_strided_slice %67 {offsets = [0, 0], sizes = [16, 32], strides = [1, 1]} : vector<16x64xf32> to vector<16x32xf32>
    %69 = arith.addf %21, %68 : vector<16x32xf32>
    %cst_27 = arith.constant dense<0.000000e+00> : vector<32xf32>
    %70 = vector.multi_reduction <add>, %69, %cst_27 [0] : vector<16x32xf32> to vector<32xf32>
    %71 = vector.shape_cast %70 : vector<32xf32> to vector<1x32xf32>
    %72 = arith.addf %28, %71 : vector<1x32xf32>
    %73 = arith.mulf %69, %69 : vector<16x32xf32>
    %cst_28 = arith.constant dense<0.000000e+00> : vector<32xf32>
    %74 = vector.multi_reduction <add>, %73, %cst_28 [0] : vector<16x32xf32> to vector<32xf32>
    %75 = vector.shape_cast %74 : vector<32xf32> to vector<1x32xf32>
    %76 = arith.addf %29, %75 : vector<1x32xf32>
    %77 = vector.extract_strided_slice %67 {offsets = [0, 32], sizes = [16, 32], strides = [1, 1]} : vector<16x64xf32> to vector<16x32xf32>
    %78 = arith.addf %25, %77 : vector<16x32xf32>
    %c0_29 = arith.constant 0 : index
    %c0_30 = arith.constant 0 : index
    %c0_31 = arith.constant 0 : index
    %79 = vector.load %arg25[%c0_29, %c0_30, %c0_31] : memref<3x16x32xf32, #tpu.memory_space<vmem>>, vector<1x16x32xf32>
    %80 = vector.shape_cast %79 : vector<1x16x32xf32> to vector<16x32xf32>
    %81 = vector.shape_cast %78 : vector<16x32xf32> to vector<1x16x32xf32>
    tpu.vector_store %arg25[%c0_29, %c0_30, %c0_31], %81 {strides = array<i32>} : memref<3x16x32xf32, #tpu.memory_space<vmem>>, vector<1x16x32xf32>,
    %c0_32 = arith.constant 0 : index
    %c16 = arith.constant 16 : index
    %c0_33 = arith.constant 0 : index
    %82 = vector.load %arg2[%c0_32, %c16, %c0_33] : memref<1x144x1xi32, #tpu.memory_space<vmem>>, vector<1x16x1xi32>
    %83 = vector.shape_cast %82 : vector<1x16x1xi32> to vector<16x1xi32>
    %84 = vector.broadcast %83 : vector<16x1xi32> to vector<16x16xi32>
    %85 = arith.cmpi eq, %2, %84 : vector<16x16xi32>
    %cst_34 = arith.constant 1.000000e+00 : f32
    %cst_35 = arith.constant 0.000000e+00 : f32
    %86 = vector.broadcast %cst_34 : f32 to vector<16x16xf32>
    %87 = vector.broadcast %cst_35 : f32 to vector<16x16xf32>
    %88 = arith.select %85, %86, %87 : vector<16x16xi1>, vector<16x16xf32>
    %89 = arith.truncf %88 : vector<16x16xf32> to vector<16x16xbf16>
    %cst_36 = arith.constant dense<0.000000e+00> : vector<16x32xf32>
    %90 = tpu.matmul %89, %3, %cst_36 {dimension_numbers = #tpu.dot_dimension_numbers<[1], [0], [0], [1], [0, 0, 1, 1], [], []>} : vector<16x16xbf16>, vector<16x32xbf16>, vector<16x32xf32> -> vector<16x32xf32>
    %cst_37 = arith.constant dense<0.000000e+00> : vector<16x32xf32>
    %91 = tpu.matmul %89, %6, %cst_37 {dimension_numbers = #tpu.dot_dimension_numbers<[1], [0], [0], [1], [0, 0, 1, 1], [], []>} : vector<16x16xbf16>, vector<16x32xbf16>, vector<16x32xf32> -> vector<16x32xf32>
    %92 = arith.addf %90, %91 : vector<16x32xf32>
    %93 = arith.truncf %92 : vector<16x32xf32> to vector<16x32xbf16>
    %94 = arith.extf %93 : vector<16x32xbf16> to vector<16x32xf32>
    %95 = arith.subf %92, %94 : vector<16x32xf32>
    %96 = arith.truncf %95 : vector<16x32xf32> to vector<16x32xbf16>
    %cst_38 = arith.constant dense<0.000000e+00> : vector<16x64xf32>
    %97 = tpu.matmul %93, %38, %cst_38 {dimension_numbers = #tpu.dot_dimension_numbers<[1], [0], [0], [1], [0, 0, 1, 1], [], []>} : vector<16x32xbf16>, vector<32x64xbf16>, vector<16x64xf32> -> vector<16x64xf32>
    %cst_39 = arith.constant dense<0.000000e+00> : vector<16x64xf32>
    %98 = tpu.matmul %93, %41, %cst_39 {dimension_numbers = #tpu.dot_dimension_numbers<[1], [0], [0], [1], [0, 0, 1, 1], [], []>} : vector<16x32xbf16>, vector<32x64xbf16>, vector<16x64xf32> -> vector<16x64xf32>
    %99 = arith.addf %97, %98 : vector<16x64xf32>
    %cst_40 = arith.constant dense<0.000000e+00> : vector<16x64xf32>
    %100 = tpu.matmul %96, %38, %cst_40 {dimension_numbers = #tpu.dot_dimension_numbers<[1], [0], [0], [1], [0, 0, 1, 1], [], []>} : vector<16x32xbf16>, vector<32x64xbf16>, vector<16x64xf32> -> vector<16x64xf32>
    %101 = arith.addf %99, %100 : vector<16x64xf32>
    %102 = vector.extract_strided_slice %101 {offsets = [0, 0], sizes = [16, 32], strides = [1, 1]} : vector<16x64xf32> to vector<16x32xf32>
    %103 = arith.addf %21, %102 : vector<16x32xf32>
    %cst_41 = arith.constant dense<0.000000e+00> : vector<32xf32>
    %104 = vector.multi_reduction <add>, %103, %cst_41 [0] : vector<16x32xf32> to vector<32xf32>
    %105 = vector.shape_cast %104 : vector<32xf32> to vector<1x32xf32>
    %106 = arith.addf %72, %105 : vector<1x32xf32>
    %107 = arith.mulf %103, %103 : vector<16x32xf32>
    %cst_42 = arith.constant dense<0.000000e+00> : vector<32xf32>
    %108 = vector.multi_reduction <add>, %107, %cst_42 [0] : vector<16x32xf32> to vector<32xf32>
    %109 = vector.shape_cast %108 : vector<32xf32> to vector<1x32xf32>
    %110 = arith.addf %76, %109 : vector<1x32xf32>
    %111 = arith.maximumf %69, %103 : vector<16x32xf32>
    %112 = vector.extract_strided_slice %101 {offsets = [0, 32], sizes = [16, 32], strides = [1, 1]} : vector<16x64xf32> to vector<16x32xf32>
    %c0_43 = arith.constant 0 : index
    %c0_44 = arith.constant 0 : index
    %c0_45 = arith.constant 0 : index
    %113 = vector.load %arg25[%c0_43, %c0_44, %c0_45] : memref<3x16x32xf32, #tpu.memory_space<vmem>>, vector<1x16x32xf32>
    %114 = vector.shape_cast %113 : vector<1x16x32xf32> to vector<16x32xf32>
    %115 = arith.addf %114, %112 : vector<16x32xf32>
    %c0_46 = arith.constant 0 : index
    %c0_47 = arith.constant 0 : index
    %c0_48 = arith.constant 0 : index
    %116 = vector.load %arg25[%c0_46, %c0_47, %c0_48] : memref<3x16x32xf32, #tpu.memory_space<vmem>>, vector<1x16x32xf32>
    %117 = vector.shape_cast %116 : vector<1x16x32xf32> to vector<16x32xf32>
    %118 = vector.shape_cast %115 : vector<16x32xf32> to vector<1x16x32xf32>
    tpu.vector_store %arg25[%c0_46, %c0_47, %c0_48], %118 {strides = array<i32>} : memref<3x16x32xf32, #tpu.memory_space<vmem>>, vector<1x16x32xf32>,
    %c0_49 = arith.constant 0 : index
    %c32 = arith.constant 32 : index
    %c0_50 = arith.constant 0 : index
    %119 = vector.load %arg2[%c0_49, %c32, %c0_50] : memref<1x144x1xi32, #tpu.memory_space<vmem>>, vector<1x16x1xi32>
    %120 = vector.shape_cast %119 : vector<1x16x1xi32> to vector<16x1xi32>
    %121 = vector.broadcast %120 : vector<16x1xi32> to vector<16x16xi32>
    %122 = arith.cmpi eq, %2, %121 : vector<16x16xi32>
    %cst_51 = arith.constant 1.000000e+00 : f32
    %cst_52 = arith.constant 0.000000e+00 : f32
    %123 = vector.broadcast %cst_51 : f32 to vector<16x16xf32>
    %124 = vector.broadcast %cst_52 : f32 to vector<16x16xf32>
    %125 = arith.select %122, %123, %124 : vector<16x16xi1>, vector<16x16xf32>
    %126 = arith.truncf %125 : vector<16x16xf32> to vector<16x16xbf16>
    %cst_53 = arith.constant dense<0.000000e+00> : vector<16x32xf32>
    %127 = tpu.matmul %126, %3, %cst_53 {dimension_numbers = #tpu.dot_dimension_numbers<[1], [0], [0], [1], [0, 0, 1, 1], [], []>} : vector<16x16xbf16>, vector<16x32xbf16>, vector<16x32xf32> -> vector<16x32xf32>
    %cst_54 = arith.constant dense<0.000000e+00> : vector<16x32xf32>
    %128 = tpu.matmul %126, %6, %cst_54 {dimension_numbers = #tpu.dot_dimension_numbers<[1], [0], [0], [1], [0, 0, 1, 1], [], []>} : vector<16x16xbf16>, vector<16x32xbf16>, vector<16x32xf32> -> vector<16x32xf32>
    %129 = arith.addf %127, %128 : vector<16x32xf32>
    %130 = arith.truncf %129 : vector<16x32xf32> to vector<16x32xbf16>
    %131 = arith.extf %130 : vector<16x32xbf16> to vector<16x32xf32>
    %132 = arith.subf %129, %131 : vector<16x32xf32>
    %133 = arith.truncf %132 : vector<16x32xf32> to vector<16x32xbf16>
    %cst_55 = arith.constant dense<0.000000e+00> : vector<16x64xf32>
    %134 = tpu.matmul %130, %44, %cst_55 {dimension_numbers = #tpu.dot_dimension_numbers<[1], [0], [0], [1], [0, 0, 1, 1], [], []>} : vector<16x32xbf16>, vector<32x64xbf16>, vector<16x64xf32> -> vector<16x64xf32>
    %cst_56 = arith.constant dense<0.000000e+00> : vector<16x64xf32>
    %135 = tpu.matmul %130, %47, %cst_56 {dimension_numbers = #tpu.dot_dimension_numbers<[1], [0], [0], [1], [0, 0, 1, 1], [], []>} : vector<16x32xbf16>, vector<32x64xbf16>, vector<16x64xf32> -> vector<16x64xf32>
    %136 = arith.addf %134, %135 : vector<16x64xf32>
    %cst_57 = arith.constant dense<0.000000e+00> : vector<16x64xf32>
    %137 = tpu.matmul %133, %44, %cst_57 {dimension_numbers = #tpu.dot_dimension_numbers<[1], [0], [0], [1], [0, 0, 1, 1], [], []>} : vector<16x32xbf16>, vector<32x64xbf16>, vector<16x64xf32> -> vector<16x64xf32>
    %138 = arith.addf %136, %137 : vector<16x64xf32>
    %139 = vector.extract_strided_slice %138 {offsets = [0, 0], sizes = [16, 32], strides = [1, 1]} : vector<16x64xf32> to vector<16x32xf32>
    %140 = arith.addf %21, %139 : vector<16x32xf32>
    %cst_58 = arith.constant dense<0.000000e+00> : vector<32xf32>
    %141 = vector.multi_reduction <add>, %140, %cst_58 [0] : vector<16x32xf32> to vector<32xf32>
    %142 = vector.shape_cast %141 : vector<32xf32> to vector<1x32xf32>
    %143 = arith.addf %106, %142 : vector<1x32xf32>
    %144 = arith.mulf %140, %140 : vector<16x32xf32>
    %cst_59 = arith.constant dense<0.000000e+00> : vector<32xf32>
    %145 = vector.multi_reduction <add>, %144, %cst_59 [0] : vector<16x32xf32> to vector<32xf32>
    %146 = vector.shape_cast %145 : vector<32xf32> to vector<1x32xf32>
    %147 = arith.addf %110, %146 : vector<1x32xf32>
    %148 = arith.maximumf %111, %140 : vector<16x32xf32>
    %149 = vector.extract_strided_slice %138 {offsets = [0, 32], sizes = [16, 32], strides = [1, 1]} : vector<16x64xf32> to vector<16x32xf32>
    %c0_60 = arith.constant 0 : index
    %c0_61 = arith.constant 0 : index
    %c0_62 = arith.constant 0 : index
    %150 = vector.load %arg25[%c0_60, %c0_61, %c0_62] : memref<3x16x32xf32, #tpu.memory_space<vmem>>, vector<1x16x32xf32>
    %151 = vector.shape_cast %150 : vector<1x16x32xf32> to vector<16x32xf32>
    %152 = arith.addf %151, %149 : vector<16x32xf32>
    %c0_63 = arith.constant 0 : index
    %c0_64 = arith.constant 0 : index
    %c0_65 = arith.constant 0 : index
    %153 = vector.load %arg25[%c0_63, %c0_64, %c0_65] : memref<3x16x32xf32, #tpu.memory_space<vmem>>, vector<1x16x32xf32>
    %154 = vector.shape_cast %153 : vector<1x16x32xf32> to vector<16x32xf32>
    %155 = vector.shape_cast %152 : vector<16x32xf32> to vector<1x16x32xf32>
    tpu.vector_store %arg25[%c0_63, %c0_64, %c0_65], %155 {strides = array<i32>} : memref<3x16x32xf32, #tpu.memory_space<vmem>>, vector<1x16x32xf32>,
    %c0_66 = arith.constant 0 : index
    %c48 = arith.constant 48 : index
    %c0_67 = arith.constant 0 : index
    %156 = vector.load %arg2[%c0_66, %c48, %c0_67] : memref<1x144x1xi32, #tpu.memory_space<vmem>>, vector<1x16x1xi32>
    %157 = vector.shape_cast %156 : vector<1x16x1xi32> to vector<16x1xi32>
    %158 = vector.broadcast %157 : vector<16x1xi32> to vector<16x16xi32>
    %159 = arith.cmpi eq, %2, %158 : vector<16x16xi32>
    %cst_68 = arith.constant 1.000000e+00 : f32
    %cst_69 = arith.constant 0.000000e+00 : f32
    %160 = vector.broadcast %cst_68 : f32 to vector<16x16xf32>
    %161 = vector.broadcast %cst_69 : f32 to vector<16x16xf32>
    %162 = arith.select %159, %160, %161 : vector<16x16xi1>, vector<16x16xf32>
    %163 = arith.truncf %162 : vector<16x16xf32> to vector<16x16xbf16>
    %cst_70 = arith.constant dense<0.000000e+00> : vector<16x32xf32>
    %164 = tpu.matmul %163, %3, %cst_70 {dimension_numbers = #tpu.dot_dimension_numbers<[1], [0], [0], [1], [0, 0, 1, 1], [], []>} : vector<16x16xbf16>, vector<16x32xbf16>, vector<16x32xf32> -> vector<16x32xf32>
    %cst_71 = arith.constant dense<0.000000e+00> : vector<16x32xf32>
    %165 = tpu.matmul %163, %6, %cst_71 {dimension_numbers = #tpu.dot_dimension_numbers<[1], [0], [0], [1], [0, 0, 1, 1], [], []>} : vector<16x16xbf16>, vector<16x32xbf16>, vector<16x32xf32> -> vector<16x32xf32>
    %166 = arith.addf %164, %165 : vector<16x32xf32>
    %167 = arith.truncf %166 : vector<16x32xf32> to vector<16x32xbf16>
    %168 = arith.extf %167 : vector<16x32xbf16> to vector<16x32xf32>
    %169 = arith.subf %166, %168 : vector<16x32xf32>
    %170 = arith.truncf %169 : vector<16x32xf32> to vector<16x32xbf16>
    %cst_72 = arith.constant dense<0.000000e+00> : vector<16x64xf32>
    %171 = tpu.matmul %167, %32, %cst_72 {dimension_numbers = #tpu.dot_dimension_numbers<[1], [0], [0], [1], [0, 0, 1, 1], [], []>} : vector<16x32xbf16>, vector<32x64xbf16>, vector<16x64xf32> -> vector<16x64xf32>
    %cst_73 = arith.constant dense<0.000000e+00> : vector<16x64xf32>
    %172 = tpu.matmul %167, %35, %cst_73 {dimension_numbers = #tpu.dot_dimension_numbers<[1], [0], [0], [1], [0, 0, 1, 1], [], []>} : vector<16x32xbf16>, vector<32x64xbf16>, vector<16x64xf32> -> vector<16x64xf32>
    %173 = arith.addf %171, %172 : vector<16x64xf32>
    %cst_74 = arith.constant dense<0.000000e+00> : vector<16x64xf32>
    %174 = tpu.matmul %170, %32, %cst_74 {dimension_numbers = #tpu.dot_dimension_numbers<[1], [0], [0], [1], [0, 0, 1, 1], [], []>} : vector<16x32xbf16>, vector<32x64xbf16>, vector<16x64xf32> -> vector<16x64xf32>
    %175 = arith.addf %173, %174 : vector<16x64xf32>
    %176 = vector.extract_strided_slice %175 {offsets = [0, 0], sizes = [16, 32], strides = [1, 1]} : vector<16x64xf32> to vector<16x32xf32>
    %177 = arith.addf %21, %176 : vector<16x32xf32>
    %cst_75 = arith.constant dense<0.000000e+00> : vector<32xf32>
    %178 = vector.multi_reduction <add>, %177, %cst_75 [0] : vector<16x32xf32> to vector<32xf32>
    %179 = vector.shape_cast %178 : vector<32xf32> to vector<1x32xf32>
    %180 = arith.addf %143, %179 : vector<1x32xf32>
    %181 = arith.mulf %177, %177 : vector<16x32xf32>
    %cst_76 = arith.constant dense<0.000000e+00> : vector<32xf32>
    %182 = vector.multi_reduction <add>, %181, %cst_76 [0] : vector<16x32xf32> to vector<32xf32>
    %183 = vector.shape_cast %182 : vector<32xf32> to vector<1x32xf32>
    %184 = arith.addf %147, %183 : vector<1x32xf32>
    %185 = arith.maximumf %148, %177 : vector<16x32xf32>
    %186 = vector.extract_strided_slice %175 {offsets = [0, 32], sizes = [16, 32], strides = [1, 1]} : vector<16x64xf32> to vector<16x32xf32>
    %187 = arith.addf %25, %186 : vector<16x32xf32>
    %c1_77 = arith.constant 1 : index
    %c0_78 = arith.constant 0 : index
    %c0_79 = arith.constant 0 : index
    %188 = vector.load %arg25[%c1_77, %c0_78, %c0_79] : memref<3x16x32xf32, #tpu.memory_space<vmem>>, vector<1x16x32xf32>
    %189 = vector.shape_cast %188 : vector<1x16x32xf32> to vector<16x32xf32>
    %190 = vector.shape_cast %187 : vector<16x32xf32> to vector<1x16x32xf32>
    tpu.vector_store %arg25[%c1_77, %c0_78, %c0_79], %190 {strides = array<i32>} : memref<3x16x32xf32, #tpu.memory_space<vmem>>, vector<1x16x32xf32>,
    %c0_80 = arith.constant 0 : index
    %c64 = arith.constant 64 : index
    %c0_81 = arith.constant 0 : index
    %191 = vector.load %arg2[%c0_80, %c64, %c0_81] : memref<1x144x1xi32, #tpu.memory_space<vmem>>, vector<1x16x1xi32>
    %192 = vector.shape_cast %191 : vector<1x16x1xi32> to vector<16x1xi32>
    %193 = vector.broadcast %192 : vector<16x1xi32> to vector<16x16xi32>
    %194 = arith.cmpi eq, %2, %193 : vector<16x16xi32>
    %cst_82 = arith.constant 1.000000e+00 : f32
    %cst_83 = arith.constant 0.000000e+00 : f32
    %195 = vector.broadcast %cst_82 : f32 to vector<16x16xf32>
    %196 = vector.broadcast %cst_83 : f32 to vector<16x16xf32>
    %197 = arith.select %194, %195, %196 : vector<16x16xi1>, vector<16x16xf32>
    %198 = arith.truncf %197 : vector<16x16xf32> to vector<16x16xbf16>
    %cst_84 = arith.constant dense<0.000000e+00> : vector<16x32xf32>
    %199 = tpu.matmul %198, %3, %cst_84 {dimension_numbers = #tpu.dot_dimension_numbers<[1], [0], [0], [1], [0, 0, 1, 1], [], []>} : vector<16x16xbf16>, vector<16x32xbf16>, vector<16x32xf32> -> vector<16x32xf32>
    %cst_85 = arith.constant dense<0.000000e+00> : vector<16x32xf32>
    %200 = tpu.matmul %198, %6, %cst_85 {dimension_numbers = #tpu.dot_dimension_numbers<[1], [0], [0], [1], [0, 0, 1, 1], [], []>} : vector<16x16xbf16>, vector<16x32xbf16>, vector<16x32xf32> -> vector<16x32xf32>
    %201 = arith.addf %199, %200 : vector<16x32xf32>
    %202 = arith.truncf %201 : vector<16x32xf32> to vector<16x32xbf16>
    %203 = arith.extf %202 : vector<16x32xbf16> to vector<16x32xf32>
    %204 = arith.subf %201, %203 : vector<16x32xf32>
    %205 = arith.truncf %204 : vector<16x32xf32> to vector<16x32xbf16>
    %cst_86 = arith.constant dense<0.000000e+00> : vector<16x64xf32>
    %206 = tpu.matmul %202, %38, %cst_86 {dimension_numbers = #tpu.dot_dimension_numbers<[1], [0], [0], [1], [0, 0, 1, 1], [], []>} : vector<16x32xbf16>, vector<32x64xbf16>, vector<16x64xf32> -> vector<16x64xf32>
    %cst_87 = arith.constant dense<0.000000e+00> : vector<16x64xf32>
    %207 = tpu.matmul %202, %41, %cst_87 {dimension_numbers = #tpu.dot_dimension_numbers<[1], [0], [0], [1], [0, 0, 1, 1], [], []>} : vector<16x32xbf16>, vector<32x64xbf16>, vector<16x64xf32> -> vector<16x64xf32>
    %208 = arith.addf %206, %207 : vector<16x64xf32>
    %cst_88 = arith.constant dense<0.000000e+00> : vector<16x64xf32>
    %209 = tpu.matmul %205, %38, %cst_88 {dimension_numbers = #tpu.dot_dimension_numbers<[1], [0], [0], [1], [0, 0, 1, 1], [], []>} : vector<16x32xbf16>, vector<32x64xbf16>, vector<16x64xf32> -> vector<16x64xf32>
    %210 = arith.addf %208, %209 : vector<16x64xf32>
    %211 = vector.extract_strided_slice %210 {offsets = [0, 0], sizes = [16, 32], strides = [1, 1]} : vector<16x64xf32> to vector<16x32xf32>
    %212 = arith.addf %21, %211 : vector<16x32xf32>
    %cst_89 = arith.constant dense<0.000000e+00> : vector<32xf32>
    %213 = vector.multi_reduction <add>, %212, %cst_89 [0] : vector<16x32xf32> to vector<32xf32>
    %214 = vector.shape_cast %213 : vector<32xf32> to vector<1x32xf32>
    %215 = arith.addf %180, %214 : vector<1x32xf32>
    %216 = arith.mulf %212, %212 : vector<16x32xf32>
    %cst_90 = arith.constant dense<0.000000e+00> : vector<32xf32>
    %217 = vector.multi_reduction <add>, %216, %cst_90 [0] : vector<16x32xf32> to vector<32xf32>
    %218 = vector.shape_cast %217 : vector<32xf32> to vector<1x32xf32>
    %219 = arith.addf %184, %218 : vector<1x32xf32>
    %220 = arith.maximumf %185, %212 : vector<16x32xf32>
    %221 = vector.extract_strided_slice %210 {offsets = [0, 32], sizes = [16, 32], strides = [1, 1]} : vector<16x64xf32> to vector<16x32xf32>
    %c1_91 = arith.constant 1 : index
    %c0_92 = arith.constant 0 : index
    %c0_93 = arith.constant 0 : index
    %222 = vector.load %arg25[%c1_91, %c0_92, %c0_93] : memref<3x16x32xf32, #tpu.memory_space<vmem>>, vector<1x16x32xf32>
    %223 = vector.shape_cast %222 : vector<1x16x32xf32> to vector<16x32xf32>
    %224 = arith.addf %223, %221 : vector<16x32xf32>
    %c1_94 = arith.constant 1 : index
    %c0_95 = arith.constant 0 : index
    %c0_96 = arith.constant 0 : index
    %225 = vector.load %arg25[%c1_94, %c0_95, %c0_96] : memref<3x16x32xf32, #tpu.memory_space<vmem>>, vector<1x16x32xf32>
    %226 = vector.shape_cast %225 : vector<1x16x32xf32> to vector<16x32xf32>
    %227 = vector.shape_cast %224 : vector<16x32xf32> to vector<1x16x32xf32>
    tpu.vector_store %arg25[%c1_94, %c0_95, %c0_96], %227 {strides = array<i32>} : memref<3x16x32xf32, #tpu.memory_space<vmem>>, vector<1x16x32xf32>,
    %c0_97 = arith.constant 0 : index
    %c80 = arith.constant 80 : index
    %c0_98 = arith.constant 0 : index
    %228 = vector.load %arg2[%c0_97, %c80, %c0_98] : memref<1x144x1xi32, #tpu.memory_space<vmem>>, vector<1x16x1xi32>
    %229 = vector.shape_cast %228 : vector<1x16x1xi32> to vector<16x1xi32>
    %230 = vector.broadcast %229 : vector<16x1xi32> to vector<16x16xi32>
    %231 = arith.cmpi eq, %2, %230 : vector<16x16xi32>
    %cst_99 = arith.constant 1.000000e+00 : f32
    %cst_100 = arith.constant 0.000000e+00 : f32
    %232 = vector.broadcast %cst_99 : f32 to vector<16x16xf32>
    %233 = vector.broadcast %cst_100 : f32 to vector<16x16xf32>
    %234 = arith.select %231, %232, %233 : vector<16x16xi1>, vector<16x16xf32>
    %235 = arith.truncf %234 : vector<16x16xf32> to vector<16x16xbf16>
    %cst_101 = arith.constant dense<0.000000e+00> : vector<16x32xf32>
    %236 = tpu.matmul %235, %3, %cst_101 {dimension_numbers = #tpu.dot_dimension_numbers<[1], [0], [0], [1], [0, 0, 1, 1], [], []>} : vector<16x16xbf16>, vector<16x32xbf16>, vector<16x32xf32> -> vector<16x32xf32>
    %cst_102 = arith.constant dense<0.000000e+00> : vector<16x32xf32>
    %237 = tpu.matmul %235, %6, %cst_102 {dimension_numbers = #tpu.dot_dimension_numbers<[1], [0], [0], [1], [0, 0, 1, 1], [], []>} : vector<16x16xbf16>, vector<16x32xbf16>, vector<16x32xf32> -> vector<16x32xf32>
    %238 = arith.addf %236, %237 : vector<16x32xf32>
    %239 = arith.truncf %238 : vector<16x32xf32> to vector<16x32xbf16>
    %240 = arith.extf %239 : vector<16x32xbf16> to vector<16x32xf32>
    %241 = arith.subf %238, %240 : vector<16x32xf32>
    %242 = arith.truncf %241 : vector<16x32xf32> to vector<16x32xbf16>
    %cst_103 = arith.constant dense<0.000000e+00> : vector<16x64xf32>
    %243 = tpu.matmul %239, %44, %cst_103 {dimension_numbers = #tpu.dot_dimension_numbers<[1], [0], [0], [1], [0, 0, 1, 1], [], []>} : vector<16x32xbf16>, vector<32x64xbf16>, vector<16x64xf32> -> vector<16x64xf32>
    %cst_104 = arith.constant dense<0.000000e+00> : vector<16x64xf32>
    %244 = tpu.matmul %239, %47, %cst_104 {dimension_numbers = #tpu.dot_dimension_numbers<[1], [0], [0], [1], [0, 0, 1, 1], [], []>} : vector<16x32xbf16>, vector<32x64xbf16>, vector<16x64xf32> -> vector<16x64xf32>
    %245 = arith.addf %243, %244 : vector<16x64xf32>
    %cst_105 = arith.constant dense<0.000000e+00> : vector<16x64xf32>
    %246 = tpu.matmul %242, %44, %cst_105 {dimension_numbers = #tpu.dot_dimension_numbers<[1], [0], [0], [1], [0, 0, 1, 1], [], []>} : vector<16x32xbf16>, vector<32x64xbf16>, vector<16x64xf32> -> vector<16x64xf32>
    %247 = arith.addf %245, %246 : vector<16x64xf32>
    %248 = vector.extract_strided_slice %247 {offsets = [0, 0], sizes = [16, 32], strides = [1, 1]} : vector<16x64xf32> to vector<16x32xf32>
    %249 = arith.addf %21, %248 : vector<16x32xf32>
    %cst_106 = arith.constant dense<0.000000e+00> : vector<32xf32>
    %250 = vector.multi_reduction <add>, %249, %cst_106 [0] : vector<16x32xf32> to vector<32xf32>
    %251 = vector.shape_cast %250 : vector<32xf32> to vector<1x32xf32>
    %252 = arith.addf %215, %251 : vector<1x32xf32>
    %253 = arith.mulf %249, %249 : vector<16x32xf32>
    %cst_107 = arith.constant dense<0.000000e+00> : vector<32xf32>
    %254 = vector.multi_reduction <add>, %253, %cst_107 [0] : vector<16x32xf32> to vector<32xf32>
    %255 = vector.shape_cast %254 : vector<32xf32> to vector<1x32xf32>
    %256 = arith.addf %219, %255 : vector<1x32xf32>
    %257 = arith.maximumf %220, %249 : vector<16x32xf32>
    %258 = vector.extract_strided_slice %247 {offsets = [0, 32], sizes = [16, 32], strides = [1, 1]} : vector<16x64xf32> to vector<16x32xf32>
    %c1_108 = arith.constant 1 : index
    %c0_109 = arith.constant 0 : index
    %c0_110 = arith.constant 0 : index
    %259 = vector.load %arg25[%c1_108, %c0_109, %c0_110] : memref<3x16x32xf32, #tpu.memory_space<vmem>>, vector<1x16x32xf32>
    %260 = vector.shape_cast %259 : vector<1x16x32xf32> to vector<16x32xf32>
    %261 = arith.addf %260, %258 : vector<16x32xf32>
    %c1_111 = arith.constant 1 : index
    %c0_112 = arith.constant 0 : index
    %c0_113 = arith.constant 0 : index
    %262 = vector.load %arg25[%c1_111, %c0_112, %c0_113] : memref<3x16x32xf32, #tpu.memory_space<vmem>>, vector<1x16x32xf32>
    %263 = vector.shape_cast %262 : vector<1x16x32xf32> to vector<16x32xf32>
    %264 = vector.shape_cast %261 : vector<16x32xf32> to vector<1x16x32xf32>
    tpu.vector_store %arg25[%c1_111, %c0_112, %c0_113], %264 {strides = array<i32>} : memref<3x16x32xf32, #tpu.memory_space<vmem>>, vector<1x16x32xf32>,
    %c0_114 = arith.constant 0 : index
    %c96 = arith.constant 96 : index
    %c0_115 = arith.constant 0 : index
    %265 = vector.load %arg2[%c0_114, %c96, %c0_115] : memref<1x144x1xi32, #tpu.memory_space<vmem>>, vector<1x16x1xi32>
    %266 = vector.shape_cast %265 : vector<1x16x1xi32> to vector<16x1xi32>
    %267 = vector.broadcast %266 : vector<16x1xi32> to vector<16x16xi32>
    %268 = arith.cmpi eq, %2, %267 : vector<16x16xi32>
    %cst_116 = arith.constant 1.000000e+00 : f32
    %cst_117 = arith.constant 0.000000e+00 : f32
    %269 = vector.broadcast %cst_116 : f32 to vector<16x16xf32>
    %270 = vector.broadcast %cst_117 : f32 to vector<16x16xf32>
    %271 = arith.select %268, %269, %270 : vector<16x16xi1>, vector<16x16xf32>
    %272 = arith.truncf %271 : vector<16x16xf32> to vector<16x16xbf16>
    %cst_118 = arith.constant dense<0.000000e+00> : vector<16x32xf32>
    %273 = tpu.matmul %272, %3, %cst_118 {dimension_numbers = #tpu.dot_dimension_numbers<[1], [0], [0], [1], [0, 0, 1, 1], [], []>} : vector<16x16xbf16>, vector<16x32xbf16>, vector<16x32xf32> -> vector<16x32xf32>
    %cst_119 = arith.constant dense<0.000000e+00> : vector<16x32xf32>
    %274 = tpu.matmul %272, %6, %cst_119 {dimension_numbers = #tpu.dot_dimension_numbers<[1], [0], [0], [1], [0, 0, 1, 1], [], []>} : vector<16x16xbf16>, vector<16x32xbf16>, vector<16x32xf32> -> vector<16x32xf32>
    %275 = arith.addf %273, %274 : vector<16x32xf32>
    %276 = arith.truncf %275 : vector<16x32xf32> to vector<16x32xbf16>
    %277 = arith.extf %276 : vector<16x32xbf16> to vector<16x32xf32>
    %278 = arith.subf %275, %277 : vector<16x32xf32>
    %279 = arith.truncf %278 : vector<16x32xf32> to vector<16x32xbf16>
    %cst_120 = arith.constant dense<0.000000e+00> : vector<16x64xf32>
    %280 = tpu.matmul %276, %32, %cst_120 {dimension_numbers = #tpu.dot_dimension_numbers<[1], [0], [0], [1], [0, 0, 1, 1], [], []>} : vector<16x32xbf16>, vector<32x64xbf16>, vector<16x64xf32> -> vector<16x64xf32>
    %cst_121 = arith.constant dense<0.000000e+00> : vector<16x64xf32>
    %281 = tpu.matmul %276, %35, %cst_121 {dimension_numbers = #tpu.dot_dimension_numbers<[1], [0], [0], [1], [0, 0, 1, 1], [], []>} : vector<16x32xbf16>, vector<32x64xbf16>, vector<16x64xf32> -> vector<16x64xf32>
    %282 = arith.addf %280, %281 : vector<16x64xf32>
    %cst_122 = arith.constant dense<0.000000e+00> : vector<16x64xf32>
    %283 = tpu.matmul %279, %32, %cst_122 {dimension_numbers = #tpu.dot_dimension_numbers<[1], [0], [0], [1], [0, 0, 1, 1], [], []>} : vector<16x32xbf16>, vector<32x64xbf16>, vector<16x64xf32> -> vector<16x64xf32>
    %284 = arith.addf %282, %283 : vector<16x64xf32>
    %285 = vector.extract_strided_slice %284 {offsets = [0, 0], sizes = [16, 32], strides = [1, 1]} : vector<16x64xf32> to vector<16x32xf32>
    %286 = arith.addf %21, %285 : vector<16x32xf32>
    %cst_123 = arith.constant dense<0.000000e+00> : vector<32xf32>
    %287 = vector.multi_reduction <add>, %286, %cst_123 [0] : vector<16x32xf32> to vector<32xf32>
    %288 = vector.shape_cast %287 : vector<32xf32> to vector<1x32xf32>
    %289 = arith.addf %252, %288 : vector<1x32xf32>
    %290 = arith.mulf %286, %286 : vector<16x32xf32>
    %cst_124 = arith.constant dense<0.000000e+00> : vector<32xf32>
    %291 = vector.multi_reduction <add>, %290, %cst_124 [0] : vector<16x32xf32> to vector<32xf32>
    %292 = vector.shape_cast %291 : vector<32xf32> to vector<1x32xf32>
    %293 = arith.addf %256, %292 : vector<1x32xf32>
    %294 = arith.maximumf %257, %286 : vector<16x32xf32>
    %295 = vector.extract_strided_slice %284 {offsets = [0, 32], sizes = [16, 32], strides = [1, 1]} : vector<16x64xf32> to vector<16x32xf32>
    %296 = arith.addf %25, %295 : vector<16x32xf32>
    %c2_125 = arith.constant 2 : index
    %c0_126 = arith.constant 0 : index
    %c0_127 = arith.constant 0 : index
    %297 = vector.load %arg25[%c2_125, %c0_126, %c0_127] : memref<3x16x32xf32, #tpu.memory_space<vmem>>, vector<1x16x32xf32>
    %298 = vector.shape_cast %297 : vector<1x16x32xf32> to vector<16x32xf32>
    %299 = vector.shape_cast %296 : vector<16x32xf32> to vector<1x16x32xf32>
    tpu.vector_store %arg25[%c2_125, %c0_126, %c0_127], %299 {strides = array<i32>} : memref<3x16x32xf32, #tpu.memory_space<vmem>>, vector<1x16x32xf32>,
    %c0_128 = arith.constant 0 : index
    %c112 = arith.constant 112 : index
    %c0_129 = arith.constant 0 : index
    %300 = vector.load %arg2[%c0_128, %c112, %c0_129] : memref<1x144x1xi32, #tpu.memory_space<vmem>>, vector<1x16x1xi32>
    %301 = vector.shape_cast %300 : vector<1x16x1xi32> to vector<16x1xi32>
    %302 = vector.broadcast %301 : vector<16x1xi32> to vector<16x16xi32>
    %303 = arith.cmpi eq, %2, %302 : vector<16x16xi32>
    %cst_130 = arith.constant 1.000000e+00 : f32
    %cst_131 = arith.constant 0.000000e+00 : f32
    %304 = vector.broadcast %cst_130 : f32 to vector<16x16xf32>
    %305 = vector.broadcast %cst_131 : f32 to vector<16x16xf32>
    %306 = arith.select %303, %304, %305 : vector<16x16xi1>, vector<16x16xf32>
    %307 = arith.truncf %306 : vector<16x16xf32> to vector<16x16xbf16>
    %cst_132 = arith.constant dense<0.000000e+00> : vector<16x32xf32>
    %308 = tpu.matmul %307, %3, %cst_132 {dimension_numbers = #tpu.dot_dimension_numbers<[1], [0], [0], [1], [0, 0, 1, 1], [], []>} : vector<16x16xbf16>, vector<16x32xbf16>, vector<16x32xf32> -> vector<16x32xf32>
    %cst_133 = arith.constant dense<0.000000e+00> : vector<16x32xf32>
    %309 = tpu.matmul %307, %6, %cst_133 {dimension_numbers = #tpu.dot_dimension_numbers<[1], [0], [0], [1], [0, 0, 1, 1], [], []>} : vector<16x16xbf16>, vector<16x32xbf16>, vector<16x32xf32> -> vector<16x32xf32>
    %310 = arith.addf %308, %309 : vector<16x32xf32>
    %311 = arith.truncf %310 : vector<16x32xf32> to vector<16x32xbf16>
    %312 = arith.extf %311 : vector<16x32xbf16> to vector<16x32xf32>
    %313 = arith.subf %310, %312 : vector<16x32xf32>
    %314 = arith.truncf %313 : vector<16x32xf32> to vector<16x32xbf16>
    %cst_134 = arith.constant dense<0.000000e+00> : vector<16x64xf32>
    %315 = tpu.matmul %311, %38, %cst_134 {dimension_numbers = #tpu.dot_dimension_numbers<[1], [0], [0], [1], [0, 0, 1, 1], [], []>} : vector<16x32xbf16>, vector<32x64xbf16>, vector<16x64xf32> -> vector<16x64xf32>
    %cst_135 = arith.constant dense<0.000000e+00> : vector<16x64xf32>
    %316 = tpu.matmul %311, %41, %cst_135 {dimension_numbers = #tpu.dot_dimension_numbers<[1], [0], [0], [1], [0, 0, 1, 1], [], []>} : vector<16x32xbf16>, vector<32x64xbf16>, vector<16x64xf32> -> vector<16x64xf32>
    %317 = arith.addf %315, %316 : vector<16x64xf32>
    %cst_136 = arith.constant dense<0.000000e+00> : vector<16x64xf32>
    %318 = tpu.matmul %314, %38, %cst_136 {dimension_numbers = #tpu.dot_dimension_numbers<[1], [0], [0], [1], [0, 0, 1, 1], [], []>} : vector<16x32xbf16>, vector<32x64xbf16>, vector<16x64xf32> -> vector<16x64xf32>
    %319 = arith.addf %317, %318 : vector<16x64xf32>
    %320 = vector.extract_strided_slice %319 {offsets = [0, 0], sizes = [16, 32], strides = [1, 1]} : vector<16x64xf32> to vector<16x32xf32>
    %321 = arith.addf %21, %320 : vector<16x32xf32>
    %cst_137 = arith.constant dense<0.000000e+00> : vector<32xf32>
    %322 = vector.multi_reduction <add>, %321, %cst_137 [0] : vector<16x32xf32> to vector<32xf32>
    %323 = vector.shape_cast %322 : vector<32xf32> to vector<1x32xf32>
    %324 = arith.addf %289, %323 : vector<1x32xf32>
    %325 = arith.mulf %321, %321 : vector<16x32xf32>
    %cst_138 = arith.constant dense<0.000000e+00> : vector<32xf32>
    %326 = vector.multi_reduction <add>, %325, %cst_138 [0] : vector<16x32xf32> to vector<32xf32>
    %327 = vector.shape_cast %326 : vector<32xf32> to vector<1x32xf32>
    %328 = arith.addf %293, %327 : vector<1x32xf32>
    %329 = arith.maximumf %294, %321 : vector<16x32xf32>
    %330 = vector.extract_strided_slice %319 {offsets = [0, 32], sizes = [16, 32], strides = [1, 1]} : vector<16x64xf32> to vector<16x32xf32>
    %c2_139 = arith.constant 2 : index
    %c0_140 = arith.constant 0 : index
    %c0_141 = arith.constant 0 : index
    %331 = vector.load %arg25[%c2_139, %c0_140, %c0_141] : memref<3x16x32xf32, #tpu.memory_space<vmem>>, vector<1x16x32xf32>
    %332 = vector.shape_cast %331 : vector<1x16x32xf32> to vector<16x32xf32>
    %333 = arith.addf %332, %330 : vector<16x32xf32>
    %c2_142 = arith.constant 2 : index
    %c0_143 = arith.constant 0 : index
    %c0_144 = arith.constant 0 : index
    %334 = vector.load %arg25[%c2_142, %c0_143, %c0_144] : memref<3x16x32xf32, #tpu.memory_space<vmem>>, vector<1x16x32xf32>
    %335 = vector.shape_cast %334 : vector<1x16x32xf32> to vector<16x32xf32>
    %336 = vector.shape_cast %333 : vector<16x32xf32> to vector<1x16x32xf32>
    tpu.vector_store %arg25[%c2_142, %c0_143, %c0_144], %336 {strides = array<i32>} : memref<3x16x32xf32, #tpu.memory_space<vmem>>, vector<1x16x32xf32>,
    %c0_145 = arith.constant 0 : index
    %c128 = arith.constant 128 : index
    %c0_146 = arith.constant 0 : index
    %337 = vector.load %arg2[%c0_145, %c128, %c0_146] : memref<1x144x1xi32, #tpu.memory_space<vmem>>, vector<1x16x1xi32>
    %338 = vector.shape_cast %337 : vector<1x16x1xi32> to vector<16x1xi32>
    %339 = vector.broadcast %338 : vector<16x1xi32> to vector<16x16xi32>
    %340 = arith.cmpi eq, %2, %339 : vector<16x16xi32>
    %cst_147 = arith.constant 1.000000e+00 : f32
    %cst_148 = arith.constant 0.000000e+00 : f32
    %341 = vector.broadcast %cst_147 : f32 to vector<16x16xf32>
    %342 = vector.broadcast %cst_148 : f32 to vector<16x16xf32>
    %343 = arith.select %340, %341, %342 : vector<16x16xi1>, vector<16x16xf32>
    %344 = arith.truncf %343 : vector<16x16xf32> to vector<16x16xbf16>
    %cst_149 = arith.constant dense<0.000000e+00> : vector<16x32xf32>
    %345 = tpu.matmul %344, %3, %cst_149 {dimension_numbers = #tpu.dot_dimension_numbers<[1], [0], [0], [1], [0, 0, 1, 1], [], []>} : vector<16x16xbf16>, vector<16x32xbf16>, vector<16x32xf32> -> vector<16x32xf32>
    %cst_150 = arith.constant dense<0.000000e+00> : vector<16x32xf32>
    %346 = tpu.matmul %344, %6, %cst_150 {dimension_numbers = #tpu.dot_dimension_numbers<[1], [0], [0], [1], [0, 0, 1, 1], [], []>} : vector<16x16xbf16>, vector<16x32xbf16>, vector<16x32xf32> -> vector<16x32xf32>
    %347 = arith.addf %345, %346 : vector<16x32xf32>
    %348 = arith.truncf %347 : vector<16x32xf32> to vector<16x32xbf16>
    %349 = arith.extf %348 : vector<16x32xbf16> to vector<16x32xf32>
    %350 = arith.subf %347, %349 : vector<16x32xf32>
    %351 = arith.truncf %350 : vector<16x32xf32> to vector<16x32xbf16>
    %cst_151 = arith.constant dense<0.000000e+00> : vector<16x64xf32>
    %352 = tpu.matmul %348, %44, %cst_151 {dimension_numbers = #tpu.dot_dimension_numbers<[1], [0], [0], [1], [0, 0, 1, 1], [], []>} : vector<16x32xbf16>, vector<32x64xbf16>, vector<16x64xf32> -> vector<16x64xf32>
    %cst_152 = arith.constant dense<0.000000e+00> : vector<16x64xf32>
    %353 = tpu.matmul %348, %47, %cst_152 {dimension_numbers = #tpu.dot_dimension_numbers<[1], [0], [0], [1], [0, 0, 1, 1], [], []>} : vector<16x32xbf16>, vector<32x64xbf16>, vector<16x64xf32> -> vector<16x64xf32>
    %354 = arith.addf %352, %353 : vector<16x64xf32>
    %cst_153 = arith.constant dense<0.000000e+00> : vector<16x64xf32>
    %355 = tpu.matmul %351, %44, %cst_153 {dimension_numbers = #tpu.dot_dimension_numbers<[1], [0], [0], [1], [0, 0, 1, 1], [], []>} : vector<16x32xbf16>, vector<32x64xbf16>, vector<16x64xf32> -> vector<16x64xf32>
    %356 = arith.addf %354, %355 : vector<16x64xf32>
    %357 = vector.extract_strided_slice %356 {offsets = [0, 0], sizes = [16, 32], strides = [1, 1]} : vector<16x64xf32> to vector<16x32xf32>
    %358 = arith.addf %21, %357 : vector<16x32xf32>
    %cst_154 = arith.constant dense<0.000000e+00> : vector<32xf32>
    %359 = vector.multi_reduction <add>, %358, %cst_154 [0] : vector<16x32xf32> to vector<32xf32>
    %360 = vector.shape_cast %359 : vector<32xf32> to vector<1x32xf32>
    %361 = arith.addf %324, %360 : vector<1x32xf32>
    %362 = arith.mulf %358, %358 : vector<16x32xf32>
    %cst_155 = arith.constant dense<0.000000e+00> : vector<32xf32>
    %363 = vector.multi_reduction <add>, %362, %cst_155 [0] : vector<16x32xf32> to vector<32xf32>
    %364 = vector.shape_cast %363 : vector<32xf32> to vector<1x32xf32>
    %365 = arith.addf %328, %364 : vector<1x32xf32>
    %366 = arith.maximumf %329, %358 : vector<16x32xf32>
    %367 = vector.extract_strided_slice %356 {offsets = [0, 32], sizes = [16, 32], strides = [1, 1]} : vector<16x64xf32> to vector<16x32xf32>
    %c2_156 = arith.constant 2 : index
    %c0_157 = arith.constant 0 : index
    %c0_158 = arith.constant 0 : index
    %368 = vector.load %arg25[%c2_156, %c0_157, %c0_158] : memref<3x16x32xf32, #tpu.memory_space<vmem>>, vector<1x16x32xf32>
    %369 = vector.shape_cast %368 : vector<1x16x32xf32> to vector<16x32xf32>
    %370 = arith.addf %369, %367 : vector<16x32xf32>
    %c2_159 = arith.constant 2 : index
    %c0_160 = arith.constant 0 : index
    %c0_161 = arith.constant 0 : index
    %371 = vector.load %arg25[%c2_159, %c0_160, %c0_161] : memref<3x16x32xf32, #tpu.memory_space<vmem>>, vector<1x16x32xf32>
    %372 = vector.shape_cast %371 : vector<1x16x32xf32> to vector<16x32xf32>
    %373 = vector.shape_cast %370 : vector<16x32xf32> to vector<1x16x32xf32>
    tpu.vector_store %arg25[%c2_159, %c0_160, %c0_161], %373 {strides = array<i32>} : memref<3x16x32xf32, #tpu.memory_space<vmem>>, vector<1x16x32xf32>,
    %cst_162 = arith.constant 1.440000e+02 : f32
    %374 = vector.broadcast %cst_162 : f32 to vector<1x32xf32>
    %375 = arith.divf %361, %374 : vector<1x32xf32>
    %cst_163 = arith.constant 1.440000e+02 : f32
    %376 = vector.broadcast %cst_163 : f32 to vector<1x32xf32>
    %377 = arith.divf %365, %376 : vector<1x32xf32>
    %378 = arith.mulf %375, %375 : vector<1x32xf32>
    %379 = arith.subf %377, %378 : vector<1x32xf32>
    %cst_164 = arith.constant 9.99999974E-6 : f32
    %380 = vector.broadcast %cst_164 : f32 to vector<1x32xf32>
    %381 = arith.addf %379, %380 : vector<1x32xf32>
    %382 = math.rsqrt %381 : vector<1x32xf32>
    %383 = vector.broadcast %375 : vector<1x32xf32> to vector<16x32xf32>
    %384 = arith.subf %366, %383 : vector<16x32xf32>
    %385 = vector.broadcast %382 : vector<1x32xf32> to vector<16x32xf32>
    %386 = arith.mulf %384, %385 : vector<16x32xf32>
    %cst_165 = arith.constant 2.000000e-01 : f32
    %387 = vector.broadcast %cst_165 : f32 to vector<16x32xf32>
    %388 = arith.mulf %387, %386 : vector<16x32xf32>
    %389 = arith.maximumf %386, %388 : vector<16x32xf32>
    %cst_166 = arith.constant 0.000000e+00 : f32
    %390 = vector.broadcast %cst_166 : f32 to vector<1x32xf32>
    %cst_167 = arith.constant 0.000000e+00 : f32
    %391 = vector.broadcast %cst_167 : f32 to vector<1x32xf32>
    %c0_168 = arith.constant 0 : index
    %c0_169 = arith.constant 0 : index
    %c0_170 = arith.constant 0 : index
    %392 = vector.load %arg25[%c0_168, %c0_169, %c0_170] : memref<3x16x32xf32, #tpu.memory_space<vmem>>, vector<1x16x32xf32>
    %393 = vector.shape_cast %392 : vector<1x16x32xf32> to vector<16x32xf32>
    %cst_171 = arith.constant dense<0.000000e+00> : vector<32xf32>
    %394 = vector.multi_reduction <add>, %393, %cst_171 [0] : vector<16x32xf32> to vector<32xf32>
    %395 = vector.shape_cast %394 : vector<32xf32> to vector<1x32xf32>
    %396 = arith.addf %390, %395 : vector<1x32xf32>
    %397 = arith.mulf %393, %393 : vector<16x32xf32>
    %cst_172 = arith.constant dense<0.000000e+00> : vector<32xf32>
    %398 = vector.multi_reduction <add>, %397, %cst_172 [0] : vector<16x32xf32> to vector<32xf32>
    %399 = vector.shape_cast %398 : vector<32xf32> to vector<1x32xf32>
    %400 = arith.addf %391, %399 : vector<1x32xf32>
    %c1_173 = arith.constant 1 : index
    %c0_174 = arith.constant 0 : index
    %c0_175 = arith.constant 0 : index
    %401 = vector.load %arg25[%c1_173, %c0_174, %c0_175] : memref<3x16x32xf32, #tpu.memory_space<vmem>>, vector<1x16x32xf32>
    %402 = vector.shape_cast %401 : vector<1x16x32xf32> to vector<16x32xf32>
    %cst_176 = arith.constant dense<0.000000e+00> : vector<32xf32>
    %403 = vector.multi_reduction <add>, %402, %cst_176 [0] : vector<16x32xf32> to vector<32xf32>
    %404 = vector.shape_cast %403 : vector<32xf32> to vector<1x32xf32>
    %405 = arith.addf %396, %404 : vector<1x32xf32>
    %406 = arith.mulf %402, %402 : vector<16x32xf32>
    %cst_177 = arith.constant dense<0.000000e+00> : vector<32xf32>
    %407 = vector.multi_reduction <add>, %406, %cst_177 [0] : vector<16x32xf32> to vector<32xf32>
    %408 = vector.shape_cast %407 : vector<32xf32> to vector<1x32xf32>
    %409 = arith.addf %400, %408 : vector<1x32xf32>
    %c2_178 = arith.constant 2 : index
    %c0_179 = arith.constant 0 : index
    %c0_180 = arith.constant 0 : index
    %410 = vector.load %arg25[%c2_178, %c0_179, %c0_180] : memref<3x16x32xf32, #tpu.memory_space<vmem>>, vector<1x16x32xf32>
    %411 = vector.shape_cast %410 : vector<1x16x32xf32> to vector<16x32xf32>
    %cst_181 = arith.constant dense<0.000000e+00> : vector<32xf32>
    %412 = vector.multi_reduction <add>, %411, %cst_181 [0] : vector<16x32xf32> to vector<32xf32>
    %413 = vector.shape_cast %412 : vector<32xf32> to vector<1x32xf32>
    %414 = arith.addf %405, %413 : vector<1x32xf32>
    %415 = arith.mulf %411, %411 : vector<16x32xf32>
    %cst_182 = arith.constant dense<0.000000e+00> : vector<32xf32>
    %416 = vector.multi_reduction <add>, %415, %cst_182 [0] : vector<16x32xf32> to vector<32xf32>
    %417 = vector.shape_cast %416 : vector<32xf32> to vector<1x32xf32>
    %418 = arith.addf %409, %417 : vector<1x32xf32>
    %cst_183 = arith.constant 4.800000e+01 : f32
    %419 = vector.broadcast %cst_183 : f32 to vector<1x32xf32>
    %420 = arith.divf %414, %419 : vector<1x32xf32>
    %cst_184 = arith.constant 4.800000e+01 : f32
    %421 = vector.broadcast %cst_184 : f32 to vector<1x32xf32>
    %422 = arith.divf %418, %421 : vector<1x32xf32>
    %423 = arith.mulf %420, %420 : vector<1x32xf32>
    %424 = arith.subf %422, %423 : vector<1x32xf32>
    %cst_185 = arith.constant 9.99999974E-6 : f32
    %425 = vector.broadcast %cst_185 : f32 to vector<1x32xf32>
    %426 = arith.addf %424, %425 : vector<1x32xf32>
    %427 = math.rsqrt %426 : vector<1x32xf32>
    %c0_186 = arith.constant 0 : index
    %c0_187 = arith.constant 0 : index
    %428 = vector.load %arg8[%c0_186, %c0_187] : memref<1x32xf32, #tpu.memory_space<vmem>>, vector<1x32xf32>
    %c0_188 = arith.constant 0 : index
    %c0_189 = arith.constant 0 : index
    %c0_190 = arith.constant 0 : index
    %429 = vector.load %arg25[%c0_188, %c0_189, %c0_190] : memref<3x16x32xf32, #tpu.memory_space<vmem>>, vector<1x16x32xf32>
    %430 = vector.shape_cast %429 : vector<1x16x32xf32> to vector<16x32xf32>
    %431 = vector.broadcast %420 : vector<1x32xf32> to vector<16x32xf32>
    %432 = arith.subf %430, %431 : vector<16x32xf32>
    %433 = vector.broadcast %427 : vector<1x32xf32> to vector<16x32xf32>
    %434 = arith.mulf %432, %433 : vector<16x32xf32>
    %cst_191 = arith.constant 0.000000e+00 : f32
    %435 = vector.broadcast %cst_191 : f32 to vector<16x32xf32>
    %436 = arith.maximumf %434, %435 : vector<16x32xf32>
    %c0_192 = arith.constant 0 : index
    %c0_193 = arith.constant 0 : index
    %c0_194 = arith.constant 0 : index
    %437 = vector.load %arg7[%c0_192, %c0_193, %c0_194] : memref<3x32x32xf32, #tpu.memory_space<vmem>>, vector<1x32x32xf32>
    %438 = vector.shape_cast %437 : vector<1x32x32xf32> to vector<32x32xf32>
    %439 = arith.truncf %438 : vector<32x32xf32> to vector<32x32xbf16>
    %440 = arith.extf %439 : vector<32x32xbf16> to vector<32x32xf32>
    %441 = arith.subf %438, %440 : vector<32x32xf32>
    %442 = arith.truncf %441 : vector<32x32xf32> to vector<32x32xbf16>
    %443 = arith.truncf %436 : vector<16x32xf32> to vector<16x32xbf16>
    %444 = arith.extf %443 : vector<16x32xbf16> to vector<16x32xf32>
    %445 = arith.subf %436, %444 : vector<16x32xf32>
    %446 = arith.truncf %445 : vector<16x32xf32> to vector<16x32xbf16>
    %cst_195 = arith.constant dense<0.000000e+00> : vector<16x32xf32>
    %447 = tpu.matmul %443, %439, %cst_195 {dimension_numbers = #tpu.dot_dimension_numbers<[1], [0], [0], [1], [0, 0, 1, 1], [], []>} : vector<16x32xbf16>, vector<32x32xbf16>, vector<16x32xf32> -> vector<16x32xf32>
    %cst_196 = arith.constant dense<0.000000e+00> : vector<16x32xf32>
    %448 = tpu.matmul %443, %442, %cst_196 {dimension_numbers = #tpu.dot_dimension_numbers<[1], [0], [0], [1], [0, 0, 1, 1], [], []>} : vector<16x32xbf16>, vector<32x32xbf16>, vector<16x32xf32> -> vector<16x32xf32>
    %449 = arith.addf %447, %448 : vector<16x32xf32>
    %cst_197 = arith.constant dense<0.000000e+00> : vector<16x32xf32>
    %450 = tpu.matmul %446, %439, %cst_197 {dimension_numbers = #tpu.dot_dimension_numbers<[1], [0], [0], [1], [0, 0, 1, 1], [], []>} : vector<16x32xbf16>, vector<32x32xbf16>, vector<16x32xf32> -> vector<16x32xf32>
    %451 = arith.addf %449, %450 : vector<16x32xf32>
    %452 = vector.broadcast %428 : vector<1x32xf32> to vector<16x32xf32>
    %453 = arith.addf %452, %451 : vector<16x32xf32>
    %c1_198 = arith.constant 1 : index
    %c0_199 = arith.constant 0 : index
    %c0_200 = arith.constant 0 : index
    %454 = vector.load %arg25[%c1_198, %c0_199, %c0_200] : memref<3x16x32xf32, #tpu.memory_space<vmem>>, vector<1x16x32xf32>
    %455 = vector.shape_cast %454 : vector<1x16x32xf32> to vector<16x32xf32>
    %456 = vector.broadcast %420 : vector<1x32xf32> to vector<16x32xf32>
    %457 = arith.subf %455, %456 : vector<16x32xf32>
    %458 = vector.broadcast %427 : vector<1x32xf32> to vector<16x32xf32>
    %459 = arith.mulf %457, %458 : vector<16x32xf32>
    %cst_201 = arith.constant 0.000000e+00 : f32
    %460 = vector.broadcast %cst_201 : f32 to vector<16x32xf32>
    %461 = arith.maximumf %459, %460 : vector<16x32xf32>
    %c1_202 = arith.constant 1 : index
    %c0_203 = arith.constant 0 : index
    %c0_204 = arith.constant 0 : index
    %462 = vector.load %arg7[%c1_202, %c0_203, %c0_204] : memref<3x32x32xf32, #tpu.memory_space<vmem>>, vector<1x32x32xf32>
    %463 = vector.shape_cast %462 : vector<1x32x32xf32> to vector<32x32xf32>
    %464 = arith.truncf %463 : vector<32x32xf32> to vector<32x32xbf16>
    %465 = arith.extf %464 : vector<32x32xbf16> to vector<32x32xf32>
    %466 = arith.subf %463, %465 : vector<32x32xf32>
    %467 = arith.truncf %466 : vector<32x32xf32> to vector<32x32xbf16>
    %468 = arith.truncf %461 : vector<16x32xf32> to vector<16x32xbf16>
    %469 = arith.extf %468 : vector<16x32xbf16> to vector<16x32xf32>
    %470 = arith.subf %461, %469 : vector<16x32xf32>
    %471 = arith.truncf %470 : vector<16x32xf32> to vector<16x32xbf16>
    %cst_205 = arith.constant dense<0.000000e+00> : vector<16x32xf32>
    %472 = tpu.matmul %468, %464, %cst_205 {dimension_numbers = #tpu.dot_dimension_numbers<[1], [0], [0], [1], [0, 0, 1, 1], [], []>} : vector<16x32xbf16>, vector<32x32xbf16>, vector<16x32xf32> -> vector<16x32xf32>
    %cst_206 = arith.constant dense<0.000000e+00> : vector<16x32xf32>
    %473 = tpu.matmul %468, %467, %cst_206 {dimension_numbers = #tpu.dot_dimension_numbers<[1], [0], [0], [1], [0, 0, 1, 1], [], []>} : vector<16x32xbf16>, vector<32x32xbf16>, vector<16x32xf32> -> vector<16x32xf32>
    %474 = arith.addf %472, %473 : vector<16x32xf32>
    %cst_207 = arith.constant dense<0.000000e+00> : vector<16x32xf32>
    %475 = tpu.matmul %471, %464, %cst_207 {dimension_numbers = #tpu.dot_dimension_numbers<[1], [0], [0], [1], [0, 0, 1, 1], [], []>} : vector<16x32xbf16>, vector<32x32xbf16>, vector<16x32xf32> -> vector<16x32xf32>
    %476 = arith.addf %474, %475 : vector<16x32xf32>
    %477 = arith.addf %453, %476 : vector<16x32xf32>
    %c2_208 = arith.constant 2 : index
    %c0_209 = arith.constant 0 : index
    %c0_210 = arith.constant 0 : index
    %478 = vector.load %arg25[%c2_208, %c0_209, %c0_210] : memref<3x16x32xf32, #tpu.memory_space<vmem>>, vector<1x16x32xf32>
    %479 = vector.shape_cast %478 : vector<1x16x32xf32> to vector<16x32xf32>
    %480 = vector.broadcast %420 : vector<1x32xf32> to vector<16x32xf32>
    %481 = arith.subf %479, %480 : vector<16x32xf32>
    %482 = vector.broadcast %427 : vector<1x32xf32> to vector<16x32xf32>
    %483 = arith.mulf %481, %482 : vector<16x32xf32>
    %cst_211 = arith.constant 0.000000e+00 : f32
    %484 = vector.broadcast %cst_211 : f32 to vector<16x32xf32>
    %485 = arith.maximumf %483, %484 : vector<16x32xf32>
    %c2_212 = arith.constant 2 : index
    %c0_213 = arith.constant 0 : index
    %c0_214 = arith.constant 0 : index
    %486 = vector.load %arg7[%c2_212, %c0_213, %c0_214] : memref<3x32x32xf32, #tpu.memory_space<vmem>>, vector<1x32x32xf32>
    %487 = vector.shape_cast %486 : vector<1x32x32xf32> to vector<32x32xf32>
    %488 = arith.truncf %487 : vector<32x32xf32> to vector<32x32xbf16>
    %489 = arith.extf %488 : vector<32x32xbf16> to vector<32x32xf32>
    %490 = arith.subf %487, %489 : vector<32x32xf32>
    %491 = arith.truncf %490 : vector<32x32xf32> to vector<32x32xbf16>
    %492 = arith.truncf %485 : vector<16x32xf32> to vector<16x32xbf16>
    %493 = arith.extf %492 : vector<16x32xbf16> to vector<16x32xf32>
    %494 = arith.subf %485, %493 : vector<16x32xf32>
    %495 = arith.truncf %494 : vector<16x32xf32> to vector<16x32xbf16>
    %cst_215 = arith.constant dense<0.000000e+00> : vector<16x32xf32>
    %496 = tpu.matmul %492, %488, %cst_215 {dimension_numbers = #tpu.dot_dimension_numbers<[1], [0], [0], [1], [0, 0, 1, 1], [], []>} : vector<16x32xbf16>, vector<32x32xbf16>, vector<16x32xf32> -> vector<16x32xf32>
    %cst_216 = arith.constant dense<0.000000e+00> : vector<16x32xf32>
    %497 = tpu.matmul %492, %491, %cst_216 {dimension_numbers = #tpu.dot_dimension_numbers<[1], [0], [0], [1], [0, 0, 1, 1], [], []>} : vector<16x32xbf16>, vector<32x32xbf16>, vector<16x32xf32> -> vector<16x32xf32>
    %498 = arith.addf %496, %497 : vector<16x32xf32>
    %cst_217 = arith.constant dense<0.000000e+00> : vector<16x32xf32>
    %499 = tpu.matmul %495, %488, %cst_217 {dimension_numbers = #tpu.dot_dimension_numbers<[1], [0], [0], [1], [0, 0, 1, 1], [], []>} : vector<16x32xbf16>, vector<32x32xbf16>, vector<16x32xf32> -> vector<16x32xf32>
    %500 = arith.addf %498, %499 : vector<16x32xf32>
    %501 = arith.addf %477, %500 : vector<16x32xf32>
    %cst_218 = arith.constant dense<0.000000e+00> : vector<32xf32>
    %502 = vector.multi_reduction <add>, %501, %cst_218 [0] : vector<16x32xf32> to vector<32xf32>
    %503 = vector.shape_cast %502 : vector<32xf32> to vector<1x32xf32>
    %504 = arith.mulf %501, %501 : vector<16x32xf32>
    %cst_219 = arith.constant dense<0.000000e+00> : vector<32xf32>
    %505 = vector.multi_reduction <add>, %504, %cst_219 [0] : vector<16x32xf32> to vector<32xf32>
    %506 = vector.shape_cast %505 : vector<32xf32> to vector<1x32xf32>
    %cst_220 = arith.constant 1.600000e+01 : f32
    %507 = vector.broadcast %cst_220 : f32 to vector<1x32xf32>
    %508 = arith.divf %503, %507 : vector<1x32xf32>
    %cst_221 = arith.constant 1.600000e+01 : f32
    %509 = vector.broadcast %cst_221 : f32 to vector<1x32xf32>
    %510 = arith.divf %506, %509 : vector<1x32xf32>
    %511 = arith.mulf %508, %508 : vector<1x32xf32>
    %512 = arith.subf %510, %511 : vector<1x32xf32>
    %cst_222 = arith.constant 9.99999974E-6 : f32
    %513 = vector.broadcast %cst_222 : f32 to vector<1x32xf32>
    %514 = arith.addf %512, %513 : vector<1x32xf32>
    %515 = math.rsqrt %514 : vector<1x32xf32>
    %516 = vector.broadcast %508 : vector<1x32xf32> to vector<16x32xf32>
    %517 = arith.subf %501, %516 : vector<16x32xf32>
    %518 = vector.broadcast %515 : vector<1x32xf32> to vector<16x32xf32>
    %519 = arith.mulf %517, %518 : vector<16x32xf32>
    %cst_223 = arith.constant 0.000000e+00 : f32
    %520 = vector.broadcast %cst_223 : f32 to vector<16x32xf32>
    %521 = arith.maximumf %519, %520 : vector<16x32xf32>
    %c0_224 = arith.constant 0 : index
    %c0_225 = arith.constant 0 : index
    %522 = vector.load %arg17[%c0_224, %c0_225] : memref<1x32xf32, #tpu.memory_space<vmem>>, vector<1x32xf32>
    %c0_226 = arith.constant 0 : index
    %c0_227 = arith.constant 0 : index
    %c0_228 = arith.constant 0 : index
    %523 = vector.load %arg3[%c0_226, %c0_227, %c0_228] : memref<1x144x1xf32, #tpu.memory_space<vmem>>, vector<1x16x1xf32>
    %524 = vector.shape_cast %523 : vector<1x16x1xf32> to vector<16x1xf32>
    %c0_229 = arith.constant 0 : index
    %c0_230 = arith.constant 0 : index
    %c0_231 = arith.constant 0 : index
    %525 = vector.load %arg16[%c0_229, %c0_230, %c0_231] : memref<3x1x32xf32, #tpu.memory_space<vmem>>, vector<1x1x32xf32>
    %526 = vector.shape_cast %525 : vector<1x1x32xf32> to vector<1x32xf32>
    %527 = vector.broadcast %524 : vector<16x1xf32> to vector<16x32xf32>
    %528 = vector.broadcast %526 : vector<1x32xf32> to vector<16x32xf32>
    %529 = arith.mulf %527, %528 : vector<16x32xf32>
    %530 = vector.broadcast %522 : vector<1x32xf32> to vector<16x32xf32>
    %531 = arith.addf %530, %529 : vector<16x32xf32>
    %c0_232 = arith.constant 0 : index
    %c16_233 = arith.constant 16 : index
    %c0_234 = arith.constant 0 : index
    %532 = vector.load %arg3[%c0_232, %c16_233, %c0_234] : memref<1x144x1xf32, #tpu.memory_space<vmem>>, vector<1x16x1xf32>
    %533 = vector.shape_cast %532 : vector<1x16x1xf32> to vector<16x1xf32>
    %c1_235 = arith.constant 1 : index
    %c0_236 = arith.constant 0 : index
    %c0_237 = arith.constant 0 : index
    %534 = vector.load %arg16[%c1_235, %c0_236, %c0_237] : memref<3x1x32xf32, #tpu.memory_space<vmem>>, vector<1x1x32xf32>
    %535 = vector.shape_cast %534 : vector<1x1x32xf32> to vector<1x32xf32>
    %536 = vector.broadcast %533 : vector<16x1xf32> to vector<16x32xf32>
    %537 = vector.broadcast %535 : vector<1x32xf32> to vector<16x32xf32>
    %538 = arith.mulf %536, %537 : vector<16x32xf32>
    %539 = arith.addf %531, %538 : vector<16x32xf32>
    %c0_238 = arith.constant 0 : index
    %c32_239 = arith.constant 32 : index
    %c0_240 = arith.constant 0 : index
    %540 = vector.load %arg3[%c0_238, %c32_239, %c0_240] : memref<1x144x1xf32, #tpu.memory_space<vmem>>, vector<1x16x1xf32>
    %541 = vector.shape_cast %540 : vector<1x16x1xf32> to vector<16x1xf32>
    %c2_241 = arith.constant 2 : index
    %c0_242 = arith.constant 0 : index
    %c0_243 = arith.constant 0 : index
    %542 = vector.load %arg16[%c2_241, %c0_242, %c0_243] : memref<3x1x32xf32, #tpu.memory_space<vmem>>, vector<1x1x32xf32>
    %543 = vector.shape_cast %542 : vector<1x1x32xf32> to vector<1x32xf32>
    %544 = vector.broadcast %541 : vector<16x1xf32> to vector<16x32xf32>
    %545 = vector.broadcast %543 : vector<1x32xf32> to vector<16x32xf32>
    %546 = arith.mulf %544, %545 : vector<16x32xf32>
    %547 = arith.addf %539, %546 : vector<16x32xf32>
    %c0_244 = arith.constant 0 : index
    %c0_245 = arith.constant 0 : index
    %c0_246 = arith.constant 0 : index
    %548 = vector.load %arg25[%c0_244, %c0_245, %c0_246] : memref<3x16x32xf32, #tpu.memory_space<vmem>>, vector<1x16x32xf32>
    %549 = vector.shape_cast %548 : vector<1x16x32xf32> to vector<16x32xf32>
    %550 = vector.shape_cast %547 : vector<16x32xf32> to vector<1x16x32xf32>
    tpu.vector_store %arg25[%c0_244, %c0_245, %c0_246], %550 {strides = array<i32>} : memref<3x16x32xf32, #tpu.memory_space<vmem>>, vector<1x16x32xf32>,
    %c0_247 = arith.constant 0 : index
    %c0_248 = arith.constant 0 : index
    %551 = vector.load %arg17[%c0_247, %c0_248] : memref<1x32xf32, #tpu.memory_space<vmem>>, vector<1x32xf32>
    %c0_249 = arith.constant 0 : index
    %c48_250 = arith.constant 48 : index
    %c0_251 = arith.constant 0 : index
    %552 = vector.load %arg3[%c0_249, %c48_250, %c0_251] : memref<1x144x1xf32, #tpu.memory_space<vmem>>, vector<1x16x1xf32>
    %553 = vector.shape_cast %552 : vector<1x16x1xf32> to vector<16x1xf32>
    %c0_252 = arith.constant 0 : index
    %c0_253 = arith.constant 0 : index
    %c0_254 = arith.constant 0 : index
    %554 = vector.load %arg16[%c0_252, %c0_253, %c0_254] : memref<3x1x32xf32, #tpu.memory_space<vmem>>, vector<1x1x32xf32>
    %555 = vector.shape_cast %554 : vector<1x1x32xf32> to vector<1x32xf32>
    %556 = vector.broadcast %553 : vector<16x1xf32> to vector<16x32xf32>
    %557 = vector.broadcast %555 : vector<1x32xf32> to vector<16x32xf32>
    %558 = arith.mulf %556, %557 : vector<16x32xf32>
    %559 = vector.broadcast %551 : vector<1x32xf32> to vector<16x32xf32>
    %560 = arith.addf %559, %558 : vector<16x32xf32>
    %c0_255 = arith.constant 0 : index
    %c64_256 = arith.constant 64 : index
    %c0_257 = arith.constant 0 : index
    %561 = vector.load %arg3[%c0_255, %c64_256, %c0_257] : memref<1x144x1xf32, #tpu.memory_space<vmem>>, vector<1x16x1xf32>
    %562 = vector.shape_cast %561 : vector<1x16x1xf32> to vector<16x1xf32>
    %c1_258 = arith.constant 1 : index
    %c0_259 = arith.constant 0 : index
    %c0_260 = arith.constant 0 : index
    %563 = vector.load %arg16[%c1_258, %c0_259, %c0_260] : memref<3x1x32xf32, #tpu.memory_space<vmem>>, vector<1x1x32xf32>
    %564 = vector.shape_cast %563 : vector<1x1x32xf32> to vector<1x32xf32>
    %565 = vector.broadcast %562 : vector<16x1xf32> to vector<16x32xf32>
    %566 = vector.broadcast %564 : vector<1x32xf32> to vector<16x32xf32>
    %567 = arith.mulf %565, %566 : vector<16x32xf32>
    %568 = arith.addf %560, %567 : vector<16x32xf32>
    %c0_261 = arith.constant 0 : index
    %c80_262 = arith.constant 80 : index
    %c0_263 = arith.constant 0 : index
    %569 = vector.load %arg3[%c0_261, %c80_262, %c0_263] : memref<1x144x1xf32, #tpu.memory_space<vmem>>, vector<1x16x1xf32>
    %570 = vector.shape_cast %569 : vector<1x16x1xf32> to vector<16x1xf32>
    %c2_264 = arith.constant 2 : index
    %c0_265 = arith.constant 0 : index
    %c0_266 = arith.constant 0 : index
    %571 = vector.load %arg16[%c2_264, %c0_265, %c0_266] : memref<3x1x32xf32, #tpu.memory_space<vmem>>, vector<1x1x32xf32>
    %572 = vector.shape_cast %571 : vector<1x1x32xf32> to vector<1x32xf32>
    %573 = vector.broadcast %570 : vector<16x1xf32> to vector<16x32xf32>
    %574 = vector.broadcast %572 : vector<1x32xf32> to vector<16x32xf32>
    %575 = arith.mulf %573, %574 : vector<16x32xf32>
    %576 = arith.addf %568, %575 : vector<16x32xf32>
    %c1_267 = arith.constant 1 : index
    %c0_268 = arith.constant 0 : index
    %c0_269 = arith.constant 0 : index
    %577 = vector.load %arg25[%c1_267, %c0_268, %c0_269] : memref<3x16x32xf32, #tpu.memory_space<vmem>>, vector<1x16x32xf32>
    %578 = vector.shape_cast %577 : vector<1x16x32xf32> to vector<16x32xf32>
    %579 = vector.shape_cast %576 : vector<16x32xf32> to vector<1x16x32xf32>
    tpu.vector_store %arg25[%c1_267, %c0_268, %c0_269], %579 {strides = array<i32>} : memref<3x16x32xf32, #tpu.memory_space<vmem>>, vector<1x16x32xf32>,
    %c0_270 = arith.constant 0 : index
    %c0_271 = arith.constant 0 : index
    %580 = vector.load %arg17[%c0_270, %c0_271] : memref<1x32xf32, #tpu.memory_space<vmem>>, vector<1x32xf32>
    %c0_272 = arith.constant 0 : index
    %c96_273 = arith.constant 96 : index
    %c0_274 = arith.constant 0 : index
    %581 = vector.load %arg3[%c0_272, %c96_273, %c0_274] : memref<1x144x1xf32, #tpu.memory_space<vmem>>, vector<1x16x1xf32>
    %582 = vector.shape_cast %581 : vector<1x16x1xf32> to vector<16x1xf32>
    %c0_275 = arith.constant 0 : index
    %c0_276 = arith.constant 0 : index
    %c0_277 = arith.constant 0 : index
    %583 = vector.load %arg16[%c0_275, %c0_276, %c0_277] : memref<3x1x32xf32, #tpu.memory_space<vmem>>, vector<1x1x32xf32>
    %584 = vector.shape_cast %583 : vector<1x1x32xf32> to vector<1x32xf32>
    %585 = vector.broadcast %582 : vector<16x1xf32> to vector<16x32xf32>
    %586 = vector.broadcast %584 : vector<1x32xf32> to vector<16x32xf32>
    %587 = arith.mulf %585, %586 : vector<16x32xf32>
    %588 = vector.broadcast %580 : vector<1x32xf32> to vector<16x32xf32>
    %589 = arith.addf %588, %587 : vector<16x32xf32>
    %c0_278 = arith.constant 0 : index
    %c112_279 = arith.constant 112 : index
    %c0_280 = arith.constant 0 : index
    %590 = vector.load %arg3[%c0_278, %c112_279, %c0_280] : memref<1x144x1xf32, #tpu.memory_space<vmem>>, vector<1x16x1xf32>
    %591 = vector.shape_cast %590 : vector<1x16x1xf32> to vector<16x1xf32>
    %c1_281 = arith.constant 1 : index
    %c0_282 = arith.constant 0 : index
    %c0_283 = arith.constant 0 : index
    %592 = vector.load %arg16[%c1_281, %c0_282, %c0_283] : memref<3x1x32xf32, #tpu.memory_space<vmem>>, vector<1x1x32xf32>
    %593 = vector.shape_cast %592 : vector<1x1x32xf32> to vector<1x32xf32>
    %594 = vector.broadcast %591 : vector<16x1xf32> to vector<16x32xf32>
    %595 = vector.broadcast %593 : vector<1x32xf32> to vector<16x32xf32>
    %596 = arith.mulf %594, %595 : vector<16x32xf32>
    %597 = arith.addf %589, %596 : vector<16x32xf32>
    %c0_284 = arith.constant 0 : index
    %c128_285 = arith.constant 128 : index
    %c0_286 = arith.constant 0 : index
    %598 = vector.load %arg3[%c0_284, %c128_285, %c0_286] : memref<1x144x1xf32, #tpu.memory_space<vmem>>, vector<1x16x1xf32>
    %599 = vector.shape_cast %598 : vector<1x16x1xf32> to vector<16x1xf32>
    %c2_287 = arith.constant 2 : index
    %c0_288 = arith.constant 0 : index
    %c0_289 = arith.constant 0 : index
    %600 = vector.load %arg16[%c2_287, %c0_288, %c0_289] : memref<3x1x32xf32, #tpu.memory_space<vmem>>, vector<1x1x32xf32>
    %601 = vector.shape_cast %600 : vector<1x1x32xf32> to vector<1x32xf32>
    %602 = vector.broadcast %599 : vector<16x1xf32> to vector<16x32xf32>
    %603 = vector.broadcast %601 : vector<1x32xf32> to vector<16x32xf32>
    %604 = arith.mulf %602, %603 : vector<16x32xf32>
    %605 = arith.addf %597, %604 : vector<16x32xf32>
    %c2_290 = arith.constant 2 : index
    %c0_291 = arith.constant 0 : index
    %c0_292 = arith.constant 0 : index
    %606 = vector.load %arg25[%c2_290, %c0_291, %c0_292] : memref<3x16x32xf32, #tpu.memory_space<vmem>>, vector<1x16x32xf32>
    %607 = vector.shape_cast %606 : vector<1x16x32xf32> to vector<16x32xf32>
    %608 = vector.shape_cast %605 : vector<16x32xf32> to vector<1x16x32xf32>
    tpu.vector_store %arg25[%c2_290, %c0_291, %c0_292], %608 {strides = array<i32>} : memref<3x16x32xf32, #tpu.memory_space<vmem>>, vector<1x16x32xf32>,
    %cst_293 = arith.constant 0.000000e+00 : f32
    %609 = vector.broadcast %cst_293 : f32 to vector<1x32xf32>
    %cst_294 = arith.constant 0.000000e+00 : f32
    %610 = vector.broadcast %cst_294 : f32 to vector<1x32xf32>
    %c0_295 = arith.constant 0 : index
    %c0_296 = arith.constant 0 : index
    %c0_297 = arith.constant 0 : index
    %611 = vector.load %arg25[%c0_295, %c0_296, %c0_297] : memref<3x16x32xf32, #tpu.memory_space<vmem>>, vector<1x16x32xf32>
    %612 = vector.shape_cast %611 : vector<1x16x32xf32> to vector<16x32xf32>
    %cst_298 = arith.constant dense<0.000000e+00> : vector<32xf32>
    %613 = vector.multi_reduction <add>, %612, %cst_298 [0] : vector<16x32xf32> to vector<32xf32>
    %614 = vector.shape_cast %613 : vector<32xf32> to vector<1x32xf32>
    %615 = arith.addf %609, %614 : vector<1x32xf32>
    %616 = arith.mulf %612, %612 : vector<16x32xf32>
    %cst_299 = arith.constant dense<0.000000e+00> : vector<32xf32>
    %617 = vector.multi_reduction <add>, %616, %cst_299 [0] : vector<16x32xf32> to vector<32xf32>
    %618 = vector.shape_cast %617 : vector<32xf32> to vector<1x32xf32>
    %619 = arith.addf %610, %618 : vector<1x32xf32>
    %c1_300 = arith.constant 1 : index
    %c0_301 = arith.constant 0 : index
    %c0_302 = arith.constant 0 : index
    %620 = vector.load %arg25[%c1_300, %c0_301, %c0_302] : memref<3x16x32xf32, #tpu.memory_space<vmem>>, vector<1x16x32xf32>
    %621 = vector.shape_cast %620 : vector<1x16x32xf32> to vector<16x32xf32>
    %cst_303 = arith.constant dense<0.000000e+00> : vector<32xf32>
    %622 = vector.multi_reduction <add>, %621, %cst_303 [0] : vector<16x32xf32> to vector<32xf32>
    %623 = vector.shape_cast %622 : vector<32xf32> to vector<1x32xf32>
    %624 = arith.addf %615, %623 : vector<1x32xf32>
    %625 = arith.mulf %621, %621 : vector<16x32xf32>
    %cst_304 = arith.constant dense<0.000000e+00> : vector<32xf32>
    %626 = vector.multi_reduction <add>, %625, %cst_304 [0] : vector<16x32xf32> to vector<32xf32>
    %627 = vector.shape_cast %626 : vector<32xf32> to vector<1x32xf32>
    %628 = arith.addf %619, %627 : vector<1x32xf32>
    %c2_305 = arith.constant 2 : index
    %c0_306 = arith.constant 0 : index
    %c0_307 = arith.constant 0 : index
    %629 = vector.load %arg25[%c2_305, %c0_306, %c0_307] : memref<3x16x32xf32, #tpu.memory_space<vmem>>, vector<1x16x32xf32>
    %630 = vector.shape_cast %629 : vector<1x16x32xf32> to vector<16x32xf32>
    %cst_308 = arith.constant dense<0.000000e+00> : vector<32xf32>
    %631 = vector.multi_reduction <add>, %630, %cst_308 [0] : vector<16x32xf32> to vector<32xf32>
    %632 = vector.shape_cast %631 : vector<32xf32> to vector<1x32xf32>
    %633 = arith.addf %624, %632 : vector<1x32xf32>
    %634 = arith.mulf %630, %630 : vector<16x32xf32>
    %cst_309 = arith.constant dense<0.000000e+00> : vector<32xf32>
    %635 = vector.multi_reduction <add>, %634, %cst_309 [0] : vector<16x32xf32> to vector<32xf32>
    %636 = vector.shape_cast %635 : vector<32xf32> to vector<1x32xf32>
    %637 = arith.addf %628, %636 : vector<1x32xf32>
    %cst_310 = arith.constant 4.800000e+01 : f32
    %638 = vector.broadcast %cst_310 : f32 to vector<1x32xf32>
    %639 = arith.divf %633, %638 : vector<1x32xf32>
    %cst_311 = arith.constant 4.800000e+01 : f32
    %640 = vector.broadcast %cst_311 : f32 to vector<1x32xf32>
    %641 = arith.divf %637, %640 : vector<1x32xf32>
    %642 = arith.mulf %639, %639 : vector<1x32xf32>
    %643 = arith.subf %641, %642 : vector<1x32xf32>
    %cst_312 = arith.constant 9.99999974E-6 : f32
    %644 = vector.broadcast %cst_312 : f32 to vector<1x32xf32>
    %645 = arith.addf %643, %644 : vector<1x32xf32>
    %646 = math.rsqrt %645 : vector<1x32xf32>
    %c0_313 = arith.constant 0 : index
    %c0_314 = arith.constant 0 : index
    %647 = vector.load %arg19[%c0_313, %c0_314] : memref<1x32xf32, #tpu.memory_space<vmem>>, vector<1x32xf32>
    %c0_315 = arith.constant 0 : index
    %c0_316 = arith.constant 0 : index
    %c0_317 = arith.constant 0 : index
    %648 = vector.load %arg25[%c0_315, %c0_316, %c0_317] : memref<3x16x32xf32, #tpu.memory_space<vmem>>, vector<1x16x32xf32>
    %649 = vector.shape_cast %648 : vector<1x16x32xf32> to vector<16x32xf32>
    %650 = vector.broadcast %639 : vector<1x32xf32> to vector<16x32xf32>
    %651 = arith.subf %649, %650 : vector<16x32xf32>
    %652 = vector.broadcast %646 : vector<1x32xf32> to vector<16x32xf32>
    %653 = arith.mulf %651, %652 : vector<16x32xf32>
    %cst_318 = arith.constant 0.000000e+00 : f32
    %654 = vector.broadcast %cst_318 : f32 to vector<16x32xf32>
    %655 = arith.maximumf %653, %654 : vector<16x32xf32>
    %c0_319 = arith.constant 0 : index
    %c0_320 = arith.constant 0 : index
    %c0_321 = arith.constant 0 : index
    %656 = vector.load %arg18[%c0_319, %c0_320, %c0_321] : memref<3x32x32xf32, #tpu.memory_space<vmem>>, vector<1x32x32xf32>
    %657 = vector.shape_cast %656 : vector<1x32x32xf32> to vector<32x32xf32>
    %658 = arith.truncf %657 : vector<32x32xf32> to vector<32x32xbf16>
    %659 = arith.extf %658 : vector<32x32xbf16> to vector<32x32xf32>
    %660 = arith.subf %657, %659 : vector<32x32xf32>
    %661 = arith.truncf %660 : vector<32x32xf32> to vector<32x32xbf16>
    %662 = arith.truncf %655 : vector<16x32xf32> to vector<16x32xbf16>
    %663 = arith.extf %662 : vector<16x32xbf16> to vector<16x32xf32>
    %664 = arith.subf %655, %663 : vector<16x32xf32>
    %665 = arith.truncf %664 : vector<16x32xf32> to vector<16x32xbf16>
    %cst_322 = arith.constant dense<0.000000e+00> : vector<16x32xf32>
    %666 = tpu.matmul %662, %658, %cst_322 {dimension_numbers = #tpu.dot_dimension_numbers<[1], [0], [0], [1], [0, 0, 1, 1], [], []>} : vector<16x32xbf16>, vector<32x32xbf16>, vector<16x32xf32> -> vector<16x32xf32>
    %cst_323 = arith.constant dense<0.000000e+00> : vector<16x32xf32>
    %667 = tpu.matmul %662, %661, %cst_323 {dimension_numbers = #tpu.dot_dimension_numbers<[1], [0], [0], [1], [0, 0, 1, 1], [], []>} : vector<16x32xbf16>, vector<32x32xbf16>, vector<16x32xf32> -> vector<16x32xf32>
    %668 = arith.addf %666, %667 : vector<16x32xf32>
    %cst_324 = arith.constant dense<0.000000e+00> : vector<16x32xf32>
    %669 = tpu.matmul %665, %658, %cst_324 {dimension_numbers = #tpu.dot_dimension_numbers<[1], [0], [0], [1], [0, 0, 1, 1], [], []>} : vector<16x32xbf16>, vector<32x32xbf16>, vector<16x32xf32> -> vector<16x32xf32>
    %670 = arith.addf %668, %669 : vector<16x32xf32>
    %671 = vector.broadcast %647 : vector<1x32xf32> to vector<16x32xf32>
    %672 = arith.addf %671, %670 : vector<16x32xf32>
    %c1_325 = arith.constant 1 : index
    %c0_326 = arith.constant 0 : index
    %c0_327 = arith.constant 0 : index
    %673 = vector.load %arg25[%c1_325, %c0_326, %c0_327] : memref<3x16x32xf32, #tpu.memory_space<vmem>>, vector<1x16x32xf32>
    %674 = vector.shape_cast %673 : vector<1x16x32xf32> to vector<16x32xf32>
    %675 = vector.broadcast %639 : vector<1x32xf32> to vector<16x32xf32>
    %676 = arith.subf %674, %675 : vector<16x32xf32>
    %677 = vector.broadcast %646 : vector<1x32xf32> to vector<16x32xf32>
    %678 = arith.mulf %676, %677 : vector<16x32xf32>
    %cst_328 = arith.constant 0.000000e+00 : f32
    %679 = vector.broadcast %cst_328 : f32 to vector<16x32xf32>
    %680 = arith.maximumf %678, %679 : vector<16x32xf32>
    %c1_329 = arith.constant 1 : index
    %c0_330 = arith.constant 0 : index
    %c0_331 = arith.constant 0 : index
    %681 = vector.load %arg18[%c1_329, %c0_330, %c0_331] : memref<3x32x32xf32, #tpu.memory_space<vmem>>, vector<1x32x32xf32>
    %682 = vector.shape_cast %681 : vector<1x32x32xf32> to vector<32x32xf32>
    %683 = arith.truncf %682 : vector<32x32xf32> to vector<32x32xbf16>
    %684 = arith.extf %683 : vector<32x32xbf16> to vector<32x32xf32>
    %685 = arith.subf %682, %684 : vector<32x32xf32>
    %686 = arith.truncf %685 : vector<32x32xf32> to vector<32x32xbf16>
    %687 = arith.truncf %680 : vector<16x32xf32> to vector<16x32xbf16>
    %688 = arith.extf %687 : vector<16x32xbf16> to vector<16x32xf32>
    %689 = arith.subf %680, %688 : vector<16x32xf32>
    %690 = arith.truncf %689 : vector<16x32xf32> to vector<16x32xbf16>
    %cst_332 = arith.constant dense<0.000000e+00> : vector<16x32xf32>
    %691 = tpu.matmul %687, %683, %cst_332 {dimension_numbers = #tpu.dot_dimension_numbers<[1], [0], [0], [1], [0, 0, 1, 1], [], []>} : vector<16x32xbf16>, vector<32x32xbf16>, vector<16x32xf32> -> vector<16x32xf32>
    %cst_333 = arith.constant dense<0.000000e+00> : vector<16x32xf32>
    %692 = tpu.matmul %687, %686, %cst_333 {dimension_numbers = #tpu.dot_dimension_numbers<[1], [0], [0], [1], [0, 0, 1, 1], [], []>} : vector<16x32xbf16>, vector<32x32xbf16>, vector<16x32xf32> -> vector<16x32xf32>
    %693 = arith.addf %691, %692 : vector<16x32xf32>
    %cst_334 = arith.constant dense<0.000000e+00> : vector<16x32xf32>
    %694 = tpu.matmul %690, %683, %cst_334 {dimension_numbers = #tpu.dot_dimension_numbers<[1], [0], [0], [1], [0, 0, 1, 1], [], []>} : vector<16x32xbf16>, vector<32x32xbf16>, vector<16x32xf32> -> vector<16x32xf32>
    %695 = arith.addf %693, %694 : vector<16x32xf32>
    %696 = arith.addf %672, %695 : vector<16x32xf32>
    %c2_335 = arith.constant 2 : index
    %c0_336 = arith.constant 0 : index
    %c0_337 = arith.constant 0 : index
    %697 = vector.load %arg25[%c2_335, %c0_336, %c0_337] : memref<3x16x32xf32, #tpu.memory_space<vmem>>, vector<1x16x32xf32>
    %698 = vector.shape_cast %697 : vector<1x16x32xf32> to vector<16x32xf32>
    %699 = vector.broadcast %639 : vector<1x32xf32> to vector<16x32xf32>
    %700 = arith.subf %698, %699 : vector<16x32xf32>
    %701 = vector.broadcast %646 : vector<1x32xf32> to vector<16x32xf32>
    %702 = arith.mulf %700, %701 : vector<16x32xf32>
    %cst_338 = arith.constant 0.000000e+00 : f32
    %703 = vector.broadcast %cst_338 : f32 to vector<16x32xf32>
    %704 = arith.maximumf %702, %703 : vector<16x32xf32>
    %c2_339 = arith.constant 2 : index
    %c0_340 = arith.constant 0 : index
    %c0_341 = arith.constant 0 : index
    %705 = vector.load %arg18[%c2_339, %c0_340, %c0_341] : memref<3x32x32xf32, #tpu.memory_space<vmem>>, vector<1x32x32xf32>
    %706 = vector.shape_cast %705 : vector<1x32x32xf32> to vector<32x32xf32>
    %707 = arith.truncf %706 : vector<32x32xf32> to vector<32x32xbf16>
    %708 = arith.extf %707 : vector<32x32xbf16> to vector<32x32xf32>
    %709 = arith.subf %706, %708 : vector<32x32xf32>
    %710 = arith.truncf %709 : vector<32x32xf32> to vector<32x32xbf16>
    %711 = arith.truncf %704 : vector<16x32xf32> to vector<16x32xbf16>
    %712 = arith.extf %711 : vector<16x32xbf16> to vector<16x32xf32>
    %713 = arith.subf %704, %712 : vector<16x32xf32>
    %714 = arith.truncf %713 : vector<16x32xf32> to vector<16x32xbf16>
    %cst_342 = arith.constant dense<0.000000e+00> : vector<16x32xf32>
    %715 = tpu.matmul %711, %707, %cst_342 {dimension_numbers = #tpu.dot_dimension_numbers<[1], [0], [0], [1], [0, 0, 1, 1], [], []>} : vector<16x32xbf16>, vector<32x32xbf16>, vector<16x32xf32> -> vector<16x32xf32>
    %cst_343 = arith.constant dense<0.000000e+00> : vector<16x32xf32>
    %716 = tpu.matmul %711, %710, %cst_343 {dimension_numbers = #tpu.dot_dimension_numbers<[1], [0], [0], [1], [0, 0, 1, 1], [], []>} : vector<16x32xbf16>, vector<32x32xbf16>, vector<16x32xf32> -> vector<16x32xf32>
    %717 = arith.addf %715, %716 : vector<16x32xf32>
    %cst_344 = arith.constant dense<0.000000e+00> : vector<16x32xf32>
    %718 = tpu.matmul %714, %707, %cst_344 {dimension_numbers = #tpu.dot_dimension_numbers<[1], [0], [0], [1], [0, 0, 1, 1], [], []>} : vector<16x32xbf16>, vector<32x32xbf16>, vector<16x32xf32> -> vector<16x32xf32>
    %719 = arith.addf %717, %718 : vector<16x32xf32>
    %720 = arith.addf %696, %719 : vector<16x32xf32>
    %cst_345 = arith.constant dense<0.000000e+00> : vector<32xf32>
    %721 = vector.multi_reduction <add>, %720, %cst_345 [0] : vector<16x32xf32> to vector<32xf32>
    %722 = vector.shape_cast %721 : vector<32xf32> to vector<1x32xf32>
    %723 = arith.mulf %720, %720 : vector<16x32xf32>
    %cst_346 = arith.constant dense<0.000000e+00> : vector<32xf32>
    %724 = vector.multi_reduction <add>, %723, %cst_346 [0] : vector<16x32xf32> to vector<32xf32>
    %725 = vector.shape_cast %724 : vector<32xf32> to vector<1x32xf32>
    %cst_347 = arith.constant 1.600000e+01 : f32
    %726 = vector.broadcast %cst_347 : f32 to vector<1x32xf32>
    %727 = arith.divf %722, %726 : vector<1x32xf32>
    %cst_348 = arith.constant 1.600000e+01 : f32
    %728 = vector.broadcast %cst_348 : f32 to vector<1x32xf32>
    %729 = arith.divf %725, %728 : vector<1x32xf32>
    %730 = arith.mulf %727, %727 : vector<1x32xf32>
    %731 = arith.subf %729, %730 : vector<1x32xf32>
    %cst_349 = arith.constant 9.99999974E-6 : f32
    %732 = vector.broadcast %cst_349 : f32 to vector<1x32xf32>
    %733 = arith.addf %731, %732 : vector<1x32xf32>
    %734 = math.rsqrt %733 : vector<1x32xf32>
    %735 = vector.broadcast %727 : vector<1x32xf32> to vector<16x32xf32>
    %736 = arith.subf %720, %735 : vector<16x32xf32>
    %737 = vector.broadcast %734 : vector<1x32xf32> to vector<16x32xf32>
    %738 = arith.mulf %736, %737 : vector<16x32xf32>
    %cst_350 = arith.constant 0.000000e+00 : f32
    %739 = vector.broadcast %cst_350 : f32 to vector<16x32xf32>
    %740 = arith.maximumf %738, %739 : vector<16x32xf32>
    %741 = tpu.concatenate %521, %389 in 1 : vector<16x32xf32>, vector<16x32xf32> -> vector<16x64xf32>
    %742 = arith.truncf %741 : vector<16x64xf32> to vector<16x64xbf16>
    %743 = arith.extf %742 : vector<16x64xbf16> to vector<16x64xf32>
    %744 = arith.subf %741, %743 : vector<16x64xf32>
    %745 = arith.truncf %744 : vector<16x64xf32> to vector<16x64xbf16>
    %c0_351 = arith.constant 0 : index
    %c0_352 = arith.constant 0 : index
    %746 = vector.load %arg9[%c0_351, %c0_352] : memref<32x64xf32, #tpu.memory_space<vmem>>, vector<32x64xf32>
    %747 = arith.truncf %746 : vector<32x64xf32> to vector<32x64xbf16>
    %748 = arith.extf %747 : vector<32x64xbf16> to vector<32x64xf32>
    %749 = arith.subf %746, %748 : vector<32x64xf32>
    %750 = arith.truncf %749 : vector<32x64xf32> to vector<32x64xbf16>
    %751 = arith.truncf %389 : vector<16x32xf32> to vector<16x32xbf16>
    %752 = arith.extf %751 : vector<16x32xbf16> to vector<16x32xf32>
    %753 = arith.subf %389, %752 : vector<16x32xf32>
    %754 = arith.truncf %753 : vector<16x32xf32> to vector<16x32xbf16>
    %cst_353 = arith.constant dense<0.000000e+00> : vector<16x64xf32>
    %755 = tpu.matmul %751, %747, %cst_353 {dimension_numbers = #tpu.dot_dimension_numbers<[1], [0], [0], [1], [0, 0, 1, 1], [], []>} : vector<16x32xbf16>, vector<32x64xbf16>, vector<16x64xf32> -> vector<16x64xf32>
    %cst_354 = arith.constant dense<0.000000e+00> : vector<16x64xf32>
    %756 = tpu.matmul %751, %750, %cst_354 {dimension_numbers = #tpu.dot_dimension_numbers<[1], [0], [0], [1], [0, 0, 1, 1], [], []>} : vector<16x32xbf16>, vector<32x64xbf16>, vector<16x64xf32> -> vector<16x64xf32>
    %757 = arith.addf %755, %756 : vector<16x64xf32>
    %cst_355 = arith.constant dense<0.000000e+00> : vector<16x64xf32>
    %758 = tpu.matmul %754, %747, %cst_355 {dimension_numbers = #tpu.dot_dimension_numbers<[1], [0], [0], [1], [0, 0, 1, 1], [], []>} : vector<16x32xbf16>, vector<32x64xbf16>, vector<16x64xf32> -> vector<16x64xf32>
    %759 = arith.addf %757, %758 : vector<16x64xf32>
    %c0_356 = arith.constant 0 : index
    %c0_357 = arith.constant 0 : index
    %760 = vector.load %arg11[%c0_356, %c0_357] : memref<32x32xf32, #tpu.memory_space<vmem>>, vector<32x32xf32>
    %761 = arith.truncf %760 : vector<32x32xf32> to vector<32x32xbf16>
    %762 = arith.extf %761 : vector<32x32xbf16> to vector<32x32xf32>
    %763 = arith.subf %760, %762 : vector<32x32xf32>
    %764 = arith.truncf %763 : vector<32x32xf32> to vector<32x32xbf16>
    %765 = arith.truncf %521 : vector<16x32xf32> to vector<16x32xbf16>
    %766 = arith.extf %765 : vector<16x32xbf16> to vector<16x32xf32>
    %767 = arith.subf %521, %766 : vector<16x32xf32>
    %768 = arith.truncf %767 : vector<16x32xf32> to vector<16x32xbf16>
    %cst_358 = arith.constant dense<0.000000e+00> : vector<16x32xf32>
    %769 = tpu.matmul %765, %761, %cst_358 {dimension_numbers = #tpu.dot_dimension_numbers<[1], [0], [0], [1], [0, 0, 1, 1], [], []>} : vector<16x32xbf16>, vector<32x32xbf16>, vector<16x32xf32> -> vector<16x32xf32>
    %cst_359 = arith.constant dense<0.000000e+00> : vector<16x32xf32>
    %770 = tpu.matmul %765, %764, %cst_359 {dimension_numbers = #tpu.dot_dimension_numbers<[1], [0], [0], [1], [0, 0, 1, 1], [], []>} : vector<16x32xbf16>, vector<32x32xbf16>, vector<16x32xf32> -> vector<16x32xf32>
    %771 = arith.addf %769, %770 : vector<16x32xf32>
    %cst_360 = arith.constant dense<0.000000e+00> : vector<16x32xf32>
    %772 = tpu.matmul %768, %761, %cst_360 {dimension_numbers = #tpu.dot_dimension_numbers<[1], [0], [0], [1], [0, 0, 1, 1], [], []>} : vector<16x32xbf16>, vector<32x32xbf16>, vector<16x32xf32> -> vector<16x32xf32>
    %773 = arith.addf %771, %772 : vector<16x32xf32>
    %c0_361 = arith.constant 0 : index
    %c0_362 = arith.constant 0 : index
    %774 = vector.load %arg13[%c0_361, %c0_362] : memref<1x32xf32, #tpu.memory_space<vmem>>, vector<1x32xf32>
    %775 = vector.broadcast %774 : vector<1x32xf32> to vector<16x32xf32>
    %776 = arith.addf %773, %775 : vector<16x32xf32>
    %c0_363 = arith.constant 0 : index
    %c0_364 = arith.constant 0 : index
    %777 = vector.load %arg10[%c0_363, %c0_364] : memref<32x64xf32, #tpu.memory_space<vmem>>, vector<32x64xf32>
    %778 = arith.truncf %777 : vector<32x64xf32> to vector<32x64xbf16>
    %779 = arith.extf %778 : vector<32x64xbf16> to vector<32x64xf32>
    %780 = arith.subf %777, %779 : vector<32x64xf32>
    %781 = arith.truncf %780 : vector<32x64xf32> to vector<32x64xbf16>
    %c0_365 = arith.constant 0 : index
    %c0_366 = arith.constant 0 : index
    %c0_367 = arith.constant 0 : index
    %782 = vector.load %arg12[%c0_365, %c0_366, %c0_367] : memref<3x32x32xf32, #tpu.memory_space<vmem>>, vector<1x32x32xf32>
    %783 = vector.shape_cast %782 : vector<1x32x32xf32> to vector<32x32xf32>
    %784 = arith.truncf %783 : vector<32x32xf32> to vector<32x32xbf16>
    %785 = arith.extf %784 : vector<32x32xbf16> to vector<32x32xf32>
    %786 = arith.subf %783, %785 : vector<32x32xf32>
    %787 = arith.truncf %786 : vector<32x32xf32> to vector<32x32xbf16>
    %c1_368 = arith.constant 1 : index
    %c0_369 = arith.constant 0 : index
    %c0_370 = arith.constant 0 : index
    %788 = vector.load %arg12[%c1_368, %c0_369, %c0_370] : memref<3x32x32xf32, #tpu.memory_space<vmem>>, vector<1x32x32xf32>
    %789 = vector.shape_cast %788 : vector<1x32x32xf32> to vector<32x32xf32>
    %790 = arith.truncf %789 : vector<32x32xf32> to vector<32x32xbf16>
    %791 = arith.extf %790 : vector<32x32xbf16> to vector<32x32xf32>
    %792 = arith.subf %789, %791 : vector<32x32xf32>
    %793 = arith.truncf %792 : vector<32x32xf32> to vector<32x32xbf16>
    %c2_371 = arith.constant 2 : index
    %c0_372 = arith.constant 0 : index
    %c0_373 = arith.constant 0 : index
    %794 = vector.load %arg12[%c2_371, %c0_372, %c0_373] : memref<3x32x32xf32, #tpu.memory_space<vmem>>, vector<1x32x32xf32>
    %795 = vector.shape_cast %794 : vector<1x32x32xf32> to vector<32x32xf32>
    %796 = arith.truncf %795 : vector<32x32xf32> to vector<32x32xbf16>
    %797 = arith.extf %796 : vector<32x32xbf16> to vector<32x32xf32>
    %798 = arith.subf %795, %797 : vector<32x32xf32>
    %799 = arith.truncf %798 : vector<32x32xf32> to vector<32x32xbf16>
    %cst_374 = arith.constant 0.000000e+00 : f32
    %800 = vector.broadcast %cst_374 : f32 to vector<1x64xf32>
    %cst_375 = arith.constant 0.000000e+00 : f32
    %801 = vector.broadcast %cst_375 : f32 to vector<1x64xf32>
    %c0_376 = arith.constant 0 : index
    %c0_377 = arith.constant 0 : index
    %c0_378 = arith.constant 0 : index
    %802 = vector.load %arg2[%c0_376, %c0_377, %c0_378] : memref<1x144x1xi32, #tpu.memory_space<vmem>>, vector<1x16x1xi32>
    %803 = vector.shape_cast %802 : vector<1x16x1xi32> to vector<16x1xi32>
    %804 = vector.broadcast %803 : vector<16x1xi32> to vector<16x16xi32>
    %805 = arith.cmpi eq, %2, %804 : vector<16x16xi32>
    %cst_379 = arith.constant 1.000000e+00 : f32
    %cst_380 = arith.constant 0.000000e+00 : f32
    %806 = vector.broadcast %cst_379 : f32 to vector<16x16xf32>
    %807 = vector.broadcast %cst_380 : f32 to vector<16x16xf32>
    %808 = arith.select %805, %806, %807 : vector<16x16xi1>, vector<16x16xf32>
    %809 = arith.truncf %808 : vector<16x16xf32> to vector<16x16xbf16>
    %cst_381 = arith.constant dense<0.000000e+00> : vector<16x64xf32>
    %810 = tpu.matmul %809, %742, %cst_381 {dimension_numbers = #tpu.dot_dimension_numbers<[1], [0], [0], [1], [0, 0, 1, 1], [], []>} : vector<16x16xbf16>, vector<16x64xbf16>, vector<16x64xf32> -> vector<16x64xf32>
    %cst_382 = arith.constant dense<0.000000e+00> : vector<16x64xf32>
    %811 = tpu.matmul %809, %745, %cst_382 {dimension_numbers = #tpu.dot_dimension_numbers<[1], [0], [0], [1], [0, 0, 1, 1], [], []>} : vector<16x16xbf16>, vector<16x64xbf16>, vector<16x64xf32> -> vector<16x64xf32>
    %812 = arith.addf %810, %811 : vector<16x64xf32>
    %813 = vector.extract_strided_slice %812 {offsets = [0, 32], sizes = [16, 32], strides = [1, 1]} : vector<16x64xf32> to vector<16x32xf32>
    %814 = arith.truncf %813 : vector<16x32xf32> to vector<16x32xbf16>
    %815 = arith.extf %814 : vector<16x32xbf16> to vector<16x32xf32>
    %816 = arith.subf %813, %815 : vector<16x32xf32>
    %817 = arith.truncf %816 : vector<16x32xf32> to vector<16x32xbf16>
    %cst_383 = arith.constant dense<0.000000e+00> : vector<16x64xf32>
    %818 = tpu.matmul %814, %778, %cst_383 {dimension_numbers = #tpu.dot_dimension_numbers<[1], [0], [0], [1], [0, 0, 1, 1], [], []>} : vector<16x32xbf16>, vector<32x64xbf16>, vector<16x64xf32> -> vector<16x64xf32>
    %cst_384 = arith.constant dense<0.000000e+00> : vector<16x64xf32>
    %819 = tpu.matmul %814, %781, %cst_384 {dimension_numbers = #tpu.dot_dimension_numbers<[1], [0], [0], [1], [0, 0, 1, 1], [], []>} : vector<16x32xbf16>, vector<32x64xbf16>, vector<16x64xf32> -> vector<16x64xf32>
    %820 = arith.addf %818, %819 : vector<16x64xf32>
    %cst_385 = arith.constant dense<0.000000e+00> : vector<16x64xf32>
    %821 = tpu.matmul %817, %778, %cst_385 {dimension_numbers = #tpu.dot_dimension_numbers<[1], [0], [0], [1], [0, 0, 1, 1], [], []>} : vector<16x32xbf16>, vector<32x64xbf16>, vector<16x64xf32> -> vector<16x64xf32>
    %822 = arith.addf %820, %821 : vector<16x64xf32>
    %823 = arith.addf %759, %822 : vector<16x64xf32>
    %cst_386 = arith.constant dense<0.000000e+00> : vector<64xf32>
    %824 = vector.multi_reduction <add>, %823, %cst_386 [0] : vector<16x64xf32> to vector<64xf32>
    %825 = vector.shape_cast %824 : vector<64xf32> to vector<1x64xf32>
    %826 = arith.addf %800, %825 : vector<1x64xf32>
    %827 = arith.mulf %823, %823 : vector<16x64xf32>
    %cst_387 = arith.constant dense<0.000000e+00> : vector<64xf32>
    %828 = vector.multi_reduction <add>, %827, %cst_387 [0] : vector<16x64xf32> to vector<64xf32>
    %829 = vector.shape_cast %828 : vector<64xf32> to vector<1x64xf32>
    %830 = arith.addf %801, %829 : vector<1x64xf32>
    %831 = vector.extract_strided_slice %812 {offsets = [0, 0], sizes = [16, 32], strides = [1, 1]} : vector<16x64xf32> to vector<16x32xf32>
    %832 = arith.truncf %831 : vector<16x32xf32> to vector<16x32xbf16>
    %833 = arith.extf %832 : vector<16x32xbf16> to vector<16x32xf32>
    %834 = arith.subf %831, %833 : vector<16x32xf32>
    %835 = arith.truncf %834 : vector<16x32xf32> to vector<16x32xbf16>
    %cst_388 = arith.constant dense<0.000000e+00> : vector<16x32xf32>
    %836 = tpu.matmul %832, %784, %cst_388 {dimension_numbers = #tpu.dot_dimension_numbers<[1], [0], [0], [1], [0, 0, 1, 1], [], []>} : vector<16x32xbf16>, vector<32x32xbf16>, vector<16x32xf32> -> vector<16x32xf32>
    %cst_389 = arith.constant dense<0.000000e+00> : vector<16x32xf32>
    %837 = tpu.matmul %832, %787, %cst_389 {dimension_numbers = #tpu.dot_dimension_numbers<[1], [0], [0], [1], [0, 0, 1, 1], [], []>} : vector<16x32xbf16>, vector<32x32xbf16>, vector<16x32xf32> -> vector<16x32xf32>
    %838 = arith.addf %836, %837 : vector<16x32xf32>
    %cst_390 = arith.constant dense<0.000000e+00> : vector<16x32xf32>
    %839 = tpu.matmul %835, %784, %cst_390 {dimension_numbers = #tpu.dot_dimension_numbers<[1], [0], [0], [1], [0, 0, 1, 1], [], []>} : vector<16x32xbf16>, vector<32x32xbf16>, vector<16x32xf32> -> vector<16x32xf32>
    %840 = arith.addf %838, %839 : vector<16x32xf32>
    %841 = arith.addf %776, %840 : vector<16x32xf32>
    %c0_391 = arith.constant 0 : index
    %c0_392 = arith.constant 0 : index
    %c0_393 = arith.constant 0 : index
    %842 = vector.load %arg25[%c0_391, %c0_392, %c0_393] : memref<3x16x32xf32, #tpu.memory_space<vmem>>, vector<1x16x32xf32>
    %843 = vector.shape_cast %842 : vector<1x16x32xf32> to vector<16x32xf32>
    %844 = vector.shape_cast %841 : vector<16x32xf32> to vector<1x16x32xf32>
    tpu.vector_store %arg25[%c0_391, %c0_392, %c0_393], %844 {strides = array<i32>} : memref<3x16x32xf32, #tpu.memory_space<vmem>>, vector<1x16x32xf32>,
    %c0_394 = arith.constant 0 : index
    %c16_395 = arith.constant 16 : index
    %c0_396 = arith.constant 0 : index
    %845 = vector.load %arg2[%c0_394, %c16_395, %c0_396] : memref<1x144x1xi32, #tpu.memory_space<vmem>>, vector<1x16x1xi32>
    %846 = vector.shape_cast %845 : vector<1x16x1xi32> to vector<16x1xi32>
    %847 = vector.broadcast %846 : vector<16x1xi32> to vector<16x16xi32>
    %848 = arith.cmpi eq, %2, %847 : vector<16x16xi32>
    %cst_397 = arith.constant 1.000000e+00 : f32
    %cst_398 = arith.constant 0.000000e+00 : f32
    %849 = vector.broadcast %cst_397 : f32 to vector<16x16xf32>
    %850 = vector.broadcast %cst_398 : f32 to vector<16x16xf32>
    %851 = arith.select %848, %849, %850 : vector<16x16xi1>, vector<16x16xf32>
    %852 = arith.truncf %851 : vector<16x16xf32> to vector<16x16xbf16>
    %cst_399 = arith.constant dense<0.000000e+00> : vector<16x64xf32>
    %853 = tpu.matmul %852, %742, %cst_399 {dimension_numbers = #tpu.dot_dimension_numbers<[1], [0], [0], [1], [0, 0, 1, 1], [], []>} : vector<16x16xbf16>, vector<16x64xbf16>, vector<16x64xf32> -> vector<16x64xf32>
    %cst_400 = arith.constant dense<0.000000e+00> : vector<16x64xf32>
    %854 = tpu.matmul %852, %745, %cst_400 {dimension_numbers = #tpu.dot_dimension_numbers<[1], [0], [0], [1], [0, 0, 1, 1], [], []>} : vector<16x16xbf16>, vector<16x64xbf16>, vector<16x64xf32> -> vector<16x64xf32>
    %855 = arith.addf %853, %854 : vector<16x64xf32>
    %856 = vector.extract_strided_slice %855 {offsets = [0, 32], sizes = [16, 32], strides = [1, 1]} : vector<16x64xf32> to vector<16x32xf32>
    %857 = arith.truncf %856 : vector<16x32xf32> to vector<16x32xbf16>
    %858 = arith.extf %857 : vector<16x32xbf16> to vector<16x32xf32>
    %859 = arith.subf %856, %858 : vector<16x32xf32>
    %860 = arith.truncf %859 : vector<16x32xf32> to vector<16x32xbf16>
    %cst_401 = arith.constant dense<0.000000e+00> : vector<16x64xf32>
    %861 = tpu.matmul %857, %778, %cst_401 {dimension_numbers = #tpu.dot_dimension_numbers<[1], [0], [0], [1], [0, 0, 1, 1], [], []>} : vector<16x32xbf16>, vector<32x64xbf16>, vector<16x64xf32> -> vector<16x64xf32>
    %cst_402 = arith.constant dense<0.000000e+00> : vector<16x64xf32>
    %862 = tpu.matmul %857, %781, %cst_402 {dimension_numbers = #tpu.dot_dimension_numbers<[1], [0], [0], [1], [0, 0, 1, 1], [], []>} : vector<16x32xbf16>, vector<32x64xbf16>, vector<16x64xf32> -> vector<16x64xf32>
    %863 = arith.addf %861, %862 : vector<16x64xf32>
    %cst_403 = arith.constant dense<0.000000e+00> : vector<16x64xf32>
    %864 = tpu.matmul %860, %778, %cst_403 {dimension_numbers = #tpu.dot_dimension_numbers<[1], [0], [0], [1], [0, 0, 1, 1], [], []>} : vector<16x32xbf16>, vector<32x64xbf16>, vector<16x64xf32> -> vector<16x64xf32>
    %865 = arith.addf %863, %864 : vector<16x64xf32>
    %866 = arith.addf %759, %865 : vector<16x64xf32>
    %cst_404 = arith.constant dense<0.000000e+00> : vector<64xf32>
    %867 = vector.multi_reduction <add>, %866, %cst_404 [0] : vector<16x64xf32> to vector<64xf32>
    %868 = vector.shape_cast %867 : vector<64xf32> to vector<1x64xf32>
    %869 = arith.addf %826, %868 : vector<1x64xf32>
    %870 = arith.mulf %866, %866 : vector<16x64xf32>
    %cst_405 = arith.constant dense<0.000000e+00> : vector<64xf32>
    %871 = vector.multi_reduction <add>, %870, %cst_405 [0] : vector<16x64xf32> to vector<64xf32>
    %872 = vector.shape_cast %871 : vector<64xf32> to vector<1x64xf32>
    %873 = arith.addf %830, %872 : vector<1x64xf32>
    %874 = arith.maximumf %823, %866 : vector<16x64xf32>
    %875 = vector.extract_strided_slice %855 {offsets = [0, 0], sizes = [16, 32], strides = [1, 1]} : vector<16x64xf32> to vector<16x32xf32>
    %876 = arith.truncf %875 : vector<16x32xf32> to vector<16x32xbf16>
    %877 = arith.extf %876 : vector<16x32xbf16> to vector<16x32xf32>
    %878 = arith.subf %875, %877 : vector<16x32xf32>
    %879 = arith.truncf %878 : vector<16x32xf32> to vector<16x32xbf16>
    %cst_406 = arith.constant dense<0.000000e+00> : vector<16x32xf32>
    %880 = tpu.matmul %876, %790, %cst_406 {dimension_numbers = #tpu.dot_dimension_numbers<[1], [0], [0], [1], [0, 0, 1, 1], [], []>} : vector<16x32xbf16>, vector<32x32xbf16>, vector<16x32xf32> -> vector<16x32xf32>
    %cst_407 = arith.constant dense<0.000000e+00> : vector<16x32xf32>
    %881 = tpu.matmul %876, %793, %cst_407 {dimension_numbers = #tpu.dot_dimension_numbers<[1], [0], [0], [1], [0, 0, 1, 1], [], []>} : vector<16x32xbf16>, vector<32x32xbf16>, vector<16x32xf32> -> vector<16x32xf32>
    %882 = arith.addf %880, %881 : vector<16x32xf32>
    %cst_408 = arith.constant dense<0.000000e+00> : vector<16x32xf32>
    %883 = tpu.matmul %879, %790, %cst_408 {dimension_numbers = #tpu.dot_dimension_numbers<[1], [0], [0], [1], [0, 0, 1, 1], [], []>} : vector<16x32xbf16>, vector<32x32xbf16>, vector<16x32xf32> -> vector<16x32xf32>
    %884 = arith.addf %882, %883 : vector<16x32xf32>
    %c0_409 = arith.constant 0 : index
    %c0_410 = arith.constant 0 : index
    %c0_411 = arith.constant 0 : index
    %885 = vector.load %arg25[%c0_409, %c0_410, %c0_411] : memref<3x16x32xf32, #tpu.memory_space<vmem>>, vector<1x16x32xf32>
    %886 = vector.shape_cast %885 : vector<1x16x32xf32> to vector<16x32xf32>
    %887 = arith.addf %886, %884 : vector<16x32xf32>
    %c0_412 = arith.constant 0 : index
    %c0_413 = arith.constant 0 : index
    %c0_414 = arith.constant 0 : index
    %888 = vector.load %arg25[%c0_412, %c0_413, %c0_414] : memref<3x16x32xf32, #tpu.memory_space<vmem>>, vector<1x16x32xf32>
    %889 = vector.shape_cast %888 : vector<1x16x32xf32> to vector<16x32xf32>
    %890 = vector.shape_cast %887 : vector<16x32xf32> to vector<1x16x32xf32>
    tpu.vector_store %arg25[%c0_412, %c0_413, %c0_414], %890 {strides = array<i32>} : memref<3x16x32xf32, #tpu.memory_space<vmem>>, vector<1x16x32xf32>,
    %c0_415 = arith.constant 0 : index
    %c32_416 = arith.constant 32 : index
    %c0_417 = arith.constant 0 : index
    %891 = vector.load %arg2[%c0_415, %c32_416, %c0_417] : memref<1x144x1xi32, #tpu.memory_space<vmem>>, vector<1x16x1xi32>
    %892 = vector.shape_cast %891 : vector<1x16x1xi32> to vector<16x1xi32>
    %893 = vector.broadcast %892 : vector<16x1xi32> to vector<16x16xi32>
    %894 = arith.cmpi eq, %2, %893 : vector<16x16xi32>
    %cst_418 = arith.constant 1.000000e+00 : f32
    %cst_419 = arith.constant 0.000000e+00 : f32
    %895 = vector.broadcast %cst_418 : f32 to vector<16x16xf32>
    %896 = vector.broadcast %cst_419 : f32 to vector<16x16xf32>
    %897 = arith.select %894, %895, %896 : vector<16x16xi1>, vector<16x16xf32>
    %898 = arith.truncf %897 : vector<16x16xf32> to vector<16x16xbf16>
    %cst_420 = arith.constant dense<0.000000e+00> : vector<16x64xf32>
    %899 = tpu.matmul %898, %742, %cst_420 {dimension_numbers = #tpu.dot_dimension_numbers<[1], [0], [0], [1], [0, 0, 1, 1], [], []>} : vector<16x16xbf16>, vector<16x64xbf16>, vector<16x64xf32> -> vector<16x64xf32>
    %cst_421 = arith.constant dense<0.000000e+00> : vector<16x64xf32>
    %900 = tpu.matmul %898, %745, %cst_421 {dimension_numbers = #tpu.dot_dimension_numbers<[1], [0], [0], [1], [0, 0, 1, 1], [], []>} : vector<16x16xbf16>, vector<16x64xbf16>, vector<16x64xf32> -> vector<16x64xf32>
    %901 = arith.addf %899, %900 : vector<16x64xf32>
    %902 = vector.extract_strided_slice %901 {offsets = [0, 32], sizes = [16, 32], strides = [1, 1]} : vector<16x64xf32> to vector<16x32xf32>
    %903 = arith.truncf %902 : vector<16x32xf32> to vector<16x32xbf16>
    %904 = arith.extf %903 : vector<16x32xbf16> to vector<16x32xf32>
    %905 = arith.subf %902, %904 : vector<16x32xf32>
    %906 = arith.truncf %905 : vector<16x32xf32> to vector<16x32xbf16>
    %cst_422 = arith.constant dense<0.000000e+00> : vector<16x64xf32>
    %907 = tpu.matmul %903, %778, %cst_422 {dimension_numbers = #tpu.dot_dimension_numbers<[1], [0], [0], [1], [0, 0, 1, 1], [], []>} : vector<16x32xbf16>, vector<32x64xbf16>, vector<16x64xf32> -> vector<16x64xf32>
    %cst_423 = arith.constant dense<0.000000e+00> : vector<16x64xf32>
    %908 = tpu.matmul %903, %781, %cst_423 {dimension_numbers = #tpu.dot_dimension_numbers<[1], [0], [0], [1], [0, 0, 1, 1], [], []>} : vector<16x32xbf16>, vector<32x64xbf16>, vector<16x64xf32> -> vector<16x64xf32>
    %909 = arith.addf %907, %908 : vector<16x64xf32>
    %cst_424 = arith.constant dense<0.000000e+00> : vector<16x64xf32>
    %910 = tpu.matmul %906, %778, %cst_424 {dimension_numbers = #tpu.dot_dimension_numbers<[1], [0], [0], [1], [0, 0, 1, 1], [], []>} : vector<16x32xbf16>, vector<32x64xbf16>, vector<16x64xf32> -> vector<16x64xf32>
    %911 = arith.addf %909, %910 : vector<16x64xf32>
    %912 = arith.addf %759, %911 : vector<16x64xf32>
    %cst_425 = arith.constant dense<0.000000e+00> : vector<64xf32>
    %913 = vector.multi_reduction <add>, %912, %cst_425 [0] : vector<16x64xf32> to vector<64xf32>
    %914 = vector.shape_cast %913 : vector<64xf32> to vector<1x64xf32>
    %915 = arith.addf %869, %914 : vector<1x64xf32>
    %916 = arith.mulf %912, %912 : vector<16x64xf32>
    %cst_426 = arith.constant dense<0.000000e+00> : vector<64xf32>
    %917 = vector.multi_reduction <add>, %916, %cst_426 [0] : vector<16x64xf32> to vector<64xf32>
    %918 = vector.shape_cast %917 : vector<64xf32> to vector<1x64xf32>
    %919 = arith.addf %873, %918 : vector<1x64xf32>
    %920 = arith.maximumf %874, %912 : vector<16x64xf32>
    %921 = vector.extract_strided_slice %901 {offsets = [0, 0], sizes = [16, 32], strides = [1, 1]} : vector<16x64xf32> to vector<16x32xf32>
    %922 = arith.truncf %921 : vector<16x32xf32> to vector<16x32xbf16>
    %923 = arith.extf %922 : vector<16x32xbf16> to vector<16x32xf32>
    %924 = arith.subf %921, %923 : vector<16x32xf32>
    %925 = arith.truncf %924 : vector<16x32xf32> to vector<16x32xbf16>
    %cst_427 = arith.constant dense<0.000000e+00> : vector<16x32xf32>
    %926 = tpu.matmul %922, %796, %cst_427 {dimension_numbers = #tpu.dot_dimension_numbers<[1], [0], [0], [1], [0, 0, 1, 1], [], []>} : vector<16x32xbf16>, vector<32x32xbf16>, vector<16x32xf32> -> vector<16x32xf32>
    %cst_428 = arith.constant dense<0.000000e+00> : vector<16x32xf32>
    %927 = tpu.matmul %922, %799, %cst_428 {dimension_numbers = #tpu.dot_dimension_numbers<[1], [0], [0], [1], [0, 0, 1, 1], [], []>} : vector<16x32xbf16>, vector<32x32xbf16>, vector<16x32xf32> -> vector<16x32xf32>
    %928 = arith.addf %926, %927 : vector<16x32xf32>
    %cst_429 = arith.constant dense<0.000000e+00> : vector<16x32xf32>
    %929 = tpu.matmul %925, %796, %cst_429 {dimension_numbers = #tpu.dot_dimension_numbers<[1], [0], [0], [1], [0, 0, 1, 1], [], []>} : vector<16x32xbf16>, vector<32x32xbf16>, vector<16x32xf32> -> vector<16x32xf32>
    %930 = arith.addf %928, %929 : vector<16x32xf32>
    %c0_430 = arith.constant 0 : index
    %c0_431 = arith.constant 0 : index
    %c0_432 = arith.constant 0 : index
    %931 = vector.load %arg25[%c0_430, %c0_431, %c0_432] : memref<3x16x32xf32, #tpu.memory_space<vmem>>, vector<1x16x32xf32>
    %932 = vector.shape_cast %931 : vector<1x16x32xf32> to vector<16x32xf32>
    %933 = arith.addf %932, %930 : vector<16x32xf32>
    %c0_433 = arith.constant 0 : index
    %c0_434 = arith.constant 0 : index
    %c0_435 = arith.constant 0 : index
    %934 = vector.load %arg25[%c0_433, %c0_434, %c0_435] : memref<3x16x32xf32, #tpu.memory_space<vmem>>, vector<1x16x32xf32>
    %935 = vector.shape_cast %934 : vector<1x16x32xf32> to vector<16x32xf32>
    %936 = vector.shape_cast %933 : vector<16x32xf32> to vector<1x16x32xf32>
    tpu.vector_store %arg25[%c0_433, %c0_434, %c0_435], %936 {strides = array<i32>} : memref<3x16x32xf32, #tpu.memory_space<vmem>>, vector<1x16x32xf32>,
    %c0_436 = arith.constant 0 : index
    %c48_437 = arith.constant 48 : index
    %c0_438 = arith.constant 0 : index
    %937 = vector.load %arg2[%c0_436, %c48_437, %c0_438] : memref<1x144x1xi32, #tpu.memory_space<vmem>>, vector<1x16x1xi32>
    %938 = vector.shape_cast %937 : vector<1x16x1xi32> to vector<16x1xi32>
    %939 = vector.broadcast %938 : vector<16x1xi32> to vector<16x16xi32>
    %940 = arith.cmpi eq, %2, %939 : vector<16x16xi32>
    %cst_439 = arith.constant 1.000000e+00 : f32
    %cst_440 = arith.constant 0.000000e+00 : f32
    %941 = vector.broadcast %cst_439 : f32 to vector<16x16xf32>
    %942 = vector.broadcast %cst_440 : f32 to vector<16x16xf32>
    %943 = arith.select %940, %941, %942 : vector<16x16xi1>, vector<16x16xf32>
    %944 = arith.truncf %943 : vector<16x16xf32> to vector<16x16xbf16>
    %cst_441 = arith.constant dense<0.000000e+00> : vector<16x64xf32>
    %945 = tpu.matmul %944, %742, %cst_441 {dimension_numbers = #tpu.dot_dimension_numbers<[1], [0], [0], [1], [0, 0, 1, 1], [], []>} : vector<16x16xbf16>, vector<16x64xbf16>, vector<16x64xf32> -> vector<16x64xf32>
    %cst_442 = arith.constant dense<0.000000e+00> : vector<16x64xf32>
    %946 = tpu.matmul %944, %745, %cst_442 {dimension_numbers = #tpu.dot_dimension_numbers<[1], [0], [0], [1], [0, 0, 1, 1], [], []>} : vector<16x16xbf16>, vector<16x64xbf16>, vector<16x64xf32> -> vector<16x64xf32>
    %947 = arith.addf %945, %946 : vector<16x64xf32>
    %948 = vector.extract_strided_slice %947 {offsets = [0, 32], sizes = [16, 32], strides = [1, 1]} : vector<16x64xf32> to vector<16x32xf32>
    %949 = arith.truncf %948 : vector<16x32xf32> to vector<16x32xbf16>
    %950 = arith.extf %949 : vector<16x32xbf16> to vector<16x32xf32>
    %951 = arith.subf %948, %950 : vector<16x32xf32>
    %952 = arith.truncf %951 : vector<16x32xf32> to vector<16x32xbf16>
    %cst_443 = arith.constant dense<0.000000e+00> : vector<16x64xf32>
    %953 = tpu.matmul %949, %778, %cst_443 {dimension_numbers = #tpu.dot_dimension_numbers<[1], [0], [0], [1], [0, 0, 1, 1], [], []>} : vector<16x32xbf16>, vector<32x64xbf16>, vector<16x64xf32> -> vector<16x64xf32>
    %cst_444 = arith.constant dense<0.000000e+00> : vector<16x64xf32>
    %954 = tpu.matmul %949, %781, %cst_444 {dimension_numbers = #tpu.dot_dimension_numbers<[1], [0], [0], [1], [0, 0, 1, 1], [], []>} : vector<16x32xbf16>, vector<32x64xbf16>, vector<16x64xf32> -> vector<16x64xf32>
    %955 = arith.addf %953, %954 : vector<16x64xf32>
    %cst_445 = arith.constant dense<0.000000e+00> : vector<16x64xf32>
    %956 = tpu.matmul %952, %778, %cst_445 {dimension_numbers = #tpu.dot_dimension_numbers<[1], [0], [0], [1], [0, 0, 1, 1], [], []>} : vector<16x32xbf16>, vector<32x64xbf16>, vector<16x64xf32> -> vector<16x64xf32>
    %957 = arith.addf %955, %956 : vector<16x64xf32>
    %958 = arith.addf %759, %957 : vector<16x64xf32>
    %cst_446 = arith.constant dense<0.000000e+00> : vector<64xf32>
    %959 = vector.multi_reduction <add>, %958, %cst_446 [0] : vector<16x64xf32> to vector<64xf32>
    %960 = vector.shape_cast %959 : vector<64xf32> to vector<1x64xf32>
    %961 = arith.addf %915, %960 : vector<1x64xf32>
    %962 = arith.mulf %958, %958 : vector<16x64xf32>
    %cst_447 = arith.constant dense<0.000000e+00> : vector<64xf32>
    %963 = vector.multi_reduction <add>, %962, %cst_447 [0] : vector<16x64xf32> to vector<64xf32>
    %964 = vector.shape_cast %963 : vector<64xf32> to vector<1x64xf32>
    %965 = arith.addf %919, %964 : vector<1x64xf32>
    %966 = arith.maximumf %920, %958 : vector<16x64xf32>
    %967 = vector.extract_strided_slice %947 {offsets = [0, 0], sizes = [16, 32], strides = [1, 1]} : vector<16x64xf32> to vector<16x32xf32>
    %968 = arith.truncf %967 : vector<16x32xf32> to vector<16x32xbf16>
    %969 = arith.extf %968 : vector<16x32xbf16> to vector<16x32xf32>
    %970 = arith.subf %967, %969 : vector<16x32xf32>
    %971 = arith.truncf %970 : vector<16x32xf32> to vector<16x32xbf16>
    %cst_448 = arith.constant dense<0.000000e+00> : vector<16x32xf32>
    %972 = tpu.matmul %968, %784, %cst_448 {dimension_numbers = #tpu.dot_dimension_numbers<[1], [0], [0], [1], [0, 0, 1, 1], [], []>} : vector<16x32xbf16>, vector<32x32xbf16>, vector<16x32xf32> -> vector<16x32xf32>
    %cst_449 = arith.constant dense<0.000000e+00> : vector<16x32xf32>
    %973 = tpu.matmul %968, %787, %cst_449 {dimension_numbers = #tpu.dot_dimension_numbers<[1], [0], [0], [1], [0, 0, 1, 1], [], []>} : vector<16x32xbf16>, vector<32x32xbf16>, vector<16x32xf32> -> vector<16x32xf32>
    %974 = arith.addf %972, %973 : vector<16x32xf32>
    %cst_450 = arith.constant dense<0.000000e+00> : vector<16x32xf32>
    %975 = tpu.matmul %971, %784, %cst_450 {dimension_numbers = #tpu.dot_dimension_numbers<[1], [0], [0], [1], [0, 0, 1, 1], [], []>} : vector<16x32xbf16>, vector<32x32xbf16>, vector<16x32xf32> -> vector<16x32xf32>
    %976 = arith.addf %974, %975 : vector<16x32xf32>
    %977 = arith.addf %776, %976 : vector<16x32xf32>
    %c1_451 = arith.constant 1 : index
    %c0_452 = arith.constant 0 : index
    %c0_453 = arith.constant 0 : index
    %978 = vector.load %arg25[%c1_451, %c0_452, %c0_453] : memref<3x16x32xf32, #tpu.memory_space<vmem>>, vector<1x16x32xf32>
    %979 = vector.shape_cast %978 : vector<1x16x32xf32> to vector<16x32xf32>
    %980 = vector.shape_cast %977 : vector<16x32xf32> to vector<1x16x32xf32>
    tpu.vector_store %arg25[%c1_451, %c0_452, %c0_453], %980 {strides = array<i32>} : memref<3x16x32xf32, #tpu.memory_space<vmem>>, vector<1x16x32xf32>,
    %c0_454 = arith.constant 0 : index
    %c64_455 = arith.constant 64 : index
    %c0_456 = arith.constant 0 : index
    %981 = vector.load %arg2[%c0_454, %c64_455, %c0_456] : memref<1x144x1xi32, #tpu.memory_space<vmem>>, vector<1x16x1xi32>
    %982 = vector.shape_cast %981 : vector<1x16x1xi32> to vector<16x1xi32>
    %983 = vector.broadcast %982 : vector<16x1xi32> to vector<16x16xi32>
    %984 = arith.cmpi eq, %2, %983 : vector<16x16xi32>
    %cst_457 = arith.constant 1.000000e+00 : f32
    %cst_458 = arith.constant 0.000000e+00 : f32
    %985 = vector.broadcast %cst_457 : f32 to vector<16x16xf32>
    %986 = vector.broadcast %cst_458 : f32 to vector<16x16xf32>
    %987 = arith.select %984, %985, %986 : vector<16x16xi1>, vector<16x16xf32>
    %988 = arith.truncf %987 : vector<16x16xf32> to vector<16x16xbf16>
    %cst_459 = arith.constant dense<0.000000e+00> : vector<16x64xf32>
    %989 = tpu.matmul %988, %742, %cst_459 {dimension_numbers = #tpu.dot_dimension_numbers<[1], [0], [0], [1], [0, 0, 1, 1], [], []>} : vector<16x16xbf16>, vector<16x64xbf16>, vector<16x64xf32> -> vector<16x64xf32>
    %cst_460 = arith.constant dense<0.000000e+00> : vector<16x64xf32>
    %990 = tpu.matmul %988, %745, %cst_460 {dimension_numbers = #tpu.dot_dimension_numbers<[1], [0], [0], [1], [0, 0, 1, 1], [], []>} : vector<16x16xbf16>, vector<16x64xbf16>, vector<16x64xf32> -> vector<16x64xf32>
    %991 = arith.addf %989, %990 : vector<16x64xf32>
    %992 = vector.extract_strided_slice %991 {offsets = [0, 32], sizes = [16, 32], strides = [1, 1]} : vector<16x64xf32> to vector<16x32xf32>
    %993 = arith.truncf %992 : vector<16x32xf32> to vector<16x32xbf16>
    %994 = arith.extf %993 : vector<16x32xbf16> to vector<16x32xf32>
    %995 = arith.subf %992, %994 : vector<16x32xf32>
    %996 = arith.truncf %995 : vector<16x32xf32> to vector<16x32xbf16>
    %cst_461 = arith.constant dense<0.000000e+00> : vector<16x64xf32>
    %997 = tpu.matmul %993, %778, %cst_461 {dimension_numbers = #tpu.dot_dimension_numbers<[1], [0], [0], [1], [0, 0, 1, 1], [], []>} : vector<16x32xbf16>, vector<32x64xbf16>, vector<16x64xf32> -> vector<16x64xf32>
    %cst_462 = arith.constant dense<0.000000e+00> : vector<16x64xf32>
    %998 = tpu.matmul %993, %781, %cst_462 {dimension_numbers = #tpu.dot_dimension_numbers<[1], [0], [0], [1], [0, 0, 1, 1], [], []>} : vector<16x32xbf16>, vector<32x64xbf16>, vector<16x64xf32> -> vector<16x64xf32>
    %999 = arith.addf %997, %998 : vector<16x64xf32>
    %cst_463 = arith.constant dense<0.000000e+00> : vector<16x64xf32>
    %1000 = tpu.matmul %996, %778, %cst_463 {dimension_numbers = #tpu.dot_dimension_numbers<[1], [0], [0], [1], [0, 0, 1, 1], [], []>} : vector<16x32xbf16>, vector<32x64xbf16>, vector<16x64xf32> -> vector<16x64xf32>
    %1001 = arith.addf %999, %1000 : vector<16x64xf32>
    %1002 = arith.addf %759, %1001 : vector<16x64xf32>
    %cst_464 = arith.constant dense<0.000000e+00> : vector<64xf32>
    %1003 = vector.multi_reduction <add>, %1002, %cst_464 [0] : vector<16x64xf32> to vector<64xf32>
    %1004 = vector.shape_cast %1003 : vector<64xf32> to vector<1x64xf32>
    %1005 = arith.addf %961, %1004 : vector<1x64xf32>
    %1006 = arith.mulf %1002, %1002 : vector<16x64xf32>
    %cst_465 = arith.constant dense<0.000000e+00> : vector<64xf32>
    %1007 = vector.multi_reduction <add>, %1006, %cst_465 [0] : vector<16x64xf32> to vector<64xf32>
    %1008 = vector.shape_cast %1007 : vector<64xf32> to vector<1x64xf32>
    %1009 = arith.addf %965, %1008 : vector<1x64xf32>
    %1010 = arith.maximumf %966, %1002 : vector<16x64xf32>
    %1011 = vector.extract_strided_slice %991 {offsets = [0, 0], sizes = [16, 32], strides = [1, 1]} : vector<16x64xf32> to vector<16x32xf32>
    %1012 = arith.truncf %1011 : vector<16x32xf32> to vector<16x32xbf16>
    %1013 = arith.extf %1012 : vector<16x32xbf16> to vector<16x32xf32>
    %1014 = arith.subf %1011, %1013 : vector<16x32xf32>
    %1015 = arith.truncf %1014 : vector<16x32xf32> to vector<16x32xbf16>
    %cst_466 = arith.constant dense<0.000000e+00> : vector<16x32xf32>
    %1016 = tpu.matmul %1012, %790, %cst_466 {dimension_numbers = #tpu.dot_dimension_numbers<[1], [0], [0], [1], [0, 0, 1, 1], [], []>} : vector<16x32xbf16>, vector<32x32xbf16>, vector<16x32xf32> -> vector<16x32xf32>
    %cst_467 = arith.constant dense<0.000000e+00> : vector<16x32xf32>
    %1017 = tpu.matmul %1012, %793, %cst_467 {dimension_numbers = #tpu.dot_dimension_numbers<[1], [0], [0], [1], [0, 0, 1, 1], [], []>} : vector<16x32xbf16>, vector<32x32xbf16>, vector<16x32xf32> -> vector<16x32xf32>
    %1018 = arith.addf %1016, %1017 : vector<16x32xf32>
    %cst_468 = arith.constant dense<0.000000e+00> : vector<16x32xf32>
    %1019 = tpu.matmul %1015, %790, %cst_468 {dimension_numbers = #tpu.dot_dimension_numbers<[1], [0], [0], [1], [0, 0, 1, 1], [], []>} : vector<16x32xbf16>, vector<32x32xbf16>, vector<16x32xf32> -> vector<16x32xf32>
    %1020 = arith.addf %1018, %1019 : vector<16x32xf32>
    %c1_469 = arith.constant 1 : index
    %c0_470 = arith.constant 0 : index
    %c0_471 = arith.constant 0 : index
    %1021 = vector.load %arg25[%c1_469, %c0_470, %c0_471] : memref<3x16x32xf32, #tpu.memory_space<vmem>>, vector<1x16x32xf32>
    %1022 = vector.shape_cast %1021 : vector<1x16x32xf32> to vector<16x32xf32>
    %1023 = arith.addf %1022, %1020 : vector<16x32xf32>
    %c1_472 = arith.constant 1 : index
    %c0_473 = arith.constant 0 : index
    %c0_474 = arith.constant 0 : index
    %1024 = vector.load %arg25[%c1_472, %c0_473, %c0_474] : memref<3x16x32xf32, #tpu.memory_space<vmem>>, vector<1x16x32xf32>
    %1025 = vector.shape_cast %1024 : vector<1x16x32xf32> to vector<16x32xf32>
    %1026 = vector.shape_cast %1023 : vector<16x32xf32> to vector<1x16x32xf32>
    tpu.vector_store %arg25[%c1_472, %c0_473, %c0_474], %1026 {strides = array<i32>} : memref<3x16x32xf32, #tpu.memory_space<vmem>>, vector<1x16x32xf32>,
    %c0_475 = arith.constant 0 : index
    %c80_476 = arith.constant 80 : index
    %c0_477 = arith.constant 0 : index
    %1027 = vector.load %arg2[%c0_475, %c80_476, %c0_477] : memref<1x144x1xi32, #tpu.memory_space<vmem>>, vector<1x16x1xi32>
    %1028 = vector.shape_cast %1027 : vector<1x16x1xi32> to vector<16x1xi32>
    %1029 = vector.broadcast %1028 : vector<16x1xi32> to vector<16x16xi32>
    %1030 = arith.cmpi eq, %2, %1029 : vector<16x16xi32>
    %cst_478 = arith.constant 1.000000e+00 : f32
    %cst_479 = arith.constant 0.000000e+00 : f32
    %1031 = vector.broadcast %cst_478 : f32 to vector<16x16xf32>
    %1032 = vector.broadcast %cst_479 : f32 to vector<16x16xf32>
    %1033 = arith.select %1030, %1031, %1032 : vector<16x16xi1>, vector<16x16xf32>
    %1034 = arith.truncf %1033 : vector<16x16xf32> to vector<16x16xbf16>
    %cst_480 = arith.constant dense<0.000000e+00> : vector<16x64xf32>
    %1035 = tpu.matmul %1034, %742, %cst_480 {dimension_numbers = #tpu.dot_dimension_numbers<[1], [0], [0], [1], [0, 0, 1, 1], [], []>} : vector<16x16xbf16>, vector<16x64xbf16>, vector<16x64xf32> -> vector<16x64xf32>
    %cst_481 = arith.constant dense<0.000000e+00> : vector<16x64xf32>
    %1036 = tpu.matmul %1034, %745, %cst_481 {dimension_numbers = #tpu.dot_dimension_numbers<[1], [0], [0], [1], [0, 0, 1, 1], [], []>} : vector<16x16xbf16>, vector<16x64xbf16>, vector<16x64xf32> -> vector<16x64xf32>
    %1037 = arith.addf %1035, %1036 : vector<16x64xf32>
    %1038 = vector.extract_strided_slice %1037 {offsets = [0, 32], sizes = [16, 32], strides = [1, 1]} : vector<16x64xf32> to vector<16x32xf32>
    %1039 = arith.truncf %1038 : vector<16x32xf32> to vector<16x32xbf16>
    %1040 = arith.extf %1039 : vector<16x32xbf16> to vector<16x32xf32>
    %1041 = arith.subf %1038, %1040 : vector<16x32xf32>
    %1042 = arith.truncf %1041 : vector<16x32xf32> to vector<16x32xbf16>
    %cst_482 = arith.constant dense<0.000000e+00> : vector<16x64xf32>
    %1043 = tpu.matmul %1039, %778, %cst_482 {dimension_numbers = #tpu.dot_dimension_numbers<[1], [0], [0], [1], [0, 0, 1, 1], [], []>} : vector<16x32xbf16>, vector<32x64xbf16>, vector<16x64xf32> -> vector<16x64xf32>
    %cst_483 = arith.constant dense<0.000000e+00> : vector<16x64xf32>
    %1044 = tpu.matmul %1039, %781, %cst_483 {dimension_numbers = #tpu.dot_dimension_numbers<[1], [0], [0], [1], [0, 0, 1, 1], [], []>} : vector<16x32xbf16>, vector<32x64xbf16>, vector<16x64xf32> -> vector<16x64xf32>
    %1045 = arith.addf %1043, %1044 : vector<16x64xf32>
    %cst_484 = arith.constant dense<0.000000e+00> : vector<16x64xf32>
    %1046 = tpu.matmul %1042, %778, %cst_484 {dimension_numbers = #tpu.dot_dimension_numbers<[1], [0], [0], [1], [0, 0, 1, 1], [], []>} : vector<16x32xbf16>, vector<32x64xbf16>, vector<16x64xf32> -> vector<16x64xf32>
    %1047 = arith.addf %1045, %1046 : vector<16x64xf32>
    %1048 = arith.addf %759, %1047 : vector<16x64xf32>
    %cst_485 = arith.constant dense<0.000000e+00> : vector<64xf32>
    %1049 = vector.multi_reduction <add>, %1048, %cst_485 [0] : vector<16x64xf32> to vector<64xf32>
    %1050 = vector.shape_cast %1049 : vector<64xf32> to vector<1x64xf32>
    %1051 = arith.addf %1005, %1050 : vector<1x64xf32>
    %1052 = arith.mulf %1048, %1048 : vector<16x64xf32>
    %cst_486 = arith.constant dense<0.000000e+00> : vector<64xf32>
    %1053 = vector.multi_reduction <add>, %1052, %cst_486 [0] : vector<16x64xf32> to vector<64xf32>
    %1054 = vector.shape_cast %1053 : vector<64xf32> to vector<1x64xf32>
    %1055 = arith.addf %1009, %1054 : vector<1x64xf32>
    %1056 = arith.maximumf %1010, %1048 : vector<16x64xf32>
    %1057 = vector.extract_strided_slice %1037 {offsets = [0, 0], sizes = [16, 32], strides = [1, 1]} : vector<16x64xf32> to vector<16x32xf32>
    %1058 = arith.truncf %1057 : vector<16x32xf32> to vector<16x32xbf16>
    %1059 = arith.extf %1058 : vector<16x32xbf16> to vector<16x32xf32>
    %1060 = arith.subf %1057, %1059 : vector<16x32xf32>
    %1061 = arith.truncf %1060 : vector<16x32xf32> to vector<16x32xbf16>
    %cst_487 = arith.constant dense<0.000000e+00> : vector<16x32xf32>
    %1062 = tpu.matmul %1058, %796, %cst_487 {dimension_numbers = #tpu.dot_dimension_numbers<[1], [0], [0], [1], [0, 0, 1, 1], [], []>} : vector<16x32xbf16>, vector<32x32xbf16>, vector<16x32xf32> -> vector<16x32xf32>
    %cst_488 = arith.constant dense<0.000000e+00> : vector<16x32xf32>
    %1063 = tpu.matmul %1058, %799, %cst_488 {dimension_numbers = #tpu.dot_dimension_numbers<[1], [0], [0], [1], [0, 0, 1, 1], [], []>} : vector<16x32xbf16>, vector<32x32xbf16>, vector<16x32xf32> -> vector<16x32xf32>
    %1064 = arith.addf %1062, %1063 : vector<16x32xf32>
    %cst_489 = arith.constant dense<0.000000e+00> : vector<16x32xf32>
    %1065 = tpu.matmul %1061, %796, %cst_489 {dimension_numbers = #tpu.dot_dimension_numbers<[1], [0], [0], [1], [0, 0, 1, 1], [], []>} : vector<16x32xbf16>, vector<32x32xbf16>, vector<16x32xf32> -> vector<16x32xf32>
    %1066 = arith.addf %1064, %1065 : vector<16x32xf32>
    %c1_490 = arith.constant 1 : index
    %c0_491 = arith.constant 0 : index
    %c0_492 = arith.constant 0 : index
    %1067 = vector.load %arg25[%c1_490, %c0_491, %c0_492] : memref<3x16x32xf32, #tpu.memory_space<vmem>>, vector<1x16x32xf32>
    %1068 = vector.shape_cast %1067 : vector<1x16x32xf32> to vector<16x32xf32>
    %1069 = arith.addf %1068, %1066 : vector<16x32xf32>
    %c1_493 = arith.constant 1 : index
    %c0_494 = arith.constant 0 : index
    %c0_495 = arith.constant 0 : index
    %1070 = vector.load %arg25[%c1_493, %c0_494, %c0_495] : memref<3x16x32xf32, #tpu.memory_space<vmem>>, vector<1x16x32xf32>
    %1071 = vector.shape_cast %1070 : vector<1x16x32xf32> to vector<16x32xf32>
    %1072 = vector.shape_cast %1069 : vector<16x32xf32> to vector<1x16x32xf32>
    tpu.vector_store %arg25[%c1_493, %c0_494, %c0_495], %1072 {strides = array<i32>} : memref<3x16x32xf32, #tpu.memory_space<vmem>>, vector<1x16x32xf32>,
    %c0_496 = arith.constant 0 : index
    %c96_497 = arith.constant 96 : index
    %c0_498 = arith.constant 0 : index
    %1073 = vector.load %arg2[%c0_496, %c96_497, %c0_498] : memref<1x144x1xi32, #tpu.memory_space<vmem>>, vector<1x16x1xi32>
    %1074 = vector.shape_cast %1073 : vector<1x16x1xi32> to vector<16x1xi32>
    %1075 = vector.broadcast %1074 : vector<16x1xi32> to vector<16x16xi32>
    %1076 = arith.cmpi eq, %2, %1075 : vector<16x16xi32>
    %cst_499 = arith.constant 1.000000e+00 : f32
    %cst_500 = arith.constant 0.000000e+00 : f32
    %1077 = vector.broadcast %cst_499 : f32 to vector<16x16xf32>
    %1078 = vector.broadcast %cst_500 : f32 to vector<16x16xf32>
    %1079 = arith.select %1076, %1077, %1078 : vector<16x16xi1>, vector<16x16xf32>
    %1080 = arith.truncf %1079 : vector<16x16xf32> to vector<16x16xbf16>
    %cst_501 = arith.constant dense<0.000000e+00> : vector<16x64xf32>
    %1081 = tpu.matmul %1080, %742, %cst_501 {dimension_numbers = #tpu.dot_dimension_numbers<[1], [0], [0], [1], [0, 0, 1, 1], [], []>} : vector<16x16xbf16>, vector<16x64xbf16>, vector<16x64xf32> -> vector<16x64xf32>
    %cst_502 = arith.constant dense<0.000000e+00> : vector<16x64xf32>
    %1082 = tpu.matmul %1080, %745, %cst_502 {dimension_numbers = #tpu.dot_dimension_numbers<[1], [0], [0], [1], [0, 0, 1, 1], [], []>} : vector<16x16xbf16>, vector<16x64xbf16>, vector<16x64xf32> -> vector<16x64xf32>
    %1083 = arith.addf %1081, %1082 : vector<16x64xf32>
    %1084 = vector.extract_strided_slice %1083 {offsets = [0, 32], sizes = [16, 32], strides = [1, 1]} : vector<16x64xf32> to vector<16x32xf32>
    %1085 = arith.truncf %1084 : vector<16x32xf32> to vector<16x32xbf16>
    %1086 = arith.extf %1085 : vector<16x32xbf16> to vector<16x32xf32>
    %1087 = arith.subf %1084, %1086 : vector<16x32xf32>
    %1088 = arith.truncf %1087 : vector<16x32xf32> to vector<16x32xbf16>
    %cst_503 = arith.constant dense<0.000000e+00> : vector<16x64xf32>
    %1089 = tpu.matmul %1085, %778, %cst_503 {dimension_numbers = #tpu.dot_dimension_numbers<[1], [0], [0], [1], [0, 0, 1, 1], [], []>} : vector<16x32xbf16>, vector<32x64xbf16>, vector<16x64xf32> -> vector<16x64xf32>
    %cst_504 = arith.constant dense<0.000000e+00> : vector<16x64xf32>
    %1090 = tpu.matmul %1085, %781, %cst_504 {dimension_numbers = #tpu.dot_dimension_numbers<[1], [0], [0], [1], [0, 0, 1, 1], [], []>} : vector<16x32xbf16>, vector<32x64xbf16>, vector<16x64xf32> -> vector<16x64xf32>
    %1091 = arith.addf %1089, %1090 : vector<16x64xf32>
    %cst_505 = arith.constant dense<0.000000e+00> : vector<16x64xf32>
    %1092 = tpu.matmul %1088, %778, %cst_505 {dimension_numbers = #tpu.dot_dimension_numbers<[1], [0], [0], [1], [0, 0, 1, 1], [], []>} : vector<16x32xbf16>, vector<32x64xbf16>, vector<16x64xf32> -> vector<16x64xf32>
    %1093 = arith.addf %1091, %1092 : vector<16x64xf32>
    %1094 = arith.addf %759, %1093 : vector<16x64xf32>
    %cst_506 = arith.constant dense<0.000000e+00> : vector<64xf32>
    %1095 = vector.multi_reduction <add>, %1094, %cst_506 [0] : vector<16x64xf32> to vector<64xf32>
    %1096 = vector.shape_cast %1095 : vector<64xf32> to vector<1x64xf32>
    %1097 = arith.addf %1051, %1096 : vector<1x64xf32>
    %1098 = arith.mulf %1094, %1094 : vector<16x64xf32>
    %cst_507 = arith.constant dense<0.000000e+00> : vector<64xf32>
    %1099 = vector.multi_reduction <add>, %1098, %cst_507 [0] : vector<16x64xf32> to vector<64xf32>
    %1100 = vector.shape_cast %1099 : vector<64xf32> to vector<1x64xf32>
    %1101 = arith.addf %1055, %1100 : vector<1x64xf32>
    %1102 = arith.maximumf %1056, %1094 : vector<16x64xf32>
    %1103 = vector.extract_strided_slice %1083 {offsets = [0, 0], sizes = [16, 32], strides = [1, 1]} : vector<16x64xf32> to vector<16x32xf32>
    %1104 = arith.truncf %1103 : vector<16x32xf32> to vector<16x32xbf16>
    %1105 = arith.extf %1104 : vector<16x32xbf16> to vector<16x32xf32>
    %1106 = arith.subf %1103, %1105 : vector<16x32xf32>
    %1107 = arith.truncf %1106 : vector<16x32xf32> to vector<16x32xbf16>
    %cst_508 = arith.constant dense<0.000000e+00> : vector<16x32xf32>
    %1108 = tpu.matmul %1104, %784, %cst_508 {dimension_numbers = #tpu.dot_dimension_numbers<[1], [0], [0], [1], [0, 0, 1, 1], [], []>} : vector<16x32xbf16>, vector<32x32xbf16>, vector<16x32xf32> -> vector<16x32xf32>
    %cst_509 = arith.constant dense<0.000000e+00> : vector<16x32xf32>
    %1109 = tpu.matmul %1104, %787, %cst_509 {dimension_numbers = #tpu.dot_dimension_numbers<[1], [0], [0], [1], [0, 0, 1, 1], [], []>} : vector<16x32xbf16>, vector<32x32xbf16>, vector<16x32xf32> -> vector<16x32xf32>
    %1110 = arith.addf %1108, %1109 : vector<16x32xf32>
    %cst_510 = arith.constant dense<0.000000e+00> : vector<16x32xf32>
    %1111 = tpu.matmul %1107, %784, %cst_510 {dimension_numbers = #tpu.dot_dimension_numbers<[1], [0], [0], [1], [0, 0, 1, 1], [], []>} : vector<16x32xbf16>, vector<32x32xbf16>, vector<16x32xf32> -> vector<16x32xf32>
    %1112 = arith.addf %1110, %1111 : vector<16x32xf32>
    %1113 = arith.addf %776, %1112 : vector<16x32xf32>
    %c2_511 = arith.constant 2 : index
    %c0_512 = arith.constant 0 : index
    %c0_513 = arith.constant 0 : index
    %1114 = vector.load %arg25[%c2_511, %c0_512, %c0_513] : memref<3x16x32xf32, #tpu.memory_space<vmem>>, vector<1x16x32xf32>
    %1115 = vector.shape_cast %1114 : vector<1x16x32xf32> to vector<16x32xf32>
    %1116 = vector.shape_cast %1113 : vector<16x32xf32> to vector<1x16x32xf32>
    tpu.vector_store %arg25[%c2_511, %c0_512, %c0_513], %1116 {strides = array<i32>} : memref<3x16x32xf32, #tpu.memory_space<vmem>>, vector<1x16x32xf32>,
    %c0_514 = arith.constant 0 : index
    %c112_515 = arith.constant 112 : index
    %c0_516 = arith.constant 0 : index
    %1117 = vector.load %arg2[%c0_514, %c112_515, %c0_516] : memref<1x144x1xi32, #tpu.memory_space<vmem>>, vector<1x16x1xi32>
    %1118 = vector.shape_cast %1117 : vector<1x16x1xi32> to vector<16x1xi32>
    %1119 = vector.broadcast %1118 : vector<16x1xi32> to vector<16x16xi32>
    %1120 = arith.cmpi eq, %2, %1119 : vector<16x16xi32>
    %cst_517 = arith.constant 1.000000e+00 : f32
    %cst_518 = arith.constant 0.000000e+00 : f32
    %1121 = vector.broadcast %cst_517 : f32 to vector<16x16xf32>
    %1122 = vector.broadcast %cst_518 : f32 to vector<16x16xf32>
    %1123 = arith.select %1120, %1121, %1122 : vector<16x16xi1>, vector<16x16xf32>
    %1124 = arith.truncf %1123 : vector<16x16xf32> to vector<16x16xbf16>
    %cst_519 = arith.constant dense<0.000000e+00> : vector<16x64xf32>
    %1125 = tpu.matmul %1124, %742, %cst_519 {dimension_numbers = #tpu.dot_dimension_numbers<[1], [0], [0], [1], [0, 0, 1, 1], [], []>} : vector<16x16xbf16>, vector<16x64xbf16>, vector<16x64xf32> -> vector<16x64xf32>
    %cst_520 = arith.constant dense<0.000000e+00> : vector<16x64xf32>
    %1126 = tpu.matmul %1124, %745, %cst_520 {dimension_numbers = #tpu.dot_dimension_numbers<[1], [0], [0], [1], [0, 0, 1, 1], [], []>} : vector<16x16xbf16>, vector<16x64xbf16>, vector<16x64xf32> -> vector<16x64xf32>
    %1127 = arith.addf %1125, %1126 : vector<16x64xf32>
    %1128 = vector.extract_strided_slice %1127 {offsets = [0, 32], sizes = [16, 32], strides = [1, 1]} : vector<16x64xf32> to vector<16x32xf32>
    %1129 = arith.truncf %1128 : vector<16x32xf32> to vector<16x32xbf16>
    %1130 = arith.extf %1129 : vector<16x32xbf16> to vector<16x32xf32>
    %1131 = arith.subf %1128, %1130 : vector<16x32xf32>
    %1132 = arith.truncf %1131 : vector<16x32xf32> to vector<16x32xbf16>
    %cst_521 = arith.constant dense<0.000000e+00> : vector<16x64xf32>
    %1133 = tpu.matmul %1129, %778, %cst_521 {dimension_numbers = #tpu.dot_dimension_numbers<[1], [0], [0], [1], [0, 0, 1, 1], [], []>} : vector<16x32xbf16>, vector<32x64xbf16>, vector<16x64xf32> -> vector<16x64xf32>
    %cst_522 = arith.constant dense<0.000000e+00> : vector<16x64xf32>
    %1134 = tpu.matmul %1129, %781, %cst_522 {dimension_numbers = #tpu.dot_dimension_numbers<[1], [0], [0], [1], [0, 0, 1, 1], [], []>} : vector<16x32xbf16>, vector<32x64xbf16>, vector<16x64xf32> -> vector<16x64xf32>
    %1135 = arith.addf %1133, %1134 : vector<16x64xf32>
    %cst_523 = arith.constant dense<0.000000e+00> : vector<16x64xf32>
    %1136 = tpu.matmul %1132, %778, %cst_523 {dimension_numbers = #tpu.dot_dimension_numbers<[1], [0], [0], [1], [0, 0, 1, 1], [], []>} : vector<16x32xbf16>, vector<32x64xbf16>, vector<16x64xf32> -> vector<16x64xf32>
    %1137 = arith.addf %1135, %1136 : vector<16x64xf32>
    %1138 = arith.addf %759, %1137 : vector<16x64xf32>
    %cst_524 = arith.constant dense<0.000000e+00> : vector<64xf32>
    %1139 = vector.multi_reduction <add>, %1138, %cst_524 [0] : vector<16x64xf32> to vector<64xf32>
    %1140 = vector.shape_cast %1139 : vector<64xf32> to vector<1x64xf32>
    %1141 = arith.addf %1097, %1140 : vector<1x64xf32>
    %1142 = arith.mulf %1138, %1138 : vector<16x64xf32>
    %cst_525 = arith.constant dense<0.000000e+00> : vector<64xf32>
    %1143 = vector.multi_reduction <add>, %1142, %cst_525 [0] : vector<16x64xf32> to vector<64xf32>
    %1144 = vector.shape_cast %1143 : vector<64xf32> to vector<1x64xf32>
    %1145 = arith.addf %1101, %1144 : vector<1x64xf32>
    %1146 = arith.maximumf %1102, %1138 : vector<16x64xf32>
    %1147 = vector.extract_strided_slice %1127 {offsets = [0, 0], sizes = [16, 32], strides = [1, 1]} : vector<16x64xf32> to vector<16x32xf32>
    %1148 = arith.truncf %1147 : vector<16x32xf32> to vector<16x32xbf16>
    %1149 = arith.extf %1148 : vector<16x32xbf16> to vector<16x32xf32>
    %1150 = arith.subf %1147, %1149 : vector<16x32xf32>
    %1151 = arith.truncf %1150 : vector<16x32xf32> to vector<16x32xbf16>
    %cst_526 = arith.constant dense<0.000000e+00> : vector<16x32xf32>
    %1152 = tpu.matmul %1148, %790, %cst_526 {dimension_numbers = #tpu.dot_dimension_numbers<[1], [0], [0], [1], [0, 0, 1, 1], [], []>} : vector<16x32xbf16>, vector<32x32xbf16>, vector<16x32xf32> -> vector<16x32xf32>
    %cst_527 = arith.constant dense<0.000000e+00> : vector<16x32xf32>
    %1153 = tpu.matmul %1148, %793, %cst_527 {dimension_numbers = #tpu.dot_dimension_numbers<[1], [0], [0], [1], [0, 0, 1, 1], [], []>} : vector<16x32xbf16>, vector<32x32xbf16>, vector<16x32xf32> -> vector<16x32xf32>
    %1154 = arith.addf %1152, %1153 : vector<16x32xf32>
    %cst_528 = arith.constant dense<0.000000e+00> : vector<16x32xf32>
    %1155 = tpu.matmul %1151, %790, %cst_528 {dimension_numbers = #tpu.dot_dimension_numbers<[1], [0], [0], [1], [0, 0, 1, 1], [], []>} : vector<16x32xbf16>, vector<32x32xbf16>, vector<16x32xf32> -> vector<16x32xf32>
    %1156 = arith.addf %1154, %1155 : vector<16x32xf32>
    %c2_529 = arith.constant 2 : index
    %c0_530 = arith.constant 0 : index
    %c0_531 = arith.constant 0 : index
    %1157 = vector.load %arg25[%c2_529, %c0_530, %c0_531] : memref<3x16x32xf32, #tpu.memory_space<vmem>>, vector<1x16x32xf32>
    %1158 = vector.shape_cast %1157 : vector<1x16x32xf32> to vector<16x32xf32>
    %1159 = arith.addf %1158, %1156 : vector<16x32xf32>
    %c2_532 = arith.constant 2 : index
    %c0_533 = arith.constant 0 : index
    %c0_534 = arith.constant 0 : index
    %1160 = vector.load %arg25[%c2_532, %c0_533, %c0_534] : memref<3x16x32xf32, #tpu.memory_space<vmem>>, vector<1x16x32xf32>
    %1161 = vector.shape_cast %1160 : vector<1x16x32xf32> to vector<16x32xf32>
    %1162 = vector.shape_cast %1159 : vector<16x32xf32> to vector<1x16x32xf32>
    tpu.vector_store %arg25[%c2_532, %c0_533, %c0_534], %1162 {strides = array<i32>} : memref<3x16x32xf32, #tpu.memory_space<vmem>>, vector<1x16x32xf32>,
    %c0_535 = arith.constant 0 : index
    %c128_536 = arith.constant 128 : index
    %c0_537 = arith.constant 0 : index
    %1163 = vector.load %arg2[%c0_535, %c128_536, %c0_537] : memref<1x144x1xi32, #tpu.memory_space<vmem>>, vector<1x16x1xi32>
    %1164 = vector.shape_cast %1163 : vector<1x16x1xi32> to vector<16x1xi32>
    %1165 = vector.broadcast %1164 : vector<16x1xi32> to vector<16x16xi32>
    %1166 = arith.cmpi eq, %2, %1165 : vector<16x16xi32>
    %cst_538 = arith.constant 1.000000e+00 : f32
    %cst_539 = arith.constant 0.000000e+00 : f32
    %1167 = vector.broadcast %cst_538 : f32 to vector<16x16xf32>
    %1168 = vector.broadcast %cst_539 : f32 to vector<16x16xf32>
    %1169 = arith.select %1166, %1167, %1168 : vector<16x16xi1>, vector<16x16xf32>
    %1170 = arith.truncf %1169 : vector<16x16xf32> to vector<16x16xbf16>
    %cst_540 = arith.constant dense<0.000000e+00> : vector<16x64xf32>
    %1171 = tpu.matmul %1170, %742, %cst_540 {dimension_numbers = #tpu.dot_dimension_numbers<[1], [0], [0], [1], [0, 0, 1, 1], [], []>} : vector<16x16xbf16>, vector<16x64xbf16>, vector<16x64xf32> -> vector<16x64xf32>
    %cst_541 = arith.constant dense<0.000000e+00> : vector<16x64xf32>
    %1172 = tpu.matmul %1170, %745, %cst_541 {dimension_numbers = #tpu.dot_dimension_numbers<[1], [0], [0], [1], [0, 0, 1, 1], [], []>} : vector<16x16xbf16>, vector<16x64xbf16>, vector<16x64xf32> -> vector<16x64xf32>
    %1173 = arith.addf %1171, %1172 : vector<16x64xf32>
    %1174 = vector.extract_strided_slice %1173 {offsets = [0, 32], sizes = [16, 32], strides = [1, 1]} : vector<16x64xf32> to vector<16x32xf32>
    %1175 = arith.truncf %1174 : vector<16x32xf32> to vector<16x32xbf16>
    %1176 = arith.extf %1175 : vector<16x32xbf16> to vector<16x32xf32>
    %1177 = arith.subf %1174, %1176 : vector<16x32xf32>
    %1178 = arith.truncf %1177 : vector<16x32xf32> to vector<16x32xbf16>
    %cst_542 = arith.constant dense<0.000000e+00> : vector<16x64xf32>
    %1179 = tpu.matmul %1175, %778, %cst_542 {dimension_numbers = #tpu.dot_dimension_numbers<[1], [0], [0], [1], [0, 0, 1, 1], [], []>} : vector<16x32xbf16>, vector<32x64xbf16>, vector<16x64xf32> -> vector<16x64xf32>
    %cst_543 = arith.constant dense<0.000000e+00> : vector<16x64xf32>
    %1180 = tpu.matmul %1175, %781, %cst_543 {dimension_numbers = #tpu.dot_dimension_numbers<[1], [0], [0], [1], [0, 0, 1, 1], [], []>} : vector<16x32xbf16>, vector<32x64xbf16>, vector<16x64xf32> -> vector<16x64xf32>
    %1181 = arith.addf %1179, %1180 : vector<16x64xf32>
    %cst_544 = arith.constant dense<0.000000e+00> : vector<16x64xf32>
    %1182 = tpu.matmul %1178, %778, %cst_544 {dimension_numbers = #tpu.dot_dimension_numbers<[1], [0], [0], [1], [0, 0, 1, 1], [], []>} : vector<16x32xbf16>, vector<32x64xbf16>, vector<16x64xf32> -> vector<16x64xf32>
    %1183 = arith.addf %1181, %1182 : vector<16x64xf32>
    %1184 = arith.addf %759, %1183 : vector<16x64xf32>
    %cst_545 = arith.constant dense<0.000000e+00> : vector<64xf32>
    %1185 = vector.multi_reduction <add>, %1184, %cst_545 [0] : vector<16x64xf32> to vector<64xf32>
    %1186 = vector.shape_cast %1185 : vector<64xf32> to vector<1x64xf32>
    %1187 = arith.addf %1141, %1186 : vector<1x64xf32>
    %1188 = arith.mulf %1184, %1184 : vector<16x64xf32>
    %cst_546 = arith.constant dense<0.000000e+00> : vector<64xf32>
    %1189 = vector.multi_reduction <add>, %1188, %cst_546 [0] : vector<16x64xf32> to vector<64xf32>
    %1190 = vector.shape_cast %1189 : vector<64xf32> to vector<1x64xf32>
    %1191 = arith.addf %1145, %1190 : vector<1x64xf32>
    %1192 = arith.maximumf %1146, %1184 : vector<16x64xf32>
    %1193 = vector.extract_strided_slice %1173 {offsets = [0, 0], sizes = [16, 32], strides = [1, 1]} : vector<16x64xf32> to vector<16x32xf32>
    %1194 = arith.truncf %1193 : vector<16x32xf32> to vector<16x32xbf16>
    %1195 = arith.extf %1194 : vector<16x32xbf16> to vector<16x32xf32>
    %1196 = arith.subf %1193, %1195 : vector<16x32xf32>
    %1197 = arith.truncf %1196 : vector<16x32xf32> to vector<16x32xbf16>
    %cst_547 = arith.constant dense<0.000000e+00> : vector<16x32xf32>
    %1198 = tpu.matmul %1194, %796, %cst_547 {dimension_numbers = #tpu.dot_dimension_numbers<[1], [0], [0], [1], [0, 0, 1, 1], [], []>} : vector<16x32xbf16>, vector<32x32xbf16>, vector<16x32xf32> -> vector<16x32xf32>
    %cst_548 = arith.constant dense<0.000000e+00> : vector<16x32xf32>
    %1199 = tpu.matmul %1194, %799, %cst_548 {dimension_numbers = #tpu.dot_dimension_numbers<[1], [0], [0], [1], [0, 0, 1, 1], [], []>} : vector<16x32xbf16>, vector<32x32xbf16>, vector<16x32xf32> -> vector<16x32xf32>
    %1200 = arith.addf %1198, %1199 : vector<16x32xf32>
    %cst_549 = arith.constant dense<0.000000e+00> : vector<16x32xf32>
    %1201 = tpu.matmul %1197, %796, %cst_549 {dimension_numbers = #tpu.dot_dimension_numbers<[1], [0], [0], [1], [0, 0, 1, 1], [], []>} : vector<16x32xbf16>, vector<32x32xbf16>, vector<16x32xf32> -> vector<16x32xf32>
    %1202 = arith.addf %1200, %1201 : vector<16x32xf32>
    %c2_550 = arith.constant 2 : index
    %c0_551 = arith.constant 0 : index
    %c0_552 = arith.constant 0 : index
    %1203 = vector.load %arg25[%c2_550, %c0_551, %c0_552] : memref<3x16x32xf32, #tpu.memory_space<vmem>>, vector<1x16x32xf32>
    %1204 = vector.shape_cast %1203 : vector<1x16x32xf32> to vector<16x32xf32>
    %1205 = arith.addf %1204, %1202 : vector<16x32xf32>
    %c2_553 = arith.constant 2 : index
    %c0_554 = arith.constant 0 : index
    %c0_555 = arith.constant 0 : index
    %1206 = vector.load %arg25[%c2_553, %c0_554, %c0_555] : memref<3x16x32xf32, #tpu.memory_space<vmem>>, vector<1x16x32xf32>
    %1207 = vector.shape_cast %1206 : vector<1x16x32xf32> to vector<16x32xf32>
    %1208 = vector.shape_cast %1205 : vector<16x32xf32> to vector<1x16x32xf32>
    tpu.vector_store %arg25[%c2_553, %c0_554, %c0_555], %1208 {strides = array<i32>} : memref<3x16x32xf32, #tpu.memory_space<vmem>>, vector<1x16x32xf32>,
    %cst_556 = arith.constant 1.440000e+02 : f32
    %1209 = vector.broadcast %cst_556 : f32 to vector<1x64xf32>
    %1210 = arith.divf %1187, %1209 : vector<1x64xf32>
    %cst_557 = arith.constant 1.440000e+02 : f32
    %1211 = vector.broadcast %cst_557 : f32 to vector<1x64xf32>
    %1212 = arith.divf %1191, %1211 : vector<1x64xf32>
    %1213 = arith.mulf %1210, %1210 : vector<1x64xf32>
    %1214 = arith.subf %1212, %1213 : vector<1x64xf32>
    %cst_558 = arith.constant 9.99999974E-6 : f32
    %1215 = vector.broadcast %cst_558 : f32 to vector<1x64xf32>
    %1216 = arith.addf %1214, %1215 : vector<1x64xf32>
    %1217 = math.rsqrt %1216 : vector<1x64xf32>
    %1218 = vector.broadcast %1210 : vector<1x64xf32> to vector<16x64xf32>
    %1219 = arith.subf %1192, %1218 : vector<16x64xf32>
    %1220 = vector.broadcast %1217 : vector<1x64xf32> to vector<16x64xf32>
    %1221 = arith.mulf %1219, %1220 : vector<16x64xf32>
    %cst_559 = arith.constant 2.000000e-01 : f32
    %1222 = vector.broadcast %cst_559 : f32 to vector<16x64xf32>
    %1223 = arith.mulf %1222, %1221 : vector<16x64xf32>
    %1224 = arith.maximumf %1221, %1223 : vector<16x64xf32>
    %cst_560 = arith.constant 0.000000e+00 : f32
    %1225 = vector.broadcast %cst_560 : f32 to vector<1x32xf32>
    %cst_561 = arith.constant 0.000000e+00 : f32
    %1226 = vector.broadcast %cst_561 : f32 to vector<1x32xf32>
    %c0_562 = arith.constant 0 : index
    %c0_563 = arith.constant 0 : index
    %c0_564 = arith.constant 0 : index
    %1227 = vector.load %arg25[%c0_562, %c0_563, %c0_564] : memref<3x16x32xf32, #tpu.memory_space<vmem>>, vector<1x16x32xf32>
    %1228 = vector.shape_cast %1227 : vector<1x16x32xf32> to vector<16x32xf32>
    %cst_565 = arith.constant dense<0.000000e+00> : vector<32xf32>
    %1229 = vector.multi_reduction <add>, %1228, %cst_565 [0] : vector<16x32xf32> to vector<32xf32>
    %1230 = vector.shape_cast %1229 : vector<32xf32> to vector<1x32xf32>
    %1231 = arith.addf %1225, %1230 : vector<1x32xf32>
    %1232 = arith.mulf %1228, %1228 : vector<16x32xf32>
    %cst_566 = arith.constant dense<0.000000e+00> : vector<32xf32>
    %1233 = vector.multi_reduction <add>, %1232, %cst_566 [0] : vector<16x32xf32> to vector<32xf32>
    %1234 = vector.shape_cast %1233 : vector<32xf32> to vector<1x32xf32>
    %1235 = arith.addf %1226, %1234 : vector<1x32xf32>
    %c1_567 = arith.constant 1 : index
    %c0_568 = arith.constant 0 : index
    %c0_569 = arith.constant 0 : index
    %1236 = vector.load %arg25[%c1_567, %c0_568, %c0_569] : memref<3x16x32xf32, #tpu.memory_space<vmem>>, vector<1x16x32xf32>
    %1237 = vector.shape_cast %1236 : vector<1x16x32xf32> to vector<16x32xf32>
    %cst_570 = arith.constant dense<0.000000e+00> : vector<32xf32>
    %1238 = vector.multi_reduction <add>, %1237, %cst_570 [0] : vector<16x32xf32> to vector<32xf32>
    %1239 = vector.shape_cast %1238 : vector<32xf32> to vector<1x32xf32>
    %1240 = arith.addf %1231, %1239 : vector<1x32xf32>
    %1241 = arith.mulf %1237, %1237 : vector<16x32xf32>
    %cst_571 = arith.constant dense<0.000000e+00> : vector<32xf32>
    %1242 = vector.multi_reduction <add>, %1241, %cst_571 [0] : vector<16x32xf32> to vector<32xf32>
    %1243 = vector.shape_cast %1242 : vector<32xf32> to vector<1x32xf32>
    %1244 = arith.addf %1235, %1243 : vector<1x32xf32>
    %c2_572 = arith.constant 2 : index
    %c0_573 = arith.constant 0 : index
    %c0_574 = arith.constant 0 : index
    %1245 = vector.load %arg25[%c2_572, %c0_573, %c0_574] : memref<3x16x32xf32, #tpu.memory_space<vmem>>, vector<1x16x32xf32>
    %1246 = vector.shape_cast %1245 : vector<1x16x32xf32> to vector<16x32xf32>
    %cst_575 = arith.constant dense<0.000000e+00> : vector<32xf32>
    %1247 = vector.multi_reduction <add>, %1246, %cst_575 [0] : vector<16x32xf32> to vector<32xf32>
    %1248 = vector.shape_cast %1247 : vector<32xf32> to vector<1x32xf32>
    %1249 = arith.addf %1240, %1248 : vector<1x32xf32>
    %1250 = arith.mulf %1246, %1246 : vector<16x32xf32>
    %cst_576 = arith.constant dense<0.000000e+00> : vector<32xf32>
    %1251 = vector.multi_reduction <add>, %1250, %cst_576 [0] : vector<16x32xf32> to vector<32xf32>
    %1252 = vector.shape_cast %1251 : vector<32xf32> to vector<1x32xf32>
    %1253 = arith.addf %1244, %1252 : vector<1x32xf32>
    %cst_577 = arith.constant 4.800000e+01 : f32
    %1254 = vector.broadcast %cst_577 : f32 to vector<1x32xf32>
    %1255 = arith.divf %1249, %1254 : vector<1x32xf32>
    %cst_578 = arith.constant 4.800000e+01 : f32
    %1256 = vector.broadcast %cst_578 : f32 to vector<1x32xf32>
    %1257 = arith.divf %1253, %1256 : vector<1x32xf32>
    %1258 = arith.mulf %1255, %1255 : vector<1x32xf32>
    %1259 = arith.subf %1257, %1258 : vector<1x32xf32>
    %cst_579 = arith.constant 9.99999974E-6 : f32
    %1260 = vector.broadcast %cst_579 : f32 to vector<1x32xf32>
    %1261 = arith.addf %1259, %1260 : vector<1x32xf32>
    %1262 = math.rsqrt %1261 : vector<1x32xf32>
    %c0_580 = arith.constant 0 : index
    %c0_581 = arith.constant 0 : index
    %1263 = vector.load %arg15[%c0_580, %c0_581] : memref<1x32xf32, #tpu.memory_space<vmem>>, vector<1x32xf32>
    %c0_582 = arith.constant 0 : index
    %c0_583 = arith.constant 0 : index
    %c0_584 = arith.constant 0 : index
    %1264 = vector.load %arg25[%c0_582, %c0_583, %c0_584] : memref<3x16x32xf32, #tpu.memory_space<vmem>>, vector<1x16x32xf32>
    %1265 = vector.shape_cast %1264 : vector<1x16x32xf32> to vector<16x32xf32>
    %1266 = vector.broadcast %1255 : vector<1x32xf32> to vector<16x32xf32>
    %1267 = arith.subf %1265, %1266 : vector<16x32xf32>
    %1268 = vector.broadcast %1262 : vector<1x32xf32> to vector<16x32xf32>
    %1269 = arith.mulf %1267, %1268 : vector<16x32xf32>
    %cst_585 = arith.constant 0.000000e+00 : f32
    %1270 = vector.broadcast %cst_585 : f32 to vector<16x32xf32>
    %1271 = arith.maximumf %1269, %1270 : vector<16x32xf32>
    %c0_586 = arith.constant 0 : index
    %c0_587 = arith.constant 0 : index
    %c0_588 = arith.constant 0 : index
    %1272 = vector.load %arg14[%c0_586, %c0_587, %c0_588] : memref<3x32x32xf32, #tpu.memory_space<vmem>>, vector<1x32x32xf32>
    %1273 = vector.shape_cast %1272 : vector<1x32x32xf32> to vector<32x32xf32>
    %1274 = arith.truncf %1273 : vector<32x32xf32> to vector<32x32xbf16>
    %1275 = arith.extf %1274 : vector<32x32xbf16> to vector<32x32xf32>
    %1276 = arith.subf %1273, %1275 : vector<32x32xf32>
    %1277 = arith.truncf %1276 : vector<32x32xf32> to vector<32x32xbf16>
    %1278 = arith.truncf %1271 : vector<16x32xf32> to vector<16x32xbf16>
    %1279 = arith.extf %1278 : vector<16x32xbf16> to vector<16x32xf32>
    %1280 = arith.subf %1271, %1279 : vector<16x32xf32>
    %1281 = arith.truncf %1280 : vector<16x32xf32> to vector<16x32xbf16>
    %cst_589 = arith.constant dense<0.000000e+00> : vector<16x32xf32>
    %1282 = tpu.matmul %1278, %1274, %cst_589 {dimension_numbers = #tpu.dot_dimension_numbers<[1], [0], [0], [1], [0, 0, 1, 1], [], []>} : vector<16x32xbf16>, vector<32x32xbf16>, vector<16x32xf32> -> vector<16x32xf32>
    %cst_590 = arith.constant dense<0.000000e+00> : vector<16x32xf32>
    %1283 = tpu.matmul %1278, %1277, %cst_590 {dimension_numbers = #tpu.dot_dimension_numbers<[1], [0], [0], [1], [0, 0, 1, 1], [], []>} : vector<16x32xbf16>, vector<32x32xbf16>, vector<16x32xf32> -> vector<16x32xf32>
    %1284 = arith.addf %1282, %1283 : vector<16x32xf32>
    %cst_591 = arith.constant dense<0.000000e+00> : vector<16x32xf32>
    %1285 = tpu.matmul %1281, %1274, %cst_591 {dimension_numbers = #tpu.dot_dimension_numbers<[1], [0], [0], [1], [0, 0, 1, 1], [], []>} : vector<16x32xbf16>, vector<32x32xbf16>, vector<16x32xf32> -> vector<16x32xf32>
    %1286 = arith.addf %1284, %1285 : vector<16x32xf32>
    %1287 = vector.broadcast %1263 : vector<1x32xf32> to vector<16x32xf32>
    %1288 = arith.addf %1287, %1286 : vector<16x32xf32>
    %c1_592 = arith.constant 1 : index
    %c0_593 = arith.constant 0 : index
    %c0_594 = arith.constant 0 : index
    %1289 = vector.load %arg25[%c1_592, %c0_593, %c0_594] : memref<3x16x32xf32, #tpu.memory_space<vmem>>, vector<1x16x32xf32>
    %1290 = vector.shape_cast %1289 : vector<1x16x32xf32> to vector<16x32xf32>
    %1291 = vector.broadcast %1255 : vector<1x32xf32> to vector<16x32xf32>
    %1292 = arith.subf %1290, %1291 : vector<16x32xf32>
    %1293 = vector.broadcast %1262 : vector<1x32xf32> to vector<16x32xf32>
    %1294 = arith.mulf %1292, %1293 : vector<16x32xf32>
    %cst_595 = arith.constant 0.000000e+00 : f32
    %1295 = vector.broadcast %cst_595 : f32 to vector<16x32xf32>
    %1296 = arith.maximumf %1294, %1295 : vector<16x32xf32>
    %c1_596 = arith.constant 1 : index
    %c0_597 = arith.constant 0 : index
    %c0_598 = arith.constant 0 : index
    %1297 = vector.load %arg14[%c1_596, %c0_597, %c0_598] : memref<3x32x32xf32, #tpu.memory_space<vmem>>, vector<1x32x32xf32>
    %1298 = vector.shape_cast %1297 : vector<1x32x32xf32> to vector<32x32xf32>
    %1299 = arith.truncf %1298 : vector<32x32xf32> to vector<32x32xbf16>
    %1300 = arith.extf %1299 : vector<32x32xbf16> to vector<32x32xf32>
    %1301 = arith.subf %1298, %1300 : vector<32x32xf32>
    %1302 = arith.truncf %1301 : vector<32x32xf32> to vector<32x32xbf16>
    %1303 = arith.truncf %1296 : vector<16x32xf32> to vector<16x32xbf16>
    %1304 = arith.extf %1303 : vector<16x32xbf16> to vector<16x32xf32>
    %1305 = arith.subf %1296, %1304 : vector<16x32xf32>
    %1306 = arith.truncf %1305 : vector<16x32xf32> to vector<16x32xbf16>
    %cst_599 = arith.constant dense<0.000000e+00> : vector<16x32xf32>
    %1307 = tpu.matmul %1303, %1299, %cst_599 {dimension_numbers = #tpu.dot_dimension_numbers<[1], [0], [0], [1], [0, 0, 1, 1], [], []>} : vector<16x32xbf16>, vector<32x32xbf16>, vector<16x32xf32> -> vector<16x32xf32>
    %cst_600 = arith.constant dense<0.000000e+00> : vector<16x32xf32>
    %1308 = tpu.matmul %1303, %1302, %cst_600 {dimension_numbers = #tpu.dot_dimension_numbers<[1], [0], [0], [1], [0, 0, 1, 1], [], []>} : vector<16x32xbf16>, vector<32x32xbf16>, vector<16x32xf32> -> vector<16x32xf32>
    %1309 = arith.addf %1307, %1308 : vector<16x32xf32>
    %cst_601 = arith.constant dense<0.000000e+00> : vector<16x32xf32>
    %1310 = tpu.matmul %1306, %1299, %cst_601 {dimension_numbers = #tpu.dot_dimension_numbers<[1], [0], [0], [1], [0, 0, 1, 1], [], []>} : vector<16x32xbf16>, vector<32x32xbf16>, vector<16x32xf32> -> vector<16x32xf32>
    %1311 = arith.addf %1309, %1310 : vector<16x32xf32>
    %1312 = arith.addf %1288, %1311 : vector<16x32xf32>
    %c2_602 = arith.constant 2 : index
    %c0_603 = arith.constant 0 : index
    %c0_604 = arith.constant 0 : index
    %1313 = vector.load %arg25[%c2_602, %c0_603, %c0_604] : memref<3x16x32xf32, #tpu.memory_space<vmem>>, vector<1x16x32xf32>
    %1314 = vector.shape_cast %1313 : vector<1x16x32xf32> to vector<16x32xf32>
    %1315 = vector.broadcast %1255 : vector<1x32xf32> to vector<16x32xf32>
    %1316 = arith.subf %1314, %1315 : vector<16x32xf32>
    %1317 = vector.broadcast %1262 : vector<1x32xf32> to vector<16x32xf32>
    %1318 = arith.mulf %1316, %1317 : vector<16x32xf32>
    %cst_605 = arith.constant 0.000000e+00 : f32
    %1319 = vector.broadcast %cst_605 : f32 to vector<16x32xf32>
    %1320 = arith.maximumf %1318, %1319 : vector<16x32xf32>
    %c2_606 = arith.constant 2 : index
    %c0_607 = arith.constant 0 : index
    %c0_608 = arith.constant 0 : index
    %1321 = vector.load %arg14[%c2_606, %c0_607, %c0_608] : memref<3x32x32xf32, #tpu.memory_space<vmem>>, vector<1x32x32xf32>
    %1322 = vector.shape_cast %1321 : vector<1x32x32xf32> to vector<32x32xf32>
    %1323 = arith.truncf %1322 : vector<32x32xf32> to vector<32x32xbf16>
    %1324 = arith.extf %1323 : vector<32x32xbf16> to vector<32x32xf32>
    %1325 = arith.subf %1322, %1324 : vector<32x32xf32>
    %1326 = arith.truncf %1325 : vector<32x32xf32> to vector<32x32xbf16>
    %1327 = arith.truncf %1320 : vector<16x32xf32> to vector<16x32xbf16>
    %1328 = arith.extf %1327 : vector<16x32xbf16> to vector<16x32xf32>
    %1329 = arith.subf %1320, %1328 : vector<16x32xf32>
    %1330 = arith.truncf %1329 : vector<16x32xf32> to vector<16x32xbf16>
    %cst_609 = arith.constant dense<0.000000e+00> : vector<16x32xf32>
    %1331 = tpu.matmul %1327, %1323, %cst_609 {dimension_numbers = #tpu.dot_dimension_numbers<[1], [0], [0], [1], [0, 0, 1, 1], [], []>} : vector<16x32xbf16>, vector<32x32xbf16>, vector<16x32xf32> -> vector<16x32xf32>
    %cst_610 = arith.constant dense<0.000000e+00> : vector<16x32xf32>
    %1332 = tpu.matmul %1327, %1326, %cst_610 {dimension_numbers = #tpu.dot_dimension_numbers<[1], [0], [0], [1], [0, 0, 1, 1], [], []>} : vector<16x32xbf16>, vector<32x32xbf16>, vector<16x32xf32> -> vector<16x32xf32>
    %1333 = arith.addf %1331, %1332 : vector<16x32xf32>
    %cst_611 = arith.constant dense<0.000000e+00> : vector<16x32xf32>
    %1334 = tpu.matmul %1330, %1323, %cst_611 {dimension_numbers = #tpu.dot_dimension_numbers<[1], [0], [0], [1], [0, 0, 1, 1], [], []>} : vector<16x32xbf16>, vector<32x32xbf16>, vector<16x32xf32> -> vector<16x32xf32>
    %1335 = arith.addf %1333, %1334 : vector<16x32xf32>
    %1336 = arith.addf %1312, %1335 : vector<16x32xf32>
    %cst_612 = arith.constant dense<0.000000e+00> : vector<32xf32>
    %1337 = vector.multi_reduction <add>, %1336, %cst_612 [0] : vector<16x32xf32> to vector<32xf32>
    %1338 = vector.shape_cast %1337 : vector<32xf32> to vector<1x32xf32>
    %1339 = arith.mulf %1336, %1336 : vector<16x32xf32>
    %cst_613 = arith.constant dense<0.000000e+00> : vector<32xf32>
    %1340 = vector.multi_reduction <add>, %1339, %cst_613 [0] : vector<16x32xf32> to vector<32xf32>
    %1341 = vector.shape_cast %1340 : vector<32xf32> to vector<1x32xf32>
    %cst_614 = arith.constant 1.600000e+01 : f32
    %1342 = vector.broadcast %cst_614 : f32 to vector<1x32xf32>
    %1343 = arith.divf %1338, %1342 : vector<1x32xf32>
    %cst_615 = arith.constant 1.600000e+01 : f32
    %1344 = vector.broadcast %cst_615 : f32 to vector<1x32xf32>
    %1345 = arith.divf %1341, %1344 : vector<1x32xf32>
    %1346 = arith.mulf %1343, %1343 : vector<1x32xf32>
    %1347 = arith.subf %1345, %1346 : vector<1x32xf32>
    %cst_616 = arith.constant 9.99999974E-6 : f32
    %1348 = vector.broadcast %cst_616 : f32 to vector<1x32xf32>
    %1349 = arith.addf %1347, %1348 : vector<1x32xf32>
    %1350 = math.rsqrt %1349 : vector<1x32xf32>
    %1351 = vector.broadcast %1343 : vector<1x32xf32> to vector<16x32xf32>
    %1352 = arith.subf %1336, %1351 : vector<16x32xf32>
    %1353 = vector.broadcast %1350 : vector<1x32xf32> to vector<16x32xf32>
    %1354 = arith.mulf %1352, %1353 : vector<16x32xf32>
    %cst_617 = arith.constant 0.000000e+00 : f32
    %1355 = vector.broadcast %cst_617 : f32 to vector<16x32xf32>
    %1356 = arith.maximumf %1354, %1355 : vector<16x32xf32>
    %1357 = arith.addf %521, %740 : vector<16x32xf32>
    %c0_618 = arith.constant 0 : index
    %c0_619 = arith.constant 0 : index
    %1358 = vector.load %arg20[%c0_618, %c0_619] : memref<32x32xf32, #tpu.memory_space<vmem>>, vector<32x32xf32>
    %1359 = arith.truncf %1358 : vector<32x32xf32> to vector<32x32xbf16>
    %1360 = arith.extf %1359 : vector<32x32xbf16> to vector<32x32xf32>
    %1361 = arith.subf %1358, %1360 : vector<32x32xf32>
    %1362 = arith.truncf %1361 : vector<32x32xf32> to vector<32x32xbf16>
    %1363 = arith.truncf %1357 : vector<16x32xf32> to vector<16x32xbf16>
    %1364 = arith.extf %1363 : vector<16x32xbf16> to vector<16x32xf32>
    %1365 = arith.subf %1357, %1364 : vector<16x32xf32>
    %1366 = arith.truncf %1365 : vector<16x32xf32> to vector<16x32xbf16>
    %cst_620 = arith.constant dense<0.000000e+00> : vector<16x32xf32>
    %1367 = tpu.matmul %1363, %1359, %cst_620 {dimension_numbers = #tpu.dot_dimension_numbers<[1], [0], [0], [1], [0, 0, 1, 1], [], []>} : vector<16x32xbf16>, vector<32x32xbf16>, vector<16x32xf32> -> vector<16x32xf32>
    %cst_621 = arith.constant dense<0.000000e+00> : vector<16x32xf32>
    %1368 = tpu.matmul %1363, %1362, %cst_621 {dimension_numbers = #tpu.dot_dimension_numbers<[1], [0], [0], [1], [0, 0, 1, 1], [], []>} : vector<16x32xbf16>, vector<32x32xbf16>, vector<16x32xf32> -> vector<16x32xf32>
    %1369 = arith.addf %1367, %1368 : vector<16x32xf32>
    %cst_622 = arith.constant dense<0.000000e+00> : vector<16x32xf32>
    %1370 = tpu.matmul %1366, %1359, %cst_622 {dimension_numbers = #tpu.dot_dimension_numbers<[1], [0], [0], [1], [0, 0, 1, 1], [], []>} : vector<16x32xbf16>, vector<32x32xbf16>, vector<16x32xf32> -> vector<16x32xf32>
    %1371 = arith.addf %1369, %1370 : vector<16x32xf32>
    %1372 = arith.addf %26, %1371 : vector<16x32xf32>
    %1373 = arith.addf %1356, %740 : vector<16x32xf32>
    %c0_623 = arith.constant 0 : index
    %c0_624 = arith.constant 0 : index
    %1374 = vector.load %arg21[%c0_623, %c0_624] : memref<32x32xf32, #tpu.memory_space<vmem>>, vector<32x32xf32>
    %1375 = arith.truncf %1374 : vector<32x32xf32> to vector<32x32xbf16>
    %1376 = arith.extf %1375 : vector<32x32xbf16> to vector<32x32xf32>
    %1377 = arith.subf %1374, %1376 : vector<32x32xf32>
    %1378 = arith.truncf %1377 : vector<32x32xf32> to vector<32x32xbf16>
    %1379 = arith.truncf %1373 : vector<16x32xf32> to vector<16x32xbf16>
    %1380 = arith.extf %1379 : vector<16x32xbf16> to vector<16x32xf32>
    %1381 = arith.subf %1373, %1380 : vector<16x32xf32>
    %1382 = arith.truncf %1381 : vector<16x32xf32> to vector<16x32xbf16>
    %cst_625 = arith.constant dense<0.000000e+00> : vector<16x32xf32>
    %1383 = tpu.matmul %1379, %1375, %cst_625 {dimension_numbers = #tpu.dot_dimension_numbers<[1], [0], [0], [1], [0, 0, 1, 1], [], []>} : vector<16x32xbf16>, vector<32x32xbf16>, vector<16x32xf32> -> vector<16x32xf32>
    %cst_626 = arith.constant dense<0.000000e+00> : vector<16x32xf32>
    %1384 = tpu.matmul %1379, %1378, %cst_626 {dimension_numbers = #tpu.dot_dimension_numbers<[1], [0], [0], [1], [0, 0, 1, 1], [], []>} : vector<16x32xbf16>, vector<32x32xbf16>, vector<16x32xf32> -> vector<16x32xf32>
    %1385 = arith.addf %1383, %1384 : vector<16x32xf32>
    %cst_627 = arith.constant dense<0.000000e+00> : vector<16x32xf32>
    %1386 = tpu.matmul %1382, %1375, %cst_627 {dimension_numbers = #tpu.dot_dimension_numbers<[1], [0], [0], [1], [0, 0, 1, 1], [], []>} : vector<16x32xbf16>, vector<32x32xbf16>, vector<16x32xf32> -> vector<16x32xf32>
    %1387 = arith.addf %1385, %1386 : vector<16x32xf32>
    %1388 = arith.addf %1372, %1387 : vector<16x32xf32>
    %cst_628 = arith.constant dense<0.000000e+00> : vector<32xf32>
    %1389 = vector.multi_reduction <add>, %1388, %cst_628 [0] : vector<16x32xf32> to vector<32xf32>
    %1390 = vector.shape_cast %1389 : vector<32xf32> to vector<1x32xf32>
    %1391 = arith.mulf %1388, %1388 : vector<16x32xf32>
    %cst_629 = arith.constant dense<0.000000e+00> : vector<32xf32>
    %1392 = vector.multi_reduction <add>, %1391, %cst_629 [0] : vector<16x32xf32> to vector<32xf32>
    %1393 = vector.shape_cast %1392 : vector<32xf32> to vector<1x32xf32>
    %cst_630 = arith.constant 1.600000e+01 : f32
    %1394 = vector.broadcast %cst_630 : f32 to vector<1x32xf32>
    %1395 = arith.divf %1390, %1394 : vector<1x32xf32>
    %cst_631 = arith.constant 1.600000e+01 : f32
    %1396 = vector.broadcast %cst_631 : f32 to vector<1x32xf32>
    %1397 = arith.divf %1393, %1396 : vector<1x32xf32>
    %1398 = arith.mulf %1395, %1395 : vector<1x32xf32>
    %1399 = arith.subf %1397, %1398 : vector<1x32xf32>
    %cst_632 = arith.constant 9.99999974E-6 : f32
    %1400 = vector.broadcast %cst_632 : f32 to vector<1x32xf32>
    %1401 = arith.addf %1399, %1400 : vector<1x32xf32>
    %1402 = math.rsqrt %1401 : vector<1x32xf32>
    %1403 = vector.broadcast %1395 : vector<1x32xf32> to vector<16x32xf32>
    %1404 = arith.subf %1388, %1403 : vector<16x32xf32>
    %1405 = vector.broadcast %1402 : vector<1x32xf32> to vector<16x32xf32>
    %1406 = arith.mulf %1404, %1405 : vector<16x32xf32>
    %cst_633 = arith.constant 2.000000e-01 : f32
    %1407 = vector.broadcast %cst_633 : f32 to vector<16x32xf32>
    %1408 = arith.mulf %1407, %1406 : vector<16x32xf32>
    %1409 = arith.maximumf %1406, %1408 : vector<16x32xf32>
    %c0_634 = arith.constant 0 : index
    %c0_635 = arith.constant 0 : index
    %1410 = vector.load %arg22[%c0_634, %c0_635] : memref<32x32xf32, #tpu.memory_space<vmem>>, vector<32x32xf32>
    %1411 = arith.truncf %1410 : vector<32x32xf32> to vector<32x32xbf16>
    %1412 = arith.extf %1411 : vector<32x32xbf16> to vector<32x32xf32>
    %1413 = arith.subf %1410, %1412 : vector<32x32xf32>
    %1414 = arith.truncf %1413 : vector<32x32xf32> to vector<32x32xbf16>
    %1415 = arith.truncf %389 : vector<16x32xf32> to vector<16x32xbf16>
    %1416 = arith.extf %1415 : vector<16x32xbf16> to vector<16x32xf32>
    %1417 = arith.subf %389, %1416 : vector<16x32xf32>
    %1418 = arith.truncf %1417 : vector<16x32xf32> to vector<16x32xbf16>
    %cst_636 = arith.constant dense<0.000000e+00> : vector<16x32xf32>
    %1419 = tpu.matmul %1415, %1411, %cst_636 {dimension_numbers = #tpu.dot_dimension_numbers<[1], [0], [0], [1], [0, 0, 1, 1], [], []>} : vector<16x32xbf16>, vector<32x32xbf16>, vector<16x32xf32> -> vector<16x32xf32>
    %cst_637 = arith.constant dense<0.000000e+00> : vector<16x32xf32>
    %1420 = tpu.matmul %1415, %1414, %cst_637 {dimension_numbers = #tpu.dot_dimension_numbers<[1], [0], [0], [1], [0, 0, 1, 1], [], []>} : vector<16x32xbf16>, vector<32x32xbf16>, vector<16x32xf32> -> vector<16x32xf32>
    %1421 = arith.addf %1419, %1420 : vector<16x32xf32>
    %cst_638 = arith.constant dense<0.000000e+00> : vector<16x32xf32>
    %1422 = tpu.matmul %1418, %1411, %cst_638 {dimension_numbers = #tpu.dot_dimension_numbers<[1], [0], [0], [1], [0, 0, 1, 1], [], []>} : vector<16x32xbf16>, vector<32x32xbf16>, vector<16x32xf32> -> vector<16x32xf32>
    %1423 = arith.addf %1421, %1422 : vector<16x32xf32>
    %1424 = arith.addf %27, %1423 : vector<16x32xf32>
    %c0_639 = arith.constant 0 : index
    %c0_640 = arith.constant 0 : index
    %1425 = vector.load %arg23[%c0_639, %c0_640] : memref<64x32xf32, #tpu.memory_space<vmem>>, vector<64x32xf32>
    %1426 = arith.truncf %1425 : vector<64x32xf32> to vector<64x32xbf16>
    %1427 = arith.extf %1426 : vector<64x32xbf16> to vector<64x32xf32>
    %1428 = arith.subf %1425, %1427 : vector<64x32xf32>
    %1429 = arith.truncf %1428 : vector<64x32xf32> to vector<64x32xbf16>
    %1430 = arith.truncf %1224 : vector<16x64xf32> to vector<16x64xbf16>
    %1431 = arith.extf %1430 : vector<16x64xbf16> to vector<16x64xf32>
    %1432 = arith.subf %1224, %1431 : vector<16x64xf32>
    %1433 = arith.truncf %1432 : vector<16x64xf32> to vector<16x64xbf16>
    %cst_641 = arith.constant dense<0.000000e+00> : vector<16x32xf32>
    %1434 = tpu.matmul %1430, %1426, %cst_641 {dimension_numbers = #tpu.dot_dimension_numbers<[1], [0], [0], [1], [0, 0, 1, 1], [], []>} : vector<16x64xbf16>, vector<64x32xbf16>, vector<16x32xf32> -> vector<16x32xf32>
    %cst_642 = arith.constant dense<0.000000e+00> : vector<16x32xf32>
    %1435 = tpu.matmul %1430, %1429, %cst_642 {dimension_numbers = #tpu.dot_dimension_numbers<[1], [0], [0], [1], [0, 0, 1, 1], [], []>} : vector<16x64xbf16>, vector<64x32xbf16>, vector<16x32xf32> -> vector<16x32xf32>
    %1436 = arith.addf %1434, %1435 : vector<16x32xf32>
    %cst_643 = arith.constant dense<0.000000e+00> : vector<16x32xf32>
    %1437 = tpu.matmul %1433, %1426, %cst_643 {dimension_numbers = #tpu.dot_dimension_numbers<[1], [0], [0], [1], [0, 0, 1, 1], [], []>} : vector<16x64xbf16>, vector<64x32xbf16>, vector<16x32xf32> -> vector<16x32xf32>
    %1438 = arith.addf %1436, %1437 : vector<16x32xf32>
    %1439 = arith.addf %1424, %1438 : vector<16x32xf32>
    %cst_644 = arith.constant dense<0.000000e+00> : vector<32xf32>
    %1440 = vector.multi_reduction <add>, %1439, %cst_644 [0] : vector<16x32xf32> to vector<32xf32>
    %1441 = vector.shape_cast %1440 : vector<32xf32> to vector<1x32xf32>
    %1442 = arith.mulf %1439, %1439 : vector<16x32xf32>
    %cst_645 = arith.constant dense<0.000000e+00> : vector<32xf32>
    %1443 = vector.multi_reduction <add>, %1442, %cst_645 [0] : vector<16x32xf32> to vector<32xf32>
    %1444 = vector.shape_cast %1443 : vector<32xf32> to vector<1x32xf32>
    %cst_646 = arith.constant 1.600000e+01 : f32
    %1445 = vector.broadcast %cst_646 : f32 to vector<1x32xf32>
    %1446 = arith.divf %1441, %1445 : vector<1x32xf32>
    %cst_647 = arith.constant 1.600000e+01 : f32
    %1447 = vector.broadcast %cst_647 : f32 to vector<1x32xf32>
    %1448 = arith.divf %1444, %1447 : vector<1x32xf32>
    %1449 = arith.mulf %1446, %1446 : vector<1x32xf32>
    %1450 = arith.subf %1448, %1449 : vector<1x32xf32>
    %cst_648 = arith.constant 9.99999974E-6 : f32
    %1451 = vector.broadcast %cst_648 : f32 to vector<1x32xf32>
    %1452 = arith.addf %1450, %1451 : vector<1x32xf32>
    %1453 = math.rsqrt %1452 : vector<1x32xf32>
    %1454 = vector.broadcast %1446 : vector<1x32xf32> to vector<16x32xf32>
    %1455 = arith.subf %1439, %1454 : vector<16x32xf32>
    %1456 = vector.broadcast %1453 : vector<1x32xf32> to vector<16x32xf32>
    %1457 = arith.mulf %1455, %1456 : vector<16x32xf32>
    %cst_649 = arith.constant 2.000000e-01 : f32
    %1458 = vector.broadcast %cst_649 : f32 to vector<16x32xf32>
    %1459 = arith.mulf %1458, %1457 : vector<16x32xf32>
    %1460 = arith.maximumf %1457, %1459 : vector<16x32xf32>
    %1461 = arith.addf %1409, %1460 : vector<16x32xf32>
    %c0_650 = arith.constant 0 : index
    %c0_651 = arith.constant 0 : index
    %c0_652 = arith.constant 0 : index
    %1462 = vector.load %arg24[%c0_650, %c0_651, %c0_652] : memref<1x16x32xf32, #tpu.memory_space<vmem>>, vector<1x16x32xf32>
    %1463 = vector.shape_cast %1462 : vector<1x16x32xf32> to vector<16x32xf32>
    %1464 = vector.shape_cast %1461 : vector<16x32xf32> to vector<1x16x32xf32>
    tpu.vector_store %arg24[%c0_650, %c0_651, %c0_652], %1464 {strides = array<i32>} : memref<1x16x32xf32, #tpu.memory_space<vmem>>, vector<1x16x32xf32>,
    return
  }
  func.func @transform_0(%arg0: i32) -> (i32, i32, i32) {
    %c0_i32 = arith.constant 0 : i32
    %c0_i32_0 = arith.constant 0 : i32
    %c0_i32_1 = arith.constant 0 : i32
    return %arg0, %c0_i32, %c0_i32_0 : i32, i32, i32
  }
  func.func @transform_1(%arg0: i32) -> (i32, i32, i32) {
    %c0_i32 = arith.constant 0 : i32
    %c0_i32_0 = arith.constant 0 : i32
    %c0_i32_1 = arith.constant 0 : i32
    return %arg0, %c0_i32, %c0_i32_0 : i32, i32, i32
  }
  func.func @transform_2(%arg0: i32) -> (i32, i32, i32) {
    %c0_i32 = arith.constant 0 : i32
    %c0_i32_0 = arith.constant 0 : i32
    %c0_i32_1 = arith.constant 0 : i32
    return %arg0, %c0_i32, %c0_i32_0 : i32, i32, i32
  }
  func.func @transform_3(%arg0: i32) -> (i32, i32) {
    %c0_i32 = arith.constant 0 : i32
    %c0_i32_0 = arith.constant 0 : i32
    %c0_i32_1 = arith.constant 0 : i32
    return %c0_i32, %c0_i32_0 : i32, i32
  }
  func.func @transform_4(%arg0: i32) -> (i32, i32, i32) {
    %c0_i32 = arith.constant 0 : i32
    %c0_i32_0 = arith.constant 0 : i32
    %c0_i32_1 = arith.constant 0 : i32
    %c0_i32_2 = arith.constant 0 : i32
    return %c0_i32, %c0_i32_0, %c0_i32_1 : i32, i32, i32
  }
  func.func @transform_5(%arg0: i32) -> (i32, i32) {
    %c0_i32 = arith.constant 0 : i32
    %c0_i32_0 = arith.constant 0 : i32
    %c0_i32_1 = arith.constant 0 : i32
    return %c0_i32, %c0_i32_0 : i32, i32
  }
  func.func @transform_6(%arg0: i32) -> (i32, i32, i32) {
    %c0_i32 = arith.constant 0 : i32
    %c0_i32_0 = arith.constant 0 : i32
    %c0_i32_1 = arith.constant 0 : i32
    %c0_i32_2 = arith.constant 0 : i32
    return %c0_i32, %c0_i32_0, %c0_i32_1 : i32, i32, i32
  }
  func.func @transform_7(%arg0: i32) -> (i32, i32) {
    %c0_i32 = arith.constant 0 : i32
    %c0_i32_0 = arith.constant 0 : i32
    %c0_i32_1 = arith.constant 0 : i32
    return %c0_i32, %c0_i32_0 : i32, i32
  }
  func.func @transform_8(%arg0: i32) -> (i32, i32) {
    %c0_i32 = arith.constant 0 : i32
    %c0_i32_0 = arith.constant 0 : i32
    %c0_i32_1 = arith.constant 0 : i32
    return %c0_i32, %c0_i32_0 : i32, i32
  }
  func.func @transform_9(%arg0: i32) -> (i32, i32) {
    %c0_i32 = arith.constant 0 : i32
    %c0_i32_0 = arith.constant 0 : i32
    %c0_i32_1 = arith.constant 0 : i32
    return %c0_i32, %c0_i32_0 : i32, i32
  }
  func.func @transform_10(%arg0: i32) -> (i32, i32) {
    %c0_i32 = arith.constant 0 : i32
    %c0_i32_0 = arith.constant 0 : i32
    %c0_i32_1 = arith.constant 0 : i32
    return %c0_i32, %c0_i32_0 : i32, i32
  }
  func.func @transform_11(%arg0: i32) -> (i32, i32, i32) {
    %c0_i32 = arith.constant 0 : i32
    %c0_i32_0 = arith.constant 0 : i32
    %c0_i32_1 = arith.constant 0 : i32
    %c0_i32_2 = arith.constant 0 : i32
    return %c0_i32, %c0_i32_0, %c0_i32_1 : i32, i32, i32
  }
  func.func @transform_12(%arg0: i32) -> (i32, i32) {
    %c0_i32 = arith.constant 0 : i32
    %c0_i32_0 = arith.constant 0 : i32
    %c0_i32_1 = arith.constant 0 : i32
    return %c0_i32, %c0_i32_0 : i32, i32
  }
  func.func @transform_13(%arg0: i32) -> (i32, i32, i32) {
    %c0_i32 = arith.constant 0 : i32
    %c0_i32_0 = arith.constant 0 : i32
    %c0_i32_1 = arith.constant 0 : i32
    %c0_i32_2 = arith.constant 0 : i32
    return %c0_i32, %c0_i32_0, %c0_i32_1 : i32, i32, i32
  }
  func.func @transform_14(%arg0: i32) -> (i32, i32) {
    %c0_i32 = arith.constant 0 : i32
    %c0_i32_0 = arith.constant 0 : i32
    %c0_i32_1 = arith.constant 0 : i32
    return %c0_i32, %c0_i32_0 : i32, i32
  }
  func.func @transform_15(%arg0: i32) -> (i32, i32, i32) {
    %c0_i32 = arith.constant 0 : i32
    %c0_i32_0 = arith.constant 0 : i32
    %c0_i32_1 = arith.constant 0 : i32
    %c0_i32_2 = arith.constant 0 : i32
    return %c0_i32, %c0_i32_0, %c0_i32_1 : i32, i32, i32
  }
  func.func @transform_16(%arg0: i32) -> (i32, i32) {
    %c0_i32 = arith.constant 0 : i32
    %c0_i32_0 = arith.constant 0 : i32
    %c0_i32_1 = arith.constant 0 : i32
    return %c0_i32, %c0_i32_0 : i32, i32
  }
  func.func @transform_17(%arg0: i32) -> (i32, i32, i32) {
    %c0_i32 = arith.constant 0 : i32
    %c0_i32_0 = arith.constant 0 : i32
    %c0_i32_1 = arith.constant 0 : i32
    %c0_i32_2 = arith.constant 0 : i32
    return %c0_i32, %c0_i32_0, %c0_i32_1 : i32, i32, i32
  }
  func.func @transform_18(%arg0: i32) -> (i32, i32) {
    %c0_i32 = arith.constant 0 : i32
    %c0_i32_0 = arith.constant 0 : i32
    %c0_i32_1 = arith.constant 0 : i32
    return %c0_i32, %c0_i32_0 : i32, i32
  }
  func.func @transform_19(%arg0: i32) -> (i32, i32) {
    %c0_i32 = arith.constant 0 : i32
    %c0_i32_0 = arith.constant 0 : i32
    %c0_i32_1 = arith.constant 0 : i32
    return %c0_i32, %c0_i32_0 : i32, i32
  }
  func.func @transform_20(%arg0: i32) -> (i32, i32) {
    %c0_i32 = arith.constant 0 : i32
    %c0_i32_0 = arith.constant 0 : i32
    %c0_i32_1 = arith.constant 0 : i32
    return %c0_i32, %c0_i32_0 : i32, i32
  }
  func.func @transform_21(%arg0: i32) -> (i32, i32) {
    %c0_i32 = arith.constant 0 : i32
    %c0_i32_0 = arith.constant 0 : i32
    %c0_i32_1 = arith.constant 0 : i32
    return %c0_i32, %c0_i32_0 : i32, i32
  }
  func.func @transform_22(%arg0: i32) -> (i32, i32) {
    %c0_i32 = arith.constant 0 : i32
    %c0_i32_0 = arith.constant 0 : i32
    %c0_i32_1 = arith.constant 0 : i32
    return %c0_i32, %c0_i32_0 : i32, i32
  }
  func.func @transform_23(%arg0: i32) -> (i32, i32, i32) {
    %c0_i32 = arith.constant 0 : i32
    %c0_i32_0 = arith.constant 0 : i32
    %c0_i32_1 = arith.constant 0 : i32
    return %arg0, %c0_i32, %c0_i32_0 : i32, i32, i32
  }
}

</mosaic_0001>

<bundles_post_ra>
// kernel: self_attention_forward.1
= control target key start
LH: loop header
LB: loop body
LE: loop exit
PB: predicated region body
PF: predicated region fallthrough
CT: control target
= control target key end

     0   :  { %s15797_s0 = inlined_call_operand.vmem [shape: f32[2,16,32], index: 0, kind: input, shape index: {}]   ;;  %s15798_s1 = inlined_call_operand.vmem [shape: s32[2,144,1], index: 1, kind: input, shape index: {}]   ;;  %s15799_s2 = inlined_call_operand.vmem [shape: f32[2,144,1], index: 2, kind: input, shape index: {}]   ;;  %s15800_s3 = inlined_call_operand.vmem [shape: f32[32,128], index: 3, kind: input, shape index: {}]   ;;  %s15801_s4 = inlined_call_operand.vmem [shape: f32[3,32,64], index: 4, kind: input, shape index: {}]   ;;  %s15802_s5 = inlined_call_operand.vmem [shape: f32[1,32], index: 5, kind: input, shape index: {}]   ;;  %s15803_s6 = inlined_call_operand.vmem [shape: f32[3,32,32], index: 6, kind: input, shape index: {}]   ;;  %s15804_s7 = inlined_call_operand.vmem [shape: f32[1,32], index: 7, kind: input, shape index: {}]   ;;  %s15805_s8 = inlined_call_operand.vmem [shape: f32[32,64], index: 8, kind: input, shape index: {}]   ;;  %s15806_s9 = inlined_call_operand.vmem [shape: f32[32,64], index: 9, kind: input, shape index: {}]   ;;  %s15807_s10 = inlined_call_operand.vmem [shape: f32[32,32], index: 10, kind: input, shape index: {}]   ;;  %s15808_s11 = inlined_call_operand.vmem [shape: f32[3,32,32], index: 11, kind: input, shape index: {}]   ;;  %s15809_s12 = inlined_call_operand.vmem [shape: f32[1,32], index: 12, kind: input, shape index: {}]   ;;  %s15810_s13 = inlined_call_operand.vmem [shape: f32[3,32,32], index: 13, kind: input, shape index: {}]   ;;  %s15811_s14 = inlined_call_operand.vmem [shape: f32[1,32], index: 14, kind: input, shape index: {}]   ;;  %s15812_s15 = inlined_call_operand.vmem [shape: f32[3,1,32], index: 15, kind: input, shape index: {}]   ;;  %s15813_s16 = inlined_call_operand.vmem [shape: f32[1,32], index: 16, kind: input, shape index: {}]   ;;  %s15814_s17 = inlined_call_operand.vmem [shape: f32[3,32,32], index: 17, kind: input, shape index: {}]   ;;  %s15815_s18 = inlined_call_operand.vmem [shape: f32[1,32], index: 18, kind: input, shape index: {}]   ;;  %s15816_s19 = inlined_call_operand.vmem [shape: f32[32,32], index: 19, kind: input, shape index: {}]   ;;  %s15817_s20 = inlined_call_operand.vmem [shape: f32[32,32], index: 20, kind: input, shape index: {}]   ;;  %s15818_s21 = inlined_call_operand.vmem [shape: f32[32,32], index: 21, kind: input, shape index: {}]   ;;  %s15819_s22 = inlined_call_operand.vmem [shape: f32[64,32], index: 22, kind: input, shape index: {}]   ;;  %s15820_s23 = inlined_call_operand.hbm [shape: f32[2,16,32], index: 23, kind: output, shape index: {}]  }
   0x1   :  { %15855 = sst [smem:[#allocation48_spill]] %s15797_s0 }
   0x2   :  { %15856 = sst [smem:[#allocation49_spill]] %s15798_s1 }
   0x3   :  { %15857 = sst [smem:[#allocation50_spill]] %s15799_s2 }
   0x4   :  { %15858 = sst [smem:[#allocation51_spill]] %s15800_s3 }
   0x5   :  { %15859 = sst [smem:[#allocation52_spill]] %s15801_s4 }
   0x6   :  { %15860 = sst [smem:[#allocation53_spill]] %s15802_s5 }
   0x7   :  { %15861 = sst [smem:[#allocation54_spill]] %s15803_s6 }
   0x8   :  { %15862 = sst [smem:[#allocation55_spill]] %s15804_s7 }
   0x9   :  { %28 = vsyncpa [#allocation4], 0 }
   0xa   :  { %30 = vsyncpa [#allocation4 + $0x1], 0  ;;  %s12930_s4 = smov 0   ;;  %s12932_s30 = smov 0  }
   0xb   :  { %s12934_s24 = smov 0   ;;  %s12936_s25 = smov 0  }
   0xc LB: > { %15863 = sst [smem:[#allocation6_spill]] %s12787_s4  ;;  %s12951_s5 = sadd.s32 4294967295, %s12799_s25   ;;  %s12799_s25 = sphi %s12936_s25, %s15958_s25   ;;  %s12795_s24 = sphi %s12934_s24, %s15960_s24   ;;  %s12791_s30 = sphi %s12932_s30, %s15962_s30   ;;  %s12787_s4 = sphi %s12930_s4, %s15961_s4  }
   0xd   : > { %15864 = sst [smem:[#allocation7_spill]] %s12795_s24  ;;  %s10388_s1 = sadd.s32 4294967294, %s12799_s25  }
   0xe   : > { %s12955_s26 = sadd.s32 1, %s12799_s25   ;;  %s541_s2 = sadd.s32 1, %s12795_s24 }
   0xf   : > { %15865 = sst [smem:[#allocation8_spill]] %s12955_s26  ;;  %s538_s6 = ssub.s32 %s12799_s25, %s12955_s26 }
  0x10   : > { %p551_p0 = scmp.ne.s32.totalorder %s12795_s24, %s12791_s30  ;;  %p539_p1 = scmp.eq.s32.totalorder %s538_s6, 0 }
  0x11   : > { %p552_p2 = scmp.eq.s32.totalorder %s12951_s5, 1  ;;  %p557_p3 = scmp.ne.s32.totalorder %s12791_s30, %s12787_s4 }
  0x12   : > { %p558_p4 = scmp.eq.s32.totalorder %s10388_s1, 1  ;;  %p10391_p7 = scmp.ge.s32.totalorder %s12799_s25, 1 }
  0x13   : > { %s12966_s27 = scalar_select %p539_p1, %s12795_s24, %s541_s2  }
  0x14   : > { %p12968_p5 = por %p552_p2, %p551_p0  ;;  %p12972_p6 = por %p558_p4, %p557_p3 }
  0x15   : > { %15866 = sst [smem:[#allocation9_spill]] %s12966_s27  ;;  %p660_p8 = scmp.lt.s32.totalorder %s12799_s25, 3 }
  0x16   : > { %s15868_s28 = scalar_select %p12972_p6, 1, 0 }
  0x17   : > { %p661_p9 = pnand %p10391_p7, %p660_p8 }
  0x18   : > { %15869 = sst [smem:[#allocation10_spill]] %s15868_s28 }
  0x19   : > { %664 = sbr.rel (%p661_p9) target bundleno = 6634 (0x19ea), region = 112 }
  0x20   : > { %p734_p10 = scmp.lt.s32.totalorder %s12951_s5, 1  ;;  %s15870_s0 = sld [smem:[#allocation51_spill]]  ;;  %v12801_v3 = vmov 0   ;;  %v15837_v6 = vmov 0.0   ;;  %vm12803_vm0 = vmmov 0   ;;  %vm776_vm1 = vcmask 261120  }
  0x21   : > { %12696 = vset.pattern.permute.xlu1 %v12801_v3  ;;  %12695 = vset.pattern.permute.xlu0 %v12801_v3  ;;  %s15871_s3 = sld [smem:[#allocation48_spill]]  ;;  %s15873_s27 = sld [smem:[#allocation53_spill]]  ;;  %v752_v45 = vlaneseq  ;;  %vm982_vm4 = vcmask 130048  }
  0x22   : > { %s12994_s28 = scalar_select %p734_p10, %s12951_s5, 1  ;;  %11097 = vmatprep.subr.bf16.mxu0 %v15837_v6  ;;  %11101 = vmatprep.mubr.msk.bf16.mxu0 %vm12803_vm0, %v15837_v6 }
  0x23   : > { %11127 = vmatprep.subr.bf16.mxu1 %v15837_v6  ;;  %11129 = vmatprep.mubr.msk.bf16.mxu1 %vm12803_vm0, %v15837_v6  ;;  %s15831_s29 = smov 32   ;;  %v13074_v46 = vand.u32 127, %v752_v45  ;;  %s15874_s2 = sld [smem:[#allocation52_spill]] }
  0x24   : > { %s15830_s24 = smul.u32 144, %s12994_s28  ;;  %s10630_s26 = sshll.u32 %s12994_s28, 4 }
  0x25   : > { %s15884_s6 = smov 96  }
  0x26   : > { %v760_v0 = vld [vmem:[%s15870_s0] sm:$0xff]  ;;  %v761_v1 = vld [vmem:[%s15870_s0 + $0x8] sm:$0xff]  ;;  %v762_v2 = vld [vmem:[%s15870_s0 + $0x10] sm:$0xff] }
  0x27   : > { %v12988_v4 = vpack.c.bf16 %v761_v1, %v760_v0  ;;  %v763_v5 = vld [vmem:[%s15870_s0 + $0x18] sm:$0xff]  ;;  %s738_s1 = scalar_lea.vmem %s15871_s3, %s10630_s26  ;;  %s15872_s0 = sld [smem:[#allocation49_spill]]  ;;  %v10400_v44 = vld [vmem:[%s15873_s27] ss:$0 sm:$0xff] }
  0x28   : > { %v12997_v7 = vpack.c.bf16 %v763_v5, %v762_v2  ;;  %v750_v16 = vld [vmem:[%s738_s1] sm:$0xff]  ;;  %v751_v17 = vld [vmem:[%s738_s1 + $0x8] sm:$0xff]  ;;  %s15877_s1 = sld [smem:[#allocation54_spill]]  ;;  %s15881_s3 = sld [smem:[#allocation55_spill]] }
  0x29   : > { %v766_v8 = vunpack.c.l.bf16 %v12988_v4  ;;  %v767_v9 = vunpack.c.h.bf16 %v12988_v4  ;;  %v13022_v21 = vpack.c.bf16 %v751_v17, %v750_v16  ;;  %s15911_s27 = sld [smem:[#allocation50_spill]] }
  0x2a   : > { %v768_v10 = vunpack.c.l.bf16 %v12997_v7  ;;  %v769_v11 = vunpack.c.h.bf16 %v12997_v7 }
  0x2b   : > { %v770_v12 = vsub.f32 %v760_v0, %v766_v8  ;;  %v771_v13 = vsub.f32 %v761_v1, %v767_v9  ;;  %11128 = vmatpush3.bf16.msra.mxu1 %v13022_v21  ;;  %v755_v35 = vunpack.c.l.bf16 %v13022_v21  ;;  %v756_v36 = vunpack.c.h.bf16 %v13022_v21 }
  0x2c   : > { %v772_v14 = vsub.f32 %v762_v2, %v768_v10  ;;  %v773_v15 = vsub.f32 %v763_v5, %v769_v11  ;;  %11133 = vmatprep.subr.bf16.mxu1 %v15837_v6 }
  0x2d   : > { %s13018_s4 = scalar_lea.vmem %s15872_s0, %s15830_s24  ;;  %v774_v20 = vpack.c.bf16 %v771_v13, %v770_v12  ;;  %v757_v39 = vsub.f32 %v750_v16, %v755_v35  ;;  %v758_v40 = vsub.f32 %v751_v17, %v756_v36  ;;  %v919_v12 = vld [vmem:[%s15874_s2] sm:$0xff]  ;;  %v920_v13 = vld [vmem:[%s15874_s2 + $0x8] sm:$0xff]  ;;  %v921_v17 = vld [vmem:[%s15874_s2 + $0x10] sm:$0xff]  ;;  %s15833_s24 = smov 96  }
  0x2e   : > { %v1241_v18 = vld [vmem:[%s13018_s4 + $0x10] sm:$0xff]  ;;  %v969_v19 = vld [vmem:[%s13018_s4] sm:$0xff]  ;;  %v1242_v22 = vld [vmem:[%s13018_s4 + $0x18] sm:$0xff]  ;;  %v775_v24 = vpack.c.bf16 %v773_v15, %v772_v14  ;;  %v13142_v14 = vpack.c.bf16 %v920_v13, %v919_v12 }
  0x2f   : > { %1244 = vperm.xlu1 %12696, %v1241_v18   ;;  %972 = vperm.xlu0 %12695, %v969_v19   ;;  %v970_v23 = vld [vmem:[%s13018_s4 + $0x8] sm:$0xff]  ;;  %v1516_v26 = vld [vmem:[%s13018_s4 + $0x20] sm:$0xff]  ;;  %v1792_v27 = vld [vmem:[%s13018_s4 + $0x38] sm:$0xff]  ;;  %v13062_v43 = vpack.c.bf16 %v758_v40, %v757_v39 }
  0x30   : > { %11098 = vmatpush3.bf16.msra.mxu0 %v774_v20  ;;  %v1517_v25 = vld [vmem:[%s13018_s4 + $0x28] sm:$0xff]  ;;  %v1791_v28 = vld [vmem:[%s13018_s4 + $0x30] sm:$0xff]  ;;  %v2065_v30 = vld [vmem:[%s13018_s4 + $0x40] sm:$0xff]  ;;  %v925_v15 = vunpack.c.l.bf16 %v13142_v14  ;;  %v926_v16 = vunpack.c.h.bf16 %v13142_v14 }
  0x31   : > { %11099 = vmatprep.subr.bf16.mxu0 %v15837_v6  ;;  %v2066_v29 = vld [vmem:[%s13018_s4 + $0x48] sm:$0xff]  ;;  %v2341_v31 = vld [vmem:[%s13018_s4 + $0x58] sm:$0xff]  ;;  %v2340_v32 = vld [vmem:[%s13018_s4 + $0x50] sm:$0xff] }
  0x32   : > { %v2616_v33 = vld [vmem:[%s13018_s4 + $0x68] sm:$0xff]  ;;  %v2615_v34 = vld [vmem:[%s13018_s4 + $0x60] sm:$0xff]  ;;  %v2890_v37 = vld [vmem:[%s13018_s4 + $0x78] sm:$0xff]  ;;  %v929_v19 = vsub.f32 %v919_v12, %v925_v15  ;;  %v930_v20 = vsub.f32 %v920_v13, %v926_v16 }
  0x33   : > { %1247 = vperm.xlu1 %12696, %v1242_v22   ;;  %975 = vperm.xlu0 %12695, %v970_v23   ;;  %v2889_v38 = vld [vmem:[%s13018_s4 + $0x70] sm:$0xff]  ;;  %v3165_v41 = vld [vmem:[%s13018_s4 + $0x88] sm:$0xff]  ;;  %v3164_v42 = vld [vmem:[%s13018_s4 + $0x80] sm:$0xff] }
  0x34   : > { %11100 = vmatpush3.bf16.msra.mxu0 %v775_v24  ;;  %v922_v18 = vld [vmem:[%s15874_s2 + $0x18] sm:$0xff]  ;;  %v13154_v23 = vpack.c.bf16 %v930_v20, %v929_v19  ;;  %v10401_v13 = vld [vmem:[%s15874_s2 + $0x20] sm:$0xff]  ;;  %v10402_v15 = vld [vmem:[%s15874_s2 + $0x28] sm:$0xff] }
  0x35   : > { %11105 = vmatprep.subr.bf16.mxu0 %v15837_v6  ;;  %v13152_v22 = vpack.c.bf16 %v922_v18, %v921_v17  ;;  %v10408_v39 = vld [vmem:[%s15874_s2 + $0x58] sm:$0xff]  ;;  %v13209_v16 = vpack.c.bf16 %v10402_v15, %v10401_v13 }
  0x37   : > { %1522 = vperm.xlu1 %12696, %v1517_v25   ;;  %1519 = vperm.xlu0 %12695, %v1516_v26   ;;  %v927_v24 = vunpack.c.l.bf16 %v13152_v22  ;;  %v928_v25 = vunpack.c.h.bf16 %v13152_v22  ;;  %v942_v20 = vunpack.c.l.bf16 %v13209_v16 }
  0x38   : > { %11102 = vmatmul.mubr.msk.bf16.vlgmr.msra.gmra.mrb[0].mxu0 %vm776_vm1, %v13022_v21 }
  0x39   : > { %11106 = vmatpush3.bf16.msra.mxu0 %v12988_v4  ;;  %11109 = vmatprep.mubr.msk.bf16.mxu0 %vm12803_vm0, %v15837_v6  ;;  %v931_v26 = vsub.f32 %v921_v17, %v927_v24  ;;  %v10403_v17 = vld [vmem:[%s15874_s2 + $0x30] sm:$0xff]  ;;  %v943_v24 = vunpack.c.h.bf16 %v13209_v16 }
  0x3a   : > { %11107 = vmatprep.subr.bf16.mxu0 %v15837_v6 }
  0x3b   : > { %1797 = vperm.xlu1 %12696, %v1792_v27   ;;  %1794 = vperm.xlu0 %12695, %v1791_v28   ;;  %v932_v27 = vsub.f32 %v922_v18, %v928_v25  ;;  %v10404_v18 = vld [vmem:[%s15874_s2 + $0x38] sm:$0xff] }
  0x3c   : > { %v13223_v25 = vpack.c.bf16 %v10404_v18, %v10403_v17 }
  0x3d   : > { %11108 = vmatpush3.bf16.msra.mxu0 %v12997_v7  ;;  %v13160_v28 = vpack.c.bf16 %v932_v27, %v931_v26 }
  0x3e   : > { %11113 = vmatprep.subr.bf16.mxu0 %v15837_v6 }
  0x3f   : > { %2071 = vperm.xlu1 %12696, %v2066_v29   ;;  %2068 = vperm.xlu0 %12695, %v2065_v30  }
  0x43   : > { %2346 = vperm.xlu1 %12696, %v2341_v31   ;;  %2343 = vperm.xlu0 %12695, %v2340_v32  }
  0x44   : > { %11110 = vmatmul.mubr.msk.bf16.vlgmr.msra.gmra.mrb[0].mxu0 %vm776_vm1, %v13022_v21 }
  0x45   : > { %11114 = vmatpush3.bf16.msra.mxu0 %v12988_v4  ;;  %11117 = vmatprep.mubr.msk.bf16.mxu0 %vm12803_vm0, %v15837_v6 }
  0x46   : > { %11115 = vmatprep.subr.bf16.mxu0 %v15837_v6 }
  0x47   : > { %2621 = vperm.xlu1 %12696, %v2616_v33   ;;  %2618 = vperm.xlu0 %12695, %v2615_v34   ;;  %v10405_v33 = vld [vmem:[%s15874_s2 + $0x40] sm:$0xff]  ;;  %v10406_v34 = vld [vmem:[%s15874_s2 + $0x48] sm:$0xff] }
  0x48   : > { %v13174_v35 = vpack.c.bf16 %v10406_v34, %v10405_v33 }
  0x49   : > { %11116 = vmatpush3.bf16.msra.mxu0 %v12997_v7 }
  0x4a   : > { %11121 = vmatprep.subr.bf16.mxu0 %v15837_v6  ;;  %v959_v36 = vunpack.c.l.bf16 %v13174_v35 }
  0x4b   : > { %2895 = vperm.xlu1 %12696, %v2890_v37   ;;  %2892 = vperm.xlu0 %12695, %v2889_v38   ;;  %v960_v37 = vunpack.c.h.bf16 %v13174_v35  ;;  %v10407_v38 = vld [vmem:[%s15874_s2 + $0x50] sm:$0xff]  ;;  %s15878_s2 = smov 32  }
  0x4c   : > { %v963_v40 = vsub.f32 %v10405_v33, %v959_v36  ;;  %v946_v33 = vsub.f32 %v10401_v13, %v942_v20  ;;  %v944_v36 = vunpack.c.l.bf16 %v13223_v25 }
  0x4f   : > { %3170 = vperm.xlu1 %12696, %v3165_v41   ;;  %3167 = vperm.xlu0 %12695, %v3164_v42   ;;  %v964_v41 = vsub.f32 %v10406_v34, %v960_v37  ;;  %v13184_v42 = vpack.c.bf16 %v10408_v39, %v10407_v38  ;;  %v947_v34 = vsub.f32 %v10402_v15, %v943_v24  ;;  %v945_v37 = vunpack.c.h.bf16 %v13223_v25 }
  0x50   : > { %11118 = vmatmul.mubr.msk.bf16.vlgmr.msra.gmra.mrb[0].mxu0 %vm776_vm1, %v13062_v43 }
  0x51   : > { %11122 = vmatpush3.bf16.msra.mxu0 %v13062_v43  ;;  %11123 = vmatprep.mubr.msk.bf16.mxu0 %vm12803_vm0, %v15837_v6  ;;  %v961_v45 = vunpack.c.l.bf16 %v13184_v42 }
  0x52   : > { %11157 = vmatprep.subr.bf16.mxu0 %v15837_v6 }
  0x53   : > { %914 = vrot.lane.b32.xlu0 %v10400_v44, %s15831_s29  ;;  %v13186_v44 = vpack.c.bf16 %v964_v41, %v963_v40 }
  0xae   : > { %v1245_v47 = vpop.permute.xlu1 %1244  ;;  %v973_v48 = vpop.permute.xlu0 %972 }
  0xaf   : > { %vm977_vm2 = vcmp.eq.s32.totalorder %v13074_v46, %v973_v48  ;;  %vm1249_vm5 = vcmp.eq.s32.totalorder %v13074_v46, %v1245_v47  ;;  %v962_v47 = vunpack.c.h.bf16 %v13184_v42  ;;  %v965_v48 = vsub.f32 %v10407_v38, %v961_v45 }
  0xb0   : > { %v979_v51 = vsel %vm977_vm2, 1.0, %v15837_v6  ;;  %v1251_v56 = vsel %vm1249_vm5, 1.0, %v15837_v6  ;;  %v13230_v45 = vpack.c.bf16 %v947_v34, %v946_v33 }
  0xb2   : > { %v1248_v49 = vpop.permute.xlu1 %1247  ;;  %v976_v50 = vpop.permute.xlu0 %975 }
  0xb3   : > { %vm978_vm3 = vcmp.eq.s32.totalorder %v13074_v46, %v976_v50  ;;  %vm1250_vm6 = vcmp.eq.s32.totalorder %v13074_v46, %v1248_v49  ;;  %v966_v49 = vsub.f32 %v10408_v39, %v962_v47  ;;  %v948_v47 = vsub.f32 %v10403_v17, %v944_v36 }
  0xb4   : > { %v980_v52 = vsel %vm978_vm3, 1.0, %v15837_v6  ;;  %v1252_v57 = vsel %vm1250_vm6, 1.0, %v15837_v6 }
  0xb5   : > { %v981_v53 = vpack.c.bf16 %v980_v52, %v979_v51  ;;  %v1253_v60 = vpack.c.bf16 %v1252_v57, %v1251_v56  ;;  %v13192_v50 = vpack.c.bf16 %v966_v49, %v965_v48  ;;  %v949_v48 = vsub.f32 %v10404_v18, %v945_v37 }
  0xb6   : > { %v1523_v54 = vpop.permute.xlu1 %1522  ;;  %v1520_v55 = vpop.permute.xlu0 %1519 }
  0xb7   : > { %11124 = vmatmul.mubr.msk.bf16.vlgmr.msra.gmra.mrb[4].mxu0 %vm982_vm4, %v981_v53  ;;  %11130 = vmatmul.mubr.msk.bf16.vlgmr.msra.gmra.mrb[0].mxu1 %vm982_vm4, %v981_v53  ;;  %vm1525_vm7 = vcmp.eq.s32.totalorder %v13074_v46, %v1523_v54  ;;  %vm1524_vm8 = vcmp.eq.s32.totalorder %v13074_v46, %v1520_v55 }
  0xb8   : > { %11158 = vmatpush3.bf16.msra.mxu0 %v13062_v43  ;;  %11159 = vmatprep.mubr.msk.bf16.mxu0 %vm12803_vm0, %v15837_v6  ;;  %v1527_v9 = vsel %vm1525_vm7, 1.0, %v15837_v6  ;;  %v1526_v10 = vsel %vm1524_vm8, 1.0, %v15837_v6 }
  0xb9   : > { %11163 = vmatprep.subr.bf16.mxu0 %v15837_v6  ;;  %11137 = vmatprep.mubr.msk.bf16.mxu1 %vm12803_vm0, %v15837_v6  ;;  %v1528_v11 = vpack.c.bf16 %v1527_v9, %v1526_v10 }
  0xba   : > { %v13092_v58 = vpop.permute.xlu1 %1797  ;;  %v13094_v59 = vpop.permute.xlu0 %1794  ;;  %11134 = vmatpush3.bf16.msra.mxu1 %v13154_v23 }
  0xbb   : > { %11135 = vmatprep.subr.bf16.mxu1 %v15837_v6  ;;  %vm1800_vm11 = vcmp.eq.s32.totalorder %v13074_v46, %v13092_v58  ;;  %vm1799_vm12 = vcmp.eq.s32.totalorder %v13074_v46, %v13094_v59 }
  0xbe   : > { %v13096_v61 = vpop.permute.xlu1 %2071  ;;  %v13098_v62 = vpop.permute.xlu0 %2068  ;;  %11136 = vmatpush3.bf16.msra.mxu1 %v13160_v28 }
  0xbf   : > { %11160 = vmatmul.mubr.msk.bf16.vlgmr.msra.gmra.mrb[8].mxu0 %vm982_vm4, %v1253_v60  ;;  %11141 = vmatprep.subr.bf16.mxu1 %v15837_v6  ;;  %vm2074_vm13 = vcmp.eq.s32.totalorder %v13074_v46, %v13096_v61  ;;  %vm2073_vm14 = vcmp.eq.s32.totalorder %v13074_v46, %v13098_v62 }
  0xc0   : > { %11164 = vmatpush3.bf16.msra.mxu0 %v13022_v21  ;;  %11165 = vmatprep.mubr.msk.bf16.mxu0 %vm12803_vm0, %v15837_v6  ;;  %v2076_v58 = vsel %vm2074_vm13, 1.0, %v15837_v6  ;;  %v2075_v59 = vsel %vm2073_vm14, 1.0, %v15837_v6 }
  0xc1   : > { %11193 = vmatprep.subr.bf16.mxu0 %v15837_v6  ;;  %v2077_v61 = vpack.c.bf16 %v2076_v58, %v2075_v59 }
  0xc2   : > { %v13105_v63 = vpop.permute.xlu1 %2346  ;;  %v13107_v0 = vpop.permute.xlu0 %2343 }
  0xc3   : > { %vm2349_vm15 = vcmp.eq.s32.totalorder %v13074_v46, %v13105_v63  ;;  %vm2348_vm2 = vcmp.eq.s32.totalorder %v13074_v46, %v13107_v0 }
  0xc6   : > { %v13109_v1 = vpop.permute.xlu1 %2621  ;;  %v13111_v2 = vpop.permute.xlu0 %2618 }
  0xc7   : > { %vm2624_vm3 = vcmp.eq.s32.totalorder %v13074_v46, %v13109_v1  ;;  %vm2623_vm5 = vcmp.eq.s32.totalorder %v13074_v46, %v13111_v2 }
  0xc8   : > { %v2626_v63 = vsel %vm2624_vm3, 1.0, %v15837_v6  ;;  %v2625_v0 = vsel %vm2623_vm5, 1.0, %v15837_v6 }
  0xc9   : > { %v2627_v1 = vpack.c.bf16 %v2626_v63, %v2625_v0 }
  0xca   : > { %v2896_v3 = vpop.permute.xlu1 %2895  ;;  %v2893_v4 = vpop.permute.xlu0 %2892 }
  0xcb   : > { %vm2898_vm9 = vcmp.eq.s32.totalorder %v13074_v46, %v2896_v3  ;;  %vm2897_vm10 = vcmp.eq.s32.totalorder %v13074_v46, %v2893_v4  ;;  %11166 = vmatmul.mubr.msk.bf16.vlgmr.msra.gmra.mrb[8].mxu0 %vm982_vm4, %v1253_v60 }
  0xcc   : > { %v2900_v5 = vsel %vm2898_vm9, 1.0, %v15837_v6  ;;  %v2899_v7 = vsel %vm2897_vm10, 1.0, %v15837_v6  ;;  %11194 = vmatpush3.bf16.msra.mxu0 %v13062_v43  ;;  %11195 = vmatprep.mubr.msk.bf16.mxu0 %vm12803_vm0, %v15837_v6 }
  0xcd   : > { %v13123_v8 = vpack.c.bf16 %v2900_v5, %v2899_v7  ;;  %11199 = vmatprep.subr.bf16.mxu0 %v15837_v6 }
  0xce   : > { %v13315_v62 = vpop.permute.xlu0 %3167  ;;  %v13434_v2 = vpop.permute.xlu1 %3170 }
  0xcf   : > { %vm3173_vm6 = vcmp.eq.s32.totalorder %v13074_v46, %v13434_v2  ;;  %vm3172_vm7 = vcmp.eq.s32.totalorder %v13074_v46, %v13315_v62 }
  0xd3   : > { %11196 = vmatmul.mubr.msk.bf16.vlgmr.msra.gmra.mrb[12].mxu0 %vm982_vm4, %v1528_v11 }
  0xd4   : > { %11200 = vmatpush3.bf16.msra.mxu0 %v13022_v21  ;;  %11201 = vmatprep.mubr.msk.bf16.mxu0 %vm12803_vm0, %v15837_v6 }
  0xd5   : > { %11205 = vmatprep.subr.bf16.mxu0 %v15837_v6 }
  0xdf   : > { %11202 = vmatmul.mubr.msk.bf16.vlgmr.msra.gmra.mrb[12].mxu0 %vm982_vm4, %v1528_v11 }
  0xe0   : > { %11209 = vmatprep.mubr.msk.bf16.mxu0 %vm12803_vm0, %v15837_v6  ;;  %11206 = vmatpush3.bf16.msra.mxu0 %v13186_v44 }
  0xe1   : > { %11207 = vmatprep.subr.bf16.mxu0 %v15837_v6 }
  0xe4   : > { %11208 = vmatpush3.bf16.msra.mxu0 %v13192_v50 }
  0xe5   : > { %11213 = vmatprep.subr.bf16.mxu0 %v15837_v6 }
 0x123   : > { %v13164_v29 = vpop.f32.mrb[0].mxu0 }
 0x124   : > { %15875 = vst [vmem:[#allocation11_spill] sm:$0xff] %v13164_v29  ;;  %v11119_v30 = vpop.f32.mrb[1].mxu0 }
 0x125   : > { %v13166_v31 = vpop.f32.mrb[2].mxu0 }
 0x126   : > { %15876 = vst [vmem:[#allocation12_spill] sm:$0xff] %v13166_v31  ;;  %v11120_v32 = vpop.f32.mrb[3].mxu0 }
 0x18a   : > { %v1020_v51 = vpop.f32.mrb[4].mxu0  ;;  %v1061_v52 = vpop.f32.mrb[0].mxu1 }
 0x18b   : > { %v1062_v53 = vadd.f32 %v1061_v52, %v1020_v51  ;;  %v11125_v54 = vpop.f32.mrb[5].mxu0  ;;  %v11131_v55 = vpop.f32.mrb[1].mxu1  ;;  %v13234_v51 = vpack.c.bf16 %v949_v48, %v948_v47 }
 0x18c   : > { %v1023_v56 = vpop.f32.mrb[6].mxu0  ;;  %v1064_v57 = vpop.f32.mrb[2].mxu1 }
 0x18d   : > { %v1065_v60 = vadd.f32 %v1064_v57, %v1023_v56  ;;  %v11126_v3 = vpop.f32.mrb[7].mxu0  ;;  %v11132_v4 = vpop.f32.mrb[3].mxu1 }
 0x18f   : > { %v1068_v5 = vpack.c.bf16 %v1065_v60, %v1062_v53 }
 0x191   : > { %v1069_v7 = vunpack.c.l.bf16 %v1068_v5  ;;  %v1070_v9 = vunpack.c.h.bf16 %v1068_v5  ;;  %11138 = vmatmul.mubr.msk.bf16.vlgmr.msra.gmra.mrb[4].mxu1 %vm776_vm1, %v1068_v5 }
 0x192   : > { %11142 = vmatpush3.bf16.msra.mxu1 %v13142_v14  ;;  %11145 = vmatprep.mubr.msk.bf16.mxu1 %vm12803_vm0, %v15837_v6 }
 0x193   : > { %v1071_v10 = vsub.f32 %v1062_v53, %v1069_v7  ;;  %v1072_v11 = vsub.f32 %v1065_v60, %v1070_v9  ;;  %11143 = vmatprep.subr.bf16.mxu1 %v15837_v6  ;;  %v1802_v7 = vsel %vm1800_vm11, 1.0, %v15837_v6  ;;  %v1801_v9 = vsel %vm1799_vm12, 1.0, %v15837_v6 }
 0x195   : > { %v1073_v12 = vpack.c.bf16 %v1072_v11, %v1071_v10  ;;  %v1803_v10 = vpack.c.bf16 %v1802_v7, %v1801_v9  ;;  %v915_v11 = vpop.permute.xlu0 %914 }
 0x196   : > { %11144 = vmatpush3.bf16.msra.mxu1 %v13152_v22  ;;  %v13321_v15 = vadd.f32 %v915_v11, %v13166_v31 }
 0x197   : > { %11149 = vmatprep.subr.bf16.mxu1 %v15837_v6 }
 0x19d   : > { %11146 = vmatmul.mubr.msk.bf16.vlgmr.msra.gmra.mrb[4].mxu1 %vm776_vm1, %v1068_v5 }
 0x19e   : > { %v1332_v19 = vpop.f32.mrb[8].mxu0  ;;  %11150 = vmatpush3.bf16.msra.mxu1 %v13142_v14  ;;  %11153 = vmatprep.mubr.msk.bf16.mxu1 %vm12803_vm0, %v15837_v6 }
 0x19f   : > { %v11167_v26 = vpop.f32.mrb[9].mxu0  ;;  %11151 = vmatprep.subr.bf16.mxu1 %v15837_v6 }
 0x1a0   : > { %v1335_v27 = vpop.f32.mrb[10].mxu0 }
 0x1a1   : > { %v1339_v30 = vpack.c.bf16 %v1335_v27, %v1332_v19  ;;  %v11168_v32 = vpop.f32.mrb[11].mxu0 }
 0x1a2   : > { %11152 = vmatpush3.bf16.msra.mxu1 %v13152_v22 }
 0x1a3   : > { %v1340_v38 = vunpack.c.l.bf16 %v1339_v30  ;;  %v1341_v39 = vunpack.c.h.bf16 %v1339_v30  ;;  %11169 = vmatprep.subr.bf16.mxu1 %v15837_v6 }
 0x1a5   : > { %v1342_v40 = vsub.f32 %v1332_v19, %v1340_v38  ;;  %v1343_v41 = vsub.f32 %v1335_v27, %v1341_v39 }
 0x1a7   : > { %v1344_v49 = vpack.c.bf16 %v1343_v41, %v1342_v40 }
 0x1a9   : > { %11154 = vmatmul.mubr.msk.bf16.vlgmr.msra.gmra.mrb[4].mxu1 %vm776_vm1, %v1073_v12  ;;  %v13318_v12 = vadd.f32 %v915_v11, %v13164_v29 }
 0x1aa   : > { %11170 = vmatpush3.bf16.msra.mxu1 %v13230_v45  ;;  %11173 = vmatprep.mubr.msk.bf16.mxu1 %vm12803_vm0, %v15837_v6 }
 0x1ab   : > { %11171 = vmatprep.subr.bf16.mxu1 %v15837_v6 }
 0x1ae   : > { %11172 = vmatpush3.bf16.msra.mxu1 %v13234_v51 }
 0x1af   : > { %11177 = vmatprep.subr.bf16.mxu1 %v15837_v6 }
 0x1b1   : > { %11174 = vmatmul.mubr.msk.bf16.vlgmr.msra.gmra.mrb[8].mxu1 %vm776_vm1, %v1339_v30 }
 0x1b2   : > { %v1607_v52 = vpop.f32.mrb[12].mxu0  ;;  %11178 = vmatpush3.bf16.msra.mxu1 %v13209_v16  ;;  %11181 = vmatprep.mubr.msk.bf16.mxu1 %vm12803_vm0, %v15837_v6 }
 0x1b3   : > { %v11203_v53 = vpop.f32.mrb[13].mxu0  ;;  %11179 = vmatprep.subr.bf16.mxu1 %v15837_v6 }
 0x1b4   : > { %v1610_v54 = vpop.f32.mrb[14].mxu0 }
 0x1b5   : > { %v1614_v55 = vpack.c.bf16 %v1610_v54, %v1607_v52  ;;  %v11204_v56 = vpop.f32.mrb[15].mxu0 }
 0x1b6   : > { %11180 = vmatpush3.bf16.msra.mxu1 %v13223_v25 }
 0x1b7   : > { %v1615_v57 = vunpack.c.l.bf16 %v1614_v55  ;;  %v1616_v60 = vunpack.c.h.bf16 %v1614_v55  ;;  %11210 = vmatmul.mubr.msk.bf16.vlgmr.msra.gmra.mrb[16].mxu0 %vm776_vm1, %v1614_v55  ;;  %11185 = vmatprep.subr.bf16.mxu1 %v15837_v6 }
 0x1b8   : > { %11214 = vmatpush3.bf16.msra.mxu0 %v13174_v35  ;;  %11217 = vmatprep.mubr.msk.bf16.mxu0 %vm12803_vm0, %v15837_v6 }
 0x1b9   : > { %v1617_v3 = vsub.f32 %v1607_v52, %v1615_v57  ;;  %v1618_v4 = vsub.f32 %v1610_v54, %v1616_v60  ;;  %11215 = vmatprep.subr.bf16.mxu0 %v15837_v6 }
 0x1bb   : > { %v1619_v5 = vpack.c.bf16 %v1618_v4, %v1617_v3 }
 0x1bc   : > { %11216 = vmatpush3.bf16.msra.mxu0 %v13184_v42 }
 0x1bd   : > { %11182 = vmatmul.mubr.msk.bf16.vlgmr.msra.gmra.mrb[8].mxu1 %vm776_vm1, %v1339_v30  ;;  %11221 = vmatprep.subr.bf16.mxu0 %v15837_v6 }
 0x1be   : > { %11186 = vmatpush3.bf16.msra.mxu1 %v13209_v16  ;;  %11189 = vmatprep.mubr.msk.bf16.mxu1 %vm12803_vm0, %v15837_v6 }
 0x1bf   : > { %11187 = vmatprep.subr.bf16.mxu1 %v15837_v6 }
 0x1c2   : > { %11188 = vmatpush3.bf16.msra.mxu1 %v13223_v25 }
 0x1c3   : > { %11218 = vmatmul.mubr.msk.bf16.vlgmr.msra.gmra.mrb[16].mxu0 %vm776_vm1, %v1614_v55  ;;  %11229 = vmatprep.subr.bf16.mxu1 %v15837_v6 }
 0x1c4   : > { %11222 = vmatpush3.bf16.msra.mxu0 %v13174_v35  ;;  %11225 = vmatprep.mubr.msk.bf16.mxu0 %vm12803_vm0, %v15837_v6 }
 0x1c5   : > { %11223 = vmatprep.subr.bf16.mxu0 %v15837_v6 }
 0x1c8   : > { %11224 = vmatpush3.bf16.msra.mxu0 %v13184_v42 }
 0x1c9   : > { %11190 = vmatmul.mubr.msk.bf16.vlgmr.msra.gmra.mrb[8].mxu1 %vm776_vm1, %v1344_v49  ;;  %11265 = vmatprep.subr.bf16.mxu0 %v15837_v6 }
 0x1ca   : > { %11230 = vmatpush3.bf16.msra.mxu1 %v13062_v43  ;;  %11231 = vmatprep.mubr.msk.bf16.mxu1 %vm12803_vm0, %v15837_v6 }
 0x1cb   : > { %11235 = vmatprep.subr.bf16.mxu1 %v15837_v6 }
 0x1cf   : > { %11226 = vmatmul.mubr.msk.bf16.vlgmr.msra.gmra.mrb[16].mxu0 %vm776_vm1, %v1619_v5 }
 0x1d0   : > { %11266 = vmatpush3.bf16.msra.mxu0 %v13062_v43  ;;  %11267 = vmatprep.mubr.msk.bf16.mxu0 %vm12803_vm0, %v15837_v6 }
 0x1d1   : > { %11232 = vmatmul.mubr.msk.bf16.vlgmr.msra.gmra.mrb[12].mxu1 %vm982_vm4, %v1803_v10  ;;  %11271 = vmatprep.subr.bf16.mxu0 %v15837_v6 }
 0x1d2   : > { %11236 = vmatpush3.bf16.msra.mxu1 %v13022_v21  ;;  %11237 = vmatprep.mubr.msk.bf16.mxu1 %vm12803_vm0, %v15837_v6 }
 0x1d3   : > { %11241 = vmatprep.subr.bf16.mxu1 %v15837_v6 }
 0x1d7   : > { %11268 = vmatmul.mubr.msk.bf16.vlgmr.msra.gmra.mrb[20].mxu0 %vm982_vm4, %v2077_v61 }
 0x1d8   : > { %11272 = vmatpush3.bf16.msra.mxu0 %v13022_v21  ;;  %11273 = vmatprep.mubr.msk.bf16.mxu0 %vm12803_vm0, %v15837_v6 }
 0x1d9   : > { %11277 = vmatprep.subr.bf16.mxu0 %v15837_v6 }
 0x1dd   : > { %11238 = vmatmul.mubr.msk.bf16.vlgmr.msra.gmra.mrb[12].mxu1 %vm982_vm4, %v1803_v10 }
 0x1de   : > { %11242 = vmatpush3.bf16.msra.mxu1 %v13154_v23  ;;  %11245 = vmatprep.mubr.msk.bf16.mxu1 %vm12803_vm0, %v15837_v6 }
 0x1df   : > { %11243 = vmatprep.subr.bf16.mxu1 %v15837_v6 }
 0x1e2   : > { %11244 = vmatpush3.bf16.msra.mxu1 %v13160_v28 }
 0x1e3   : > { %11274 = vmatmul.mubr.msk.bf16.vlgmr.msra.gmra.mrb[20].mxu0 %vm982_vm4, %v2077_v61  ;;  %11249 = vmatprep.subr.bf16.mxu1 %v15837_v6 }
 0x1e4   : > { %11278 = vmatpush3.bf16.msra.mxu0 %v13230_v45  ;;  %11281 = vmatprep.mubr.msk.bf16.mxu0 %vm12803_vm0, %v15837_v6 }
 0x1e5   : > { %11279 = vmatprep.subr.bf16.mxu0 %v15837_v6 }
 0x1e8   : > { %11280 = vmatpush3.bf16.msra.mxu0 %v13234_v51 }
 0x1e9   : > { %11285 = vmatprep.subr.bf16.mxu0 %v15837_v6 }
 0x27c   : > { %v1196_v13 = vpop.f32.mrb[4].mxu1 }
 0x27d   : > { %v1205_v17 = vadd.f32 %v1196_v13, %v13164_v29  ;;  %v1229_v18 = vadd.f32 %v1196_v13, %v13318_v12  ;;  %v11155_v19 = vpop.f32.mrb[5].mxu1 }
 0x27e   : > { %v1199_v20 = vpop.f32.mrb[6].mxu1 }
 0x27f   : > { %v1217_v24 = vmul.f32 %v1205_v17, %v1205_v17  ;;  %v1206_v26 = vadd.f32 %v1199_v20, %v13166_v31  ;;  %v1230_v27 = vadd.f32 %v1199_v20, %v13321_v15  ;;  %1233 = vrot.lane.b32.xlu1 %v1229_v18, %s15833_s24  ;;  %v11156_v30 = vpop.f32.mrb[7].mxu1  ;;  %v1207_v32 = vsel %vm776_vm1, %v1205_v17, 0.0 }
 0x281   : > { %v1208_v33 = vsel %vm776_vm1, %v1206_v26, 0.0  ;;  %v1218_v34 = vmul.f32 %v1206_v26, %v1206_v26  ;;  %1235 = vrot.lane.b32.xlu0 %v1230_v27, %s15833_s24  ;;  %v1219_v37 = vsel %vm776_vm1, %v1217_v24, 0.0 }
 0x282   : > { %v1209_v36 = vadd.f32 %v1208_v33, %v1207_v32 }
 0x283   : > { %v1220_v38 = vsel %vm776_vm1, %v1218_v34, 0.0 }
 0x284   : > { %v1221_v39 = vadd.f32 %v1220_v38, %v1219_v37  ;;  %v1210_v40 = vrot.slane %v1209_v36, 4 }
 0x286   : > { %v1222_v41 = vrot.slane %v1221_v39, 4  ;;  %v1211_v47 = vadd.f32 %v1210_v40, %v1209_v36 }
 0x288   : > { %v1223_v53 = vadd.f32 %v1222_v41, %v1221_v39  ;;  %v1212_v3 = vrot.slane %v1211_v47, 2 }
 0x28a   : > { %v1224_v10 = vrot.slane %v1223_v53, 2  ;;  %v1213_v24 = vadd.f32 %v1212_v3, %v1211_v47 }
 0x28c   : > { %v1225_v33 = vadd.f32 %v1224_v10, %v1223_v53 }
 0x29c   : > { %v1467_v48 = vpop.f32.mrb[8].mxu1 }
 0x29d   : > { %v1476_v49 = vadd.f32 %v1467_v48, %v13164_v29  ;;  %1506 = vrot.lane.b32.xlu1 %v1467_v48, %s15833_s24  ;;  %v11191_v52 = vpop.f32.mrb[9].mxu1 }
 0x29e   : > { %v1470_v54 = vpop.f32.mrb[10].mxu1 }
 0x29f   : > { %v1488_v55 = vmul.f32 %v1476_v49, %v1476_v49  ;;  %v1500_v56 = vmax.f32 %v1205_v17, %v1476_v49  ;;  %v1477_v57 = vadd.f32 %v1470_v54, %v13166_v31  ;;  %1508 = vrot.lane.b32.xlu0 %v1470_v54, %s15833_s24  ;;  %v11192_v60 = vpop.f32.mrb[11].mxu1  ;;  %v1478_v4 = vsel %vm776_vm1, %v1476_v49, 0.0 }
 0x2a0   : > { %v1214_v49 = vrot.slane %v1213_v24, 1  ;;  %v1226_v60 = vrot.slane %v1225_v33, 1 }
 0x2a1   : > { %v1479_v5 = vsel %vm776_vm1, %v1477_v57, 0.0  ;;  %v1489_v7 = vmul.f32 %v1477_v57, %v1477_v57  ;;  %v1501_v9 = vmax.f32 %v1206_v26, %v1477_v57  ;;  %v1490_v61 = vsel %vm776_vm1, %v1488_v55, 0.0 }
 0x2a2   : > { %v1480_v58 = vadd.f32 %v1479_v5, %v1478_v4  ;;  %v13339_v59 = vpop.f32.mrb[16].mxu0  ;;  %v1215_v10 = vadd.f32 %v1214_v49, %v1213_v24 }
 0x2a3   : > { %v1491_v11 = vsel %vm776_vm1, %v1489_v7, 0.0  ;;  %v1751_v13 = vadd.f32 %v13339_v59, %v13164_v29  ;;  %v11227_v17 = vpop.f32.mrb[17].mxu0 }
 0x2a4   : > { %v1481_v18 = vrot.slane %v1480_v58, 4  ;;  %v1492_v19 = vadd.f32 %v1491_v11, %v1490_v61  ;;  %v13345_v20 = vpop.f32.mrb[18].mxu0 }
 0x2a5   : > { %v1763_v27 = vmul.f32 %v1751_v13, %v1751_v13  ;;  %v13347_v30 = vmax.f32 %v1500_v56, %v1751_v13  ;;  %v1752_v26 = vadd.f32 %v13345_v20, %v13166_v31  ;;  %v11228_v32 = vpop.f32.mrb[19].mxu0  ;;  %v1753_v37 = vsel %vm776_vm1, %v1751_v13, 0.0 }
 0x2a6   : > { %v1482_v34 = vadd.f32 %v1481_v18, %v1480_v58  ;;  %v1493_v36 = vrot.slane %v1492_v19, 4  ;;  %v1227_v13 = vadd.f32 %v1226_v60, %v1225_v33 }
 0x2a7   : > { %v1754_v38 = vsel %vm776_vm1, %v1752_v26, 0.0  ;;  %v1764_v39 = vmul.f32 %v1752_v26, %v1752_v26  ;;  %v13353_v40 = vmax.f32 %v1501_v9, %v1752_v26  ;;  %v1765_v52 = vsel %vm776_vm1, %v1763_v27, 0.0 }
 0x2a8   : > { %v1483_v41 = vrot.slane %v1482_v34, 2  ;;  %v1494_v48 = vadd.f32 %v1493_v36, %v1492_v19  ;;  %v1755_v47 = vadd.f32 %v1754_v38, %v1753_v37 }
 0x2a9   : > { %v1766_v54 = vsel %vm776_vm1, %v1764_v39, 0.0 }
 0x2aa   : > { %v1484_v55 = vadd.f32 %v1483_v41, %v1482_v34  ;;  %v1495_v56 = vrot.slane %v1494_v48, 2  ;;  %v1756_v53 = vrot.slane %v1755_v47, 4  ;;  %v1767_v57 = vadd.f32 %v1766_v54, %v1765_v52 }
 0x2ac   : > { %v1485_v3 = vrot.slane %v1484_v55, 1  ;;  %v1496_v4 = vadd.f32 %v1495_v56, %v1494_v48  ;;  %v1757_v5 = vadd.f32 %v1756_v53, %v1755_v47  ;;  %v1768_v7 = vrot.slane %v1767_v57, 4 }
 0x2ae   : > { %v1486_v9 = vadd.f32 %v1485_v3, %v1484_v55  ;;  %v1497_v58 = vrot.slane %v1496_v4, 1  ;;  %v1758_v61 = vrot.slane %v1757_v5, 2  ;;  %v1769_v11 = vadd.f32 %v1768_v7, %v1767_v57 }
 0x2b0   : > { %v1487_v17 = vadd.f32 %v1486_v9, %v1215_v10  ;;  %v1498_v18 = vadd.f32 %v1497_v58, %v1496_v4  ;;  %v1759_v19 = vadd.f32 %v1758_v61, %v1757_v5  ;;  %v1770_v27 = vrot.slane %v1769_v11, 2  ;;  %v1882_v26 = vpop.f32.mrb[12].mxu1 }
 0x2b1   : > { %v11239_v32 = vpop.f32.mrb[13].mxu1 }
 0x2b2   : > { %v1499_v34 = vadd.f32 %v1498_v18, %v1227_v13  ;;  %v1760_v36 = vrot.slane %v1759_v19, 1  ;;  %v1771_v37 = vadd.f32 %v1770_v27, %v1769_v11  ;;  %v1885_v38 = vpop.f32.mrb[14].mxu1  ;;  %v2351_v11 = vsel %vm2349_vm15, 1.0, %v15837_v6 }
 0x2b3   : > { %v1889_v39 = vpack.c.bf16 %v1885_v38, %v1882_v26  ;;  %v11240_v41 = vpop.f32.mrb[15].mxu1  ;;  %v2350_v13 = vsel %vm2348_vm2, 1.0, %v15837_v6 }
 0x2b4   : > { %v1761_v48 = vadd.f32 %v1760_v36, %v1759_v19  ;;  %v1772_v47 = vrot.slane %v1771_v37, 1 }
 0x2b5   : > { %v1890_v24 = vunpack.c.l.bf16 %v1889_v39  ;;  %v1891_v49 = vunpack.c.h.bf16 %v1889_v39  ;;  %11246 = vmatmul.mubr.msk.bf16.vlgmr.msra.gmra.mrb[16].mxu1 %vm776_vm1, %v1889_v39 }
 0x2b6   : > { %v13358_v52 = vadd.f32 %v1761_v48, %v1487_v17  ;;  %v1773_v33 = vadd.f32 %v1772_v47, %v1771_v37  ;;  %v2156_v54 = vpop.f32.mrb[20].mxu0  ;;  %11250 = vmatpush3.bf16.msra.mxu1 %v13142_v14  ;;  %11253 = vmatprep.mubr.msk.bf16.mxu1 %vm12803_vm0, %v15837_v6  ;;  %v2352_v17 = vpack.c.bf16 %v2351_v11, %v2350_v13 }
 0x2b7   : > { %v1892_v55 = vsub.f32 %v1882_v26, %v1890_v24  ;;  %v1893_v56 = vsub.f32 %v1885_v38, %v1891_v49  ;;  %v11275_v53 = vpop.f32.mrb[21].mxu0  ;;  %11251 = vmatprep.subr.bf16.mxu1 %v15837_v6 }
 0x2b8   : > { %v13364_v57 = vadd.f32 %v1773_v33, %v1499_v34  ;;  %v2159_v60 = vpop.f32.mrb[22].mxu0 }
 0x2b9   : > { %v1894_v3 = vpack.c.bf16 %v1893_v56, %v1892_v55  ;;  %v2163_v4 = vpack.c.bf16 %v2159_v60, %v2156_v54  ;;  %v11276_v5 = vpop.f32.mrb[23].mxu0 }
 0x2ba   : > { %11252 = vmatpush3.bf16.msra.mxu1 %v13152_v22 }
 0x2bb   : > { %v2164_v7 = vunpack.c.l.bf16 %v2163_v4  ;;  %v2165_v10 = vunpack.c.h.bf16 %v2163_v4  ;;  %11282 = vmatmul.mubr.msk.bf16.vlgmr.msra.gmra.mrb[24].mxu0 %vm776_vm1, %v2163_v4  ;;  %11257 = vmatprep.subr.bf16.mxu1 %v15837_v6 }
 0x2bc   : > { %11286 = vmatpush3.bf16.msra.mxu0 %v13209_v16  ;;  %11289 = vmatprep.mubr.msk.bf16.mxu0 %vm12803_vm0, %v15837_v6 }
 0x2bd   : > { %v2166_v9 = vsub.f32 %v2156_v54, %v2164_v7  ;;  %v2167_v58 = vsub.f32 %v2159_v60, %v2165_v10  ;;  %11287 = vmatprep.subr.bf16.mxu0 %v15837_v6 }
 0x2bf   : > { %v2168_v61 = vpack.c.bf16 %v2167_v58, %v2166_v9 }
 0x2c0   : > { %11288 = vmatpush3.bf16.msra.mxu0 %v13223_v25 }
 0x2c1   : > { %11254 = vmatmul.mubr.msk.bf16.vlgmr.msra.gmra.mrb[16].mxu1 %vm776_vm1, %v1889_v39  ;;  %11293 = vmatprep.subr.bf16.mxu0 %v15837_v6 }
 0x2c2   : > { %11258 = vmatpush3.bf16.msra.mxu1 %v13142_v14  ;;  %11261 = vmatprep.mubr.msk.bf16.mxu1 %vm12803_vm0, %v15837_v6 }
 0x2c3   : > { %11259 = vmatprep.subr.bf16.mxu1 %v15837_v6 }
 0x2c6   : > { %11260 = vmatpush3.bf16.msra.mxu1 %v13152_v22 }
 0x2c7   : > { %11290 = vmatmul.mubr.msk.bf16.vlgmr.msra.gmra.mrb[24].mxu0 %vm776_vm1, %v2163_v4  ;;  %11301 = vmatprep.subr.bf16.mxu1 %v15837_v6 }
 0x2c8   : > { %11294 = vmatpush3.bf16.msra.mxu0 %v13209_v16  ;;  %11297 = vmatprep.mubr.msk.bf16.mxu0 %vm12803_vm0, %v15837_v6 }
 0x2c9   : > { %11295 = vmatprep.subr.bf16.mxu0 %v15837_v6 }
 0x2cc   : > { %11296 = vmatpush3.bf16.msra.mxu0 %v13223_v25 }
 0x2cd   : > { %11262 = vmatmul.mubr.msk.bf16.vlgmr.msra.gmra.mrb[16].mxu1 %vm776_vm1, %v1894_v3  ;;  %11337 = vmatprep.subr.bf16.mxu0 %v15837_v6 }
 0x2ce   : > { %11302 = vmatpush3.bf16.msra.mxu1 %v13062_v43  ;;  %11303 = vmatprep.mubr.msk.bf16.mxu1 %vm12803_vm0, %v15837_v6 }
 0x2cf   : > { %11307 = vmatprep.subr.bf16.mxu1 %v15837_v6 }
 0x2d3   : > { %11298 = vmatmul.mubr.msk.bf16.vlgmr.msra.gmra.mrb[24].mxu0 %vm776_vm1, %v2168_v61 }
 0x2d4   : > { %11338 = vmatpush3.bf16.msra.mxu0 %v13062_v43  ;;  %11339 = vmatprep.mubr.msk.bf16.mxu0 %vm12803_vm0, %v15837_v6 }
 0x2d5   : > { %11304 = vmatmul.mubr.msk.bf16.vlgmr.msra.gmra.mrb[20].mxu1 %vm982_vm4, %v2352_v17  ;;  %11343 = vmatprep.subr.bf16.mxu0 %v15837_v6 }
 0x2d6   : > { %11308 = vmatpush3.bf16.msra.mxu1 %v13022_v21  ;;  %11309 = vmatprep.mubr.msk.bf16.mxu1 %vm12803_vm0, %v15837_v6 }
 0x2d7   : > { %11313 = vmatprep.subr.bf16.mxu1 %v15837_v6 }
 0x2db   : > { %11340 = vmatmul.mubr.msk.bf16.vlgmr.msra.gmra.mrb[28].mxu0 %vm982_vm4, %v2627_v1 }
 0x2dc   : > { %11344 = vmatpush3.bf16.msra.mxu0 %v13022_v21  ;;  %11345 = vmatprep.mubr.msk.bf16.mxu0 %vm12803_vm0, %v15837_v6 }
 0x2dd   : > { %11349 = vmatprep.subr.bf16.mxu0 %v15837_v6 }
 0x2e1   : > { %11310 = vmatmul.mubr.msk.bf16.vlgmr.msra.gmra.mrb[20].mxu1 %vm982_vm4, %v2352_v17 }
 0x2e2   : > { %11314 = vmatpush3.bf16.msra.mxu1 %v13186_v44  ;;  %11317 = vmatprep.mubr.msk.bf16.mxu1 %vm12803_vm0, %v15837_v6 }
 0x2e3   : > { %11315 = vmatprep.subr.bf16.mxu1 %v15837_v6 }
 0x2e6   : > { %11316 = vmatpush3.bf16.msra.mxu1 %v13192_v50 }
 0x2e7   : > { %11346 = vmatmul.mubr.msk.bf16.vlgmr.msra.gmra.mrb[28].mxu0 %vm982_vm4, %v2627_v1  ;;  %11321 = vmatprep.subr.bf16.mxu1 %v15837_v6 }
 0x2e8   : > { %11350 = vmatpush3.bf16.msra.mxu0 %v13154_v23  ;;  %11353 = vmatprep.mubr.msk.bf16.mxu0 %vm12803_vm0, %v15837_v6 }
 0x2e9   : > { %11351 = vmatprep.subr.bf16.mxu0 %v15837_v6 }
 0x2ec   : > { %11352 = vmatpush3.bf16.msra.mxu0 %v13160_v28 }
 0x2ed   : > { %11357 = vmatprep.subr.bf16.mxu0 %v15837_v6 }
 0x2f1   : > { %v1234_v18 = vpop.permute.xlu1 %1233 }
 0x2f2   : > { %1239 = vst.msk [vmem:[#allocation2] sm:$0xff] %vm776_vm1, %v1234_v18 }
 0x2f3   : > { %v1236_v19 = vpop.permute.xlu0 %1235 }
 0x2f4   : > { %1240 = vst.msk [vmem:[#allocation2 + $0x8] sm:$0xff] %vm776_vm1, %v1236_v19 }
 0x2f9   : > { %v1502_v27 = vld [vmem:[#allocation2] sm:$0xff] }
 0x2fb   : > { %v1503_v32 = vld [vmem:[#allocation2 + $0x8] sm:$0xff] }
 0x30f   : > { %v1507_v26 = vpop.permute.xlu1 %1506 }
 0x310   : > { %v1512_v23 = vadd.f32 %v1507_v26, %v1502_v27 }
 0x311   : > { %v1509_v34 = vpop.permute.xlu0 %1508 }
 0x312   : > { %1514 = vst.msk [vmem:[#allocation2] sm:$0xff] %vm776_vm1, %v1512_v23  ;;  %v1513_v36 = vadd.f32 %v1509_v34, %v1503_v32 }
 0x314   : > { %1515 = vst.msk [vmem:[#allocation2 + $0x8] sm:$0xff] %vm776_vm1, %v1513_v36 }
 0x3a0   : > { %v2017_v28 = vpop.f32.mrb[16].mxu1 }
 0x3a1   : > { %v2026_v37 = vadd.f32 %v2017_v28, %v13164_v29  ;;  %v2052_v38 = vadd.f32 %v2017_v28, %v13318_v12  ;;  %v11263_v39 = vpop.f32.mrb[17].mxu1 }
 0x3a2   : > { %v2020_v41 = vpop.f32.mrb[18].mxu1 }
 0x3a3   : > { %v2038_v48 = vmul.f32 %v2026_v37, %v2026_v37  ;;  %v2050_v47 = vmax.f32 %v13347_v30, %v2026_v37  ;;  %v2027_v24 = vadd.f32 %v2020_v41, %v13166_v31  ;;  %2056 = vrot.lane.b32.xlu1 %v2052_v38, %s15833_s24  ;;  %v11264_v49 = vpop.f32.mrb[19].mxu1  ;;  %v2053_v33 = vadd.f32 %v2020_v41, %v13321_v15 }
 0x3a4   : > { %v2028_v54 = vsel %vm776_vm1, %v2026_v37, 0.0 }
 0x3a5   : > { %v2029_v55 = vsel %vm776_vm1, %v2027_v24, 0.0  ;;  %v2039_v56 = vmul.f32 %v2027_v24, %v2027_v24  ;;  %v2051_v53 = vmax.f32 %v13353_v40, %v2027_v24  ;;  %2058 = vrot.lane.b32.xlu0 %v2053_v33, %s15833_s24  ;;  %v2040_v30 = vsel %vm776_vm1, %v2038_v48, 0.0 }
 0x3a6   : > { %v2030_v60 = vadd.f32 %v2029_v55, %v2028_v54  ;;  %v13451_v3 = vpop.f32.mrb[24].mxu0 }
 0x3a7   : > { %v2041_v4 = vsel %vm776_vm1, %v2039_v56, 0.0  ;;  %v2300_v5 = vadd.f32 %v13451_v3, %v13164_v29  ;;  %v11299_v7 = vpop.f32.mrb[25].mxu0 }
 0x3a8   : > { %v2031_v10 = vrot.slane %v2030_v60, 4  ;;  %v2042_v9 = vadd.f32 %v2041_v4, %v2040_v30  ;;  %v13457_v58 = vpop.f32.mrb[26].mxu0 }
 0x3a9   : > { %v2312_v61 = vmul.f32 %v2300_v5, %v2300_v5  ;;  %v13459_v11 = vmax.f32 %v2050_v47, %v2300_v5  ;;  %v2301_v40 = vadd.f32 %v13457_v58, %v13166_v31  ;;  %v11300_v13 = vpop.f32.mrb[27].mxu0  ;;  %v2302_v0 = vsel %vm776_vm1, %v2300_v5, 0.0 }
 0x3aa   : > { %v2032_v17 = vadd.f32 %v2031_v10, %v2030_v60  ;;  %v2043_v63 = vrot.slane %v2042_v9, 4 }
 0x3ab   : > { %v2303_v1 = vsel %vm776_vm1, %v2301_v40, 0.0  ;;  %v2313_v18 = vmul.f32 %v2301_v40, %v2301_v40  ;;  %v13465_v19 = vmax.f32 %v2051_v53, %v2301_v40  ;;  %v2314_v32 = vsel %vm776_vm1, %v2312_v61, 0.0 }
 0x3ac   : > { %v2033_v27 = vrot.slane %v2032_v17, 2  ;;  %v2044_v26 = vadd.f32 %v2043_v63, %v2042_v9  ;;  %v2304_v23 = vadd.f32 %v2303_v1, %v2302_v0 }
 0x3ad   : > { %v2315_v34 = vsel %vm776_vm1, %v2313_v18, 0.0 }
 0x3ae   : > { %v2034_v36 = vadd.f32 %v2033_v27, %v2032_v17  ;;  %v2045_v28 = vrot.slane %v2044_v26, 2  ;;  %v2305_v37 = vrot.slane %v2304_v23, 4  ;;  %v2316_v38 = vadd.f32 %v2315_v34, %v2314_v32 }
 0x3b0   : > { %v2035_v39 = vrot.slane %v2034_v36, 1  ;;  %v2046_v41 = vadd.f32 %v2045_v28, %v2044_v26  ;;  %v2306_v48 = vadd.f32 %v2305_v37, %v2304_v23  ;;  %v2317_v47 = vrot.slane %v2316_v38, 4 }
 0x3b2   : > { %v2036_v24 = vadd.f32 %v2035_v39, %v2034_v36  ;;  %v2047_v49 = vrot.slane %v2046_v41, 1  ;;  %v2307_v33 = vrot.slane %v2306_v48, 2  ;;  %v2318_v54 = vadd.f32 %v2317_v47, %v2316_v38 }
 0x3b4   : > { %v2037_v55 = vadd.f32 %v2036_v24, %v13358_v52  ;;  %v2048_v56 = vadd.f32 %v2047_v49, %v2046_v41  ;;  %v2308_v53 = vadd.f32 %v2307_v33, %v2306_v48  ;;  %v2319_v60 = vrot.slane %v2318_v54, 2  ;;  %v2431_v30 = vpop.f32.mrb[20].mxu1 }
 0x3b5   : > { %v11311_v4 = vpop.f32.mrb[21].mxu1 }
 0x3b6   : > { %v2049_v5 = vadd.f32 %v2048_v56, %v13364_v57  ;;  %v2309_v7 = vrot.slane %v2308_v53, 1  ;;  %v2320_v10 = vadd.f32 %v2319_v60, %v2318_v54  ;;  %v2434_v9 = vpop.f32.mrb[22].mxu1 }
 0x3b7   : > { %v2438_v61 = vpack.c.bf16 %v2434_v9, %v2431_v30  ;;  %v11312_v40 = vpop.f32.mrb[23].mxu1 }
 0x3b8   : > { %v2310_v13 = vadd.f32 %v2309_v7, %v2308_v53  ;;  %v2321_v17 = vrot.slane %v2320_v10, 1 }
 0x3b9   : > { %v2439_v63 = vunpack.c.l.bf16 %v2438_v61  ;;  %v2440_v0 = vunpack.c.h.bf16 %v2438_v61  ;;  %11318 = vmatmul.mubr.msk.bf16.vlgmr.msra.gmra.mrb[24].mxu1 %vm776_vm1, %v2438_v61 }
 0x3ba   : > { %v13472_v1 = vadd.f32 %v2310_v13, %v2037_v55  ;;  %v2322_v52 = vadd.f32 %v2321_v17, %v2320_v10  ;;  %v2706_v18 = vpop.f32.mrb[28].mxu0  ;;  %11322 = vmatpush3.bf16.msra.mxu1 %v13174_v35  ;;  %11325 = vmatprep.mubr.msk.bf16.mxu1 %vm12803_vm0, %v15837_v6 }
 0x3bb   : > { %v2441_v57 = vsub.f32 %v2431_v30, %v2439_v63  ;;  %v2442_v27 = vsub.f32 %v2434_v9, %v2440_v0  ;;  %v11347_v26 = vpop.f32.mrb[29].mxu0  ;;  %11323 = vmatprep.subr.bf16.mxu1 %v15837_v6 }
 0x3bc   : > { %v13478_v23 = vadd.f32 %v2322_v52, %v2049_v5  ;;  %v2709_v32 = vpop.f32.mrb[30].mxu0 }
 0x3bd   : > { %v2443_v34 = vpack.c.bf16 %v2442_v27, %v2441_v57  ;;  %v2713_v36 = vpack.c.bf16 %v2709_v32, %v2706_v18  ;;  %v11348_v28 = vpop.f32.mrb[31].mxu0 }
 0x3be   : > { %11324 = vmatpush3.bf16.msra.mxu1 %v13184_v42 }
 0x3bf   : > { %v2714_v37 = vunpack.c.l.bf16 %v2713_v36  ;;  %v2715_v38 = vunpack.c.h.bf16 %v2713_v36  ;;  %11354 = vmatmul.mubr.msk.bf16.vlgmr.msra.gmra.mrb[32].mxu0 %vm776_vm1, %v2713_v36  ;;  %11329 = vmatprep.subr.bf16.mxu1 %v15837_v6 }
 0x3c0   : > { %11358 = vmatpush3.bf16.msra.mxu0 %v13142_v14  ;;  %11361 = vmatprep.mubr.msk.bf16.mxu0 %vm12803_vm0, %v15837_v6 }
 0x3c1   : > { %v2716_v39 = vsub.f32 %v2706_v18, %v2714_v37  ;;  %v2717_v41 = vsub.f32 %v2709_v32, %v2715_v38  ;;  %11359 = vmatprep.subr.bf16.mxu0 %v15837_v6 }
 0x3c3   : > { %v2718_v48 = vpack.c.bf16 %v2717_v41, %v2716_v39 }
 0x3c4   : > { %11360 = vmatpush3.bf16.msra.mxu0 %v13152_v22 }
 0x3c5   : > { %11326 = vmatmul.mubr.msk.bf16.vlgmr.msra.gmra.mrb[24].mxu1 %vm776_vm1, %v2438_v61  ;;  %11365 = vmatprep.subr.bf16.mxu0 %v15837_v6 }
 0x3c6   : > { %11330 = vmatpush3.bf16.msra.mxu1 %v13174_v35  ;;  %11333 = vmatprep.mubr.msk.bf16.mxu1 %vm12803_vm0, %v15837_v6 }
 0x3c7   : > { %11331 = vmatprep.subr.bf16.mxu1 %v15837_v6 }
 0x3ca   : > { %11332 = vmatpush3.bf16.msra.mxu1 %v13184_v42 }
 0x3cb   : > { %11362 = vmatmul.mubr.msk.bf16.vlgmr.msra.gmra.mrb[32].mxu0 %vm776_vm1, %v2713_v36  ;;  %11373 = vmatprep.subr.bf16.mxu1 %v15837_v6 }
 0x3cc   : > { %11366 = vmatpush3.bf16.msra.mxu0 %v13142_v14  ;;  %11369 = vmatprep.mubr.msk.bf16.mxu0 %vm12803_vm0, %v15837_v6  ;;  %v3175_v14 = vsel %vm3173_vm6, 1.0, %v15837_v6 }
 0x3cd   : > { %11367 = vmatprep.subr.bf16.mxu0 %v15837_v6 }
 0x3d0   : > { %11368 = vmatpush3.bf16.msra.mxu0 %v13152_v22  ;;  %v3174_v22 = vsel %vm3172_vm7, 1.0, %v15837_v6 }
 0x3d1   : > { %11334 = vmatmul.mubr.msk.bf16.vlgmr.msra.gmra.mrb[24].mxu1 %vm776_vm1, %v2443_v34  ;;  %11409 = vmatprep.subr.bf16.mxu0 %v15837_v6 }
 0x3d2   : > { %11374 = vmatpush3.bf16.msra.mxu1 %v13062_v43  ;;  %11375 = vmatprep.mubr.msk.bf16.mxu1 %vm12803_vm0, %v15837_v6 }
 0x3d3   : > { %11379 = vmatprep.subr.bf16.mxu1 %v15837_v6 }
 0x3d7   : > { %11370 = vmatmul.mubr.msk.bf16.vlgmr.msra.gmra.mrb[32].mxu0 %vm776_vm1, %v2718_v48 }
 0x3d8   : > { %11410 = vmatpush3.bf16.msra.mxu0 %v13062_v43  ;;  %11411 = vmatprep.mubr.msk.bf16.mxu0 %vm12803_vm0, %v15837_v6  ;;  %v3176_v43 = vpack.c.bf16 %v3175_v14, %v3174_v22 }
 0x3d9   : > { %11376 = vmatmul.mubr.msk.bf16.vlgmr.msra.gmra.mrb[28].mxu1 %vm982_vm4, %v13123_v8  ;;  %11415 = vmatprep.subr.bf16.mxu0 %v15837_v6 }
 0x3da   : > { %11380 = vmatpush3.bf16.msra.mxu1 %v13022_v21  ;;  %11381 = vmatprep.mubr.msk.bf16.mxu1 %vm12803_vm0, %v15837_v6 }
 0x3db   : > { %11385 = vmatprep.subr.bf16.mxu1 %v15837_v6 }
 0x3df   : > { %11412 = vmatmul.mubr.msk.bf16.vlgmr.msra.gmra.mrb[36].mxu0 %vm982_vm4, %v3176_v43 }
 0x3e0   : > { %11416 = vmatpush3.bf16.msra.mxu0 %v13022_v21  ;;  %11417 = vmatprep.mubr.msk.bf16.mxu0 %vm12803_vm0, %v15837_v6 }
 0x3e1   : > { %11421 = vmatprep.subr.bf16.mxu0 %v15837_v6 }
 0x3e5   : > { %11382 = vmatmul.mubr.msk.bf16.vlgmr.msra.gmra.mrb[28].mxu1 %vm982_vm4, %v13123_v8 }
 0x3e6   : > { %11386 = vmatpush3.bf16.msra.mxu1 %v13230_v45  ;;  %11389 = vmatprep.mubr.msk.bf16.mxu1 %vm12803_vm0, %v15837_v6 }
 0x3e7   : > { %11387 = vmatprep.subr.bf16.mxu1 %v15837_v6 }
 0x3ea   : > { %11388 = vmatpush3.bf16.msra.mxu1 %v13234_v51 }
 0x3eb   : > { %11418 = vmatmul.mubr.msk.bf16.vlgmr.msra.gmra.mrb[36].mxu0 %vm982_vm4, %v3176_v43  ;;  %11393 = vmatprep.subr.bf16.mxu1 %v15837_v6 }
 0x3ec   : > { %11422 = vmatpush3.bf16.msra.mxu0 %v13186_v44  ;;  %11425 = vmatprep.mubr.msk.bf16.mxu0 %vm12803_vm0, %v15837_v6 }
 0x3ed   : > { %11423 = vmatprep.subr.bf16.mxu0 %v15837_v6 }
 0x3f0   : > { %11424 = vmatpush3.bf16.msra.mxu0 %v13192_v50 }
 0x3f1   : > { %11429 = vmatprep.subr.bf16.mxu0 %v15837_v6 }
 0x415   : > { %v2057_v21 = vpop.permute.xlu1 %2056 }
 0x416   : > { %2063 = vst.msk [vmem:[#allocation2 + $0x10] sm:$0xff] %vm776_vm1, %v2057_v21 }
 0x417   : > { %v2059_v8 = vpop.permute.xlu0 %2058 }
 0x418   : > { %2064 = vst.msk [vmem:[#allocation2 + $0x18] sm:$0xff] %vm776_vm1, %v2059_v8 }
 0x4a4   : > { %v13547_v45 = vpop.f32.mrb[24].mxu1 }
 0x4a5   : > { %v2575_v44 = vadd.f32 %v13547_v45, %v13164_v29  ;;  %v11335_v51 = vpop.f32.mrb[25].mxu1 }
 0x4a6   : > { %v13551_v62 = vpop.f32.mrb[26].mxu1 }
 0x4a7   : > { %v2587_v2 = vmul.f32 %v2575_v44, %v2575_v44  ;;  %v2599_v47 = vmax.f32 %v13459_v11, %v2575_v44  ;;  %v2576_v50 = vadd.f32 %v13551_v62, %v13166_v31  ;;  %v11336_v24 = vpop.f32.mrb[27].mxu1  ;;  %v2577_v49 = vsel %vm776_vm1, %v2575_v44, 0.0 }
 0x4a9   : > { %v2578_v33 = vsel %vm776_vm1, %v2576_v50, 0.0  ;;  %v2588_v54 = vmul.f32 %v2576_v50, %v2576_v50  ;;  %v2600_v55 = vmax.f32 %v13465_v19, %v2576_v50  ;;  %v2589_v60 = vsel %vm776_vm1, %v2587_v2, 0.0 }
 0x4aa   : > { %v2579_v56 = vadd.f32 %v2578_v33, %v2577_v49  ;;  %v2841_v53 = vpop.f32.mrb[32].mxu0 }
 0x4ab   : > { %v2590_v30 = vsel %vm776_vm1, %v2588_v54, 0.0  ;;  %v2850_v4 = vadd.f32 %v2841_v53, %v13164_v29  ;;  %v2876_v11 = vadd.f32 %v2841_v53, %v13318_v12  ;;  %v11371_v5 = vpop.f32.mrb[33].mxu0 }
 0x4ac   : > { %v2580_v7 = vrot.slane %v2579_v56, 4  ;;  %v2591_v10 = vadd.f32 %v2590_v30, %v2589_v60  ;;  %v2844_v9 = vpop.f32.mrb[34].mxu0 }
 0x4ad   : > { %v2862_v61 = vmul.f32 %v2850_v4, %v2850_v4  ;;  %v13563_v40 = vmax.f32 %v2599_v47, %v2850_v4  ;;  %v2851_v13 = vadd.f32 %v2844_v9, %v13166_v31  ;;  %2880 = vrot.lane.b32.xlu1 %v2876_v11, %s15833_s24  ;;  %v11372_v19 = vpop.f32.mrb[35].mxu0  ;;  %v2877_v0 = vadd.f32 %v2844_v9, %v13321_v15 }
 0x4ae   : > { %v2581_v17 = vadd.f32 %v2580_v7, %v2579_v56  ;;  %v2592_v63 = vrot.slane %v2591_v10, 4  ;;  %v2852_v52 = vsel %vm776_vm1, %v2850_v4, 0.0 }
 0x4af   : > { %v2853_v12 = vsel %vm776_vm1, %v2851_v13, 0.0  ;;  %v2863_v18 = vmul.f32 %v2851_v13, %v2851_v13  ;;  %v13570_v57 = vmax.f32 %v2600_v55, %v2851_v13  ;;  %2882 = vrot.lane.b32.xlu0 %v2877_v0, %s15833_s24  ;;  %v2864_v34 = vsel %vm776_vm1, %v2862_v61, 0.0 }
 0x4b0   : > { %v2582_v27 = vrot.slane %v2581_v17, 2  ;;  %v2593_v26 = vadd.f32 %v2592_v63, %v2591_v10  ;;  %v2854_v32 = vadd.f32 %v2853_v12, %v2852_v52 }
 0x4b1   : > { %v2865_v36 = vsel %vm776_vm1, %v2863_v18, 0.0  ;;  %2330 = vrot.lane.b32.xlu1 %v13451_v3, %s15833_s24 }
 0x4b2   : > { %v2583_v15 = vadd.f32 %v2582_v27, %v2581_v17  ;;  %v2594_v28 = vrot.slane %v2593_v26, 2  ;;  %v2855_v37 = vrot.slane %v2854_v32, 4  ;;  %v2866_v38 = vadd.f32 %v2865_v36, %v2864_v34  ;;  %v2327_v27 = vld [vmem:[#allocation2 + $0x18] sm:$0xff] }
 0x4b3   : > { %2332 = vrot.lane.b32.xlu0 %v13457_v58, %s15833_s24 }
 0x4b4   : > { %v2584_v39 = vrot.slane %v2583_v15, 1  ;;  %v2595_v41 = vadd.f32 %v2594_v28, %v2593_v26  ;;  %v2856_v48 = vadd.f32 %v2855_v37, %v2854_v32  ;;  %v2867_v14 = vrot.slane %v2866_v38, 4 }
 0x4b6   : > { %v2585_v22 = vadd.f32 %v2584_v39, %v2583_v15  ;;  %v2596_v43 = vrot.slane %v2595_v41, 1  ;;  %v2857_v21 = vrot.slane %v2856_v48, 2  ;;  %v2868_v8 = vadd.f32 %v2867_v14, %v2866_v38 }
 0x4b8   : > { %v2586_v44 = vadd.f32 %v2585_v22, %v13472_v1  ;;  %v2597_v51 = vadd.f32 %v2596_v43, %v2595_v41  ;;  %v2858_v2 = vadd.f32 %v2857_v21, %v2856_v48  ;;  %v2869_v3 = vrot.slane %v2868_v8, 2  ;;  %v2980_v47 = vpop.f32.mrb[28].mxu1 }
 0x4b9   : > { %v11383_v50 = vpop.f32.mrb[29].mxu1 }
 0x4ba   : > { %v2598_v24 = vadd.f32 %v2597_v51, %v13478_v23  ;;  %v2859_v49 = vrot.slane %v2858_v2, 1  ;;  %v2870_v33 = vadd.f32 %v2869_v3, %v2868_v8  ;;  %v2983_v54 = vpop.f32.mrb[30].mxu1 }
 0x4bb   : > { %v2987_v55 = vpack.c.bf16 %v2983_v54, %v2980_v47  ;;  %v11384_v56 = vpop.f32.mrb[31].mxu1 }
 0x4bc   : > { %v2860_v53 = vadd.f32 %v2859_v49, %v2858_v2  ;;  %v2871_v58 = vrot.slane %v2870_v33, 1 }
 0x4bd   : > { %v2988_v60 = vunpack.c.l.bf16 %v2987_v55  ;;  %v2989_v30 = vunpack.c.h.bf16 %v2987_v55  ;;  %11390 = vmatmul.mubr.msk.bf16.vlgmr.msra.gmra.mrb[32].mxu1 %vm776_vm1, %v2987_v55 }
 0x4be   : > { %v13582_v4 = vadd.f32 %v2860_v53, %v2586_v44  ;;  %v2872_v1 = vadd.f32 %v2871_v58, %v2870_v33  ;;  %v3255_v11 = vpop.f32.mrb[36].mxu0  ;;  %11394 = vmatpush3.bf16.msra.mxu1 %v13209_v16  ;;  %11397 = vmatprep.mubr.msk.bf16.mxu1 %vm12803_vm0, %v15837_v6 }
 0x4bf   : > { %v2990_v23 = vsub.f32 %v2980_v47, %v2988_v60  ;;  %v2991_v5 = vsub.f32 %v2983_v54, %v2989_v30  ;;  %v11419_v7 = vpop.f32.mrb[37].mxu0  ;;  %11395 = vmatprep.subr.bf16.mxu1 %v15837_v6 }
 0x4c0   : > { %v13588_v10 = vadd.f32 %v2872_v1, %v2598_v24  ;;  %v3258_v9 = vpop.f32.mrb[38].mxu0 }
 0x4c1   : > { %v2992_v61 = vpack.c.bf16 %v2991_v5, %v2990_v23  ;;  %v3262_v13 = vpack.c.bf16 %v3258_v9, %v3255_v11  ;;  %v11420_v19 = vpop.f32.mrb[39].mxu0 }
 0x4c2   : > { %11396 = vmatpush3.bf16.msra.mxu1 %v13223_v25 }
 0x4c3   : > { %v3263_v17 = vunpack.c.l.bf16 %v3262_v13  ;;  %v3264_v63 = vunpack.c.h.bf16 %v3262_v13  ;;  %11426 = vmatmul.mubr.msk.bf16.vlgmr.msra.gmra.mrb[40].mxu0 %vm776_vm1, %v3262_v13  ;;  %11401 = vmatprep.subr.bf16.mxu1 %v15837_v6 }
 0x4c4   : > { %11430 = vmatpush3.bf16.msra.mxu0 %v13174_v35  ;;  %11433 = vmatprep.mubr.msk.bf16.mxu0 %vm12803_vm0, %v15837_v6 }
 0x4c5   : > { %v3265_v0 = vsub.f32 %v3255_v11, %v3263_v17  ;;  %v3266_v52 = vsub.f32 %v3258_v9, %v3264_v63  ;;  %11431 = vmatprep.subr.bf16.mxu0 %v15837_v6 }
 0x4c7   : > { %v3267_v12 = vpack.c.bf16 %v3266_v52, %v3265_v0 }
 0x4c8   : > { %11432 = vmatpush3.bf16.msra.mxu0 %v13184_v42 }
 0x4c9   : > { %11398 = vmatmul.mubr.msk.bf16.vlgmr.msra.gmra.mrb[32].mxu1 %vm776_vm1, %v2987_v55  ;;  %11437 = vmatprep.subr.bf16.mxu0 %v15837_v6 }
 0x4ca   : > { %11402 = vmatpush3.bf16.msra.mxu1 %v13209_v16  ;;  %11405 = vmatprep.mubr.msk.bf16.mxu1 %vm12803_vm0, %v15837_v6 }
 0x4cb   : > { %11403 = vmatprep.subr.bf16.mxu1 %v15837_v6 }
 0x4ce   : > { %11404 = vmatpush3.bf16.msra.mxu1 %v13223_v25  ;;  %v2326_v25 = vld [vmem:[#allocation2 + $0x10] sm:$0xff] }
 0x4cf   : > { %11434 = vmatmul.mubr.msk.bf16.vlgmr.msra.gmra.mrb[40].mxu0 %vm776_vm1, %v3262_v13  ;;  %11445 = vmatprep.subr.bf16.mxu1 %v15837_v6 }
 0x4d0   : > { %11438 = vmatpush3.bf16.msra.mxu0 %v13174_v35  ;;  %11441 = vmatprep.mubr.msk.bf16.mxu0 %vm12803_vm0, %v15837_v6 }
 0x4d1   : > { %11439 = vmatprep.subr.bf16.mxu0 %v15837_v6 }
 0x4d4   : > { %11440 = vmatpush3.bf16.msra.mxu0 %v13184_v42 }
 0x4d5   : > { %11406 = vmatmul.mubr.msk.bf16.vlgmr.msra.gmra.mrb[32].mxu1 %vm776_vm1, %v2992_v61  ;;  %11517 = vmatprep.subr.bf16.mxu0 %v15837_v6 }
 0x4d6   : > { %11449 = vmatprep.mubr.msk.bf16.mxu1 %vm12803_vm0, %v15837_v6 }
 0x4db   : > { %11442 = vmatmul.mubr.msk.bf16.vlgmr.msra.gmra.mrb[40].mxu0 %vm776_vm1, %v3267_v12 }
 0x4dc   : > { %11521 = vmatprep.mubr.msk.bf16.mxu0 %vm12803_vm0, %v15837_v6 }
 0x51f   : > { %v2881_v35 = vpop.permute.xlu1 %2880 }
 0x520   : > { %2887 = vst.msk [vmem:[#allocation2 + $0x20] sm:$0xff] %vm776_vm1, %v2881_v35 }
 0x521   : > { %v2883_v16 = vpop.permute.xlu0 %2882 }
 0x522   : > { %2888 = vst.msk [vmem:[#allocation2 + $0x28] sm:$0xff] %vm776_vm1, %v2883_v16 }
 0x523   : > { %v2331_v42 = vpop.permute.xlu1 %2330 }
 0x524   : > { %v2336_v18 = vadd.f32 %v2331_v42, %v2326_v25 }
 0x525   : > { %v2333_v26 = vpop.permute.xlu0 %2332 }
 0x526   : > { %2338 = vst.msk [vmem:[#allocation2 + $0x10] sm:$0xff] %vm776_vm1, %v2336_v18  ;;  %v2337_v32 = vadd.f32 %v2333_v26, %v2327_v27 }
 0x528   : > { %2339 = vst.msk [vmem:[#allocation2 + $0x18] sm:$0xff] %vm776_vm1, %v2337_v32 }
 0x5a8   : > { %v3115_v34 = vpop.f32.mrb[32].mxu1 }
 0x5a9   : > { %v3124_v36 = vadd.f32 %v3115_v34, %v13164_v29  ;;  %v11407_v15 = vpop.f32.mrb[33].mxu1  ;;  %3154 = vrot.lane.b32.xlu1 %v3115_v34, %s15833_s24 }
 0x5aa   : > { %v3118_v28 = vpop.f32.mrb[34].mxu1 }
 0x5ab   : > { %v3136_v37 = vmul.f32 %v3124_v36, %v3124_v36  ;;  %v3148_v38 = vmax.f32 %v13563_v40, %v3124_v36  ;;  %v3125_v39 = vadd.f32 %v3118_v28, %v13166_v31  ;;  %v11408_v41 = vpop.f32.mrb[35].mxu1  ;;  %3156 = vrot.lane.b32.xlu0 %v3118_v28, %s15833_s24  ;;  %v3126_v48 = vsel %vm776_vm1, %v3124_v36, 0.0 }
 0x5ad   : > { %v3127_v14 = vsel %vm776_vm1, %v3125_v39, 0.0  ;;  %v3137_v22 = vmul.f32 %v3125_v39, %v3125_v39  ;;  %v3149_v43 = vmax.f32 %v13570_v57, %v3125_v39  ;;  %1781 = vrot.lane.b32.xlu1 %v13339_v59, %s15833_s24  ;;  %v3138_v44 = vsel %vm776_vm1, %v3136_v37, 0.0 }
 0x5ae   : > { %v3128_v21 = vadd.f32 %v3127_v14, %v3126_v48  ;;  %v3390_v8 = vpop.f32.mrb[40].mxu0  ;;  %v3542_v14 = vld [vmem:[%s15877_s1 + $0x10] sm:$0xff] }
 0x5af   : > { %v3139_v40 = vsel %vm776_vm1, %v3137_v22, 0.0  ;;  %v3399_v51 = vadd.f32 %v3390_v8, %v13164_v29  ;;  %1783 = vrot.lane.b32.xlu0 %v13345_v20, %s15833_s24  ;;  %v11443_v2 = vpop.f32.mrb[41].mxu0 }
 0x5b0   : > { %v3129_v3 = vrot.slane %v3128_v21, 4  ;;  %v3140_v47 = vadd.f32 %v3139_v40, %v3138_v44  ;;  %v3393_v50 = vpop.f32.mrb[42].mxu0 }
 0x5b1   : > { %v3411_v24 = vmul.f32 %v3399_v51, %v3399_v51  ;;  %v13638_v57 = vmax.f32 %v3148_v38, %v3399_v51  ;;  %v3400_v59 = vadd.f32 %v3393_v50, %v13166_v31  ;;  %2605 = vrot.lane.b32.xlu1 %v13547_v45, %s15833_s24  ;;  %v11444_v49 = vpop.f32.mrb[43].mxu0  ;;  %v3401_v55 = vsel %vm776_vm1, %v3399_v51, 0.0 }
 0x5b2   : > { %v3130_v33 = vadd.f32 %v3129_v3, %v3128_v21  ;;  %v3141_v54 = vrot.slane %v3140_v47, 4 }
 0x5b3   : > { %v3402_v56 = vsel %vm776_vm1, %v3400_v59, 0.0  ;;  %v3412_v20 = vmul.f32 %v3400_v59, %v3400_v59  ;;  %v3424_v53 = vmax.f32 %v3149_v43, %v3400_v59  ;;  %2607 = vrot.lane.b32.xlu0 %v13551_v62, %s15833_s24  ;;  %v3413_v1 = vsel %vm776_vm1, %v3411_v24, 0.0  ;;  %v3543_v43 = vld [vmem:[%s15877_s1 + $0x18] sm:$0xff] }
 0x5b4   : > { %v3131_v58 = vrot.slane %v3130_v33, 2  ;;  %v3142_v60 = vadd.f32 %v3141_v54, %v3140_v47  ;;  %v3403_v30 = vadd.f32 %v3402_v56, %v3401_v55  ;;  %v13668_v21 = vpack.c.bf16 %v3543_v43, %v3542_v14 }
 0x5b5   : > { %v3414_v11 = vsel %vm776_vm1, %v3412_v20, 0.0  ;;  %3429 = vrot.lane.b32.xlu1 %v3390_v8, %s15833_s24 }
 0x5b6   : > { %v3132_v45 = vadd.f32 %v3131_v58, %v3130_v33  ;;  %v3143_v23 = vrot.slane %v3142_v60, 2  ;;  %v3404_v5 = vrot.slane %v3403_v30, 4  ;;  %v3415_v7 = vadd.f32 %v3414_v11, %v3413_v1  ;;  %v5294_v58 = vld [vmem:[%s13018_s4 + $0x8] sm:$0xff] }
 0x5b7   : > { %3431 = vrot.lane.b32.xlu0 %v3393_v50, %s15833_s24  ;;  %v3548_v40 = vunpack.c.l.bf16 %v13668_v21  ;;  %v3549_v51 = vunpack.c.h.bf16 %v13668_v21 }
 0x5b8   : > { %v3133_v9 = vrot.slane %v3132_v45, 1  ;;  %v3144_v61 = vadd.f32 %v3143_v23, %v3142_v60  ;;  %v3405_v13 = vadd.f32 %v3404_v5, %v3403_v30  ;;  %v3416_v19 = vrot.slane %v3415_v7, 4  ;;  %v5293_v60 = vld [vmem:[%s13018_s4] sm:$0xff]  ;;  %v5694_v23 = vld [vmem:[%s13018_s4 + $0x10] sm:$0xff] }
 0x5b9   : > { %v3552_v47 = vsub.f32 %v3542_v14, %v3548_v40  ;;  %v3553_v50 = vsub.f32 %v3543_v43, %v3549_v51 }
 0x5ba   : > { %v3134_v62 = vadd.f32 %v3133_v9, %v3132_v45  ;;  %v3145_v17 = vrot.slane %v3144_v61, 1  ;;  %v3406_v63 = vrot.slane %v3405_v13, 2  ;;  %v3417_v0 = vadd.f32 %v3416_v19, %v3415_v7  ;;  %v3150_v7 = vld [vmem:[#allocation2 + $0x20] sm:$0xff] }
 0x5bb   : > { %v3555_v33 = vpack.c.bf16 %v3553_v50, %v3552_v47 }
 0x5bc   : > { %v3146_v52 = vadd.f32 %v3145_v17, %v3144_v61  ;;  %v3407_v12 = vadd.f32 %v3406_v63, %v3405_v13  ;;  %v3418_v35 = vrot.slane %v3417_v0, 2  ;;  %v3135_v16 = vadd.f32 %v3134_v62, %v13582_v4  ;;  %v3540_v4 = vld [vmem:[%s15877_s1] sm:$0xff]  ;;  %v3151_v13 = vld [vmem:[#allocation2 + $0x28] sm:$0xff] }
 0x5bd   : > { %v1777_v17 = vld [vmem:[#allocation2] sm:$0xff] }
 0x5be   : > { %v3147_v25 = vadd.f32 %v3146_v52, %v13588_v10  ;;  %v3408_v42 = vrot.slane %v3407_v12, 1  ;;  %v3419_v18 = vadd.f32 %v3418_v35, %v3417_v0  ;;  %v3541_v10 = vld [vmem:[%s15877_s1 + $0x8] sm:$0xff] }
 0x5bf   : > { %v13663_v22 = vpack.c.bf16 %v3541_v10, %v3540_v4  ;;  %v1778_v52 = vld [vmem:[#allocation2 + $0x8] sm:$0xff] }
 0x5c0   : > { %v3409_v27 = vadd.f32 %v3408_v42, %v3407_v12  ;;  %v3420_v26 = vrot.slane %v3419_v18, 1 }
 0x5c1   : > { %v3546_v8 = vunpack.c.l.bf16 %v13663_v22  ;;  %v3547_v44 = vunpack.c.h.bf16 %v13663_v22 }
 0x5c2   : > { %v3421_v32 = vadd.f32 %v3420_v26, %v3419_v18  ;;  %v3410_v34 = vadd.f32 %v3409_v27, %v3135_v16  ;;  %v2601_v16 = vld [vmem:[#allocation2 + $0x10] sm:$0xff]  ;;  %v2602_v18 = vld [vmem:[#allocation2 + $0x18] sm:$0xff] }
 0x5c3   : > { %v3550_v2 = vsub.f32 %v3540_v4, %v3546_v8  ;;  %v3551_v3 = vsub.f32 %v3541_v10, %v3547_v44 }
 0x5c4   : > { %v3422_v36 = vadd.f32 %v3421_v32, %v3147_v25  ;;  %v3440_v15 = vmul.f32 0.0069444445, %v3410_v34 }
 0x5c6   : > { %v3441_v28 = vmul.f32 0.0069444445, %v3422_v36  ;;  %v3442_v37 = vmul.f32 %v3440_v15, %v3440_v15  ;;  %v3447_v38 = vsub.f32 %v3424_v53, %v3440_v15  ;;  %v3446_v39 = vsub.f32 %v13638_v57, %v3440_v15 }
 0x5c7   : > { %v3554_v57 = vpack.c.bf16 %v3551_v3, %v3550_v2 }
 0x5c8   : > { %v3443_v41 = vsub.f32 %v3441_v28, %v3442_v37 }
 0x5c9   : > { %11446 = vmatpush3.bf16.msra.mxu1 %v3554_v57 }
 0x5ca   : > { %v3444_v48 = vadd.f32 1e-05, %v3443_v41  ;;  %11447 = vmatprep.subr.bf16.mxu1 %v15837_v6 }
 0x5cc   : > { %12697 = vrsqrt.f32 %v3444_v48 }
 0x5cd   : > { %11448 = vmatpush3.bf16.msra.mxu1 %v3555_v33 }
 0x5ce   : > { %11453 = vmatprep.subr.bf16.mxu1 %v15837_v6 }
 0x5d6   : > { %v12698_v24 = vpop.eup %12697 }
 0x5d7   : > { %v3449_v59 = vmul.f32 %v12698_v24, %v3447_v38  ;;  %v3448_v49 = vmul.f32 %v12698_v24, %v3446_v39 }
 0x5d9   : > { %v3451_v54 = vmul.f32 0.2, %v3449_v59  ;;  %v3450_v55 = vmul.f32 0.2, %v3448_v49 }
 0x5db   : > { %v3453_v56 = vmax.f32 %v3449_v59, %v3451_v54  ;;  %v3452_v20 = vmax.f32 %v3448_v49, %v3450_v55 }
 0x5dd   : > { %4900 = vrot.lane.b32.xlu0 %v3453_v56, %s15878_s2  ;;  %4898 = vrot.lane.b32.xlu1 %v3452_v20, %s15878_s2  ;;  %v13677_v53 = vpack.c.bf16 %v3453_v56, %v3452_v20 }
 0x5df   : > { %15879 = vst [vmem:[#allocation13_spill] sm:$0xff] %v13677_v53  ;;  %v4929_v30 = vunpack.c.l.bf16 %v13677_v53  ;;  %v4930_v1 = vunpack.c.h.bf16 %v13677_v53 }
 0x5e1   : > { %v4931_v11 = vsub.f32 %v3452_v20, %v4929_v30  ;;  %5299 = vperm.xlu0 %12695, %v5294_v58   ;;  %5296 = vperm.xlu1 %12696, %v5293_v60   ;;  %v4932_v45 = vsub.f32 %v3453_v56, %v4930_v1 }
 0x5e3   : > { %v13685_v5 = vpack.c.bf16 %v4932_v45, %v4931_v11 }
 0x5e5   : > { %15880 = vst [vmem:[#allocation14_spill] sm:$0xff] %v13685_v5  ;;  %5697 = vperm.xlu0 %12695, %v5694_v23  }
 0x61b   : > { %v3155_v9 = vpop.permute.xlu1 %3154 }
 0x61c   : > { %v3160_v61 = vadd.f32 %v3155_v9, %v3150_v7 }
 0x61d   : > { %v3157_v19 = vpop.permute.xlu0 %3156 }
 0x61e   : > { %3162 = vst.msk [vmem:[#allocation2 + $0x20] sm:$0xff] %vm776_vm1, %v3160_v61  ;;  %v3161_v62 = vadd.f32 %v3157_v19, %v3151_v13 }
 0x61f   : > { %v1782_v63 = vpop.permute.xlu1 %1781 }
 0x620   : > { %3163 = vst.msk [vmem:[#allocation2 + $0x28] sm:$0xff] %vm776_vm1, %v3161_v62  ;;  %v1787_v0 = vadd.f32 %v1782_v63, %v1777_v17 }
 0x621   : > { %v1784_v12 = vpop.permute.xlu0 %1783 }
 0x622   : > { %1789 = vst.msk [vmem:[#allocation2] sm:$0xff] %vm776_vm1, %v1787_v0  ;;  %v1788_v35 = vadd.f32 %v1784_v12, %v1778_v52 }
 0x623   : > { %v2606_v25 = vpop.permute.xlu1 %2605 }
 0x624   : > { %1790 = vst.msk [vmem:[#allocation2 + $0x8] sm:$0xff] %vm776_vm1, %v1788_v35  ;;  %v2611_v42 = vadd.f32 %v2606_v25, %v2601_v16 }
 0x625   : > { %v2608_v27 = vpop.permute.xlu0 %2607  ;;  %v3425_v32 = vld [vmem:[#allocation2 + $0x20] sm:$0xff] }
 0x626   : > { %2613 = vst.msk [vmem:[#allocation2 + $0x10] sm:$0xff] %vm776_vm1, %v2611_v42  ;;  %v2612_v26 = vadd.f32 %v2608_v27, %v2602_v18 }
 0x627   : > { %v3430_v34 = vpop.permute.xlu1 %3429  ;;  %v3426_v15 = vld [vmem:[#allocation2 + $0x28] sm:$0xff] }
 0x628   : > { %2614 = vst.msk [vmem:[#allocation2 + $0x18] sm:$0xff] %vm776_vm1, %v2612_v26  ;;  %v3435_v36 = vadd.f32 %v3430_v34, %v3425_v32 }
 0x629   : > { %v3432_v28 = vpop.permute.xlu0 %3431  ;;  %v13693_v37 = vld [vmem:[#allocation2] sm:$0xff] }
 0x62a   : > { %3437 = vst.msk [vmem:[#allocation2 + $0x20] sm:$0xff] %vm776_vm1, %v3435_v36  ;;  %v3436_v38 = vadd.f32 %v3432_v28, %v3426_v15  ;;  %v3466_v39 = vmul.f32 %v13693_v37, %v13693_v37  ;;  %v3456_v48 = vsel %vm776_vm1, %v13693_v37, 0.0 }
 0x62b   : > { %v13698_v41 = vld [vmem:[#allocation2 + $0x8] sm:$0xff] }
 0x62c   : > { %3438 = vst.msk [vmem:[#allocation2 + $0x28] sm:$0xff] %vm776_vm1, %v3436_v38  ;;  %v3457_v4 = vsel %vm776_vm1, %v13698_v41, 0.0  ;;  %v3467_v10 = vmul.f32 %v13698_v41, %v13698_v41  ;;  %v3468_v44 = vsel %vm776_vm1, %v3466_v39, 0.0 }
 0x62d   : > { %v13707_v14 = vld [vmem:[#allocation2 + $0x10] sm:$0xff]  ;;  %v3458_v43 = vadd.f32 %v3457_v4, %v3456_v48 }
 0x62e   : > { %v3490_v8 = vmul.f32 %v13707_v14, %v13707_v14  ;;  %v3469_v40 = vsel %vm776_vm1, %v3467_v10, 0.0  ;;  %v3480_v47 = vsel %vm776_vm1, %v13707_v14, 0.0 }
 0x62f   : > { %v13713_v51 = vld [vmem:[#allocation2 + $0x18] sm:$0xff]  ;;  %v3459_v2 = vrot.slane %v3458_v43, 4  ;;  %v3470_v3 = vadd.f32 %v3469_v40, %v3468_v44 }
 0x630   : > { %v3481_v50 = vsel %vm776_vm1, %v13713_v51, 0.0  ;;  %v3491_v24 = vmul.f32 %v13713_v51, %v13713_v51  ;;  %v3492_v54 = vsel %vm776_vm1, %v3490_v8, 0.0 }
 0x631   : > { %v13721_v57 = vld [vmem:[#allocation2 + $0x20] sm:$0xff]  ;;  %v3460_v59 = vadd.f32 %v3459_v2, %v3458_v43  ;;  %v3471_v49 = vrot.slane %v3470_v3, 4  ;;  %v3482_v33 = vadd.f32 %v3481_v50, %v3480_v47 }
 0x632   : > { %v3493_v55 = vsel %vm776_vm1, %v3491_v24, 0.0  ;;  %v3514_v56 = vmul.f32 %v13721_v57, %v13721_v57  ;;  %v3504_v1 = vsel %vm776_vm1, %v13721_v57, 0.0 }
 0x633   : > { %v3503_v20 = vld [vmem:[#allocation2 + $0x28] sm:$0xff]  ;;  %v3472_v58 = vadd.f32 %v3471_v49, %v3470_v3  ;;  %v3483_v60 = vrot.slane %v3482_v33, 4  ;;  %v3494_v30 = vadd.f32 %v3493_v55, %v3492_v54  ;;  %v3461_v23 = vrot.slane %v3460_v59, 2 }
 0x634   : > { %v3505_v11 = vsel %vm776_vm1, %v3503_v20, 0.0  ;;  %v3515_v45 = vmul.f32 %v3503_v20, %v3503_v20  ;;  %v3516_v13 = vsel %vm776_vm1, %v3514_v56, 0.0 }
 0x635   : > { %v3506_v7 = vadd.f32 %v3505_v11, %v3504_v1  ;;  %v3473_v9 = vrot.slane %v3472_v58, 2  ;;  %v3484_v61 = vadd.f32 %v3483_v60, %v3482_v33  ;;  %v3495_v62 = vrot.slane %v3494_v30, 4 }
 0x636   : > { %v3517_v19 = vsel %vm776_vm1, %v3515_v45, 0.0  ;;  %v3462_v0 = vadd.f32 %v3461_v23, %v3460_v59 }
 0x637   : > { %v3518_v17 = vadd.f32 %v3517_v19, %v3516_v13  ;;  %v3485_v63 = vrot.slane %v3484_v61, 2  ;;  %v3496_v52 = vadd.f32 %v3495_v62, %v3494_v30  ;;  %v3507_v12 = vrot.slane %v3506_v7, 4 }
 0x638   : > { %v3474_v35 = vadd.f32 %v3473_v9, %v3472_v58  ;;  %v3463_v32 = vrot.slane %v3462_v0, 1 }
 0x639   : > { %v3486_v16 = vadd.f32 %v3485_v63, %v3484_v61  ;;  %v3519_v25 = vrot.slane %v3518_v17, 4  ;;  %v3497_v42 = vrot.slane %v3496_v52, 2  ;;  %v3508_v18 = vadd.f32 %v3507_v12, %v3506_v7 }
 0x63a   : > { %v3475_v15 = vrot.slane %v3474_v35, 1  ;;  %v3464_v10 = vadd.f32 %v3463_v32, %v3462_v0  ;;  %v10458_v0 = vld [vmem:[%s15877_s1 + $0x20] sm:$0xff] }
 0x63b   : > { %v3487_v27 = vrot.slane %v3486_v16, 1  ;;  %v3520_v26 = vadd.f32 %v3519_v25, %v3518_v17  ;;  %v3498_v34 = vadd.f32 %v3497_v42, %v3496_v52  ;;  %v3509_v36 = vrot.slane %v3508_v18, 2  ;;  %v10459_v52 = vld [vmem:[%s15877_s1 + $0x28] sm:$0xff]  ;;  %v10461_v25 = vld [vmem:[%s15877_s1 + $0x38] sm:$0xff] }
 0x63c   : > { %v3476_v44 = vadd.f32 %v3475_v15, %v3474_v35  ;;  %v3712_v35 = vpack.c.bf16 %v10459_v52, %v10458_v0 }
 0x63d   : > { %v3521_v28 = vrot.slane %v3520_v26, 2  ;;  %v3488_v38 = vadd.f32 %v3487_v27, %v3486_v16  ;;  %v3499_v39 = vrot.slane %v3498_v34, 1  ;;  %v3510_v48 = vadd.f32 %v3509_v36, %v3508_v18  ;;  %v10460_v16 = vld [vmem:[%s15877_s1 + $0x30] sm:$0xff] }
 0x63e   : > { %v3714_v42 = vunpack.c.l.bf16 %v3712_v35  ;;  %v3715_v18 = vunpack.c.h.bf16 %v3712_v35  ;;  %v3713_v27 = vpack.c.bf16 %v10461_v25, %v10460_v16 }
 0x63f   : > { %v3522_v4 = vadd.f32 %v3521_v28, %v3520_v26  ;;  %v3500_v43 = vadd.f32 %v3499_v39, %v3498_v34  ;;  %v3511_v8 = vrot.slane %v3510_v48, 1  ;;  %v3489_v2 = vadd.f32 %v3488_v38, %v3464_v10 }
 0x640   : > { %v3718_v34 = vsub.f32 %v10458_v0, %v3714_v42  ;;  %v3719_v36 = vsub.f32 %v10459_v52, %v3715_v18  ;;  %v3716_v15 = vunpack.c.l.bf16 %v3713_v27  ;;  %v3717_v28 = vunpack.c.h.bf16 %v3713_v27 }
 0x641   : > { %v3523_v40 = vrot.slane %v3522_v4, 1  ;;  %v3512_v3 = vadd.f32 %v3511_v8, %v3510_v48  ;;  %v3501_v47 = vadd.f32 %v3500_v43, %v3476_v44 }
 0x642   : > { %v3720_v48 = vsub.f32 %v10460_v16, %v3716_v15 }
 0x643   : > { %v3524_v50 = vadd.f32 %v3523_v40, %v3522_v4  ;;  %v3513_v24 = vadd.f32 %v3512_v3, %v3489_v2  ;;  %v3721_v4 = vsub.f32 %v10461_v25, %v3717_v28  ;;  %v10457_v28 = vld [vmem:[%s15881_s3] ss:$0 sm:$0xff] }
 0x645   : > { %v3525_v59 = vadd.f32 %v3524_v50, %v3501_v47  ;;  %v13732_v49 = vmul.f32 0.020833334, %v3513_v24  ;;  %v3723_v8 = vpack.c.bf16 %v3721_v4, %v3720_v48  ;;  %v10467_v24 = vld [vmem:[%s15877_s1 + $0x50] sm:$0xff] }
 0x647   : > { %v3528_v33 = vmul.f32 0.020833334, %v3525_v59  ;;  %v3529_v54 = vmul.f32 %v13732_v49, %v13732_v49  ;;  %v3534_v58 = vsub.f32 %v13693_v37, %v13732_v49  ;;  %v3535_v60 = vsub.f32 %v13698_v41, %v13732_v49  ;;  %v10468_v59 = vld [vmem:[%s15877_s1 + $0x58] sm:$0xff] }
 0x648   : > { %v3863_v1 = vsub.f32 %v13721_v57, %v13732_v49  ;;  %v3864_v11 = vsub.f32 %v3503_v20, %v13732_v49  ;;  %v3701_v43 = vsub.f32 %v13707_v14, %v13732_v49  ;;  %v10465_v14 = vld [vmem:[%s15877_s1 + $0x40] sm:$0xff] }
 0x649   : > { %v3530_v55 = vsub.f32 %v3528_v33, %v3529_v54  ;;  %v3875_v54 = vpack.c.bf16 %v10468_v59, %v10467_v24 }
 0x64b   : > { %v3531_v56 = vadd.f32 1e-05, %v3530_v55 }
 0x64d   : > { %12699 = vrsqrt.f32 %v3531_v56 }
 0x657   : > { %v12700_v30 = vpop.eup %12699 }
 0x658   : > { %v3536_v45 = vmul.f32 %v12700_v30, %v3534_v58  ;;  %v3537_v23 = vmul.f32 %v12700_v30, %v3535_v60  ;;  %v3865_v7 = vmul.f32 %v12700_v30, %v3863_v1  ;;  %v3866_v9 = vmul.f32 %v12700_v30, %v3864_v11 }
 0x659   : > { %v3703_v44 = vmul.f32 %v12700_v30, %v3701_v43  ;;  %v3879_v1 = vunpack.c.h.bf16 %v3875_v54 }
 0x65a   : > { %v3538_v61 = vmax.f32 %v3536_v45, 0.0  ;;  %v3539_v13 = vmax.f32 %v3537_v23, 0.0  ;;  %v3867_v19 = vmax.f32 %v3865_v7, 0.0  ;;  %v3868_v62 = vmax.f32 %v3866_v9, 0.0 }
 0x65b   : > { %v3705_v2 = vmax.f32 %v3703_v44, 0.0  ;;  %v3883_v9 = vsub.f32 %v10468_v59, %v3879_v1 }
 0x65c   : > { %v3556_v17 = vpack.c.bf16 %v3539_v13, %v3538_v61  ;;  %v13743_v63 = vpack.c.bf16 %v3868_v62, %v3867_v19 }
 0x65e   : > { %11450 = vmatmul.mubr.msk.bf16.vlgmr.msra.gmra.mrb[36].mxu1 %vm776_vm1, %v3556_v17  ;;  %v3887_v37 = vunpack.c.l.bf16 %v13743_v63  ;;  %v3888_v41 = vunpack.c.h.bf16 %v13743_v63  ;;  %v3557_v26 = vunpack.c.l.bf16 %v3556_v17  ;;  %v3558_v32 = vunpack.c.h.bf16 %v3556_v17 }
 0x65f   : > { %11454 = vmatpush3.bf16.msra.mxu1 %v13663_v22  ;;  %11457 = vmatprep.mubr.msk.bf16.mxu1 %vm12803_vm0, %v15837_v6 }
 0x660   : > { %11455 = vmatprep.subr.bf16.mxu1 %v15837_v6  ;;  %v13752_v57 = vsub.f32 %v3867_v19, %v3887_v37  ;;  %v13754_v20 = vsub.f32 %v3868_v62, %v3888_v41  ;;  %v3559_v38 = vsub.f32 %v3538_v61, %v3557_v26  ;;  %v3560_v39 = vsub.f32 %v3539_v13, %v3558_v32  ;;  %v4912_v19 = vld [vmem:[%s15805_s8] sm:$0xff]  ;;  %v4913_v62 = vld [vmem:[%s15805_s8 + $0x8] sm:$0xff]  ;;  %v4914_v37 = vld [vmem:[%s15805_s8 + $0x10] sm:$0xff] }
 0x661   : > { %v4915_v41 = vld [vmem:[%s15805_s8 + $0x18] sm:$0xff] }
 0x662   : > { %v3891_v12 = vpack.c.bf16 %v13754_v20, %v13752_v57  ;;  %v3561_v10 = vpack.c.bf16 %v3560_v39, %v3559_v38  ;;  %v5065_v57 = vld [vmem:[%s15807_s10] sm:$0xff]  ;;  %v5066_v20 = vld [vmem:[%s15807_s10 + $0x8] sm:$0xff] }
 0x663   : > { %11456 = vmatpush3.bf16.msra.mxu1 %v13668_v21 }
 0x664   : > { %11461 = vmatprep.subr.bf16.mxu1 %v15837_v6 }
 0x66a   : > { %11458 = vmatmul.mubr.msk.bf16.vlgmr.msra.gmra.mrb[36].mxu1 %vm776_vm1, %v3556_v17  ;;  %v4916_v17 = vpack.c.bf16 %v4913_v62, %v4912_v19 }
 0x66b   : > { %11462 = vmatpush3.bf16.msra.mxu1 %v13663_v22  ;;  %11465 = vmatprep.mubr.msk.bf16.mxu1 %vm12803_vm0, %v15837_v6  ;;  %v3722_v22 = vpack.c.bf16 %v3719_v36, %v3718_v34  ;;  %v5067_v34 = vld [vmem:[%s15807_s10 + $0x10] sm:$0xff]  ;;  %v5068_v36 = vld [vmem:[%s15807_s10 + $0x18] sm:$0xff] }
 0x66c   : > { %11463 = vmatprep.subr.bf16.mxu1 %v15837_v6  ;;  %v4918_v0 = vunpack.c.l.bf16 %v4916_v17  ;;  %v4919_v52 = vunpack.c.h.bf16 %v4916_v17  ;;  %v13879_v15 = vpack.c.bf16 %v5068_v36, %v5067_v34 }
 0x66e   : > { %v4922_v16 = vsub.f32 %v4912_v19, %v4918_v0  ;;  %v4923_v25 = vsub.f32 %v4913_v62, %v4919_v52  ;;  %v4901_v0 = vpop.permute.xlu0 %4900  ;;  %v4899_v52 = vpop.permute.xlu1 %4898 }
 0x66f   : > { %11464 = vmatpush3.bf16.msra.mxu1 %v13668_v21  ;;  %v3702_v21 = vsub.f32 %v13713_v51, %v13732_v49  ;;  %v10466_v51 = vld [vmem:[%s15877_s1 + $0x48] sm:$0xff]  ;;  %s15910_s1 = smul.u32 144, %s12994_s28  ;;  %s731_s28 = sand.u32 1, %s12791_s30  }
 0x670   : > { %11469 = vmatprep.subr.bf16.mxu1 %v15837_v6  ;;  %v3874_v50 = vpack.c.bf16 %v10466_v51, %v10465_v14  ;;  %s10392_s24 = sshll.u32 %s731_s28, 4  ;;  %s15756_s0 = scalar_lea.sflag [#allocation4], %s731_s28 }
 0x671   : > { %v3704_v40 = vmul.f32 %v12700_v30, %v3702_v21  ;;  %v3878_v30 = vunpack.c.l.bf16 %v3875_v54  ;;  %s14252_s2 = scalar_lea.vmem %s15911_s27, %s15910_s1  ;;  %s12806_s27 = smov 64  }
 0x672   : > { %v3876_v49 = vunpack.c.l.bf16 %v3874_v50  ;;  %v3877_v33 = vunpack.c.h.bf16 %v3874_v50 }
 0x673   : > { %v3706_v3 = vmax.f32 %v3704_v40, 0.0  ;;  %v3882_v7 = vsub.f32 %v10467_v24, %v3878_v30 }
 0x674   : > { %v3880_v58 = vsub.f32 %v10465_v14, %v3876_v49  ;;  %v3881_v60 = vsub.f32 %v10466_v51, %v3877_v33 }
 0x675   : > { %v3724_v47 = vpack.c.bf16 %v3706_v3, %v3705_v2  ;;  %v3885_v13 = vpack.c.bf16 %v3883_v9, %v3882_v7 }
 0x676   : > { %11466 = vmatmul.mubr.msk.bf16.vlgmr.msra.gmra.mrb[36].mxu1 %vm776_vm1, %v3561_v10  ;;  %v3884_v23 = vpack.c.bf16 %v3881_v60, %v3880_v58 }
 0x677   : > { %11470 = vmatpush3.bf16.msra.mxu1 %v3722_v22  ;;  %11473 = vmatprep.mubr.msk.bf16.mxu1 %vm12803_vm0, %v15837_v6  ;;  %v3725_v55 = vunpack.c.l.bf16 %v3724_v47  ;;  %v3726_v56 = vunpack.c.h.bf16 %v3724_v47 }
 0x678   : > { %11471 = vmatprep.subr.bf16.mxu1 %v15837_v6 }
 0x679   : > { %v3727_v11 = vsub.f32 %v3705_v2, %v3725_v55  ;;  %v3728_v45 = vsub.f32 %v3706_v3, %v3726_v56 }
 0x67b   : > { %11472 = vmatpush3.bf16.msra.mxu1 %v3723_v8  ;;  %v3729_v61 = vpack.c.bf16 %v3728_v45, %v3727_v11 }
 0x67c   : > { %11477 = vmatprep.subr.bf16.mxu1 %v15837_v6 }
 0x682   : > { %11474 = vmatmul.mubr.msk.bf16.vlgmr.msra.gmra.mrb[36].mxu1 %vm776_vm1, %v3724_v47 }
 0x683   : > { %11478 = vmatpush3.bf16.msra.mxu1 %v3712_v35  ;;  %11481 = vmatprep.mubr.msk.bf16.mxu1 %vm12803_vm0, %v15837_v6 }
 0x684   : > { %11479 = vmatprep.subr.bf16.mxu1 %v15837_v6 }
 0x687   : > { %11480 = vmatpush3.bf16.msra.mxu1 %v3713_v27 }
 0x688   : > { %11485 = vmatprep.subr.bf16.mxu1 %v15837_v6 }
 0x68e   : > { %11482 = vmatmul.mubr.msk.bf16.vlgmr.msra.gmra.mrb[36].mxu1 %vm776_vm1, %v3724_v47 }
 0x68f   : > { %11486 = vmatpush3.bf16.msra.mxu1 %v3712_v35  ;;  %11489 = vmatprep.mubr.msk.bf16.mxu1 %vm12803_vm0, %v15837_v6  ;;  %v4917_v35 = vpack.c.bf16 %v4915_v41, %v4914_v37 }
 0x690   : > { %11487 = vmatprep.subr.bf16.mxu1 %v15837_v6 }
 0x691   : > { %v4920_v42 = vunpack.c.l.bf16 %v4917_v35  ;;  %v4921_v18 = vunpack.c.h.bf16 %v4917_v35 }
 0x693   : > { %11488 = vmatpush3.bf16.msra.mxu1 %v3713_v27  ;;  %v4926_v27 = vpack.c.bf16 %v4923_v25, %v4922_v16  ;;  %v4924_v26 = vsub.f32 %v4914_v37, %v4920_v42  ;;  %v4925_v32 = vsub.f32 %v4915_v41, %v4921_v18 }
 0x694   : > { %11493 = vmatprep.subr.bf16.mxu1 %v15837_v6 }
 0x69a   : > { %11490 = vmatmul.mubr.msk.bf16.vlgmr.msra.gmra.mrb[36].mxu1 %vm776_vm1, %v3729_v61 }
 0x69b   : > { %11494 = vmatpush3.bf16.msra.mxu1 %v3884_v23  ;;  %11497 = vmatprep.mubr.msk.bf16.mxu1 %vm12803_vm0, %v15837_v6 }
 0x69c   : > { %11495 = vmatprep.subr.bf16.mxu1 %v15837_v6 }
 0x69f   : > { %11496 = vmatpush3.bf16.msra.mxu1 %v3885_v13 }
 0x6a0   : > { %11501 = vmatprep.subr.bf16.mxu1 %v15837_v6 }
 0x6a6   : > { %11498 = vmatmul.mubr.msk.bf16.vlgmr.msra.gmra.mrb[36].mxu1 %vm776_vm1, %v13743_v63 }
 0x6a7   : > { %11502 = vmatpush3.bf16.msra.mxu1 %v3874_v50  ;;  %11505 = vmatprep.mubr.msk.bf16.mxu1 %vm12803_vm0, %v15837_v6 }
 0x6a8   : > { %11503 = vmatprep.subr.bf16.mxu1 %v15837_v6 }
 0x6ab   : > { %11504 = vmatpush3.bf16.msra.mxu1 %v3875_v54 }
 0x6ac   : > { %11509 = vmatprep.subr.bf16.mxu1 %v15837_v6 }
 0x6b2   : > { %11506 = vmatmul.mubr.msk.bf16.vlgmr.msra.gmra.mrb[36].mxu1 %vm776_vm1, %v13743_v63  ;;  %v4927_v63 = vpack.c.bf16 %v4925_v32, %v4924_v26  ;;  %v5297_v26 = vpop.permute.xlu1 %5296 }
 0x6b3   : > { %11510 = vmatpush3.bf16.msra.mxu1 %v3874_v50  ;;  %11513 = vmatprep.mubr.msk.bf16.mxu1 %vm12803_vm0, %v15837_v6  ;;  %vm5301_vm9 = vcmp.eq.s32.totalorder %v13074_v46, %v5297_v26 }
 0x6b4   : > { %11511 = vmatprep.subr.bf16.mxu1 %v15837_v6 }
 0x6b7   : > { %11512 = vmatpush3.bf16.msra.mxu1 %v3875_v54 }
 0x6b8   : > { %11589 = vmatprep.subr.bf16.mxu1 %v15837_v6 }
 0x6be   : > { %11514 = vmatmul.mubr.msk.bf16.vlgmr.msra.gmra.mrb[36].mxu1 %vm776_vm1, %v3891_v12  ;;  %v13869_v12 = vpack.c.bf16 %v5066_v20, %v5065_v57 }
 0x6bf   : > { %11590 = vmatpush3.bf16.msra.mxu1 %v4926_v27  ;;  %11593 = vmatprep.mubr.msk.bf16.mxu1 %vm12803_vm0, %v15837_v6  ;;  %v5300_v27 = vpop.permute.xlu0 %5299 }
 0x6c0   : > { %11591 = vmatprep.subr.bf16.mxu1 %v15837_v6  ;;  %vm5302_vm8 = vcmp.eq.s32.totalorder %v13074_v46, %v5300_v27 }
 0x6c1   : > { %v5304_v36 = vsel %vm5302_vm8, 1.0, %v15837_v6 }
 0x6c3   : > { %11592 = vmatpush3.bf16.msra.mxu1 %v4927_v63 }
 0x6c4   : > { %11597 = vmatprep.subr.bf16.mxu1 %v15837_v6 }
 0x6c6   : > { %11594 = vmatmul.mubr.msk.bf16.vlgmr.msra.gmra.mrb[40].mxu1 %vm776_vm1, %v13677_v53 }
 0x6c7   : > { %11598 = vmatpush3.bf16.msra.mxu1 %v4916_v17  ;;  %11601 = vmatprep.mubr.msk.bf16.mxu1 %vm12803_vm0, %v15837_v6 }
 0x6c8   : > { %11599 = vmatprep.subr.bf16.mxu1 %v15837_v6 }
 0x6cb   : > { %11600 = vmatpush3.bf16.msra.mxu1 %v4917_v35 }
 0x6cc   : > { %11605 = vmatprep.subr.bf16.mxu1 %v15837_v6 }
 0x6d2   : > { %11602 = vmatmul.mubr.msk.bf16.vlgmr.msra.gmra.mrb[40].mxu1 %vm776_vm1, %v13677_v53 }
 0x6d3   : > { %11606 = vmatpush3.bf16.msra.mxu1 %v4916_v17  ;;  %11609 = vmatprep.mubr.msk.bf16.mxu1 %vm12803_vm0, %v15837_v6 }
 0x6d4   : > { %11607 = vmatprep.subr.bf16.mxu1 %v15837_v6 }
 0x6d7   : > { %11608 = vmatpush3.bf16.msra.mxu1 %v4917_v35 }
 0x6d8   : > { %11621 = vmatprep.subr.bf16.mxu1 %v15837_v6 }
 0x6de   : > { %11610 = vmatmul.mubr.msk.bf16.vlgmr.msra.gmra.mrb[40].mxu1 %vm776_vm1, %v13685_v5 }
 0x6df   : > { %11625 = vmatprep.mubr.msk.bf16.mxu1 %vm12803_vm0, %v15837_v6  ;;  %11622 = vmatpush3.bf16.msra.mxu1 %v13869_v12 }
 0x6e0   : > { %11623 = vmatprep.subr.bf16.mxu1 %v15837_v6 }
 0x6e3   : > { %11624 = vmatpush3.bf16.msra.mxu1 %v13879_v15 }
 0x6e4   : > { %11637 = vmatprep.subr.bf16.mxu1 %v15837_v6 }
 0x791   : > { %v4014_v38 = vpop.f32.mrb[36].mxu1 }
 0x792   : > { %v12359_v39 = vadd.f32 %v10457_v28, %v4014_v38  ;;  %v11515_v22 = vpop.f32.mrb[37].mxu1 }
 0x793   : > { %v4017_v48 = vpop.f32.mrb[38].mxu1  ;;  %v5227_v22 = vld [vmem:[%s15806_s9] sm:$0xff] }
 0x794   : > { %v4034_v4 = vmul.f32 %v12359_v39, %v12359_v39  ;;  %v12360_v10 = vadd.f32 %v10457_v28, %v4017_v48  ;;  %v11516_v43 = vpop.f32.mrb[39].mxu1  ;;  %v4025_v21 = vsel %vm776_vm1, %v12359_v39, 0.0  ;;  %v5303_v28 = vsel %vm5301_vm9, 1.0, %v15837_v6  ;;  %v5228_v48 = vld [vmem:[%s15806_s9 + $0x8] sm:$0xff] }
 0x795   : > { %v5230_v43 = vld [vmem:[%s15806_s9 + $0x18] sm:$0xff] }
 0x796   : > { %v4026_v8 = vsel %vm776_vm1, %v12360_v10, 0.0  ;;  %v4035_v44 = vmul.f32 %v12360_v10, %v12360_v10  ;;  %v4036_v2 = vsel %vm776_vm1, %v4034_v4, 0.0  ;;  %v5229_v4 = vld [vmem:[%s15806_s9 + $0x10] sm:$0xff] }
 0x797   : > { %v4027_v40 = vadd.f32 %v4026_v8, %v4025_v21  ;;  %v13945_v21 = vpack.c.bf16 %v5230_v43, %v5229_v4  ;;  %v6099_v43 = vld [vmem:[%s13018_s4 + $0x28] sm:$0xff] }
 0x798   : > { %v4037_v3 = vsel %vm776_vm1, %v4035_v44, 0.0 }
 0x799   : > { %v4028_v47 = vrot.slane %v4027_v40, 4  ;;  %v4038_v14 = vadd.f32 %v4037_v3, %v4036_v2 }
 0x79b   : > { %v4029_v51 = vadd.f32 %v4028_v47, %v4027_v40  ;;  %v4039_v50 = vrot.slane %v4038_v14, 4 }
 0x79d   : > { %v4030_v24 = vrot.slane %v4029_v51, 2  ;;  %v4040_v59 = vadd.f32 %v4039_v50, %v4038_v14 }
 0x79f   : > { %v4031_v49 = vadd.f32 %v4030_v24, %v4029_v51  ;;  %v4041_v33 = vrot.slane %v4040_v59, 2 }
 0x7a1   : > { %v4032_v54 = vrot.slane %v4031_v49, 1  ;;  %v4042_v55 = vadd.f32 %v4041_v33, %v4040_v59 }
 0x7a3   : > { %v4033_v56 = vadd.f32 %v4032_v54, %v4031_v49  ;;  %v4043_v58 = vrot.slane %v4042_v55, 1 }
 0x7a5   : > { %v4044_v60 = vadd.f32 %v4043_v58, %v4042_v55  ;;  %v4046_v30 = vmul.f32 0.0625, %v4033_v56  ;;  %v5695_v55 = vld [vmem:[%s13018_s4 + $0x18] sm:$0xff]  ;;  %v6098_v56 = vld [vmem:[%s13018_s4 + $0x20] sm:$0xff] }
 0x7a6   : > { %v5243_v58 = vld [vmem:[%s15808_s11] sm:$0xff] }
 0x7a7   : > { %v4047_v1 = vmul.f32 0.0625, %v4044_v60  ;;  %v4048_v11 = vmul.f32 %v4046_v30, %v4046_v30  ;;  %v4052_v45 = vsub.f32 %v12359_v39, %v4046_v30  ;;  %v4053_v23 = vsub.f32 %v12360_v10, %v4046_v30  ;;  %v5244_v60 = vld [vmem:[%s15808_s11 + $0x8] sm:$0xff] }
 0x7a8   : > { %v5305_v39 = vpack.c.bf16 %v5304_v36, %v5303_v28  ;;  %v13939_v10 = vpack.c.bf16 %v5228_v48, %v5227_v22  ;;  %v13970_v30 = vpack.c.bf16 %v5244_v60, %v5243_v58 }
 0x7a9   : > { %v4049_v7 = vsub.f32 %v4047_v1, %v4048_v11  ;;  %v5245_v1 = vld [vmem:[%s15808_s11 + $0x10] sm:$0xff]  ;;  %v5246_v11 = vld [vmem:[%s15808_s11 + $0x18] sm:$0xff] }
 0x7ab   : > { %v4050_v9 = vadd.f32 1e-05, %v4049_v7  ;;  %v5698_v7 = vpop.permute.xlu0 %5697 }
 0x7ac   : > { %vm5702_vm10 = vcmp.eq.s32.totalorder %v13074_v46, %v5698_v7 }
 0x7ad   : > { %12701 = vrsqrt.f32 %v4050_v9 }
 0x7b1   : > { %v13890_v61 = vpop.f32.mrb[40].mxu1 }
 0x7b2   : > { %15882 = vst [vmem:[#allocation15_spill] sm:$0xff] %v13890_v61  ;;  %v11611_v13 = vpop.f32.mrb[41].mxu1 }
 0x7b3   : > { %v13892_v19 = vpop.f32.mrb[42].mxu1  ;;  %v5704_v13 = vsel %vm5702_vm10, 1.0, %v15837_v6 }
 0x7b4   : > { %15883 = vst [vmem:[#allocation16_spill] sm:$0xff] %v13892_v19  ;;  %v11612_v62 = vpop.f32.mrb[43].mxu1 }
 0x7b7   : > { %v12702_v17 = vpop.eup %12701 }
 0x7b8   : > { %v4054_v37 = vmul.f32 %v12702_v17, %v4052_v45  ;;  %v4055_v41 = vmul.f32 %v12702_v17, %v4053_v23  ;;  %v13980_v23 = vpack.c.bf16 %v5246_v11, %v5245_v1 }
 0x7ba   : > { %v13894_v35 = vmax.f32 %v4054_v37, 0.0  ;;  %v13896_v16 = vmax.f32 %v4055_v41, 0.0 }
 0x7bc   : > { %v4904_v25 = vsel %vm776_vm1, %v13894_v35, %v4899_v52  ;;  %v4905_v42 = vsel %vm776_vm1, %v13896_v16, %v4901_v0  ;;  %v13904_v18 = vpack.c.bf16 %v13896_v16, %v13894_v35 }
 0x7bd   : > { %v13906_v32 = vpack.c.bf16 %v4905_v42, %v4904_v25 }
 0x7be   : > { %11626 = vmatmul.mubr.msk.bf16.vlgmr.msra.gmra.mrb[44].mxu1 %vm776_vm1, %v13904_v18 }
 0x7bf   : > { %v4907_v63 = vunpack.c.l.bf16 %v13906_v32  ;;  %v4908_v57 = vunpack.c.h.bf16 %v13906_v32  ;;  %11639 = vmatprep.mubr.msk.bf16.mxu1 %vm12803_vm0, %v15837_v6 }
 0x7c1   : > { %v4909_v20 = vsub.f32 %v4904_v25, %v4907_v63  ;;  %v4910_v34 = vsub.f32 %v4905_v42, %v4908_v57 }
 0x7c3   : > { %v13918_v38 = vpack.c.bf16 %v4910_v34, %v4909_v20 }
 0x7c5   : > { %11638 = vmatpush3.bf16.msra.mxu1 %v13918_v38 }
 0x7c6   : > { %11643 = vmatprep.subr.bf16.mxu1 %v15837_v6 }
 0x7c8   : > { %11640 = vmatmul.mubr.msk.bf16.vlgmr.msra.gmra.mrb[48].mxu1 %vm982_vm4, %v5305_v39 }
 0x7c9   : > { %11644 = vmatpush3.bf16.msra.mxu1 %v13906_v32  ;;  %11645 = vmatprep.mubr.msk.bf16.mxu1 %vm12803_vm0, %v15837_v6 }
 0x7ca   : > { %11665 = vmatprep.subr.bf16.mxu1 %v15837_v6 }
 0x7d4   : > { %11646 = vmatmul.mubr.msk.bf16.vlgmr.msra.gmra.mrb[48].mxu1 %vm982_vm4, %v5305_v39 }
 0x7d5   : > { %11669 = vmatprep.mubr.msk.bf16.mxu1 %vm12803_vm0, %v15837_v6  ;;  %11666 = vmatpush3.bf16.msra.mxu1 %v13939_v10 }
 0x7d6   : > { %11667 = vmatprep.subr.bf16.mxu1 %v15837_v6 }
 0x7d9   : > { %11668 = vmatpush3.bf16.msra.mxu1 %v13945_v21 }
 0x7da   : > { %11681 = vmatprep.subr.bf16.mxu1 %v15837_v6 }
 0x891   : > { %v13950_v8 = vpop.f32.mrb[44].mxu1 }
 0x892   : > { %v11627_v44 = vpop.f32.mrb[45].mxu1 }
 0x893   : > { %v13952_v40 = vpop.f32.mrb[46].mxu1  ;;  %v6502_v44 = vld [vmem:[%s13018_s4 + $0x30] sm:$0xff] }
 0x894   : > { %v11628_v2 = vpop.f32.mrb[47].mxu1 }
 0x895   : > { %v10515_v2 = vld [vmem:[%s15808_s11 + $0x20] sm:$0xff] }
 0x8a7   : > { %v5384_v3 = vpop.f32.mrb[48].mxu1 }
 0x8a8   : > { %v11647_v47 = vpop.f32.mrb[49].mxu1 }
 0x8a9   : > { %v5387_v14 = vpop.f32.mrb[50].mxu1 }
 0x8aa   : > { %v13954_v51 = vpack.c.bf16 %v5387_v14, %v5384_v3  ;;  %v11648_v50 = vpop.f32.mrb[51].mxu1 }
 0x8ab   : > { %v10518_v50 = vld [vmem:[%s15808_s11 + $0x38] sm:$0xff] }
 0x8ac   : > { %v5392_v24 = vunpack.c.l.bf16 %v13954_v51  ;;  %v5393_v59 = vunpack.c.h.bf16 %v13954_v51 }
 0x8ae   : > { %v5394_v49 = vsub.f32 %v5384_v3, %v5392_v24  ;;  %v5395_v33 = vsub.f32 %v5387_v14, %v5393_v59  ;;  %v10516_v3 = vld [vmem:[%s15808_s11 + $0x28] sm:$0xff]  ;;  %v10517_v14 = vld [vmem:[%s15808_s11 + $0x30] sm:$0xff] }
 0x8af   : > { %v14033_v47 = vpack.c.bf16 %v10516_v3, %v10515_v2  ;;  %v14043_v59 = vpack.c.bf16 %v10518_v50, %v10517_v14  ;;  %v10521_v2 = vld [vmem:[%s15808_s11 + $0x50] sm:$0xff]  ;;  %v10522_v3 = vld [vmem:[%s15808_s11 + $0x58] sm:$0xff] }
 0x8b0   : > { %v13958_v54 = vpack.c.bf16 %v5395_v33, %v5394_v49  ;;  %v14106_v50 = vpack.c.bf16 %v10522_v3, %v10521_v2  ;;  %v6905_v3 = vld [vmem:[%s13018_s4 + $0x48] sm:$0xff] }
 0x8b2   : > { %5486 = vrot.lane.b32.xlu1 %v13958_v54, %s15884_s6 }
 0x8b6   : > { %5700 = vperm.xlu1 %12696, %v5695_v55  }
 0x8ba   : > { %6101 = vperm.xlu1 %12696, %v6098_v56  }
 0x924   : > { %v5487_v45 = vpop.permute.xlu1 %5486 }
 0x925   : > { %11670 = vmatmul.mubr.msk.bf16.vlgmr.msra.gmra.mrb[52].mxu1 %vm776_vm1, %v5487_v45 }
 0x926   : > { %11682 = vmatpush3.bf16.msra.mxu1 %v13970_v30  ;;  %11685 = vmatprep.mubr.msk.bf16.mxu1 %vm12803_vm0, %v15837_v6 }
 0x927   : > { %11683 = vmatprep.subr.bf16.mxu1 %v15837_v6 }
 0x92a   : > { %11684 = vmatpush3.bf16.msra.mxu1 %v13980_v23 }
 0x92b   : > { %11697 = vmatprep.subr.bf16.mxu1 %v15837_v6 }
 0x92d   : > { %11686 = vmatmul.mubr.msk.bf16.vlgmr.msra.gmra.mrb[56].mxu1 %vm776_vm1, %v13954_v51 }
 0x92e   : > { %11698 = vmatpush3.bf16.msra.mxu1 %v13918_v38  ;;  %11699 = vmatprep.mubr.msk.bf16.mxu1 %vm12803_vm0, %v15837_v6 }
 0x92f   : > { %11703 = vmatprep.subr.bf16.mxu1 %v15837_v6 }
 0x935   : > { %v5701_v9 = vpop.permute.xlu1 %5700 }
 0x936   : > { %vm5703_vm11 = vcmp.eq.s32.totalorder %v13074_v46, %v5701_v9 }
 0x937   : > { %v5705_v62 = vsel %vm5703_vm11, 1.0, %v15837_v6 }
 0x938   : > { %v5706_v17 = vpack.c.bf16 %v5705_v62, %v5704_v13 }
 0x939   : > { %v6102_v49 = vpop.permute.xlu1 %6101 }
 0x93a   : > { %11700 = vmatmul.mubr.msk.bf16.vlgmr.msra.gmra.mrb[60].mxu1 %vm982_vm4, %v5706_v17  ;;  %vm6106_vm12 = vcmp.eq.s32.totalorder %v13074_v46, %v6102_v49 }
 0x93b   : > { %11704 = vmatpush3.bf16.msra.mxu1 %v13906_v32  ;;  %11705 = vmatprep.mubr.msk.bf16.mxu1 %vm12803_vm0, %v15837_v6  ;;  %v6108_v55 = vsel %vm6106_vm12, 1.0, %v15837_v6 }
 0x93c   : > { %11725 = vmatprep.subr.bf16.mxu1 %v15837_v6 }
 0x946   : > { %11706 = vmatmul.mubr.msk.bf16.vlgmr.msra.gmra.mrb[60].mxu1 %vm982_vm4, %v5706_v17 }
 0x947   : > { %11726 = vmatpush3.bf16.msra.mxu1 %v13939_v10  ;;  %11729 = vmatprep.mubr.msk.bf16.mxu1 %vm12803_vm0, %v15837_v6 }
 0x948   : > { %11727 = vmatprep.subr.bf16.mxu1 %v15837_v6 }
 0x94b   : > { %11728 = vmatpush3.bf16.msra.mxu1 %v13945_v21 }
 0x94c   : > { %11741 = vmatprep.subr.bf16.mxu1 %v15837_v6 }
 0x9f8   : > { %v14009_v37 = vpop.f32.mrb[52].mxu1 }
 0x9f9   : > { %15885 = vst [vmem:[#allocation17_spill] sm:$0xff] %v14009_v37  ;;  %v11671_v41 = vpop.f32.mrb[53].mxu1 }
 0x9fa   : > { %v14011_v0 = vpop.f32.mrb[54].mxu1 }
 0x9fb   : > { %15886 = vst [vmem:[#allocation18_spill] sm:$0xff] %v14011_v0  ;;  %v11672_v52 = vpop.f32.mrb[55].mxu1 }
 0xa00   : > { %v14013_v25 = vpop.f32.mrb[56].mxu1 }
 0xa01   : > { %15887 = vst [vmem:[#allocation19_spill] sm:$0xff] %v14013_v25  ;;  %v11687_v42 = vpop.f32.mrb[57].mxu1 }
 0xa02   : > { %v14015_v27 = vpop.f32.mrb[58].mxu1 }
 0xa03   : > { %15888 = vst [vmem:[#allocation20_spill] sm:$0xff] %v14015_v27  ;;  %v11688_v26 = vpop.f32.mrb[59].mxu1 }
 0xa19   : > { %v5785_v63 = vpop.f32.mrb[60].mxu1 }
 0xa1a   : > { %v11707_v57 = vpop.f32.mrb[61].mxu1 }
 0xa1b   : > { %v5788_v20 = vpop.f32.mrb[62].mxu1 }
 0xa1c   : > { %v14017_v34 = vpack.c.bf16 %v5788_v20, %v5785_v63  ;;  %v11708_v36 = vpop.f32.mrb[63].mxu1 }
 0xa1e   : > { %v5793_v28 = vunpack.c.l.bf16 %v14017_v34  ;;  %v5794_v39 = vunpack.c.h.bf16 %v14017_v34 }
 0xa20   : > { %v5795_v22 = vsub.f32 %v5785_v63, %v5793_v28  ;;  %v5796_v48 = vsub.f32 %v5788_v20, %v5794_v39  ;;  %v6503_v39 = vld [vmem:[%s13018_s4 + $0x38] sm:$0xff] }
 0xa22   : > { %v14021_v4 = vpack.c.bf16 %v5796_v48, %v5795_v22  ;;  %v6904_v22 = vld [vmem:[%s13018_s4 + $0x40] sm:$0xff] }
 0xa23   : > { %v10519_v48 = vld [vmem:[%s15808_s11 + $0x40] sm:$0xff] }
 0xa24   : > { %5887 = vrot.lane.b32.xlu0 %v14021_v4, %s15884_s6 }
 0xa28   : > { %6104 = vperm.xlu0 %12695, %v6099_v43   ;;  %v10520_v43 = vld [vmem:[%s15808_s11 + $0x48] sm:$0xff] }
 0xa2c   : > { %6505 = vperm.xlu0 %12695, %v6502_v44   ;;  %v14096_v44 = vpack.c.bf16 %v10520_v43, %v10519_v48 }
 0xa96   : > { %v5888_v24 = vpop.permute.xlu0 %5887 }
 0xa97   : > { %11730 = vmatmul.mubr.msk.bf16.vlgmr.msra.gmra.mrb[64].mxu1 %vm776_vm1, %v5888_v24 }
 0xa98   : > { %11742 = vmatpush3.bf16.msra.mxu1 %v14033_v47  ;;  %11745 = vmatprep.mubr.msk.bf16.mxu1 %vm12803_vm0, %v15837_v6 }
 0xa99   : > { %11743 = vmatprep.subr.bf16.mxu1 %v15837_v6 }
 0xa9c   : > { %11744 = vmatpush3.bf16.msra.mxu1 %v14043_v59 }
 0xa9d   : > { %11757 = vmatprep.subr.bf16.mxu1 %v15837_v6 }
 0xa9f   : > { %11746 = vmatmul.mubr.msk.bf16.vlgmr.msra.gmra.mrb[68].mxu1 %vm776_vm1, %v14017_v34 }
 0xaa0   : > { %11758 = vmatpush3.bf16.msra.mxu1 %v13918_v38  ;;  %11759 = vmatprep.mubr.msk.bf16.mxu1 %vm12803_vm0, %v15837_v6 }
 0xaa1   : > { %11763 = vmatprep.subr.bf16.mxu1 %v15837_v6 }
 0xaa7   : > { %v6105_v33 = vpop.permute.xlu0 %6104 }
 0xaa8   : > { %vm6107_vm13 = vcmp.eq.s32.totalorder %v13074_v46, %v6105_v33 }
 0xaa9   : > { %v6109_v56 = vsel %vm6107_vm13, 1.0, %v15837_v6  ;;  %vm9868_vm13 = vcmask 785920  }
 0xaaa   : > { %v6110_v58 = vpack.c.bf16 %v6109_v56, %v6108_v55 }
 0xaab   : > { %v6506_v24 = vpop.permute.xlu0 %6505 }
 0xaac   : > { %11760 = vmatmul.mubr.msk.bf16.vlgmr.msra.gmra.mrb[72].mxu1 %vm982_vm4, %v6110_v58  ;;  %vm6510_vm14 = vcmp.eq.s32.totalorder %v13074_v46, %v6506_v24 }
 0xaad   : > { %11764 = vmatpush3.bf16.msra.mxu1 %v13906_v32  ;;  %11765 = vmatprep.mubr.msk.bf16.mxu1 %vm12803_vm0, %v15837_v6  ;;  %v6512_v33 = vsel %vm6510_vm14, 1.0, %v15837_v6 }
 0xaae   : > { %11785 = vmatprep.subr.bf16.mxu1 %v15837_v6 }
 0xab8   : > { %11766 = vmatmul.mubr.msk.bf16.vlgmr.msra.gmra.mrb[72].mxu1 %vm982_vm4, %v6110_v58 }
 0xab9   : > { %11786 = vmatpush3.bf16.msra.mxu1 %v13939_v10  ;;  %11789 = vmatprep.mubr.msk.bf16.mxu1 %vm12803_vm0, %v15837_v6 }
 0xaba   : > { %11787 = vmatprep.subr.bf16.mxu1 %v15837_v6 }
 0xabd   : > { %11788 = vmatpush3.bf16.msra.mxu1 %v13945_v21 }
 0xabe   : > { %11801 = vmatprep.subr.bf16.mxu1 %v15837_v6 }
 0xb6a   : > { %v14072_v60 = vpop.f32.mrb[64].mxu1 }
 0xb6b   : > { %15889 = vst [vmem:[#allocation21_spill] sm:$0xff] %v14072_v60  ;;  %v11731_v1 = vpop.f32.mrb[65].mxu1 }
 0xb6c   : > { %v14074_v11 = vpop.f32.mrb[66].mxu1 }
 0xb6d   : > { %15890 = vst [vmem:[#allocation22_spill] sm:$0xff] %v14074_v11  ;;  %v11732_v45 = vpop.f32.mrb[67].mxu1 }
 0xb72   : > { %v14076_v7 = vpop.f32.mrb[68].mxu1 }
 0xb73   : > { %15891 = vst [vmem:[#allocation23_spill] sm:$0xff] %v14076_v7  ;;  %v11747_v9 = vpop.f32.mrb[69].mxu1 }
 0xb74   : > { %v14078_v13 = vpop.f32.mrb[70].mxu1 }
 0xb75   : > { %15892 = vst [vmem:[#allocation24_spill] sm:$0xff] %v14078_v13  ;;  %v11748_v62 = vpop.f32.mrb[71].mxu1 }
 0xb8b   : > { %v6189_v17 = vpop.f32.mrb[72].mxu1 }
 0xb8c   : > { %v11767_v41 = vpop.f32.mrb[73].mxu1 }
 0xb8d   : > { %v6192_v52 = vpop.f32.mrb[74].mxu1 }
 0xb8e   : > { %v14080_v42 = vpack.c.bf16 %v6192_v52, %v6189_v17  ;;  %v11768_v26 = vpop.f32.mrb[75].mxu1 }
 0xb90   : > { %v6197_v63 = vunpack.c.l.bf16 %v14080_v42  ;;  %v6198_v57 = vunpack.c.h.bf16 %v14080_v42 }
 0xb92   : > { %v6199_v20 = vsub.f32 %v6189_v17, %v6197_v63  ;;  %v6200_v36 = vsub.f32 %v6192_v52, %v6198_v57 }
 0xb94   : > { %v14084_v28 = vpack.c.bf16 %v6200_v36, %v6199_v20 }
 0xb96   : > { %15893 = vst [vmem:[#allocation25_spill] sm:$0xff] %v14084_v28  ;;  %6291 = vrot.lane.b32.xlu1 %v14084_v28, %s15884_s6 }
 0xb9a   : > { %6508 = vperm.xlu1 %12696, %v6503_v39  }
 0xb9e   : > { %6907 = vperm.xlu1 %12696, %v6904_v22  }
 0xc08   : > { %v6292_v14 = vpop.permute.xlu1 %6291 }
 0xc09   : > { %11790 = vmatmul.mubr.msk.bf16.vlgmr.msra.gmra.mrb[76].mxu1 %vm776_vm1, %v6292_v14  ;;  %v7308_v14 = vld [vmem:[%s13018_s4 + $0x50] sm:$0xff] }
 0xc0a   : > { %11802 = vmatpush3.bf16.msra.mxu1 %v14096_v44  ;;  %11805 = vmatprep.mubr.msk.bf16.mxu1 %vm12803_vm0, %v15837_v6 }
 0xc0b   : > { %11803 = vmatprep.subr.bf16.mxu1 %v15837_v6 }
 0xc0e   : > { %11804 = vmatpush3.bf16.msra.mxu1 %v14106_v50 }
 0xc0f   : > { %11817 = vmatprep.subr.bf16.mxu1 %v15837_v6 }
 0xc11   : > { %11806 = vmatmul.mubr.msk.bf16.vlgmr.msra.gmra.mrb[80].mxu1 %vm776_vm1, %v14080_v42 }
 0xc12   : > { %11818 = vmatpush3.bf16.msra.mxu1 %v13918_v38  ;;  %11819 = vmatprep.mubr.msk.bf16.mxu1 %vm12803_vm0, %v15837_v6 }
 0xc13   : > { %11823 = vmatprep.subr.bf16.mxu1 %v15837_v6 }
 0xc19   : > { %v6509_v49 = vpop.permute.xlu1 %6508 }
 0xc1a   : > { %vm6511_vm15 = vcmp.eq.s32.totalorder %v13074_v46, %v6509_v49 }
 0xc1b   : > { %v6513_v55 = vsel %vm6511_vm15, 1.0, %v15837_v6 }
 0xc1c   : > { %v6514_v56 = vpack.c.bf16 %v6513_v55, %v6512_v33 }
 0xc1d   : > { %v6908_v49 = vpop.permute.xlu1 %6907 }
 0xc1e   : > { %11820 = vmatmul.mubr.msk.bf16.vlgmr.msra.gmra.mrb[84].mxu1 %vm982_vm4, %v6514_v56  ;;  %vm6912_vm2 = vcmp.eq.s32.totalorder %v13074_v46, %v6908_v49 }
 0xc1f   : > { %11824 = vmatpush3.bf16.msra.mxu1 %v13906_v32  ;;  %11825 = vmatprep.mubr.msk.bf16.mxu1 %vm12803_vm0, %v15837_v6  ;;  %v6914_v55 = vsel %vm6912_vm2, 1.0, %v15837_v6 }
 0xc20   : > { %11845 = vmatprep.subr.bf16.mxu1 %v15837_v6 }
 0xc2a   : > { %11826 = vmatmul.mubr.msk.bf16.vlgmr.msra.gmra.mrb[84].mxu1 %vm982_vm4, %v6514_v56 }
 0xc2b   : > { %11846 = vmatpush3.bf16.msra.mxu1 %v13939_v10  ;;  %11849 = vmatprep.mubr.msk.bf16.mxu1 %vm12803_vm0, %v15837_v6 }
 0xc2c   : > { %11847 = vmatprep.subr.bf16.mxu1 %v15837_v6 }
 0xc2f   : > { %11848 = vmatpush3.bf16.msra.mxu1 %v13945_v21 }
 0xc30   : > { %11861 = vmatprep.subr.bf16.mxu1 %v15837_v6 }
 0xcdc   : > { %v14135_v58 = vpop.f32.mrb[76].mxu1 }
 0xcdd   : > { %15894 = vst [vmem:[#allocation26_spill] sm:$0xff] %v14135_v58  ;;  %v11791_v1 = vpop.f32.mrb[77].mxu1 }
 0xcde   : > { %v14137_v45 = vpop.f32.mrb[78].mxu1 }
 0xcdf   : > { %15895 = vst [vmem:[#allocation27_spill] sm:$0xff] %v14137_v45  ;;  %v11792_v9 = vpop.f32.mrb[79].mxu1 }
 0xce4   : > { %v14139_v62 = vpop.f32.mrb[80].mxu1 }
 0xce5   : > { %15896 = vst [vmem:[#allocation28_spill] sm:$0xff] %v14139_v62  ;;  %v11807_v17 = vpop.f32.mrb[81].mxu1 }
 0xce6   : > { %v14141_v41 = vpop.f32.mrb[82].mxu1 }
 0xce7   : > { %15897 = vst [vmem:[#allocation29_spill] sm:$0xff] %v14141_v41  ;;  %v11808_v52 = vpop.f32.mrb[83].mxu1 }
 0xcfd   : > { %v6593_v26 = vpop.f32.mrb[84].mxu1 }
 0xcfe   : > { %v11827_v63 = vpop.f32.mrb[85].mxu1 }
 0xcff   : > { %v6596_v57 = vpop.f32.mrb[86].mxu1 }
 0xd00   : > { %v14143_v20 = vpack.c.bf16 %v6596_v57, %v6593_v26  ;;  %v11828_v36 = vpop.f32.mrb[87].mxu1 }
 0xd02   : > { %v6601_v39 = vunpack.c.l.bf16 %v14143_v20  ;;  %v6602_v22 = vunpack.c.h.bf16 %v14143_v20 }
 0xd04   : > { %v6603_v48 = vsub.f32 %v6593_v26, %v6601_v39  ;;  %v6604_v43 = vsub.f32 %v6596_v57, %v6602_v22 }
 0xd06   : > { %v14147_v2 = vpack.c.bf16 %v6604_v43, %v6603_v48 }
 0xd08   : > { %15898 = vst [vmem:[#allocation30_spill] sm:$0xff] %v14147_v2  ;;  %6695 = vrot.lane.b32.xlu0 %v14147_v2, %s15884_s6 }
 0xd0c   : > { %6910 = vperm.xlu0 %12695, %v6905_v3  }
 0xd10   : > { %7311 = vperm.xlu0 %12695, %v7308_v14  }
 0xd7a   : > { %v6696_v24 = vpop.permute.xlu0 %6695 }
 0xd7b   : > { %11850 = vmatmul.mubr.msk.bf16.vlgmr.msra.gmra.mrb[88].mxu1 %vm776_vm1, %v6696_v24 }
 0xd7c   : > { %11862 = vmatpush3.bf16.msra.mxu1 %v13970_v30  ;;  %11865 = vmatprep.mubr.msk.bf16.mxu1 %vm12803_vm0, %v15837_v6 }
 0xd7d   : > { %11863 = vmatprep.subr.bf16.mxu1 %v15837_v6 }
 0xd80   : > { %11864 = vmatpush3.bf16.msra.mxu1 %v13980_v23 }
 0xd81   : > { %11877 = vmatprep.subr.bf16.mxu1 %v15837_v6 }
 0xd83   : > { %11866 = vmatmul.mubr.msk.bf16.vlgmr.msra.gmra.mrb[92].mxu1 %vm776_vm1, %v14143_v20 }
 0xd84   : > { %11878 = vmatpush3.bf16.msra.mxu1 %v13918_v38  ;;  %11879 = vmatprep.mubr.msk.bf16.mxu1 %vm12803_vm0, %v15837_v6 }
 0xd85   : > { %11883 = vmatprep.subr.bf16.mxu1 %v15837_v6 }
 0xd8b   : > { %v6911_v33 = vpop.permute.xlu0 %6910 }
 0xd8c   : > { %vm6913_vm3 = vcmp.eq.s32.totalorder %v13074_v46, %v6911_v33 }
 0xd8d   : > { %v6915_v56 = vsel %vm6913_vm3, 1.0, %v15837_v6 }
 0xd8e   : > { %v6916_v1 = vpack.c.bf16 %v6915_v56, %v6914_v55 }
 0xd90   : > { %11880 = vmatmul.mubr.msk.bf16.vlgmr.msra.gmra.mrb[96].mxu1 %vm982_vm4, %v6916_v1 }
 0xd91   : > { %11884 = vmatpush3.bf16.msra.mxu1 %v13906_v32  ;;  %11885 = vmatprep.mubr.msk.bf16.mxu1 %vm12803_vm0, %v15837_v6 }
 0xd92   : > { %11905 = vmatprep.subr.bf16.mxu1 %v15837_v6 }
 0xd9c   : > { %11886 = vmatmul.mubr.msk.bf16.vlgmr.msra.gmra.mrb[96].mxu1 %vm982_vm4, %v6916_v1  ;;  %v7309_v1 = vld [vmem:[%s13018_s4 + $0x58] sm:$0xff] }
 0xd9d   : > { %11906 = vmatpush3.bf16.msra.mxu1 %v13939_v10  ;;  %11909 = vmatprep.mubr.msk.bf16.mxu1 %vm12803_vm0, %v15837_v6 }
 0xd9e   : > { %11907 = vmatprep.subr.bf16.mxu1 %v15837_v6 }
 0xda1   : > { %11908 = vmatpush3.bf16.msra.mxu1 %v13945_v21 }
 0xda2   : > { %11921 = vmatprep.subr.bf16.mxu1 %v15837_v6 }
 0xe4e   : > { %v14182_v9 = vpop.f32.mrb[88].mxu1 }
 0xe4f   : > { %15899 = vst [vmem:[#allocation31_spill] sm:$0xff] %v14182_v9  ;;  %v11851_v17 = vpop.f32.mrb[89].mxu1 }
 0xe50   : > { %v14184_v52 = vpop.f32.mrb[90].mxu1  ;;  %v7712_v17 = vld [vmem:[%s13018_s4 + $0x60] sm:$0xff] }
 0xe51   : > { %15900 = vst [vmem:[#allocation32_spill] sm:$0xff] %v14184_v52  ;;  %v11852_v26 = vpop.f32.mrb[91].mxu1 }
 0xe56   : > { %v14186_v63 = vpop.f32.mrb[92].mxu1 }
 0xe57   : > { %15901 = vst [vmem:[#allocation33_spill] sm:$0xff] %v14186_v63  ;;  %v11867_v57 = vpop.f32.mrb[93].mxu1 }
 0xe58   : > { %v14188_v36 = vpop.f32.mrb[94].mxu1  ;;  %v7312_v57 = vpop.permute.xlu0 %7311 }
 0xe59   : > { %15902 = vst [vmem:[#allocation34_spill] sm:$0xff] %v14188_v36  ;;  %v11868_v39 = vpop.f32.mrb[95].mxu1  ;;  %vm7316_vm5 = vcmp.eq.s32.totalorder %v13074_v46, %v7312_v57 }
 0xe6f   : > { %v6995_v22 = vpop.f32.mrb[96].mxu1 }
 0xe70   : > { %v11887_v48 = vpop.f32.mrb[97].mxu1 }
 0xe71   : > { %v6998_v43 = vpop.f32.mrb[98].mxu1 }
 0xe72   : > { %v14190_v3 = vpack.c.bf16 %v6998_v43, %v6995_v22  ;;  %v11888_v14 = vpop.f32.mrb[99].mxu1 }
 0xe74   : > { %15903 = vst [vmem:[#allocation35_spill] sm:$0xff] %v14190_v3  ;;  %v7003_v24 = vunpack.c.l.bf16 %v14190_v3  ;;  %v7004_v49 = vunpack.c.h.bf16 %v14190_v3 }
 0xe76   : > { %v7005_v33 = vsub.f32 %v6995_v22, %v7003_v24  ;;  %v7006_v55 = vsub.f32 %v6998_v43, %v7004_v49  ;;  %v7318_v22 = vsel %vm7316_vm5, 1.0, %v15837_v6 }
 0xe78   : > { %v14194_v56 = vpack.c.bf16 %v7006_v55, %v7005_v33 }
 0xe7a   : > { %15904 = vst [vmem:[#allocation36_spill] sm:$0xff] %v14194_v56  ;;  %7097 = vrot.lane.b32.xlu1 %v14194_v56, %s15884_s6 }
 0xe7e   : > { %7314 = vperm.xlu1 %12696, %v7309_v1  }
 0xe82   : > { %7715 = vperm.xlu1 %12696, %v7712_v17  }
 0xeec   : > { %v7098_v26 = vpop.permute.xlu1 %7097 }
 0xeed   : > { %11910 = vmatmul.mubr.msk.bf16.vlgmr.msra.gmra.mrb[100].mxu1 %vm776_vm1, %v7098_v26 }
 0xeee   : > { %11922 = vmatpush3.bf16.msra.mxu1 %v14033_v47  ;;  %11925 = vmatprep.mubr.msk.bf16.mxu1 %vm12803_vm0, %v15837_v6 }
 0xeef   : > { %11923 = vmatprep.subr.bf16.mxu1 %v15837_v6 }
 0xef2   : > { %11924 = vmatpush3.bf16.msra.mxu1 %v14043_v59 }
 0xef3   : > { %11937 = vmatprep.subr.bf16.mxu1 %v15837_v6 }
 0xef5   : > { %11926 = vmatmul.mubr.msk.bf16.vlgmr.msra.gmra.mrb[104].mxu1 %vm776_vm1, %v14190_v3 }
 0xef6   : > { %11938 = vmatpush3.bf16.msra.mxu1 %v13918_v38  ;;  %11939 = vmatprep.mubr.msk.bf16.mxu1 %vm12803_vm0, %v15837_v6 }
 0xef7   : > { %11943 = vmatprep.subr.bf16.mxu1 %v15837_v6 }
 0xefd   : > { %v7315_v39 = vpop.permute.xlu1 %7314 }
 0xefe   : > { %vm7317_vm6 = vcmp.eq.s32.totalorder %v13074_v46, %v7315_v39 }
 0xeff   : > { %v7319_v48 = vsel %vm7317_vm6, 1.0, %v15837_v6 }
 0xf00   : > { %v7320_v43 = vpack.c.bf16 %v7319_v48, %v7318_v22 }
 0xf02   : > { %11940 = vmatmul.mubr.msk.bf16.vlgmr.msra.gmra.mrb[108].mxu1 %vm982_vm4, %v7320_v43 }
 0xf03   : > { %11944 = vmatpush3.bf16.msra.mxu1 %v13906_v32  ;;  %11945 = vmatprep.mubr.msk.bf16.mxu1 %vm12803_vm0, %v15837_v6 }
 0xf04   : > { %11965 = vmatprep.subr.bf16.mxu1 %v15837_v6 }
 0xf0e   : > { %11946 = vmatmul.mubr.msk.bf16.vlgmr.msra.gmra.mrb[108].mxu1 %vm982_vm4, %v7320_v43 }
 0xf0f   : > { %11966 = vmatpush3.bf16.msra.mxu1 %v13939_v10  ;;  %11969 = vmatprep.mubr.msk.bf16.mxu1 %vm12803_vm0, %v15837_v6 }
 0xf10   : > { %11967 = vmatprep.subr.bf16.mxu1 %v15837_v6 }
 0xf13   : > { %11968 = vmatpush3.bf16.msra.mxu1 %v13945_v21 }
 0xf14   : > { %11981 = vmatprep.subr.bf16.mxu1 %v15837_v6 }
 0xfc0   : > { %v14229_v14 = vpop.f32.mrb[100].mxu1 }
 0xfc1   : > { %15905 = vst [vmem:[#allocation37_spill] sm:$0xff] %v14229_v14  ;;  %v11911_v24 = vpop.f32.mrb[101].mxu1 }
 0xfc2   : > { %v14231_v49 = vpop.f32.mrb[102].mxu1 }
 0xfc3   : > { %15906 = vst [vmem:[#allocation38_spill] sm:$0xff] %v14231_v49  ;;  %v11912_v33 = vpop.f32.mrb[103].mxu1 }
 0xfc8   : > { %v14233_v55 = vpop.f32.mrb[104].mxu1 }
 0xfc9   : > { %15907 = vst [vmem:[#allocation39_spill] sm:$0xff] %v14233_v55  ;;  %v11927_v1 = vpop.f32.mrb[105].mxu1 }
 0xfca   : > { %v14235_v17 = vpop.f32.mrb[106].mxu1  ;;  %v7713_v1 = vld [vmem:[%s13018_s4 + $0x68] sm:$0xff] }
 0xfcb   : > { %15908 = vst [vmem:[#allocation40_spill] sm:$0xff] %v14235_v17  ;;  %v11928_v26 = vpop.f32.mrb[107].mxu1  ;;  %v14314_v17 = vld [vmem:[%s15812_s15 + $0x2] ss:$0 sm:$0xff] }
 0xfcc   : > { %v8114_v26 = vld [vmem:[%s13018_s4 + $0x70] sm:$0xff] }
 0xfe1   : > { %v7399_v57 = vpop.f32.mrb[108].mxu1 }
 0xfe2   : > { %v11947_v39 = vpop.f32.mrb[109].mxu1 }
 0xfe3   : > { %v7402_v22 = vpop.f32.mrb[110].mxu1  ;;  %v4168_v39 = vld [vmem:[%s14252_s2 + $0x40] sm:$0xff] }
 0xfe4   : > { %v14237_v48 = vpack.c.bf16 %v7402_v22, %v7399_v57  ;;  %v11948_v43 = vpop.f32.mrb[111].mxu1 }
 0xfe5   : > { %v4112_v43 = vld [vmem:[%s14252_s2 + $0x20] sm:$0xff] }
 0xfe6   : > { %v7407_v24 = vunpack.c.l.bf16 %v14237_v48  ;;  %v7408_v6 = vunpack.c.h.bf16 %v14237_v48 }
 0xfe8   : > { %v7409_v33 = vsub.f32 %v7399_v57, %v7407_v24  ;;  %v7410_v31 = vsub.f32 %v7402_v22, %v7408_v6  ;;  %v4059_v6 = vld [vmem:[%s14252_s2] sm:$0xff]  ;;  %v4088_v57 = vld [vmem:[%s14252_s2 + $0x10] sm:$0xff] }
 0xfe9   : > { %v4217_v22 = vld [vmem:[%s14252_s2 + $0x60] sm:$0xff]  ;;  %v4191_v24 = vld [vmem:[%s14252_s2 + $0x50] sm:$0xff] }
 0xfea   : > { %v14241_v29 = vpack.c.bf16 %v7410_v31, %v7409_v33  ;;  %v4139_v31 = vld [vmem:[%s14252_s2 + $0x30] sm:$0xff] }
 0xfeb   : > { %v4246_v33 = vld [vmem:[%s14252_s2 + $0x70] sm:$0xff] }
 0xfec   : > { %15909 = vst [vmem:[#allocation41_spill] sm:$0xff] %v14241_v29  ;;  %7501 = vrot.lane.b32.xlu0 %v14241_v29, %s15884_s6 }
 0xff0   : > { %7718 = vperm.xlu0 %12695, %v7713_v1   ;;  %v4269_v1 = vld [vmem:[%s14252_s2 + $0x80] sm:$0xff] }
 0xff4   : > { %8117 = vperm.xlu0 %12695, %v8114_v26  }
 0xff8   : > { %4064 = vperm.xlu0 %12695, %v4059_v6   ;;  %v15912_v6 = vmov 0.0  }
 0xffc   : > { %4144 = vperm.xlu0 %12695, %v4139_v31   ;;  %v7716_v31 = vpop.permute.xlu1 %7715 }
 0xffd   : > { %vm7720_vm7 = vcmp.eq.s32.totalorder %v13074_v46, %v7716_v31  ;;  %v14295_v31 = vld [vmem:[%s15812_s15] ss:$0 sm:$0xff] }
0x1000   : > { %4094 = vperm.xlu0 %12695, %v4088_v57  }
0x1004   : > { %4173 = vperm.xlu0 %12695, %v4168_v39   ;;  %v7722_v39 = vsel %vm7720_vm7, 1.0, %v15912_v6 }
0x1008   : > { %4222 = vperm.xlu0 %12695, %v4217_v22  }
0x100c   : > { %4118 = vperm.xlu0 %12695, %v4112_v43  }
0x1010   : > { %4196 = vperm.xlu0 %12695, %v4191_v24  }
0x1014   : > { %4251 = vperm.xlu0 %12695, %v4246_v33  }
0x1018   : > { %4274 = vperm.xlu0 %12695, %v4269_v1  }
0x105e   : > { %v7502_v26 = vpop.permute.xlu0 %7501 }
0x105f   : > { %11970 = vmatmul.mubr.msk.bf16.vlgmr.msra.gmra.mrb[112].mxu1 %vm776_vm1, %v7502_v26 }
0x1060   : > { %11982 = vmatpush3.bf16.msra.mxu1 %v14096_v44  ;;  %11985 = vmatprep.mubr.msk.bf16.mxu1 %vm12803_vm0, %v15912_v6 }
0x1061   : > { %11983 = vmatprep.subr.bf16.mxu1 %v15912_v6 }
0x1064   : > { %11984 = vmatpush3.bf16.msra.mxu1 %v14106_v50 }
0x1065   : > { %11997 = vmatprep.subr.bf16.mxu1 %v15912_v6 }
0x1067   : > { %11986 = vmatmul.mubr.msk.bf16.vlgmr.msra.gmra.mrb[116].mxu1 %vm776_vm1, %v14237_v48 }
0x1068   : > { %11998 = vmatpush3.bf16.msra.mxu1 %v13918_v38  ;;  %11999 = vmatprep.mubr.msk.bf16.mxu1 %vm12803_vm0, %v15912_v6 }
0x1069   : > { %12003 = vmatprep.subr.bf16.mxu1 %v15912_v6 }
0x106f   : > { %v7719_v57 = vpop.permute.xlu0 %7718 }
0x1070   : > { %vm7721_vm8 = vcmp.eq.s32.totalorder %v13074_v46, %v7719_v57 }
0x1071   : > { %v7723_v22 = vsel %vm7721_vm8, 1.0, %v15912_v6 }
0x1072   : > { %v7724_v43 = vpack.c.bf16 %v7723_v22, %v7722_v39  ;;  %v14300_v39 = vld [vmem:[%s15812_s15 + $0x1] ss:$0 sm:$0xff] }
0x1073   : > { %v14280_v24 = vpop.permute.xlu0 %8117 }
0x1074   : > { %12000 = vmatmul.mubr.msk.bf16.vlgmr.msra.gmra.mrb[120].mxu1 %vm982_vm4, %v7724_v43  ;;  %vm8122_vm9 = vcmp.eq.s32.totalorder %v13074_v46, %v14280_v24 }
0x1075   : > { %12004 = vmatpush3.bf16.msra.mxu1 %v13906_v32  ;;  %12005 = vmatprep.mubr.msk.bf16.mxu1 %vm12803_vm0, %v15912_v6 }
0x1076   : > { %12025 = vmatprep.subr.bf16.mxu1 %v15912_v6 }
0x1077   : > { %v4065_v33 = vpop.permute.xlu0 %4064 }
0x1078   : > { %v4078_v22 = vmul.f32 %v14295_v31, %v4065_v33 }
0x107b   : > { %v4145_v1 = vpop.permute.xlu0 %4144 }
0x107c   : > { %v4158_v49 = vmul.f32 %v14295_v31, %v4145_v1 }
0x107f   : > { %v4095_v26 = vpop.permute.xlu0 %4094 }
0x1080   : > { %12006 = vmatmul.mubr.msk.bf16.vlgmr.msra.gmra.mrb[120].mxu1 %vm982_vm4, %v7724_v43  ;;  %v14308_v43 = vld [vmem:[%s15813_s16] ss:$0 sm:$0xff]  ;;  %v4108_v53 = vmul.f32 %v14300_v39, %v4095_v26 }
0x1081   : > { %12026 = vmatpush3.bf16.msra.mxu1 %v13939_v10  ;;  %12029 = vmatprep.mubr.msk.bf16.mxu1 %vm12803_vm0, %v15912_v6  ;;  %v4086_v55 = vadd.f32 %v14308_v43, %v4078_v22  ;;  %v4166_v52 = vadd.f32 %v14308_v43, %v4158_v49 }
0x1082   : > { %12027 = vmatprep.subr.bf16.mxu1 %v15912_v6 }
0x1083   : > { %v4174_v57 = vpop.permute.xlu0 %4173  ;;  %v4110_v14 = vadd.f32 %v4108_v53, %v4086_v55 }
0x1084   : > { %v4187_v36 = vmul.f32 %v14300_v39, %v4174_v57 }
0x1085   : > { %12028 = vmatpush3.bf16.msra.mxu1 %v13945_v21 }
0x1086   : > { %12041 = vmatprep.subr.bf16.mxu1 %v15912_v6  ;;  %v4189_v26 = vadd.f32 %v4187_v36, %v4166_v52 }
0x1087   : > { %v4223_v5 = vpop.permute.xlu0 %4222 }
0x1088   : > { %v4236_v45 = vmul.f32 %v14295_v31, %v4223_v5 }
0x108a   : > { %v4244_v55 = vadd.f32 %v14308_v43, %v4236_v45 }
0x108b   : > { %v4119_v33 = vpop.permute.xlu0 %4118 }
0x108c   : > { %v4132_v63 = vmul.f32 %v14314_v17, %v4119_v33 }
0x108e   : > { %v4134_v9 = vadd.f32 %v4132_v63, %v4110_v14 }
0x108f   : > { %v4197_v41 = vpop.permute.xlu0 %4196 }
0x1090   : > { %4136 = vst.msk [vmem:[#allocation2] sm:$0xff] %vm776_vm1, %v4134_v9  ;;  %v4210_v62 = vmul.f32 %v14314_v17, %v4197_v41 }
0x1092   : > { %v4212_v22 = vadd.f32 %v4210_v62, %v4189_v26 }
0x1093   : > { %v4252_v58 = vpop.permute.xlu0 %4251 }
0x1094   : > { %4214 = vst.msk [vmem:[#allocation2 + $0x10] sm:$0xff] %vm776_vm1, %v4212_v22  ;;  %v4265_v53 = vmul.f32 %v14300_v39, %v4252_v58 }
0x1096   : > { %v4267_v57 = vadd.f32 %v4265_v53, %v4244_v55 }
0x1097   : > { %v4275_v1 = vpop.permute.xlu0 %4274  ;;  %v14426_v11 = vld [vmem:[#allocation2] sm:$0xff] }
0x1098   : > { %v4288_v63 = vmul.f32 %v14314_v17, %v4275_v1 }
0x109a   : > { %v4290_v14 = vadd.f32 %v4288_v63, %v4267_v57 }
0x109c   : > { %4292 = vst.msk [vmem:[#allocation2 + $0x20] sm:$0xff] %vm776_vm1, %v4290_v14 }
0x1132   : > { %v14329_v9 = vpop.f32.mrb[112].mxu1 }
0x1133   : > { %15913 = vst [vmem:[#allocation42_spill] sm:$0xff] %v14329_v9  ;;  %v11971_v41 = vpop.f32.mrb[113].mxu1 }
0x1134   : > { %v14331_v52 = vpop.f32.mrb[114].mxu1  ;;  %v8115_v41 = vld [vmem:[%s13018_s4 + $0x78] sm:$0xff] }
0x1135   : > { %15914 = vst [vmem:[#allocation43_spill] sm:$0xff] %v14331_v52  ;;  %v11972_v5 = vpop.f32.mrb[115].mxu1 }
0x1136   : > { %v4060_v5 = vld [vmem:[%s14252_s2 + $0x8] sm:$0xff] }
0x113a   : > { %v14333_v62 = vpop.f32.mrb[116].mxu1 }
0x113b   : > { %15915 = vst [vmem:[#allocation44_spill] sm:$0xff] %v14333_v62  ;;  %v11987_v36 = vpop.f32.mrb[117].mxu1 }
0x113c   : > { %v14335_v58 = vpop.f32.mrb[118].mxu1  ;;  %v4140_v36 = vld [vmem:[%s14252_s2 + $0x38] sm:$0xff] }
0x113d   : > { %15916 = vst [vmem:[#allocation45_spill] sm:$0xff] %v14335_v58  ;;  %v11988_v45 = vpop.f32.mrb[119].mxu1 }
0x113e   : > { %v4089_v45 = vld [vmem:[%s14252_s2 + $0x18] sm:$0xff] }
0x1153   : > { %v7803_v49 = vpop.f32.mrb[120].mxu1 }
0x1154   : > { %v12007_v33 = vpop.f32.mrb[121].mxu1 }
0x1155   : > { %v7806_v26 = vpop.f32.mrb[122].mxu1  ;;  %v4218_v33 = vld [vmem:[%s14252_s2 + $0x68] sm:$0xff] }
0x1156   : > { %v14337_v22 = vpack.c.bf16 %v7806_v26, %v7803_v49  ;;  %v12008_v53 = vpop.f32.mrb[123].mxu1 }
0x1157   : > { %v4192_v53 = vld [vmem:[%s14252_s2 + $0x58] sm:$0xff] }
0x1158   : > { %15917 = vst [vmem:[#allocation46_spill] sm:$0xff] %v14337_v22  ;;  %v7811_v55 = vunpack.c.l.bf16 %v14337_v22  ;;  %v7812_v1 = vunpack.c.h.bf16 %v14337_v22 }
0x115a   : > { %v7813_v57 = vsub.f32 %v7803_v49, %v7811_v55  ;;  %v7814_v63 = vsub.f32 %v7806_v26, %v7812_v1  ;;  %v4169_v49 = vld [vmem:[%s14252_s2 + $0x48] sm:$0xff]  ;;  %v4247_v55 = vld [vmem:[%s14252_s2 + $0x78] sm:$0xff] }
0x115b   : > { %v4113_v26 = vld [vmem:[%s14252_s2 + $0x28] sm:$0xff] }
0x115c   : > { %v14341_v14 = vpack.c.bf16 %v7814_v63, %v7813_v57  ;;  %v4270_v1 = vld [vmem:[%s14252_s2 + $0x88] sm:$0xff]  ;;  %v8518_v57 = vld [vmem:[%s13018_s4 + $0x80] sm:$0xff] }
0x115d   : > { %v4379_v63 = vld [vmem:[%s15814_s17] sm:$0xff] }
0x115e   : > { %15918 = vst [vmem:[#allocation47_spill] sm:$0xff] %v14341_v14  ;;  %7905 = vrot.lane.b32.xlu1 %v14341_v14, %s15884_s6 }
0x1162   : > { %8120 = vperm.xlu1 %12696, %v8115_v41   ;;  %v4380_v41 = vld [vmem:[%s15814_s17 + $0x8] sm:$0xff] }
0x1166   : > { %4069 = vperm.xlu1 %12696, %v4060_v5   ;;  %v4381_v5 = vld [vmem:[%s15814_s17 + $0x10] sm:$0xff] }
0x116a   : > { %4149 = vperm.xlu1 %12696, %v4140_v36   ;;  %v14373_v36 = vpack.c.bf16 %v4380_v41, %v4379_v63 }
0x116e   : > { %4099 = vperm.xlu1 %12696, %v4089_v45   ;;  %v4382_v45 = vld [vmem:[%s15814_s17 + $0x18] sm:$0xff] }
0x1172   : > { %4178 = vperm.xlu1 %12696, %v4169_v49   ;;  %v14378_v49 = vpack.c.bf16 %v4382_v45, %v4381_v5 }
0x1176   : > { %4227 = vperm.xlu1 %12696, %v4218_v33   ;;  %v4385_v33 = vunpack.c.l.bf16 %v14373_v36 }
0x117a   : > { %4123 = vperm.xlu1 %12696, %v4113_v26   ;;  %v4386_v26 = vunpack.c.h.bf16 %v14373_v36 }
0x117e   : > { %4201 = vperm.xlu1 %12696, %v4192_v53   ;;  %v4387_v53 = vunpack.c.l.bf16 %v14378_v49 }
0x1180   : > { %v4391_v58 = vsub.f32 %v4381_v5, %v4387_v53 }
0x1182   : > { %4256 = vperm.xlu1 %12696, %v4247_v55   ;;  %v4388_v55 = vunpack.c.h.bf16 %v14378_v49 }
0x1184   : > { %v4392_v62 = vsub.f32 %v4382_v45, %v4388_v55 }
0x1186   : > { %4279 = vperm.xlu1 %12696, %v4270_v1   ;;  %v4389_v1 = vsub.f32 %v4379_v63, %v4385_v33  ;;  %v4394_v9 = vpack.c.bf16 %v4392_v62, %v4391_v58 }
0x118a   : > { %8521 = vperm.xlu1 %12696, %v8518_v57   ;;  %v4390_v57 = vsub.f32 %v4380_v41, %v4386_v26 }
0x118c   : > { %v4393_v52 = vpack.c.bf16 %v4390_v57, %v4389_v1 }
0x118e   : > { %5398 = vrot.lane.b32.xlu1 %v13954_v51, %s15884_s6  ;;  %11518 = vmatpush3.bf16.msra.mxu0 %v4393_v52 }
0x118f   : > { %11519 = vmatprep.subr.bf16.mxu0 %v15912_v6 }
0x1192   : > { %6203 = vrot.lane.b32.xlu1 %v14080_v42, %s15884_s6  ;;  %11520 = vmatpush3.bf16.msra.mxu0 %v4394_v9  ;;  %v8124_v9 = vsel %vm8122_vm9, 1.0, %v15912_v6 }
0x1193   : > { %11525 = vmatprep.subr.bf16.mxu0 %v15912_v6 }
0x1196   : > { %7009 = vrot.lane.b32.xlu1 %v14190_v3, %s15884_s6 }
0x119a   : > { %7817 = vrot.lane.b32.xlu1 %v14337_v22, %s15884_s6 }
0x11d0   : > { %v7906_v13 = vpop.permute.xlu1 %7905 }
0x11d1   : > { %12030 = vmatmul.mubr.msk.bf16.vlgmr.msra.gmra.mrb[124].mxu1 %vm776_vm1, %v7906_v13 }
0x11d2   : > { %12042 = vmatpush3.bf16.msra.mxu1 %v13970_v30  ;;  %12045 = vmatprep.mubr.msk.bf16.mxu1 %vm12803_vm0, %v15912_v6 }
0x11d3   : > { %12043 = vmatprep.subr.bf16.mxu1 %v15912_v6 }
0x11d6   : > { %12044 = vmatpush3.bf16.msra.mxu1 %v13980_v23 }
0x11d7   : > { %12057 = vmatprep.subr.bf16.mxu1 %v15912_v6 }
0x11d9   : > { %12046 = vmatmul.mubr.msk.bf16.vlgmr.msra.gmra.mrb[128].mxu1 %vm776_vm1, %v14337_v22 }
0x11da   : > { %12058 = vmatpush3.bf16.msra.mxu1 %v13918_v38  ;;  %12059 = vmatprep.mubr.msk.bf16.mxu1 %vm12803_vm0, %v15912_v6 }
0x11db   : > { %12063 = vmatprep.subr.bf16.mxu1 %v15912_v6 }
0x11e1   : > { %v8121_v13 = vpop.permute.xlu1 %8120 }
0x11e2   : > { %vm8123_vm10 = vcmp.eq.s32.totalorder %v13074_v46, %v8121_v13 }
0x11e3   : > { %v8125_v52 = vsel %vm8123_vm10, 1.0, %v15912_v6 }
0x11e4   : > { %v8126_v62 = vpack.c.bf16 %v8125_v52, %v8124_v9 }
0x11e5   : > { %v4070_v58 = vpop.permute.xlu1 %4069 }
0x11e6   : > { %12060 = vmatmul.mubr.msk.bf16.vlgmr.msra.gmra.mrb[132].mxu1 %vm982_vm4, %v8126_v62  ;;  %v4079_v5 = vmul.f32 %v14295_v31, %v4070_v58 }
0x11e7   : > { %12064 = vmatpush3.bf16.msra.mxu1 %v13906_v32  ;;  %12065 = vmatprep.mubr.msk.bf16.mxu1 %vm12803_vm0, %v15912_v6 }
0x11e8   : > { %12085 = vmatprep.subr.bf16.mxu1 %v15912_v6  ;;  %v4087_v26 = vadd.f32 %v14308_v43, %v4079_v5 }
0x11e9   : > { %v4150_v63 = vpop.permute.xlu1 %4149 }
0x11ea   : > { %v4159_v53 = vmul.f32 %v14295_v31, %v4150_v63 }
0x11ec   : > { %v4167_v9 = vadd.f32 %v14308_v43, %v4159_v53  ;;  %v14433_v53 = vld [vmem:[#allocation2 + $0x10] sm:$0xff] }
0x11ed   : > { %v4100_v24 = vpop.permute.xlu1 %4099 }
0x11ee   : > { %v4109_v33 = vmul.f32 %v14300_v39, %v4100_v24 }
0x11f0   : > { %v4111_v1 = vadd.f32 %v4109_v33, %v4087_v26  ;;  %v4306_v26 = vmul.f32 %v14426_v11, %v14426_v11 }
0x11f1   : > { %v4179_v41 = vpop.permute.xlu1 %4178 }
0x11f2   : > { %12066 = vmatmul.mubr.msk.bf16.vlgmr.msra.gmra.mrb[132].mxu1 %vm982_vm4, %v8126_v62  ;;  %v4188_v57 = vmul.f32 %v14300_v39, %v4179_v41 }
0x11f3   : > { %12086 = vmatpush3.bf16.msra.mxu1 %v13939_v10  ;;  %12089 = vmatprep.mubr.msk.bf16.mxu1 %vm12803_vm0, %v15912_v6 }
0x11f4   : > { %12087 = vmatprep.subr.bf16.mxu1 %v15912_v6  ;;  %v4190_v58 = vadd.f32 %v4188_v57, %v4167_v9  ;;  %v4308_v9 = vsel %vm776_vm1, %v4306_v26, 0.0 }
0x11f5   : > { %v4228_v45 = vpop.permute.xlu1 %4227 }
0x11f6   : > { %v4237_v5 = vmul.f32 %v14295_v31, %v4228_v45  ;;  %v4296_v31 = vsel %vm776_vm1, %v14426_v11, 0.0 }
0x11f7   : > { %12088 = vmatpush3.bf16.msra.mxu1 %v13945_v21 }
0x11f8   : > { %12101 = vmatprep.subr.bf16.mxu1 %v15912_v6  ;;  %v4245_v33 = vadd.f32 %v14308_v43, %v4237_v5  ;;  %v4320_v5 = vsel %vm776_vm1, %v14433_v53, 0.0 }
0x11f9   : > { %v4124_v55 = vpop.permute.xlu1 %4123 }
0x11fa   : > { %v4133_v13 = vmul.f32 %v14314_v17, %v4124_v55 }
0x11fc   : > { %v4135_v52 = vadd.f32 %v4133_v13, %v4111_v1 }
0x11fd   : > { %v4202_v62 = vpop.permute.xlu1 %4201 }
0x11fe   : > { %4137 = vst.msk [vmem:[#allocation2 + $0x8] sm:$0xff] %vm776_vm1, %v4135_v52  ;;  %v4211_v24 = vmul.f32 %v14314_v17, %v4202_v62  ;;  %v4330_v62 = vmul.f32 %v14433_v53, %v14433_v53 }
0x1200   : > { %v4213_v63 = vadd.f32 %v4211_v24, %v4190_v58 }
0x1201   : > { %v4257_v7 = vpop.permute.xlu1 %4256 }
0x1202   : > { %4215 = vst.msk [vmem:[#allocation2 + $0x18] sm:$0xff] %vm776_vm1, %v4213_v63  ;;  %v4266_v41 = vmul.f32 %v14300_v39, %v4257_v7 }
0x1204   : > { %v4268_v45 = vadd.f32 %v4266_v41, %v4245_v33 }
0x1205   : > { %v4280_v55 = vpop.permute.xlu1 %4279  ;;  %v14435_v1 = vld [vmem:[#allocation2 + $0x8] sm:$0xff] }
0x1206   : > { %v4289_v57 = vmul.f32 %v14314_v17, %v4280_v55  ;;  %v4297_v13 = vsel %vm776_vm1, %v14435_v1, 0.0  ;;  %v4307_v7 = vmul.f32 %v14435_v1, %v14435_v1  ;;  %v4332_v55 = vsel %vm776_vm1, %v4330_v62, 0.0 }
0x1207   : > { %v4298_v39 = vadd.f32 %v4297_v13, %v4296_v31 }
0x1208   : > { %v4291_v43 = vadd.f32 %v4289_v57, %v4268_v45  ;;  %v4309_v52 = vsel %vm776_vm1, %v4307_v7, 0.0  ;;  %v14459_v45 = vld [vmem:[#allocation2 + $0x20] sm:$0xff] }
0x1209   : > { %v14448_v58 = vld [vmem:[#allocation2 + $0x18] sm:$0xff]  ;;  %v4310_v24 = vadd.f32 %v4309_v52, %v4308_v9  ;;  %v4299_v17 = vrot.slane %v4298_v39, 4  ;;  %v4354_v60 = vmul.f32 %v14459_v45, %v14459_v45  ;;  %v4344_v3 = vsel %vm776_vm1, %v14459_v45, 0.0 }
0x120a   : > { %4293 = vst.msk [vmem:[#allocation2 + $0x28] sm:$0xff] %vm776_vm1, %v4291_v43  ;;  %v4321_v63 = vsel %vm776_vm1, %v14448_v58, 0.0  ;;  %v4331_v41 = vmul.f32 %v14448_v58, %v14448_v58 }
0x120b   : > { %v4311_v33 = vrot.slane %v4310_v24, 4  ;;  %v4322_v26 = vadd.f32 %v4321_v63, %v4320_v5  ;;  %v4300_v7 = vadd.f32 %v4299_v17, %v4298_v39 }
0x120c   : > { %v4333_v31 = vsel %vm776_vm1, %v4331_v41, 0.0 }
0x120d   : > { %v4323_v57 = vrot.slane %v4322_v26, 4  ;;  %v4334_v13 = vadd.f32 %v4333_v31, %v4332_v55  ;;  %v4312_v43 = vadd.f32 %v4311_v33, %v4310_v24  ;;  %v4301_v5 = vrot.slane %v4300_v7, 2 }
0x120e   : > { %v4356_v24 = vsel %vm776_vm1, %v4354_v60, 0.0 }
0x120f   : > { %v4324_v9 = vadd.f32 %v4323_v57, %v4322_v26  ;;  %v4335_v52 = vrot.slane %v4334_v13, 4  ;;  %v4313_v63 = vrot.slane %v4312_v43, 2  ;;  %v4302_v31 = vadd.f32 %v4301_v5, %v4300_v7 }
0x1211   : > { %v4343_v14 = vld [vmem:[#allocation2 + $0x28] sm:$0xff]  ;;  %v4325_v22 = vrot.slane %v4324_v9, 2  ;;  %v4336_v29 = vadd.f32 %v4335_v52, %v4334_v13  ;;  %v4314_v13 = vadd.f32 %v4313_v63, %v4312_v43  ;;  %v4303_v0 = vrot.slane %v4302_v31, 1 }
0x1212   : > { %v4355_v56 = vmul.f32 %v4343_v14, %v4343_v14  ;;  %v4345_v62 = vsel %vm776_vm1, %v4343_v14, 0.0 }
0x1213   : > { %v4337_v41 = vrot.slane %v4336_v29, 2  ;;  %v4326_v55 = vadd.f32 %v4325_v22, %v4324_v9  ;;  %v4346_v39 = vadd.f32 %v4345_v62, %v4344_v3  ;;  %v4315_v37 = vrot.slane %v4314_v13, 1 }
0x1214   : > { %v4357_v17 = vsel %vm776_vm1, %v4355_v56, 0.0  ;;  %v4304_v62 = vadd.f32 %v4303_v0, %v4302_v31 }
0x1215   : > { %v4338_v33 = vadd.f32 %v4337_v41, %v4336_v29  ;;  %v4358_v26 = vadd.f32 %v4357_v17, %v4356_v24  ;;  %v4347_v57 = vrot.slane %v4346_v39, 4  ;;  %v4327_v2 = vrot.slane %v4326_v55, 1 }
0x1216   : > { %v4316_v29 = vadd.f32 %v4315_v37, %v4314_v13 }
0x1217   : > { %v4359_v52 = vrot.slane %v4358_v26, 4  ;;  %v4348_v27 = vadd.f32 %v4347_v57, %v4346_v39  ;;  %v4339_v25 = vrot.slane %v4338_v33, 1  ;;  %v4328_v22 = vadd.f32 %v4327_v2, %v4326_v55 }
0x1219   : > { %v4360_v19 = vadd.f32 %v4359_v52, %v4358_v26  ;;  %v4349_v61 = vrot.slane %v4348_v27, 2  ;;  %v4340_v9 = vadd.f32 %v4339_v25, %v4338_v33  ;;  %v4329_v7 = vadd.f32 %v4328_v22, %v4304_v62 }
0x121b   : > { %v4361_v28 = vrot.slane %v4360_v19, 2  ;;  %v4350_v3 = vadd.f32 %v4349_v61, %v4348_v27  ;;  %v4341_v43 = vadd.f32 %v4340_v9, %v4316_v29  ;;  %v10495_v29 = vld [vmem:[%s15814_s17 + $0x28] sm:$0xff] }
0x121d   : > { %v4362_v60 = vadd.f32 %v4361_v28, %v4360_v19  ;;  %v4351_v56 = vrot.slane %v4350_v3, 1 }
0x121f   : > { %v4363_v41 = vrot.slane %v4362_v60, 1  ;;  %v4352_v5 = vadd.f32 %v4351_v56, %v4350_v3  ;;  %v10494_v56 = vld [vmem:[%s15814_s17 + $0x20] sm:$0xff] }
0x1221   : > { %v4364_v63 = vadd.f32 %v4363_v41, %v4362_v60  ;;  %v4353_v24 = vadd.f32 %v4352_v5, %v4329_v7  ;;  %v4551_v41 = vpack.c.bf16 %v10495_v29, %v10494_v56  ;;  %v10496_v7 = vld [vmem:[%s15814_s17 + $0x30] sm:$0xff]  ;;  %v10497_v5 = vld [vmem:[%s15814_s17 + $0x38] sm:$0xff] }
0x1223   : > { %v4365_v39 = vadd.f32 %v4364_v63, %v4341_v43  ;;  %v14468_v17 = vmul.f32 0.020833334, %v4353_v24  ;;  %v4553_v43 = vunpack.c.l.bf16 %v4551_v41  ;;  %v4554_v63 = vunpack.c.h.bf16 %v4551_v41 }
0x1224   : > { %v4552_v24 = vpack.c.bf16 %v10497_v5, %v10496_v7 }
0x1225   : > { %v4367_v26 = vmul.f32 0.020833334, %v4365_v39  ;;  %v4368_v57 = vmul.f32 %v14468_v17, %v14468_v17  ;;  %v4373_v19 = vsub.f32 %v14426_v11, %v14468_v17  ;;  %v4374_v37 = vsub.f32 %v14435_v1, %v14468_v17 }
0x1226   : > { %v4702_v25 = vsub.f32 %v14459_v45, %v14468_v17  ;;  %v4703_v27 = vsub.f32 %v4343_v14, %v14468_v17 }
0x1227   : > { %v4369_v2 = vsub.f32 %v4367_v26, %v4368_v57  ;;  %v4557_v57 = vsub.f32 %v10494_v56, %v4553_v43 }
0x1229   : > { %v4370_v61 = vadd.f32 1e-05, %v4369_v2  ;;  %v4558_v2 = vsub.f32 %v10495_v29, %v4554_v63 }
0x122b   : > { %12703 = vrsqrt.f32 %v4370_v61  ;;  %v4555_v61 = vunpack.c.l.bf16 %v4552_v24 }
0x1235   : > { %v12704_v0 = vpop.eup %12703 }
0x1236   : > { %v4375_v28 = vmul.f32 %v12704_v0, %v4373_v19  ;;  %v4376_v55 = vmul.f32 %v12704_v0, %v4374_v37  ;;  %v4704_v33 = vmul.f32 %v12704_v0, %v4702_v25  ;;  %v4705_v31 = vmul.f32 %v12704_v0, %v4703_v27 }
0x1237   : > { %v4556_v19 = vunpack.c.h.bf16 %v4552_v24  ;;  %v4559_v27 = vsub.f32 %v10496_v7, %v4555_v61 }
0x1238   : > { %v4377_v13 = vmax.f32 %v4375_v28, 0.0  ;;  %v4378_v52 = vmax.f32 %v4376_v55, 0.0  ;;  %v4706_v22 = vmax.f32 %v4704_v33, 0.0  ;;  %v4707_v3 = vmax.f32 %v4705_v31, 0.0 }
0x1239   : > { %v4560_v28 = vsub.f32 %v10497_v5, %v4556_v19  ;;  %v4540_v33 = vsub.f32 %v14433_v53, %v14468_v17  ;;  %v10501_v53 = vld [vmem:[%s15814_s17 + $0x40] sm:$0xff] }
0x123a   : > { %v4395_v9 = vpack.c.bf16 %v4378_v52, %v4377_v13  ;;  %v14479_v60 = vpack.c.bf16 %v4707_v3, %v4706_v22 }
0x123b   : > { %v4562_v31 = vpack.c.bf16 %v4560_v28, %v4559_v27  ;;  %v12717_v27 = vld [vmem:[%s15807_s10] sm:$0xff] }
0x123c   : > { %11522 = vmatmul.mubr.msk.bf16.vlgmr.msra.gmra.mrb[44].mxu0 %vm776_vm1, %v4395_v9  ;;  %v4726_v11 = vunpack.c.l.bf16 %v14479_v60  ;;  %v4727_v14 = vunpack.c.h.bf16 %v14479_v60  ;;  %v4396_v39 = vunpack.c.l.bf16 %v4395_v9  ;;  %v4397_v26 = vunpack.c.h.bf16 %v4395_v9 }
0x123d   : > { %11526 = vmatpush3.bf16.msra.mxu0 %v14373_v36  ;;  %11529 = vmatprep.mubr.msk.bf16.mxu0 %vm12803_vm0, %v15912_v6 }
0x123e   : > { %11527 = vmatprep.subr.bf16.mxu0 %v15912_v6  ;;  %v14488_v1 = vsub.f32 %v4706_v22, %v4726_v11  ;;  %v14490_v45 = vsub.f32 %v4707_v3, %v4727_v14  ;;  %v4398_v37 = vsub.f32 %v4377_v13, %v4396_v39  ;;  %v4399_v25 = vsub.f32 %v4378_v52, %v4397_v26  ;;  %v10504_v11 = vld [vmem:[%s15814_s17 + $0x58] sm:$0xff] }
0x123f   : > { %v4542_v13 = vmul.f32 %v12704_v0, %v4540_v33  ;;  %v5073_v33 = vunpack.c.l.bf16 %v13879_v15 }
0x1240   : > { %v4730_v62 = vpack.c.bf16 %v14490_v45, %v14488_v1  ;;  %v4400_v55 = vpack.c.bf16 %v4399_v25, %v4398_v37  ;;  %v5083_v1 = vunpack.c.h.bf16 %v13904_v18 }
0x1241   : > { %11528 = vmatpush3.bf16.msra.mxu0 %v14378_v49  ;;  %v4544_v22 = vmax.f32 %v4542_v13, 0.0  ;;  %v12719_v13 = vld [vmem:[%s15807_s10 + $0x10] sm:$0xff] }
0x1242   : > { %11533 = vmatprep.subr.bf16.mxu0 %v15912_v6 }
0x1248   : > { %11530 = vmatmul.mubr.msk.bf16.vlgmr.msra.gmra.mrb[44].mxu0 %vm776_vm1, %v4395_v9 }
0x1249   : > { %11534 = vmatpush3.bf16.msra.mxu0 %v14373_v36  ;;  %11537 = vmatprep.mubr.msk.bf16.mxu0 %vm12803_vm0, %v15912_v6  ;;  %v4561_v36 = vpack.c.bf16 %v4558_v2, %v4557_v57 }
0x124a   : > { %11535 = vmatprep.subr.bf16.mxu0 %v15912_v6 }
0x124d   : > { %11536 = vmatpush3.bf16.msra.mxu0 %v14378_v49  ;;  %v4541_v49 = vsub.f32 %v14448_v58, %v14468_v17  ;;  %v10502_v58 = vld [vmem:[%s15814_s17 + $0x48] sm:$0xff] }
0x124e   : > { %11541 = vmatprep.subr.bf16.mxu0 %v15912_v6  ;;  %v4713_v17 = vpack.c.bf16 %v10502_v58, %v10501_v53 }
0x124f   : > { %v4543_v52 = vmul.f32 %v12704_v0, %v4541_v49  ;;  %v10503_v0 = vld [vmem:[%s15814_s17 + $0x50] sm:$0xff]  ;;  %v5074_v49 = vunpack.c.h.bf16 %v13879_v15 }
0x1250   : > { %v4715_v14 = vunpack.c.l.bf16 %v4713_v17  ;;  %v4716_v56 = vunpack.c.h.bf16 %v4713_v17  ;;  %v4714_v29 = vpack.c.bf16 %v10504_v11, %v10503_v0 }
0x1251   : > { %v4545_v3 = vmax.f32 %v4543_v52, 0.0  ;;  %v5077_v52 = vsub.f32 %v12719_v13, %v5073_v33  ;;  %v12726_v33 = vld [vmem:[%s15808_s11 + $0x8] sm:$0xff]  ;;  %v5252_v13 = vunpack.c.h.bf16 %v13980_v23 }
0x1252   : > { %v4719_v43 = vsub.f32 %v10501_v53, %v4715_v14  ;;  %v4720_v63 = vsub.f32 %v10502_v58, %v4716_v56  ;;  %v4717_v39 = vunpack.c.l.bf16 %v4714_v29  ;;  %v4718_v26 = vunpack.c.h.bf16 %v4714_v29  ;;  %v12722_v56 = vld [vmem:[%s15806_s9 + $0x8] sm:$0xff] }
0x1253   : > { %v4563_v9 = vpack.c.bf16 %v4545_v3, %v4544_v22  ;;  %v5233_v53 = vunpack.c.l.bf16 %v13939_v10  ;;  %v5234_v58 = vunpack.c.h.bf16 %v13939_v10 }
0x1254   : > { %11538 = vmatmul.mubr.msk.bf16.vlgmr.msra.gmra.mrb[44].mxu0 %vm776_vm1, %v4400_v55  ;;  %v4721_v61 = vsub.f32 %v10503_v0, %v4717_v39  ;;  %v4722_v19 = vsub.f32 %v10504_v11, %v4718_v26  ;;  %v12721_v11 = vld [vmem:[%s15806_s9] sm:$0xff]  ;;  %v12723_v39 = vld [vmem:[%s15806_s9 + $0x10] sm:$0xff] }
0x1255   : > { %11542 = vmatpush3.bf16.msra.mxu0 %v4561_v36  ;;  %11545 = vmatprep.mubr.msk.bf16.mxu0 %vm12803_vm0, %v15912_v6  ;;  %v4564_v7 = vunpack.c.l.bf16 %v4563_v9  ;;  %v4565_v5 = vunpack.c.h.bf16 %v4563_v9  ;;  %v5072_v36 = vunpack.c.h.bf16 %v13869_v12  ;;  %v5237_v14 = vsub.f32 %v12721_v11, %v5233_v53 }
0x1256   : > { %11543 = vmatprep.subr.bf16.mxu0 %v15912_v6  ;;  %v4724_v25 = vpack.c.bf16 %v4722_v19, %v4721_v61  ;;  %v14624_v19 = vpop.permute.xlu1 %8521 }
0x1257   : > { %v4566_v57 = vsub.f32 %v4544_v22, %v4564_v7  ;;  %v4567_v2 = vsub.f32 %v4545_v3, %v4565_v5  ;;  %v12720_v22 = vld [vmem:[%s15807_s10 + $0x18] sm:$0xff]  ;;  %v5236_v7 = vunpack.c.h.bf16 %v13945_v21  ;;  %vm8526_vm11 = vcmp.eq.s32.totalorder %v13074_v46, %v14624_v19 }
0x1258   : > { %v5078_v3 = vsub.f32 %v12720_v22, %v5074_v49  ;;  %v12727_v22 = vld [vmem:[%s15808_s11 + $0x10] sm:$0xff] }
0x1259   : > { %11544 = vmatpush3.bf16.msra.mxu0 %v4562_v31  ;;  %v4568_v37 = vpack.c.bf16 %v4567_v2, %v4566_v57  ;;  %v12724_v57 = vld [vmem:[%s15806_s9 + $0x18] sm:$0xff] }
0x125a   : > { %11549 = vmatprep.subr.bf16.mxu0 %v15912_v6  ;;  %v5240_v2 = vsub.f32 %v12724_v57, %v5236_v7  ;;  %v5267_v57 = vunpack.c.h.bf16 %v14033_v47 }
0x1260   : > { %11546 = vmatmul.mubr.msk.bf16.vlgmr.msra.gmra.mrb[44].mxu0 %vm776_vm1, %v4563_v9 }
0x1261   : > { %11550 = vmatpush3.bf16.msra.mxu0 %v4551_v41  ;;  %11553 = vmatprep.mubr.msk.bf16.mxu0 %vm12803_vm0, %v15912_v6 }
0x1262   : > { %11551 = vmatprep.subr.bf16.mxu0 %v15912_v6 }
0x1265   : > { %11552 = vmatpush3.bf16.msra.mxu0 %v4552_v24 }
0x1266   : > { %11557 = vmatprep.subr.bf16.mxu0 %v15912_v6 }
0x126c   : > { %11554 = vmatmul.mubr.msk.bf16.vlgmr.msra.gmra.mrb[44].mxu0 %vm776_vm1, %v4563_v9  ;;  %v5080_v9 = vpack.c.bf16 %v5078_v3, %v5077_v52 }
0x126d   : > { %11558 = vmatpush3.bf16.msra.mxu0 %v4551_v41  ;;  %11561 = vmatprep.mubr.msk.bf16.mxu0 %vm12803_vm0, %v15912_v6  ;;  %v4723_v41 = vpack.c.bf16 %v4720_v63, %v4719_v43  ;;  %v5085_v43 = vsub.f32 %v13896_v16, %v5083_v1 }
0x126e   : > { %11559 = vmatprep.subr.bf16.mxu0 %v15912_v6 }
0x1271   : > { %11560 = vmatpush3.bf16.msra.mxu0 %v4552_v24  ;;  %v5071_v24 = vunpack.c.l.bf16 %v13869_v12 }
0x1272   : > { %11565 = vmatprep.subr.bf16.mxu0 %v15912_v6 }
0x1273   : > { %v5075_v28 = vsub.f32 %v12717_v27, %v5071_v24  ;;  %v5250_v27 = vunpack.c.h.bf16 %v13970_v30 }
0x1275   : > { %v5254_v49 = vsub.f32 %v12726_v33, %v5250_v27  ;;  %v12731_v27 = vld [vmem:[%s15808_s11 + $0x30] sm:$0xff] }
0x1278   : > { %11562 = vmatmul.mubr.msk.bf16.vlgmr.msra.gmra.mrb[44].mxu0 %vm776_vm1, %v4568_v37 }
0x1279   : > { %11566 = vmatpush3.bf16.msra.mxu0 %v4723_v41  ;;  %11569 = vmatprep.mubr.msk.bf16.mxu0 %vm12803_vm0, %v15912_v6 }
0x127a   : > { %11567 = vmatprep.subr.bf16.mxu0 %v15912_v6 }
0x127d   : > { %11568 = vmatpush3.bf16.msra.mxu0 %v4724_v25 }
0x127e   : > { %11573 = vmatprep.subr.bf16.mxu0 %v15912_v6 }
0x1284   : > { %11570 = vmatmul.mubr.msk.bf16.vlgmr.msra.gmra.mrb[44].mxu0 %vm776_vm1, %v14479_v60 }
0x1285   : > { %11574 = vmatpush3.bf16.msra.mxu0 %v4713_v17  ;;  %11577 = vmatprep.mubr.msk.bf16.mxu0 %vm12803_vm0, %v15912_v6 }
0x1286   : > { %11575 = vmatprep.subr.bf16.mxu0 %v15912_v6 }
0x1289   : > { %11576 = vmatpush3.bf16.msra.mxu0 %v4714_v29 }
0x128a   : > { %11581 = vmatprep.subr.bf16.mxu0 %v15912_v6 }
0x1290   : > { %11578 = vmatmul.mubr.msk.bf16.vlgmr.msra.gmra.mrb[44].mxu0 %vm776_vm1, %v14479_v60  ;;  %v12718_v60 = vld [vmem:[%s15807_s10 + $0x8] sm:$0xff] }
0x1291   : > { %11582 = vmatpush3.bf16.msra.mxu0 %v4713_v17  ;;  %11585 = vmatprep.mubr.msk.bf16.mxu0 %vm12803_vm0, %v15912_v6  ;;  %v5076_v55 = vsub.f32 %v12718_v60, %v5072_v36  ;;  %v5082_v17 = vunpack.c.l.bf16 %v13904_v18  ;;  %v5249_v36 = vunpack.c.l.bf16 %v13970_v30  ;;  %v12725_v60 = vld [vmem:[%s15808_s11] sm:$0xff] }
0x1292   : > { %11583 = vmatprep.subr.bf16.mxu0 %v15912_v6 }
0x1293   : > { %v5079_v31 = vpack.c.bf16 %v5076_v55, %v5075_v28  ;;  %v5084_v5 = vsub.f32 %v13894_v35, %v5082_v17  ;;  %v5399_v28 = vpop.permute.xlu1 %5398  ;;  %v5253_v55 = vsub.f32 %v12725_v60, %v5249_v36  ;;  %v5269_v36 = vunpack.c.h.bf16 %v14043_v59  ;;  %v12732_v60 = vld [vmem:[%s15808_s11 + $0x38] sm:$0xff] }
0x1295   : > { %11584 = vmatpush3.bf16.msra.mxu0 %v4714_v29  ;;  %v5238_v29 = vsub.f32 %v12722_v56, %v5234_v58  ;;  %v5086_v41 = vpack.c.bf16 %v5085_v43, %v5084_v5  ;;  %v14652_v52 = vpack.c.bf16 %v5254_v49, %v5253_v55  ;;  %v8528_v43 = vsel %vm8526_vm11, 1.0, %v15912_v6  ;;  %v10493_v49 = vld [vmem:[%s15815_s18] ss:$0 sm:$0xff] }
0x1296   : > { %11613 = vmatprep.subr.bf16.mxu0 %v15912_v6  ;;  %v5273_v55 = vsub.f32 %v12732_v60, %v5269_v36 }
0x1297   : > { %v14612_v63 = vpack.c.bf16 %v5238_v29, %v5237_v14 }
0x129c   : > { %11586 = vmatmul.mubr.msk.bf16.vlgmr.msra.gmra.mrb[44].mxu0 %vm776_vm1, %v4730_v62 }
0x129d   : > { %11614 = vmatpush3.bf16.msra.mxu0 %v5079_v31  ;;  %11617 = vmatprep.mubr.msk.bf16.mxu0 %vm12803_vm0, %v15912_v6  ;;  %v5251_v31 = vunpack.c.l.bf16 %v13980_v23 }
0x129e   : > { %11615 = vmatprep.subr.bf16.mxu0 %v15912_v6 }
0x129f   : > { %v5255_v3 = vsub.f32 %v12727_v22, %v5251_v31 }
0x12a1   : > { %11616 = vmatpush3.bf16.msra.mxu0 %v5080_v9  ;;  %v12728_v9 = vld [vmem:[%s15808_s11 + $0x18] sm:$0xff] }
0x12a2   : > { %11629 = vmatprep.subr.bf16.mxu0 %v15912_v6  ;;  %v5256_v53 = vsub.f32 %v12728_v9, %v5252_v13 }
0x12a4   : > { %v14591_v45 = vpop.f32.mrb[124].mxu1  ;;  %11618 = vmatmul.mubr.msk.bf16.vlgmr.msra.gmra.mrb[48].mxu0 %vm776_vm1, %v13904_v18  ;;  %v5235_v18 = vunpack.c.l.bf16 %v13945_v21  ;;  %v14663_v58 = vpack.c.bf16 %v5256_v53, %v5255_v3 }
0x12a5   : > { %v12031_v62 = vpop.f32.mrb[125].mxu1  ;;  %11630 = vmatpush3.bf16.msra.mxu0 %v13869_v12  ;;  %11633 = vmatprep.mubr.msk.bf16.mxu0 %vm12803_vm0, %v15912_v6 }
0x12a6   : > { %v14596_v0 = vpop.f32.mrb[126].mxu1  ;;  %11631 = vmatprep.subr.bf16.mxu0 %v15912_v6  ;;  %v5239_v26 = vsub.f32 %v12723_v39, %v5235_v18 }
0x12a7   : > { %v12032_v12 = vpop.f32.mrb[127].mxu1 }
0x12a8   : > { %v14629_v25 = vpack.c.bf16 %v5240_v2, %v5239_v26  ;;  %v8519_v12 = vld [vmem:[%s13018_s4 + $0x88] sm:$0xff]  ;;  %v5266_v26 = vunpack.c.l.bf16 %v14033_v47  ;;  %s10631_s4 = sshll.u32 %s12951_s5, 8  ;;  %s12807_s5 = smov [#allocation3]  }
0x12a9   : > { %11632 = vmatpush3.bf16.msra.mxu0 %v13879_v15  ;;  %s15752_s1 = scalar_lea.hbm %s15820_s23, %s10631_s4 }
0x12aa   : > { %11649 = vmatprep.subr.bf16.mxu0 %v15912_v6 }
0x12ac   : > { %v14621_v61 = vpop.f32.mrb[128].mxu1  ;;  %11634 = vmatmul.mubr.msk.bf16.vlgmr.msra.gmra.mrb[52].mxu0 %vm776_vm1, %v5086_v41 }
0x12ad   : > { %v12047_v15 = vpop.f32.mrb[129].mxu1  ;;  %11650 = vmatpush3.bf16.msra.mxu0 %v14612_v63  ;;  %11653 = vmatprep.mubr.msk.bf16.mxu0 %vm12803_vm0, %v15912_v6 }
0x12ae   : > { %v14627_v37 = vpop.f32.mrb[130].mxu1  ;;  %11651 = vmatprep.subr.bf16.mxu0 %v15912_v6  ;;  %v12730_v15 = vld [vmem:[%s15808_s11 + $0x28] sm:$0xff] }
0x12af   : > { %v12048_v24 = vpop.f32.mrb[131].mxu1  ;;  %v5271_v19 = vsub.f32 %v12730_v15, %v5267_v57 }
0x12b0   : > { %v5268_v24 = vunpack.c.l.bf16 %v14043_v59 }
0x12b1   : > { %11652 = vmatpush3.bf16.msra.mxu0 %v14629_v25 }
0x12b2   : > { %11657 = vmatprep.subr.bf16.mxu0 %v15912_v6 }
0x12b4   : > { %11654 = vmatmul.mubr.msk.bf16.vlgmr.msra.gmra.mrb[56].mxu0 %vm776_vm1, %v5399_v28 }
0x12b5   : > { %11658 = vmatpush3.bf16.msra.mxu0 %v13939_v10  ;;  %11661 = vmatprep.mubr.msk.bf16.mxu0 %vm12803_vm0, %v15912_v6 }
0x12b6   : > { %11659 = vmatprep.subr.bf16.mxu0 %v15912_v6 }
0x12b9   : > { %11660 = vmatpush3.bf16.msra.mxu0 %v13945_v21 }
0x12ba   : > { %11673 = vmatprep.subr.bf16.mxu0 %v15912_v6 }
0x12bc   : > { %11662 = vmatmul.mubr.msk.bf16.vlgmr.msra.gmra.mrb[60].mxu0 %vm776_vm1, %v5399_v28  ;;  %v5272_v28 = vsub.f32 %v12731_v27, %v5268_v24 }
0x12bd   : > { %11674 = vmatpush3.bf16.msra.mxu0 %v14652_v52  ;;  %11677 = vmatprep.mubr.msk.bf16.mxu0 %vm12803_vm0, %v15912_v6 }
0x12be   : > { %11675 = vmatprep.subr.bf16.mxu0 %v15912_v6  ;;  %v14753_v33 = vpack.c.bf16 %v5273_v55, %v5272_v28  ;;  %v12735_v55 = vld [vmem:[%s15808_s11 + $0x50] sm:$0xff] }
0x12c1   : > { %11676 = vmatpush3.bf16.msra.mxu0 %v14663_v58 }
0x12c2   : > { %11689 = vmatprep.subr.bf16.mxu0 %v15912_v6 }
0x12c4   : > { %11678 = vmatmul.mubr.msk.bf16.vlgmr.msra.gmra.mrb[64].mxu0 %vm776_vm1, %v13954_v51 }
0x12c5   : > { %v8205_v17 = vpop.f32.mrb[132].mxu1  ;;  %11690 = vmatpush3.bf16.msra.mxu0 %v13970_v30  ;;  %11693 = vmatprep.mubr.msk.bf16.mxu0 %vm12803_vm0, %v15912_v6 }
0x12c6   : > { %v12067_v1 = vpop.f32.mrb[133].mxu1  ;;  %11691 = vmatprep.subr.bf16.mxu0 %v15912_v6 }
0x12c7   : > { %v8208_v62 = vpop.f32.mrb[134].mxu1 }
0x12c8   : > { %v14676_v11 = vpack.c.bf16 %v8208_v62, %v8205_v17  ;;  %v12068_v14 = vpop.f32.mrb[135].mxu1 }
0x12c9   : > { %11692 = vmatpush3.bf16.msra.mxu0 %v13980_v23  ;;  %v5284_v14 = vunpack.c.h.bf16 %v14096_v44 }
0x12ca   : > { %v8213_v56 = vunpack.c.l.bf16 %v14676_v11  ;;  %v8214_v29 = vunpack.c.h.bf16 %v14676_v11  ;;  %11709 = vmatprep.subr.bf16.mxu0 %v15912_v6 }
0x12cc   : > { %v8215_v51 = vsub.f32 %v8205_v17, %v8213_v56  ;;  %v8216_v18 = vsub.f32 %v8208_v62, %v8214_v29  ;;  %11694 = vmatmul.mubr.msk.bf16.vlgmr.msra.gmra.mrb[68].mxu0 %vm776_vm1, %v13958_v54  ;;  %v5283_v17 = vunpack.c.l.bf16 %v14096_v44  ;;  %v6204_v29 = vpop.permute.xlu1 %6203 }
0x12cd   : > { %11710 = vmatpush3.bf16.msra.mxu0 %v14612_v63  ;;  %11713 = vmatprep.mubr.msk.bf16.mxu0 %vm12803_vm0, %v15912_v6 }
0x12ce   : > { %v14684_v7 = vpack.c.bf16 %v8216_v18, %v8215_v51  ;;  %11711 = vmatprep.subr.bf16.mxu0 %v15912_v6 }
0x12d0   : > { %8307 = vrot.lane.b32.xlu0 %v14684_v7, %s15884_s6 }
0x12d1   : > { %11712 = vmatpush3.bf16.msra.mxu0 %v14629_v25 }
0x12d2   : > { %11717 = vmatprep.subr.bf16.mxu0 %v15912_v6 }
0x12d4   : > { %8524 = vperm.xlu0 %12695, %v8519_v12  }
0x12d8   : > { %5799 = vrot.lane.b32.xlu0 %v14017_v34, %s15884_s6 }
0x12dc   : > { %6607 = vrot.lane.b32.xlu0 %v14143_v20, %s15884_s6 }
0x12e0   : > { %7413 = vrot.lane.b32.xlu0 %v14237_v48, %s15884_s6 }
0x12e4   : > { %8219 = vrot.lane.b32.xlu0 %v14676_v11, %s15884_s6 }
0x1342   : > { %v8308_v54 = vpop.permute.xlu0 %8307 }
0x1343   : > { %12090 = vmatmul.mubr.msk.bf16.vlgmr.msra.gmra.mrb[136].mxu1 %vm776_vm1, %v8308_v54 }
0x1344   : > { %12102 = vmatpush3.bf16.msra.mxu1 %v14033_v47  ;;  %12105 = vmatprep.mubr.msk.bf16.mxu1 %vm12803_vm0, %v15912_v6 }
0x1345   : > { %12103 = vmatprep.subr.bf16.mxu1 %v15912_v6 }
0x1348   : > { %12104 = vmatpush3.bf16.msra.mxu1 %v14043_v59 }
0x1349   : > { %12117 = vmatprep.subr.bf16.mxu1 %v15912_v6 }
0x134b   : > { %12106 = vmatmul.mubr.msk.bf16.vlgmr.msra.gmra.mrb[140].mxu1 %vm776_vm1, %v14676_v11 }
0x134c   : > { %12118 = vmatpush3.bf16.msra.mxu1 %v13918_v38  ;;  %12119 = vmatprep.mubr.msk.bf16.mxu1 %vm12803_vm0, %v15912_v6 }
0x134d   : > { %12123 = vmatprep.subr.bf16.mxu1 %v15912_v6 }
0x1353   : > { %v8525_v5 = vpop.permute.xlu0 %8524 }
0x1354   : > { %vm8527_vm12 = vcmp.eq.s32.totalorder %v13074_v46, %v8525_v5  ;;  %v12729_v46 = vld [vmem:[%s15808_s11 + $0x20] sm:$0xff] }
0x1355   : > { %v8529_v39 = vsel %vm8527_vm12, 1.0, %v15912_v6  ;;  %v5270_v41 = vsub.f32 %v12729_v46, %v5266_v26  ;;  %v5285_v46 = vunpack.c.l.bf16 %v14106_v50 }
0x1356   : > { %v8530_v38 = vpack.c.bf16 %v8529_v39, %v8528_v43  ;;  %v12733_v43 = vld [vmem:[%s15808_s11 + $0x40] sm:$0xff] }
0x1357   : > { %v5800_v2 = vpop.permute.xlu0 %5799  ;;  %v5287_v39 = vsub.f32 %v12733_v43, %v5283_v17 }
0x1358   : > { %11714 = vmatmul.mubr.msk.bf16.vlgmr.msra.gmra.mrb[72].mxu0 %vm776_vm1, %v5800_v2  ;;  %12120 = vmatmul.mubr.msk.bf16.vlgmr.msra.gmra.mrb[144].mxu1 %vm982_vm4, %v8530_v38 }
0x1359   : > { %12124 = vmatpush3.bf16.msra.mxu1 %v13906_v32  ;;  %11718 = vmatpush3.bf16.msra.mxu0 %v13939_v10  ;;  %v14742_v32 = vpack.c.bf16 %v5271_v19, %v5270_v41  ;;  %v5286_v41 = vunpack.c.h.bf16 %v14106_v50 }
0x135a   : > { %11719 = vmatprep.subr.bf16.mxu0 %v15912_v6  ;;  %11721 = vmatprep.mubr.msk.bf16.mxu0 %vm12803_vm0, %v15912_v6 }
0x135b   : > { %12125 = vmatprep.mubr.msk.bf16.mxu1 %vm12803_vm0, %v15912_v6  ;;  %12145 = vmatprep.subr.bf16.mxu1 %v15912_v6 }
0x135d   : > { %11720 = vmatpush3.bf16.msra.mxu0 %v13945_v21 }
0x135e   : > { %11733 = vmatprep.subr.bf16.mxu0 %v15912_v6 }
0x1360   : > { %11722 = vmatmul.mubr.msk.bf16.vlgmr.msra.gmra.mrb[76].mxu0 %vm776_vm1, %v5800_v2 }
0x1361   : > { %11734 = vmatpush3.bf16.msra.mxu0 %v14742_v32  ;;  %11737 = vmatprep.mubr.msk.bf16.mxu0 %vm12803_vm0, %v15912_v6 }
0x1362   : > { %11735 = vmatprep.subr.bf16.mxu0 %v15912_v6 }
0x1364   : > { %12126 = vmatmul.mubr.msk.bf16.vlgmr.msra.gmra.mrb[144].mxu1 %vm982_vm4, %v8530_v38  ;;  %v12734_v38 = vld [vmem:[%s15808_s11 + $0x48] sm:$0xff]  ;;  %vm5536_vm4 = vcmask 523264  }
0x1365   : > { %11736 = vmatpush3.bf16.msra.mxu0 %v14753_v33  ;;  %12146 = vmatpush3.bf16.msra.mxu1 %v13939_v10  ;;  %v5288_v2 = vsub.f32 %v12734_v38, %v5284_v14 }
0x1366   : > { %11749 = vmatprep.subr.bf16.mxu0 %v15912_v6  ;;  %12147 = vmatprep.subr.bf16.mxu1 %v15912_v6 }
0x1367   : > { %12149 = vmatprep.mubr.msk.bf16.mxu1 %vm12803_vm0, %v15912_v6  ;;  %v14818_v60 = vpack.c.bf16 %v5288_v2, %v5287_v39 }
0x1368   : > { %11738 = vmatmul.mubr.msk.bf16.vlgmr.msra.gmra.mrb[80].mxu0 %vm776_vm1, %v14017_v34 }
0x1369   : > { %11750 = vmatpush3.bf16.msra.mxu0 %v14033_v47  ;;  %11753 = vmatprep.mubr.msk.bf16.mxu0 %vm12803_vm0, %v15912_v6 }
0x136a   : > { %11751 = vmatprep.subr.bf16.mxu0 %v15912_v6  ;;  %12148 = vmatpush3.bf16.msra.mxu1 %v13945_v21 }
0x136b   : > { %12161 = vmatprep.subr.bf16.mxu1 %v15912_v6 }
0x136d   : > { %11752 = vmatpush3.bf16.msra.mxu0 %v14043_v59 }
0x136e   : > { %11769 = vmatprep.subr.bf16.mxu0 %v15912_v6 }
0x136f   : > { %v4853_v34 = vpop.f32.mrb[44].mxu0 }
0x1370   : > { %11754 = vmatmul.mubr.msk.bf16.vlgmr.msra.gmra.mrb[84].mxu0 %vm776_vm1, %v14021_v4  ;;  %v14780_v31 = vadd.f32 %v10493_v49, %v4853_v34  ;;  %v11587_v13 = vpop.f32.mrb[45].mxu0  ;;  %v12736_v34 = vld [vmem:[%s15808_s11 + $0x58] sm:$0xff] }
0x1371   : > { %11770 = vmatpush3.bf16.msra.mxu0 %v14612_v63  ;;  %11773 = vmatprep.mubr.msk.bf16.mxu0 %vm12803_vm0, %v15912_v6  ;;  %v4856_v22 = vpop.f32.mrb[46].mxu0  ;;  %v5290_v13 = vsub.f32 %v12736_v34, %v5286_v41  ;;  %v15922_v34 = vld [vmem:[#allocation18_spill] sm:$0xff] }
0x1372   : > { %11771 = vmatprep.subr.bf16.mxu0 %v15912_v6  ;;  %v4873_v3 = vmul.f32 %v14780_v31, %v14780_v31  ;;  %v14788_v9 = vadd.f32 %v10493_v49, %v4856_v22  ;;  %v11588_v53 = vpop.f32.mrb[47].mxu0  ;;  %v4864_v4 = vsel %vm776_vm1, %v14780_v31, 0.0  ;;  %v5289_v49 = vsub.f32 %v12735_v55, %v5285_v46  ;;  %v15921_v55 = vld [vmem:[#allocation15_spill] sm:$0xff] }
0x1374   : > { %v4865_v1 = vsel %vm776_vm1, %v14788_v9, 0.0  ;;  %v4874_v62 = vmul.f32 %v14788_v9, %v14788_v9  ;;  %v4875_v51 = vsel %vm776_vm1, %v4873_v3, 0.0 }
0x1375   : > { %11772 = vmatpush3.bf16.msra.mxu0 %v14629_v25  ;;  %v4866_v56 = vadd.f32 %v4865_v1, %v4864_v4 }
0x1376   : > { %11777 = vmatprep.subr.bf16.mxu0 %v15912_v6  ;;  %v4876_v18 = vsel %vm776_vm1, %v4874_v62, 0.0  ;;  %v14831_v62 = vpack.c.bf16 %v5290_v13, %v5289_v49 }
0x1377   : > { %v4867_v12 = vrot.slane %v4866_v56, 4  ;;  %v4877_v54 = vadd.f32 %v4876_v18, %v4875_v51  ;;  %v5124_v5 = vpop.f32.mrb[48].mxu0 }
0x1378   : > { %11774 = vmatmul.mubr.msk.bf16.vlgmr.msra.gmra.mrb[88].mxu0 %vm776_vm1, %v6204_v29  ;;  %v5166_v26 = vadd.f32 %v13950_v8, %v5124_v5  ;;  %v11619_v57 = vpop.f32.mrb[49].mxu0 }
0x1379   : > { %11778 = vmatpush3.bf16.msra.mxu0 %v13939_v10  ;;  %11781 = vmatprep.mubr.msk.bf16.mxu0 %vm12803_vm0, %v15912_v6  ;;  %v4868_v15 = vadd.f32 %v4867_v12, %v4866_v56  ;;  %v4878_v19 = vrot.slane %v4877_v54, 4  ;;  %v5127_v24 = vpop.f32.mrb[50].mxu0 }
0x137a   : > { %11779 = vmatprep.subr.bf16.mxu0 %v15912_v6  ;;  %v5169_v8 = vadd.f32 %v13952_v40, %v5127_v24  ;;  %v11620_v36 = vpop.f32.mrb[51].mxu0 }
0x137b   : > { %v4869_v27 = vrot.slane %v4868_v15, 2  ;;  %v4879_v28 = vadd.f32 %v4878_v19, %v4877_v54 }
0x137d   : > { %11780 = vmatpush3.bf16.msra.mxu0 %v13945_v21  ;;  %v4870_v22 = vadd.f32 %v4869_v27, %v4868_v15  ;;  %v4880_v3 = vrot.slane %v4879_v28, 2  ;;  %v15919_v15 = vld [vmem:[#allocation25_spill] sm:$0xff] }
0x137e   : > { %11793 = vmatprep.subr.bf16.mxu0 %v15912_v6 }
0x137f   : > { %v4871_v40 = vrot.slane %v4870_v22, 1  ;;  %v4881_v53 = vadd.f32 %v4880_v3, %v4879_v28  ;;  %v5209_v17 = vpop.f32.mrb[52].mxu0  ;;  %v6608_v3 = vpop.permute.xlu0 %6607 }
0x1380   : > { %11782 = vmatmul.mubr.msk.bf16.vlgmr.msra.gmra.mrb[92].mxu0 %vm776_vm1, %v6204_v29  ;;  %v14828_v4 = vadd.f32 %v5209_v17, %v5166_v26  ;;  %v11635_v1 = vpop.f32.mrb[53].mxu0 }
0x1381   : > { %11794 = vmatpush3.bf16.msra.mxu0 %v14818_v60  ;;  %11797 = vmatprep.mubr.msk.bf16.mxu0 %vm12803_vm0, %v15912_v6  ;;  %v4872_v14 = vadd.f32 %v4871_v40, %v4870_v22  ;;  %v4882_v56 = vrot.slane %v4881_v53, 1  ;;  %v5212_v51 = vpop.f32.mrb[54].mxu0  ;;  %v15923_v1 = vld [vmem:[#allocation16_spill] sm:$0xff] }
0x1382   : > { %11795 = vmatprep.subr.bf16.mxu0 %v15912_v6  ;;  %v14836_v18 = vadd.f32 %v5212_v51, %v5169_v8  ;;  %v11636_v12 = vpop.f32.mrb[55].mxu0  ;;  %v15920_v8 = vld [vmem:[#allocation17_spill] sm:$0xff]  ;;  %v15924_v51 = vld [vmem:[#allocation19_spill] sm:$0xff] }
0x1383   : > { %v4883_v54 = vadd.f32 %v4882_v56, %v4881_v53  ;;  %v4884_v29 = vmul.f32 0.0625, %v4872_v14 }
0x1385   : > { %11796 = vmatpush3.bf16.msra.mxu0 %v14831_v62  ;;  %v4885_v5 = vmul.f32 0.0625, %v4883_v54  ;;  %v4886_v43 = vmul.f32 %v4884_v29, %v4884_v29  ;;  %v4890_v39 = vsub.f32 %v14780_v31, %v4884_v29  ;;  %v4891_v26 = vsub.f32 %v14788_v9, %v4884_v29 }
0x1386   : > { %11809 = vmatprep.subr.bf16.mxu0 %v15912_v6 }
0x1387   : > { %v4887_v57 = vsub.f32 %v4885_v5, %v4886_v43  ;;  %v5437_v38 = vpop.f32.mrb[56].mxu0 }
0x1388   : > { %11798 = vmatmul.mubr.msk.bf16.vlgmr.msra.gmra.mrb[96].mxu0 %vm776_vm1, %v14080_v42  ;;  %v11655_v2 = vpop.f32.mrb[57].mxu0 }
0x1389   : > { %11810 = vmatpush3.bf16.msra.mxu0 %v14096_v44  ;;  %11813 = vmatprep.mubr.msk.bf16.mxu0 %vm12803_vm0, %v15912_v6  ;;  %v4888_v46 = vadd.f32 1e-05, %v4887_v57  ;;  %v5440_v41 = vpop.f32.mrb[58].mxu0  ;;  %v15925_v57 = vld [vmem:[#allocation20_spill] sm:$0xff] }
0x138a   : > { %11811 = vmatprep.subr.bf16.mxu0 %v15912_v6  ;;  %v11656_v31 = vpop.f32.mrb[59].mxu0 }
0x138b   : > { %12705 = vrsqrt.f32 %v4888_v46 }
0x138d   : > { %11812 = vmatpush3.bf16.msra.mxu0 %v14106_v50 }
0x138e   : > { %11829 = vmatprep.subr.bf16.mxu0 %v15912_v6 }
0x138f   : > { %v5478_v9 = vpop.f32.mrb[60].mxu0 }
0x1390   : > { %11814 = vmatmul.mubr.msk.bf16.vlgmr.msra.gmra.mrb[100].mxu0 %vm776_vm1, %v15919_v15  ;;  %v5479_v42 = vadd.f32 %v5478_v9, %v5437_v38  ;;  %v11663_v19 = vpop.f32.mrb[61].mxu0  ;;  %v10514_v9 = vld [vmem:[%s15809_s12] ss:$0 sm:$0xff] }
0x1391   : > { %11830 = vmatpush3.bf16.msra.mxu0 %v14612_v63  ;;  %11833 = vmatprep.mubr.msk.bf16.mxu0 %vm12803_vm0, %v15912_v6  ;;  %v5481_v24 = vpop.f32.mrb[62].mxu0 }
0x1392   : > { %11831 = vmatprep.subr.bf16.mxu0 %v15912_v6  ;;  %v5532_v36 = vadd.f32 %v15920_v8, %v5479_v42  ;;  %v5482_v27 = vadd.f32 %v5481_v24, %v5440_v41  ;;  %v11664_v28 = vpop.f32.mrb[63].mxu0  ;;  %v14898_v42 = vadd.f32 %v10514_v9, %v14828_v4 }
0x1394   : > { %v14858_v49 = vadd.f32 %v5532_v36, %v15921_v55  ;;  %v5533_v13 = vadd.f32 %v15922_v34, %v5482_v27  ;;  %v14905_v36 = vadd.f32 %v10514_v9, %v14836_v18  ;;  %v15926_v18 = vld [vmem:[#allocation30_spill] sm:$0xff] }
0x1395   : > { %11832 = vmatpush3.bf16.msra.mxu0 %v14629_v25  ;;  %v12706_v22 = vpop.eup %12705 }
0x1396   : > { %11837 = vmatprep.subr.bf16.mxu0 %v15912_v6  ;;  %v14863_v40 = vmul.f32 %v12706_v22, %v4890_v39  ;;  %v14865_v53 = vmul.f32 %v12706_v22, %v4891_v26  ;;  %v5547_v17 = vmul.f32 %v14858_v49, %v14858_v49  ;;  %v14870_v14 = vadd.f32 %v5533_v13, %v15923_v1  ;;  %v15927_v13 = vld [vmem:[#allocation35_spill] sm:$0xff]  ;;  %v15928_v22 = vld [vmem:[#allocation36_spill] sm:$0xff] }
0x1397   : > { %v5596_v56 = vpop.f32.mrb[64].mxu0  ;;  %v5537_v29 = vsel %vm5536_vm4, %v14858_v49, 0.0 }
0x1398   : > { %11834 = vmatmul.mubr.msk.bf16.vlgmr.msra.gmra.mrb[104].mxu0 %vm776_vm1, %v6608_v3  ;;  %v5638_v12 = vadd.f32 %v15924_v51, %v5596_v56  ;;  %v11679_v54 = vpop.f32.mrb[65].mxu0  ;;  %v5538_v5 = vsel %vm5536_vm4, %v14870_v14, 0.0  ;;  %v5548_v43 = vmul.f32 %v14870_v14, %v14870_v14  ;;  %v5549_v46 = vsel %vm5536_vm4, %v5547_v17, 0.0  ;;  %v15929_v17 = vld [vmem:[#allocation41_spill] sm:$0xff]  ;;  %v15930_v56 = vld [vmem:[#allocation46_spill] sm:$0xff] }
0x1399   : > { %11838 = vmatpush3.bf16.msra.mxu0 %v13939_v10  ;;  %11841 = vmatprep.mubr.msk.bf16.mxu0 %vm12803_vm0, %v15912_v6  ;;  %v5599_v39 = vpop.f32.mrb[66].mxu0  ;;  %v14884_v26 = vadd.f32 %v5538_v5, %v5537_v29 }
0x139a   : > { %11839 = vmatprep.subr.bf16.mxu0 %v15912_v6  ;;  %v5641_v38 = vadd.f32 %v15925_v57, %v5599_v39  ;;  %v11680_v2 = vpop.f32.mrb[67].mxu0  ;;  %v5550_v41 = vsel %vm5536_vm4, %v5548_v43, 0.0 }
0x139b   : > { %v14889_v31 = vadd.f32 %v5550_v41, %v5549_v46  ;;  %v15932_v41 = vld [vmem:[#allocation21_spill] sm:$0xff] }
0x139d   : > { %11840 = vmatpush3.bf16.msra.mxu0 %v13945_v21 }
0x139e   : > { %11853 = vmatprep.subr.bf16.mxu0 %v15912_v6 }
0x139f   : > { %v5681_v15 = vpop.f32.mrb[68].mxu0 }
0x13a0   : > { %11842 = vmatmul.mubr.msk.bf16.vlgmr.msra.gmra.mrb[108].mxu0 %vm776_vm1, %v6608_v3  ;;  %v5688_v19 = vadd.f32 %v5681_v15, %v5638_v12  ;;  %v11695_v24 = vpop.f32.mrb[69].mxu0  ;;  %v7414_v3 = vpop.permute.xlu0 %7413 }
0x13a1   : > { %11854 = vmatpush3.bf16.msra.mxu0 %v14652_v52  ;;  %11857 = vmatprep.mubr.msk.bf16.mxu0 %vm12803_vm0, %v15912_v6  ;;  %v5684_v8 = vpop.f32.mrb[70].mxu0 }
0x13a2   : > { %11855 = vmatprep.subr.bf16.mxu0 %v15912_v6  ;;  %v5690_v27 = vadd.f32 %v5688_v19, %v14898_v42  ;;  %v5689_v28 = vadd.f32 %v5684_v8, %v5641_v38  ;;  %v11696_v34 = vpop.f32.mrb[71].mxu0  ;;  %v15933_v8 = vld [vmem:[#allocation22_spill] sm:$0xff] }
0x13a4   : > { %5692 = vst.msk [vmem:[#allocation2] sm:$0xff] %vm776_vm1, %v5690_v27  ;;  %v5691_v4 = vadd.f32 %v5689_v28, %v14905_v36 }
0x13a5   : > { %11856 = vmatpush3.bf16.msra.mxu0 %v14663_v58 }
0x13a6   : > { %11869 = vmatprep.subr.bf16.mxu0 %v15912_v6  ;;  %5693 = vst.msk [vmem:[#allocation2 + $0x8] sm:$0xff] %vm776_vm1, %v5691_v4 }
0x13a8   : > { %11858 = vmatmul.mubr.msk.bf16.vlgmr.msra.gmra.mrb[112].mxu0 %vm776_vm1, %v14143_v20  ;;  %v7010_v20 = vpop.permute.xlu1 %7009 }
0x13a9   : > { %11870 = vmatpush3.bf16.msra.mxu0 %v13970_v30  ;;  %11873 = vmatprep.mubr.msk.bf16.mxu0 %vm12803_vm0, %v15912_v6 }
0x13aa   : > { %11871 = vmatprep.subr.bf16.mxu0 %v15912_v6 }
0x13ad   : > { %11872 = vmatpush3.bf16.msra.mxu0 %v13980_v23 }
0x13ae   : > { %11889 = vmatprep.subr.bf16.mxu0 %v15912_v6 }
0x13b0   : > { %11874 = vmatmul.mubr.msk.bf16.vlgmr.msra.gmra.mrb[116].mxu0 %vm776_vm1, %v15926_v18 }
0x13b1   : > { %11890 = vmatpush3.bf16.msra.mxu0 %v14612_v63  ;;  %11893 = vmatprep.mubr.msk.bf16.mxu0 %vm12803_vm0, %v15912_v6 }
0x13b2   : > { %11891 = vmatprep.subr.bf16.mxu0 %v15912_v6 }
0x13b5   : > { %11892 = vmatpush3.bf16.msra.mxu0 %v14629_v25 }
0x13b6   : > { %11897 = vmatprep.subr.bf16.mxu0 %v15912_v6 }
0x13b8   : > { %11894 = vmatmul.mubr.msk.bf16.vlgmr.msra.gmra.mrb[120].mxu0 %vm776_vm1, %v7010_v20 }
0x13b9   : > { %11898 = vmatpush3.bf16.msra.mxu0 %v13939_v10  ;;  %11901 = vmatprep.mubr.msk.bf16.mxu0 %vm12803_vm0, %v15912_v6 }
0x13ba   : > { %11899 = vmatprep.subr.bf16.mxu0 %v15912_v6 }
0x13bd   : > { %11900 = vmatpush3.bf16.msra.mxu0 %v13945_v21 }
0x13be   : > { %11913 = vmatprep.subr.bf16.mxu0 %v15912_v6 }
0x13c0   : > { %11902 = vmatmul.mubr.msk.bf16.vlgmr.msra.gmra.mrb[124].mxu0 %vm776_vm1, %v7010_v20 }
0x13c1   : > { %11914 = vmatpush3.bf16.msra.mxu0 %v14742_v32  ;;  %11917 = vmatprep.mubr.msk.bf16.mxu0 %vm12803_vm0, %v15912_v6 }
0x13c2   : > { %11915 = vmatprep.subr.bf16.mxu0 %v15912_v6 }
0x13c5   : > { %11916 = vmatpush3.bf16.msra.mxu0 %v14753_v33 }
0x13c6   : > { %11929 = vmatprep.subr.bf16.mxu0 %v15912_v6 }
0x13c8   : > { %11918 = vmatmul.mubr.msk.bf16.vlgmr.msra.gmra.mrb[128].mxu0 %vm776_vm1, %v15927_v13 }
0x13c9   : > { %11930 = vmatpush3.bf16.msra.mxu0 %v14033_v47  ;;  %11933 = vmatprep.mubr.msk.bf16.mxu0 %vm12803_vm0, %v15912_v6 }
0x13ca   : > { %11931 = vmatprep.subr.bf16.mxu0 %v15912_v6 }
0x13cd   : > { %11932 = vmatpush3.bf16.msra.mxu0 %v14043_v59 }
0x13ce   : > { %11949 = vmatprep.subr.bf16.mxu0 %v15912_v6 }
0x13d0   : > { %11934 = vmatmul.mubr.msk.bf16.vlgmr.msra.gmra.mrb[132].mxu0 %vm776_vm1, %v15928_v22 }
0x13d1   : > { %11950 = vmatpush3.bf16.msra.mxu0 %v14612_v63  ;;  %11953 = vmatprep.mubr.msk.bf16.mxu0 %vm12803_vm0, %v15912_v6 }
0x13d2   : > { %11951 = vmatprep.subr.bf16.mxu0 %v15912_v6 }
0x13d5   : > { %11952 = vmatpush3.bf16.msra.mxu0 %v14629_v25 }
0x13d6   : > { %11957 = vmatprep.subr.bf16.mxu0 %v15912_v6 }
0x13d8   : > { %11954 = vmatmul.mubr.msk.bf16.vlgmr.msra.gmra.mrb[136].mxu0 %vm776_vm1, %v7414_v3 }
0x13d9   : > { %11958 = vmatpush3.bf16.msra.mxu0 %v13939_v10  ;;  %11961 = vmatprep.mubr.msk.bf16.mxu0 %vm12803_vm0, %v15912_v6 }
0x13da   : > { %11959 = vmatprep.subr.bf16.mxu0 %v15912_v6 }
0x13dd   : > { %11960 = vmatpush3.bf16.msra.mxu0 %v13945_v21 }
0x13de   : > { %11973 = vmatprep.subr.bf16.mxu0 %v15912_v6 }
0x13e0   : > { %11962 = vmatmul.mubr.msk.bf16.vlgmr.msra.gmra.mrb[140].mxu0 %vm776_vm1, %v7414_v3 }
0x13e1   : > { %11974 = vmatpush3.bf16.msra.mxu0 %v14818_v60  ;;  %11977 = vmatprep.mubr.msk.bf16.mxu0 %vm12803_vm0, %v15912_v6 }
0x13e2   : > { %11975 = vmatprep.subr.bf16.mxu0 %v15912_v6 }
0x13e5   : > { %11976 = vmatpush3.bf16.msra.mxu0 %v14831_v62 }
0x13e6   : > { %11989 = vmatprep.subr.bf16.mxu0 %v15912_v6 }
0x13e8   : > { %11978 = vmatmul.mubr.msk.bf16.vlgmr.msra.gmra.mrb[144].mxu0 %vm776_vm1, %v14237_v48  ;;  %v7818_v48 = vpop.permute.xlu1 %7817 }
0x13e9   : > { %11990 = vmatpush3.bf16.msra.mxu0 %v14096_v44  ;;  %11993 = vmatprep.mubr.msk.bf16.mxu0 %vm12803_vm0, %v15912_v6 }
0x13ea   : > { %11991 = vmatprep.subr.bf16.mxu0 %v15912_v6 }
0x13ed   : > { %11992 = vmatpush3.bf16.msra.mxu0 %v14106_v50 }
0x13ee   : > { %12009 = vmatprep.subr.bf16.mxu0 %v15912_v6 }
0x13f0   : > { %11994 = vmatmul.mubr.msk.bf16.vlgmr.msra.gmra.mrb[148].mxu0 %vm776_vm1, %v15929_v17 }
0x13f1   : > { %12010 = vmatpush3.bf16.msra.mxu0 %v14612_v63  ;;  %12013 = vmatprep.mubr.msk.bf16.mxu0 %vm12803_vm0, %v15912_v6 }
0x13f2   : > { %12011 = vmatprep.subr.bf16.mxu0 %v15912_v6 }
0x13f5   : > { %12012 = vmatpush3.bf16.msra.mxu0 %v14629_v25 }
0x13f6   : > { %12017 = vmatprep.subr.bf16.mxu0 %v15912_v6 }
0x13f8   : > { %12014 = vmatmul.mubr.msk.bf16.vlgmr.msra.gmra.mrb[152].mxu0 %vm776_vm1, %v7818_v48 }
0x13f9   : > { %12018 = vmatpush3.bf16.msra.mxu0 %v13939_v10  ;;  %12021 = vmatprep.mubr.msk.bf16.mxu0 %vm12803_vm0, %v15912_v6 }
0x13fa   : > { %12019 = vmatprep.subr.bf16.mxu0 %v15912_v6 }
0x13fd   : > { %12020 = vmatpush3.bf16.msra.mxu0 %v13945_v21 }
0x13fe   : > { %12033 = vmatprep.subr.bf16.mxu0 %v15912_v6 }
0x1400   : > { %12022 = vmatmul.mubr.msk.bf16.vlgmr.msra.gmra.mrb[156].mxu0 %vm776_vm1, %v7818_v48 }
0x1401   : > { %12034 = vmatpush3.bf16.msra.mxu0 %v14652_v52  ;;  %12037 = vmatprep.mubr.msk.bf16.mxu0 %vm12803_vm0, %v15912_v6  ;;  %v15931_v52 = vld [vmem:[#allocation47_spill] sm:$0xff] }
0x1402   : > { %12035 = vmatprep.subr.bf16.mxu0 %v15912_v6 }
0x1405   : > { %12036 = vmatpush3.bf16.msra.mxu0 %v14663_v58  ;;  %v8220_v58 = vpop.permute.xlu0 %8219 }
0x1406   : > { %12049 = vmatprep.subr.bf16.mxu0 %v15912_v6 }
0x1408   : > { %12038 = vmatmul.mubr.msk.bf16.vlgmr.msra.gmra.mrb[160].mxu0 %vm776_vm1, %v15930_v56 }
0x1409   : > { %12050 = vmatpush3.bf16.msra.mxu0 %v13970_v30  ;;  %12053 = vmatprep.mubr.msk.bf16.mxu0 %vm12803_vm0, %v15912_v6 }
0x140a   : > { %12051 = vmatprep.subr.bf16.mxu0 %v15912_v6 }
0x140d   : > { %12052 = vmatpush3.bf16.msra.mxu0 %v13980_v23 }
0x140e   : > { %12069 = vmatprep.subr.bf16.mxu0 %v15912_v6 }
0x1410   : > { %12054 = vmatmul.mubr.msk.bf16.vlgmr.msra.gmra.mrb[164].mxu0 %vm776_vm1, %v15931_v52 }
0x1411   : > { %12070 = vmatpush3.bf16.msra.mxu0 %v14612_v63  ;;  %12073 = vmatprep.mubr.msk.bf16.mxu0 %vm12803_vm0, %v15912_v6 }
0x1412   : > { %12071 = vmatprep.subr.bf16.mxu0 %v15912_v6 }
0x1415   : > { %12072 = vmatpush3.bf16.msra.mxu0 %v14629_v25 }
0x1416   : > { %v15018_v30 = vpop.f32.mrb[136].mxu1  ;;  %12077 = vmatprep.subr.bf16.mxu0 %v15912_v6 }
0x1417   : > { %v12091_v23 = vpop.f32.mrb[137].mxu1 }
0x1418   : > { %12074 = vmatmul.mubr.msk.bf16.vlgmr.msra.gmra.mrb[168].mxu0 %vm776_vm1, %v8220_v58  ;;  %v15022_v51 = vpop.f32.mrb[138].mxu1 }
0x1419   : > { %12078 = vmatpush3.bf16.msra.mxu0 %v13939_v10  ;;  %v12092_v12 = vpop.f32.mrb[139].mxu1  ;;  %12081 = vmatprep.mubr.msk.bf16.mxu0 %vm12803_vm0, %v15912_v6 }
0x141a   : > { %12079 = vmatprep.subr.bf16.mxu0 %v15912_v6 }
0x141d   : > { %12080 = vmatpush3.bf16.msra.mxu0 %v13945_v21 }
0x141e   : > { %v15029_v54 = vpop.f32.mrb[140].mxu1  ;;  %12093 = vmatprep.subr.bf16.mxu0 %v15912_v6 }
0x141f   : > { %v12107_v29 = vpop.f32.mrb[141].mxu1 }
0x1420   : > { %12082 = vmatmul.mubr.msk.bf16.vlgmr.msra.gmra.mrb[172].mxu0 %vm776_vm1, %v8220_v58  ;;  %v15033_v5 = vpop.f32.mrb[142].mxu1  ;;  %v15934_v29 = vld [vmem:[#allocation23_spill] sm:$0xff] }
0x1421   : > { %12094 = vmatpush3.bf16.msra.mxu0 %v14742_v32  ;;  %v12108_v43 = vpop.f32.mrb[143].mxu1  ;;  %12097 = vmatprep.mubr.msk.bf16.mxu0 %vm12803_vm0, %v15912_v6 }
0x1422   : > { %12095 = vmatprep.subr.bf16.mxu0 %v15912_v6 }
0x1425   : > { %12096 = vmatpush3.bf16.msra.mxu0 %v14753_v33 }
0x1426   : > { %12109 = vmatprep.subr.bf16.mxu0 %v15912_v6 }
0x1428   : > { %12098 = vmatmul.mubr.msk.bf16.vlgmr.msra.gmra.mrb[176].mxu0 %vm776_vm1, %v14676_v11 }
0x1429   : > { %12110 = vmatpush3.bf16.msra.mxu0 %v14033_v47  ;;  %12113 = vmatprep.mubr.msk.bf16.mxu0 %vm12803_vm0, %v15912_v6  ;;  %v5540_v47 = vrot.slane %v14884_v26, 4 }
0x142a   : > { %12111 = vmatprep.subr.bf16.mxu0 %v15912_v6 }
0x142b   : > { %v5838_v32 = vpop.f32.mrb[72].mxu0 }
0x142c   : > { %v11715_v39 = vpop.f32.mrb[73].mxu0 }
0x142d   : > { %v5841_v57 = vpop.f32.mrb[74].mxu0  ;;  %12112 = vmatpush3.bf16.msra.mxu0 %v14043_v59  ;;  %v5552_v59 = vrot.slane %v14889_v31, 4 }
0x142e   : > { %v11716_v38 = vpop.f32.mrb[75].mxu0  ;;  %12129 = vmatprep.subr.bf16.mxu0 %v15912_v6 }
0x1430   : > { %12114 = vmatmul.mubr.msk.bf16.vlgmr.msra.gmra.mrb[180].mxu0 %vm776_vm1, %v14684_v7 }
0x1431   : > { %12130 = vmatpush3.bf16.msra.mxu0 %v14612_v63  ;;  %12133 = vmatprep.mubr.msk.bf16.mxu0 %vm12803_vm0, %v15912_v6  ;;  %v5541_v63 = vadd.f32 %v5540_v47, %v14884_v26  ;;  %v15935_v47 = vld [vmem:[#allocation24_spill] sm:$0xff] }
0x1432   : > { %12131 = vmatprep.subr.bf16.mxu0 %v15912_v6 }
0x1433   : > { %v5879_v11 = vpop.f32.mrb[76].mxu0  ;;  %v5542_v13 = vrot.slane %v5541_v63, 2 }
0x1434   : > { %v5880_v33 = vadd.f32 %v5879_v11, %v5838_v32  ;;  %v11723_v2 = vpop.f32.mrb[77].mxu0 }
0x1435   : > { %v5882_v46 = vpop.f32.mrb[78].mxu0  ;;  %12132 = vmatpush3.bf16.msra.mxu0 %v14629_v25  ;;  %v5553_v25 = vadd.f32 %v5552_v59, %v14889_v31 }
0x1436   : > { %v5933_v9 = vadd.f32 %v15932_v41, %v5880_v33  ;;  %v5883_v7 = vadd.f32 %v5882_v46, %v5841_v57  ;;  %v11724_v15 = vpop.f32.mrb[79].mxu0  ;;  %12137 = vmatprep.subr.bf16.mxu0 %v15912_v6 }
0x1437   : > { %v8609_v19 = vpop.f32.mrb[144].mxu1  ;;  %v5554_v39 = vrot.slane %v5553_v25, 2 }
0x1438   : > { %v15062_v24 = vadd.f32 %v5933_v9, %v15921_v55  ;;  %v5934_v27 = vadd.f32 %v15933_v8, %v5883_v7  ;;  %v12127_v28 = vpop.f32.mrb[145].mxu1  ;;  %v5543_v9 = vadd.f32 %v5542_v13, %v5541_v63 }
0x1439   : > { %v8612_v34 = vpop.f32.mrb[146].mxu1 }
0x143a   : > { %v5947_v4 = vmul.f32 %v15062_v24, %v15062_v24  ;;  %v5959_v18 = vmax.f32 %v14858_v49, %v15062_v24  ;;  %v15071_v20 = vadd.f32 %v5934_v27, %v15923_v1  ;;  %v12128_v26 = vpop.f32.mrb[147].mxu1  ;;  %v15073_v22 = vpack.c.bf16 %v8612_v34, %v8609_v19 }
0x143b   : > { %v5998_v3 = vpop.f32.mrb[80].mxu0  ;;  %v5937_v17 = vsel %vm5536_vm4, %v15062_v24, 0.0  ;;  %v5555_v27 = vadd.f32 %v5554_v39, %v5553_v25  ;;  %v6093_v25 = vld [vmem:[#allocation2 + $0x8] sm:$0xff] }
0x143c   : > { %v5938_v31 = vsel %vm5536_vm4, %v15071_v20, 0.0  ;;  %v5948_v48 = vmul.f32 %v15071_v20, %v15071_v20  ;;  %v5960_v56 = vmax.f32 %v14870_v14, %v15071_v20  ;;  %v11739_v52 = vpop.f32.mrb[81].mxu0  ;;  %v8617_v23 = vunpack.c.l.bf16 %v15073_v22  ;;  %8623 = vrot.lane.b32.xlu1 %v15073_v22, %s15884_s6 }
0x143d   : > { %v5939_v58 = vadd.f32 %v5938_v31, %v5937_v17  ;;  %v8618_v12 = vunpack.c.h.bf16 %v15073_v22  ;;  %v6040_v43 = vadd.f32 %v15934_v29, %v5998_v3  ;;  %v6001_v32 = vpop.f32.mrb[82].mxu0  ;;  %v5949_v57 = vsel %vm5536_vm4, %v5947_v4, 0.0  ;;  %v6092_v29 = vld [vmem:[#allocation2] sm:$0xff] }
0x143e   : > { %v5950_v38 = vsel %vm5536_vm4, %v5948_v48, 0.0  ;;  %v6043_v11 = vadd.f32 %v15935_v47, %v6001_v32  ;;  %v11740_v33 = vpop.f32.mrb[83].mxu0  ;;  %v8619_v59 = vsub.f32 %v8609_v19, %v8617_v23  ;;  %v5544_v31 = vrot.slane %v5543_v9, 1 }
0x143f   : > { %v5940_v2 = vrot.slane %v5939_v58, 4  ;;  %v5951_v46 = vadd.f32 %v5950_v38, %v5949_v57  ;;  %v8620_v41 = vsub.f32 %v8612_v34, %v8618_v12 }
0x1440   : > { %v5545_v39 = vadd.f32 %v5544_v31, %v5543_v9 }
0x1441   : > { %v5941_v7 = vadd.f32 %v5940_v2, %v5939_v58  ;;  %v5952_v15 = vrot.slane %v5951_v46, 4  ;;  %v15091_v8 = vpack.c.bf16 %v8620_v41, %v8619_v59  ;;  %v5556_v58 = vrot.slane %v5555_v27, 1 }
0x1443   : > { %v5942_v28 = vrot.slane %v5941_v7, 2  ;;  %v5953_v26 = vadd.f32 %v5952_v15, %v5951_v46  ;;  %8711 = vrot.lane.b32.xlu0 %v15091_v8, %s15884_s6  ;;  %v6083_v4 = vpop.f32.mrb[84].mxu0 }
0x1444   : > { %v6090_v3 = vadd.f32 %v6083_v4, %v6040_v43  ;;  %v11755_v17 = vpop.f32.mrb[85].mxu0  ;;  %v5557_v43 = vadd.f32 %v5556_v58, %v5555_v27  ;;  %v15936_v4 = vld [vmem:[#allocation26_spill] sm:$0xff] }
0x1445   : > { %v5943_v48 = vadd.f32 %v5942_v28, %v5941_v7  ;;  %v5954_v52 = vrot.slane %v5953_v26, 2  ;;  %v6086_v19 = vpop.f32.mrb[86].mxu0 }
0x1446   : > { %v6094_v34 = vadd.f32 %v6092_v29, %v6090_v3  ;;  %v6091_v63 = vadd.f32 %v6086_v19, %v6043_v11  ;;  %v11756_v13 = vpop.f32.mrb[87].mxu0 }
0x1447   : > { %v5944_v23 = vrot.slane %v5943_v48, 1  ;;  %v5955_v12 = vadd.f32 %v5954_v52, %v5953_v26 }
0x1448   : > { %6096 = vst.msk [vmem:[#allocation2] sm:$0xff] %vm776_vm1, %v6094_v34  ;;  %v6095_v32 = vadd.f32 %v6093_v25, %v6091_v63 }
0x1449   : > { %v5945_v57 = vadd.f32 %v5944_v23, %v5943_v48  ;;  %v5956_v38 = vrot.slane %v5955_v12, 1  ;;  %v15937_v48 = vld [vmem:[#allocation27_spill] sm:$0xff] }
0x144a   : > { %6097 = vst.msk [vmem:[#allocation2 + $0x8] sm:$0xff] %vm776_vm1, %v6095_v32  ;;  %v15938_v32 = vld [vmem:[#allocation28_spill] sm:$0xff] }
0x144b   : > { %v5946_v47 = vadd.f32 %v5945_v57, %v5545_v39  ;;  %v5957_v33 = vadd.f32 %v5956_v38, %v5955_v12  ;;  %v6242_v2 = vpop.f32.mrb[88].mxu0  ;;  %v15939_v57 = vld [vmem:[#allocation29_spill] sm:$0xff] }
0x144c   : > { %v11775_v46 = vpop.f32.mrb[89].mxu0 }
0x144d   : > { %v5958_v59 = vadd.f32 %v5957_v33, %v5557_v43  ;;  %v6245_v11 = vpop.f32.mrb[90].mxu0 }
0x144e   : > { %v11776_v41 = vpop.f32.mrb[91].mxu0 }
0x1453   : > { %v6283_v7 = vpop.f32.mrb[92].mxu0 }
0x1454   : > { %v6284_v15 = vadd.f32 %v6283_v7, %v6242_v2  ;;  %v11783_v28 = vpop.f32.mrb[93].mxu0 }
0x1455   : > { %v6286_v26 = vpop.f32.mrb[94].mxu0 }
0x1456   : > { %v6337_v3 = vadd.f32 %v15936_v4, %v6284_v15  ;;  %v6287_v17 = vadd.f32 %v6286_v26, %v6245_v11  ;;  %v11784_v9 = vpop.f32.mrb[95].mxu0  ;;  %v6496_v26 = vld [vmem:[#allocation2] sm:$0xff] }
0x1458   : > { %v6339_v31 = vadd.f32 %v6337_v3, %v15921_v55  ;;  %v6338_v52 = vadd.f32 %v15937_v48, %v6287_v17 }
0x145a   : > { %v6351_v27 = vmul.f32 %v6339_v31, %v6339_v31  ;;  %v15103_v29 = vmax.f32 %v5959_v18, %v6339_v31  ;;  %v6340_v19 = vadd.f32 %v6338_v52, %v15923_v1  ;;  %v6341_v63 = vsel %vm5536_vm4, %v6339_v31, 0.0  ;;  %v6497_v52 = vld [vmem:[#allocation2 + $0x8] sm:$0xff] }
0x145b   : > { %v6402_v34 = vpop.f32.mrb[96].mxu0 }
0x145c   : > { %v6342_v13 = vsel %vm5536_vm4, %v6340_v19, 0.0  ;;  %v6352_v58 = vmul.f32 %v6340_v19, %v6340_v19  ;;  %v15111_v23 = vmax.f32 %v5960_v56, %v6340_v19  ;;  %v11799_v12 = vpop.f32.mrb[97].mxu0  ;;  %v6444_v39 = vadd.f32 %v15938_v32, %v6402_v34 }
0x145d   : > { %v6343_v25 = vadd.f32 %v6342_v13, %v6341_v63  ;;  %v6405_v49 = vpop.f32.mrb[98].mxu0  ;;  %v6353_v24 = vsel %vm5536_vm4, %v6351_v27, 0.0 }
0x145e   : > { %v6354_v18 = vsel %vm5536_vm4, %v6352_v58, 0.0  ;;  %v6447_v38 = vadd.f32 %v15939_v57, %v6405_v49  ;;  %v11800_v43 = vpop.f32.mrb[99].mxu0 }
0x145f   : > { %v6344_v33 = vrot.slane %v6343_v25, 4  ;;  %v6355_v2 = vadd.f32 %v6354_v18, %v6353_v24 }
0x1461   : > { %v6345_v46 = vadd.f32 %v6344_v33, %v6343_v25  ;;  %v6356_v11 = vrot.slane %v6355_v2, 4 }
0x1463   : > { %v6346_v41 = vrot.slane %v6345_v46, 2  ;;  %v6357_v14 = vadd.f32 %v6356_v11, %v6355_v2  ;;  %v6487_v20 = vpop.f32.mrb[100].mxu0  ;;  %v15941_v11 = vld [vmem:[#allocation32_spill] sm:$0xff] }
0x1464   : > { %v6494_v56 = vadd.f32 %v6487_v20, %v6444_v39  ;;  %v11815_v7 = vpop.f32.mrb[101].mxu0 }
0x1465   : > { %v6347_v15 = vadd.f32 %v6346_v41, %v6345_v46  ;;  %v6358_v28 = vrot.slane %v6357_v14, 2  ;;  %v6490_v4 = vpop.f32.mrb[102].mxu0 }
0x1466   : > { %v6498_v3 = vadd.f32 %v6496_v26, %v6494_v56  ;;  %v6495_v17 = vadd.f32 %v6490_v4, %v6447_v38  ;;  %v11816_v9 = vpop.f32.mrb[103].mxu0  ;;  %v15940_v38 = vld [vmem:[#allocation31_spill] sm:$0xff] }
0x1467   : > { %v6348_v31 = vrot.slane %v6347_v15, 1  ;;  %v6359_v48 = vadd.f32 %v6358_v28, %v6357_v14 }
0x1468   : > { %6500 = vst.msk [vmem:[#allocation2] sm:$0xff] %vm776_vm1, %v6498_v3  ;;  %v6499_v27 = vadd.f32 %v6497_v52, %v6495_v17  ;;  %v15942_v3 = vld [vmem:[#allocation33_spill] sm:$0xff] }
0x1469   : > { %v6349_v19 = vadd.f32 %v6348_v31, %v6347_v15  ;;  %v6360_v34 = vrot.slane %v6359_v48, 1 }
0x146a   : > { %6501 = vst.msk [vmem:[#allocation2 + $0x8] sm:$0xff] %vm776_vm1, %v6499_v27 }
0x146b   : > { %v6350_v63 = vadd.f32 %v6349_v19, %v5946_v47  ;;  %v6361_v13 = vadd.f32 %v6360_v34, %v6359_v48  ;;  %v6646_v58 = vpop.f32.mrb[104].mxu0 }
0x146c   : > { %v11835_v12 = vpop.f32.mrb[105].mxu0 }
0x146d   : > { %v6362_v25 = vadd.f32 %v6361_v13, %v5958_v59  ;;  %v6649_v32 = vpop.f32.mrb[106].mxu0 }
0x146e   : > { %v11836_v39 = vpop.f32.mrb[107].mxu0 }
0x1473   : > { %v6687_v49 = vpop.f32.mrb[108].mxu0 }
0x1474   : > { %v6688_v24 = vadd.f32 %v6687_v49, %v6646_v58  ;;  %v11843_v18 = vpop.f32.mrb[109].mxu0 }
0x1475   : > { %v6690_v57 = vpop.f32.mrb[110].mxu0 }
0x1476   : > { %v6741_v43 = vadd.f32 %v15940_v38, %v6688_v24  ;;  %v6691_v33 = vadd.f32 %v6690_v57, %v6649_v32  ;;  %v11844_v2 = vpop.f32.mrb[111].mxu0 }
0x1478   : > { %v6743_v46 = vadd.f32 %v6741_v43, %v15921_v55  ;;  %v6742_v41 = vadd.f32 %v15941_v11, %v6691_v33 }
0x147a   : > { %v6755_v14 = vmul.f32 %v6743_v46, %v6743_v46  ;;  %v6767_v47 = vmax.f32 %v15103_v29, %v6743_v46  ;;  %v6744_v20 = vadd.f32 %v6742_v41, %v15923_v1  ;;  %v6745_v56 = vsel %vm5536_vm4, %v6743_v46, 0.0  ;;  %v15943_v29 = vld [vmem:[#allocation34_spill] sm:$0xff] }
0x147b   : > { %v6806_v59 = vpop.f32.mrb[112].mxu0 }
0x147c   : > { %v6746_v7 = vsel %vm5536_vm4, %v6744_v20, 0.0  ;;  %v6756_v15 = vmul.f32 %v6744_v20, %v6744_v20  ;;  %v6768_v28 = vmax.f32 %v15111_v23, %v6744_v20  ;;  %v11859_v26 = vpop.f32.mrb[113].mxu0  ;;  %v6848_v17 = vadd.f32 %v15942_v3, %v6806_v59 }
0x147d   : > { %v6747_v4 = vadd.f32 %v6746_v7, %v6745_v56  ;;  %v6809_v9 = vpop.f32.mrb[114].mxu0  ;;  %v6757_v31 = vsel %vm5536_vm4, %v6755_v14, 0.0 }
0x147e   : > { %v6758_v48 = vsel %vm5536_vm4, %v6756_v15, 0.0  ;;  %v6851_v52 = vadd.f32 %v15943_v29, %v6809_v9  ;;  %v11860_v27 = vpop.f32.mrb[115].mxu0 }
0x147f   : > { %v6748_v19 = vrot.slane %v6747_v4, 4  ;;  %v6759_v34 = vadd.f32 %v6758_v48, %v6757_v31  ;;  %v15944_v48 = vld [vmem:[#allocation37_spill] sm:$0xff] }
0x1481   : > { %v6749_v13 = vadd.f32 %v6748_v19, %v6747_v4  ;;  %v6760_v58 = vrot.slane %v6759_v34, 4 }
0x1483   : > { %v6750_v12 = vrot.slane %v6749_v13, 2  ;;  %v6761_v32 = vadd.f32 %v6760_v58, %v6759_v34  ;;  %v6891_v39 = vpop.f32.mrb[116].mxu0  ;;  %v15945_v34 = vld [vmem:[#allocation38_spill] sm:$0xff] }
0x1484   : > { %v6898_v23 = vadd.f32 %v6891_v39, %v6848_v17  ;;  %v11875_v49 = vpop.f32.mrb[117].mxu0 }
0x1485   : > { %v6751_v24 = vadd.f32 %v6750_v12, %v6749_v13  ;;  %v6762_v18 = vrot.slane %v6761_v32, 2  ;;  %v6894_v57 = vpop.f32.mrb[118].mxu0 }
0x1486   : > { %v6900_v38 = vadd.f32 %v6898_v23, %v14898_v42  ;;  %v6899_v43 = vadd.f32 %v6894_v57, %v6851_v52  ;;  %v11876_v33 = vpop.f32.mrb[119].mxu0  ;;  %v15946_v57 = vld [vmem:[#allocation39_spill] sm:$0xff] }
0x1487   : > { %v6752_v2 = vrot.slane %v6751_v24, 1  ;;  %v6763_v46 = vadd.f32 %v6762_v18, %v6761_v32 }
0x1488   : > { %6902 = vst.msk [vmem:[#allocation2 + $0x10] sm:$0xff] %vm776_vm1, %v6900_v38  ;;  %v6901_v11 = vadd.f32 %v6899_v43, %v14905_v36 }
0x1489   : > { %v6753_v41 = vadd.f32 %v6752_v2, %v6751_v24  ;;  %v6764_v14 = vrot.slane %v6763_v46, 1  ;;  %v15947_v2 = vld [vmem:[#allocation40_spill] sm:$0xff] }
0x148a   : > { %6903 = vst.msk [vmem:[#allocation2 + $0x18] sm:$0xff] %vm776_vm1, %v6901_v11 }
0x148b   : > { %v6754_v20 = vadd.f32 %v6753_v41, %v6350_v63  ;;  %v6765_v59 = vadd.f32 %v6764_v14, %v6763_v46  ;;  %v7048_v56 = vpop.f32.mrb[120].mxu0 }
0x148c   : > { %v11895_v7 = vpop.f32.mrb[121].mxu0 }
0x148d   : > { %v6766_v15 = vadd.f32 %v6765_v59, %v6362_v25  ;;  %v7051_v26 = vpop.f32.mrb[122].mxu0 }
0x148e   : > { %v11896_v4 = vpop.f32.mrb[123].mxu0 }
0x1493   : > { %v7089_v3 = vpop.f32.mrb[124].mxu0 }
0x1494   : > { %v7090_v17 = vadd.f32 %v7089_v3, %v7048_v56  ;;  %v11903_v9 = vpop.f32.mrb[125].mxu0 }
0x1495   : > { %v7092_v31 = vpop.f32.mrb[126].mxu0 }
0x1496   : > { %v7143_v29 = vadd.f32 %v15944_v48, %v7090_v17  ;;  %v7093_v52 = vadd.f32 %v7092_v31, %v7051_v26  ;;  %v11904_v27 = vpop.f32.mrb[127].mxu0  ;;  %v7302_v31 = vld [vmem:[#allocation2 + $0x10] sm:$0xff] }
0x1498   : > { %v7145_v19 = vadd.f32 %v7143_v29, %v15921_v55  ;;  %v7144_v13 = vadd.f32 %v15945_v34, %v7093_v52 }
0x149a   : > { %v7157_v58 = vmul.f32 %v7145_v19, %v7145_v19  ;;  %v15138_v63 = vmax.f32 %v6767_v47, %v7145_v19  ;;  %v7146_v12 = vadd.f32 %v7144_v13, %v15923_v1  ;;  %v7147_v32 = vsel %vm5536_vm4, %v7145_v19, 0.0  ;;  %v7303_v13 = vld [vmem:[#allocation2 + $0x18] sm:$0xff] }
0x149b   : > { %v7208_v25 = vpop.f32.mrb[128].mxu0 }
0x149c   : > { %v7148_v39 = vsel %vm5536_vm4, %v7146_v12, 0.0  ;;  %v7158_v23 = vmul.f32 %v7146_v12, %v7146_v12  ;;  %v15143_v49 = vmax.f32 %v6768_v28, %v7146_v12  ;;  %v11919_v24 = vpop.f32.mrb[129].mxu0  ;;  %v7250_v38 = vadd.f32 %v15946_v57, %v7208_v25 }
0x149d   : > { %v7149_v18 = vadd.f32 %v7148_v39, %v7147_v32  ;;  %v7211_v43 = vpop.f32.mrb[130].mxu0  ;;  %v7159_v33 = vsel %vm5536_vm4, %v7157_v58, 0.0 }
0x149e   : > { %v7160_v47 = vsel %vm5536_vm4, %v7158_v23, 0.0  ;;  %v7253_v46 = vadd.f32 %v15947_v2, %v7211_v43  ;;  %v11920_v11 = vpop.f32.mrb[131].mxu0  ;;  %v9541_v2 = vld [vmem:[%s15816_s19 + $0x8] sm:$0xff] }
0x149f   : > { %v7150_v41 = vrot.slane %v7149_v18, 4  ;;  %v7161_v14 = vadd.f32 %v7160_v47, %v7159_v33  ;;  %v15948_v11 = vld [vmem:[#allocation42_spill] sm:$0xff] }
0x14a1   : > { %v7151_v59 = vadd.f32 %v7150_v41, %v7149_v18  ;;  %v7162_v56 = vrot.slane %v7161_v14, 4 }
0x14a3   : > { %v7152_v7 = vrot.slane %v7151_v59, 2  ;;  %v7163_v26 = vadd.f32 %v7162_v56, %v7161_v14  ;;  %v7293_v28 = vpop.f32.mrb[132].mxu0 }
0x14a4   : > { %v7300_v4 = vadd.f32 %v7293_v28, %v7250_v38  ;;  %v11935_v3 = vpop.f32.mrb[133].mxu0 }
0x14a5   : > { %v7153_v17 = vadd.f32 %v7152_v7, %v7151_v59  ;;  %v7164_v9 = vrot.slane %v7163_v26, 2  ;;  %v7296_v48 = vpop.f32.mrb[134].mxu0 }
0x14a6   : > { %v7304_v29 = vadd.f32 %v7302_v31, %v7300_v4  ;;  %v7301_v52 = vadd.f32 %v7296_v48, %v7253_v46  ;;  %v11936_v27 = vpop.f32.mrb[135].mxu0 }
0x14a7   : > { %v7154_v19 = vrot.slane %v7153_v17, 1  ;;  %v7165_v34 = vadd.f32 %v7164_v9, %v7163_v26 }
0x14a8   : > { %7306 = vst.msk [vmem:[#allocation2 + $0x10] sm:$0xff] %vm776_vm1, %v7304_v29  ;;  %v7305_v58 = vadd.f32 %v7303_v13, %v7301_v52 }
0x14a9   : > { %v7155_v12 = vadd.f32 %v7154_v19, %v7153_v17  ;;  %v7166_v25 = vrot.slane %v7165_v34, 1  ;;  %v9542_v17 = vld [vmem:[%s15816_s19 + $0x10] sm:$0xff] }
0x14aa   : > { %7307 = vst.msk [vmem:[#allocation2 + $0x18] sm:$0xff] %vm776_vm1, %v7305_v58  ;;  %v15950_v58 = vld [vmem:[#allocation44_spill] sm:$0xff] }
0x14ab   : > { %v15151_v32 = vadd.f32 %v7155_v12, %v6754_v20  ;;  %v7167_v39 = vadd.f32 %v7166_v25, %v7165_v34  ;;  %v7452_v23 = vpop.f32.mrb[136].mxu0 }
0x14ac   : > { %v11955_v24 = vpop.f32.mrb[137].mxu0 }
0x14ad   : > { %v15153_v18 = vadd.f32 %v7167_v39, %v6766_v15  ;;  %v7455_v57 = vpop.f32.mrb[138].mxu0  ;;  %v9540_v15 = vld [vmem:[%s15816_s19] sm:$0xff] }
0x14ae   : > { %v11956_v38 = vpop.f32.mrb[139].mxu0  ;;  %v8624_v43 = vpop.permute.xlu1 %8623  ;;  %v15173_v56 = vpack.c.bf16 %v9541_v2, %v9540_v15 }
0x14af   : > { %12134 = vmatmul.mubr.msk.bf16.vlgmr.msra.gmra.mrb[184].mxu0 %vm776_vm1, %v8624_v43 }
0x14b0   : > { %12138 = vmatpush3.bf16.msra.mxu0 %v13939_v10  ;;  %12141 = vmatprep.mubr.msk.bf16.mxu0 %vm12803_vm0, %v15912_v6  ;;  %v9546_v31 = vunpack.c.l.bf16 %v15173_v56  ;;  %v9547_v48 = vunpack.c.h.bf16 %v15173_v56 }
0x14b1   : > { %12139 = vmatprep.subr.bf16.mxu0 %v15912_v6 }
0x14b3   : > { %v7493_v33 = vpop.f32.mrb[140].mxu0 }
0x14b4   : > { %v7494_v20 = vadd.f32 %v7493_v33, %v7452_v23  ;;  %v11963_v47 = vpop.f32.mrb[141].mxu0  ;;  %12140 = vmatpush3.bf16.msra.mxu0 %v13945_v21  ;;  %v15949_v21 = vld [vmem:[#allocation43_spill] sm:$0xff] }
0x14b5   : > { %v8712_v46 = vpop.permute.xlu0 %8711  ;;  %v7496_v10 = vpop.f32.mrb[142].mxu0  ;;  %12153 = vmatprep.subr.bf16.mxu0 %v15912_v6  ;;  %v9551_v47 = vsub.f32 %v9541_v2, %v9547_v48 }
0x14b6   : > { %v7547_v41 = vadd.f32 %v15948_v11, %v7494_v20  ;;  %v7497_v14 = vadd.f32 %v7496_v10, %v7455_v57  ;;  %12150 = vmatmul.mubr.msk.bf16.vlgmr.msra.gmra.mrb[148].mxu1 %vm776_vm1, %v8712_v46  ;;  %v11964_v59 = vpop.f32.mrb[143].mxu0  ;;  %v15951_v57 = vld [vmem:[#allocation45_spill] sm:$0xff] }
0x14b7   : > { %12162 = vmatpush3.bf16.msra.mxu1 %v14096_v44  ;;  %12165 = vmatprep.mubr.msk.bf16.mxu1 %vm12803_vm0, %v15912_v6 }
0x14b8   : > { %v15176_v7 = vadd.f32 %v7547_v41, %v15921_v55  ;;  %v7548_v26 = vadd.f32 %v15949_v21, %v7497_v14  ;;  %12142 = vmatmul.mubr.msk.bf16.vlgmr.msra.gmra.mrb[188].mxu0 %vm776_vm1, %v8624_v43  ;;  %12163 = vmatprep.subr.bf16.mxu1 %v15912_v6 }
0x14b9   : > { %12154 = vmatpush3.bf16.msra.mxu0 %v14818_v60  ;;  %12157 = vmatprep.mubr.msk.bf16.mxu0 %vm12803_vm0, %v15912_v6  ;;  %v9543_v60 = vld [vmem:[%s15816_s19 + $0x18] sm:$0xff] }
0x14ba   : > { %v7561_v28 = vmul.f32 %v15176_v7, %v15176_v7  ;;  %v7573_v4 = vmax.f32 %v15138_v63, %v15176_v7  ;;  %v15189_v3 = vadd.f32 %v7548_v26, %v15923_v1  ;;  %12155 = vmatprep.subr.bf16.mxu0 %v15912_v6  ;;  %v7551_v29 = vsel %vm5536_vm4, %v15176_v7, 0.0 }
0x14bb   : > { %12164 = vmatpush3.bf16.msra.mxu1 %v14106_v50  ;;  %v7612_v9 = vpop.f32.mrb[144].mxu0  ;;  %v15212_v39 = vpack.c.bf16 %v9543_v60, %v9542_v17 }
0x14bc   : > { %v7552_v52 = vsel %vm5536_vm4, %v15189_v3, 0.0  ;;  %v7562_v27 = vmul.f32 %v15189_v3, %v15189_v3  ;;  %v7574_v19 = vmax.f32 %v15143_v49, %v15189_v3  ;;  %v11979_v34 = vpop.f32.mrb[145].mxu0  ;;  %12177 = vmatprep.subr.bf16.mxu1 %v15912_v6  ;;  %v7654_v12 = vadd.f32 %v15950_v58, %v7612_v9  ;;  %v7706_v9 = vld [vmem:[#allocation2 + $0x10] sm:$0xff] }
0x14bd   : > { %v7553_v13 = vadd.f32 %v7552_v52, %v7551_v29  ;;  %12156 = vmatpush3.bf16.msra.mxu0 %v14831_v62  ;;  %v7615_v25 = vpop.f32.mrb[146].mxu0  ;;  %v7563_v23 = vsel %vm5536_vm4, %v7561_v28, 0.0  ;;  %v9550_v62 = vsub.f32 %v9540_v15, %v9546_v31  ;;  %v9548_v11 = vunpack.c.l.bf16 %v15212_v39 }
0x14be   : > { %v7564_v24 = vsel %vm5536_vm4, %v7562_v27, 0.0  ;;  %v7657_v38 = vadd.f32 %v15951_v57, %v7615_v25  ;;  %12166 = vmatmul.mubr.msk.bf16.vlgmr.msra.gmra.mrb[152].mxu1 %vm776_vm1, %v15073_v22  ;;  %v11980_v43 = vpop.f32.mrb[147].mxu0  ;;  %12169 = vmatprep.subr.bf16.mxu0 %v15912_v6  ;;  %v9549_v41 = vunpack.c.h.bf16 %v15212_v39  ;;  %v4894_v29 = vmax.f32 %v14863_v40, 0.0  ;;  %v7707_v25 = vld [vmem:[#allocation2 + $0x18] sm:$0xff]  ;;  %v9903_v40 = vld [vmem:[%s15818_s21] sm:$0xff] }
0x14bf   : > { %v7554_v33 = vrot.slane %v7553_v13, 4  ;;  %v7565_v20 = vadd.f32 %v7564_v24, %v7563_v23  ;;  %12181 = vmatprep.mubr.msk.bf16.mxu1 %vm12803_vm0, %v15912_v6  ;;  %v9554_v15 = vpack.c.bf16 %v9551_v47, %v9550_v62  ;;  %v9552_v31 = vsub.f32 %v9542_v17, %v9548_v11 }
0x14c0   : > { %12158 = vmatmul.mubr.msk.bf16.vlgmr.msra.gmra.mrb[192].mxu0 %vm776_vm1, %v15073_v22  ;;  %v9553_v48 = vsub.f32 %v9543_v60, %v9549_v41  ;;  %v4895_v52 = vmax.f32 %v14865_v53, 0.0  ;;  %v9538_v24 = vadd.f32 %v4894_v29, %v13894_v35  ;;  %v9904_v53 = vld [vmem:[%s15818_s21 + $0x8] sm:$0xff] }
0x14c1   : > { %v7555_v46 = vadd.f32 %v7554_v33, %v7553_v13  ;;  %v7566_v10 = vrot.slane %v7565_v20, 4  ;;  %12170 = vmatpush3.bf16.msra.mxu0 %v14096_v44  ;;  %12173 = vmatprep.mubr.msk.bf16.mxu0 %vm12803_vm0, %v15912_v6 }
0x14c2   : > { %12171 = vmatprep.subr.bf16.mxu0 %v15912_v6  ;;  %v9555_v60 = vpack.c.bf16 %v9553_v48, %v9552_v31  ;;  %v9539_v57 = vadd.f32 %v4895_v52, %v13896_v16 }
0x14c3   : > { %v7556_v14 = vrot.slane %v7555_v46, 2  ;;  %v7567_v59 = vadd.f32 %v7566_v10, %v7565_v20  ;;  %v7697_v21 = vpop.f32.mrb[148].mxu0 }
0x14c4   : > { %v7704_v26 = vadd.f32 %v7697_v21, %v7654_v12  ;;  %v11995_v22 = vpop.f32.mrb[149].mxu0  ;;  %v9556_v35 = vpack.c.bf16 %v9539_v57, %v9538_v24 }
0x14c5   : > { %v7557_v2 = vadd.f32 %v7556_v14, %v7555_v46  ;;  %v7568_v28 = vrot.slane %v7567_v59, 2  ;;  %12172 = vmatpush3.bf16.msra.mxu0 %v14106_v50  ;;  %v7700_v44 = vpop.f32.mrb[150].mxu0 }
0x14c6   : > { %v7708_v27 = vadd.f32 %v7706_v9, %v7704_v26  ;;  %v7705_v34 = vadd.f32 %v7700_v44, %v7657_v38  ;;  %v11996_v13 = vpop.f32.mrb[151].mxu0  ;;  %12249 = vmatprep.subr.bf16.mxu0 %v15912_v6  ;;  %v9558_v44 = vunpack.c.h.bf16 %v9556_v35 }
0x14c7   : > { %v7558_v58 = vrot.slane %v7557_v2, 1  ;;  %v7569_v12 = vadd.f32 %v7568_v28, %v7567_v59 }
0x14c8   : > { %7710 = vst.msk [vmem:[#allocation2 + $0x10] sm:$0xff] %vm776_vm1, %v7708_v27  ;;  %v7709_v23 = vadd.f32 %v7707_v25, %v7705_v34  ;;  %12174 = vmatmul.mubr.msk.bf16.vlgmr.msra.gmra.mrb[196].mxu0 %vm776_vm1, %v15091_v8 }
0x14c9   : > { %v7559_v50 = vadd.f32 %v7558_v58, %v7557_v2  ;;  %v7570_v17 = vrot.slane %v7569_v12, 1  ;;  %12250 = vmatpush3.bf16.msra.mxu0 %v9554_v15  ;;  %12253 = vmatprep.mubr.msk.bf16.mxu0 %vm12803_vm0, %v15912_v6 }
0x14ca   : > { %7711 = vst.msk [vmem:[#allocation2 + $0x18] sm:$0xff] %vm776_vm1, %v7709_v23  ;;  %12251 = vmatprep.subr.bf16.mxu0 %v15912_v6 }
0x14cb   : > { %v15248_v8 = vadd.f32 %v7559_v50, %v15151_v32  ;;  %v7571_v38 = vadd.f32 %v7570_v17, %v7569_v12  ;;  %v7856_v43 = vpop.f32.mrb[152].mxu0 }
0x14cc   : > { %v12015_v33 = vpop.f32.mrb[153].mxu0 }
0x14cd   : > { %v15251_v20 = vadd.f32 %v7571_v38, %v15153_v18  ;;  %12252 = vmatpush3.bf16.msra.mxu0 %v9555_v60  ;;  %v7859_v62 = vpop.f32.mrb[154].mxu0 }
0x14ce   : > { %v12016_v47 = vpop.f32.mrb[155].mxu0  ;;  %12257 = vmatprep.subr.bf16.mxu0 %v15912_v6 }
0x14d0   : > { %12254 = vmatmul.mubr.msk.bf16.vlgmr.msra.gmra.mrb[200].mxu0 %vm776_vm1, %v9556_v35 }
0x14d1   : > { %12258 = vmatpush3.bf16.msra.mxu0 %v15173_v56  ;;  %12261 = vmatprep.mubr.msk.bf16.mxu0 %vm12803_vm0, %v15912_v6 }
0x14d2   : > { %12259 = vmatprep.subr.bf16.mxu0 %v15912_v6 }
0x14d3   : > { %v7897_v16 = vpop.f32.mrb[156].mxu0 }
0x14d4   : > { %v7898_v32 = vadd.f32 %v7897_v16, %v7856_v43  ;;  %v12023_v46 = vpop.f32.mrb[157].mxu0 }
0x14d5   : > { %v7900_v18 = vpop.f32.mrb[158].mxu0  ;;  %12260 = vmatpush3.bf16.msra.mxu0 %v15212_v39 }
0x14d6   : > { %v7951_v10 = vadd.f32 %v14591_v45, %v7898_v32  ;;  %v7901_v11 = vadd.f32 %v7900_v18, %v7859_v62  ;;  %v12024_v41 = vpop.f32.mrb[159].mxu0  ;;  %12265 = vmatprep.subr.bf16.mxu0 %v15912_v6 }
0x14d8   : > { %v7953_v14 = vadd.f32 %v7951_v10, %v15921_v55  ;;  %v7952_v59 = vadd.f32 %v14596_v0, %v7901_v11 }
0x14da   : > { %v7965_v21 = vmul.f32 %v7953_v14, %v7953_v14  ;;  %v15267_v26 = vmax.f32 %v7573_v4, %v7953_v14  ;;  %v7954_v22 = vadd.f32 %v7952_v59, %v15923_v1  ;;  %v7955_v2 = vsel %vm5536_vm4, %v7953_v14, 0.0 }
0x14db   : > { %v8016_v15 = vpop.f32.mrb[160].mxu0 }
0x14dc   : > { %v7956_v45 = vsel %vm5536_vm4, %v7954_v22, 0.0  ;;  %v7966_v28 = vmul.f32 %v7954_v22, %v7954_v22  ;;  %v15275_v9 = vmax.f32 %v7574_v19, %v7954_v22  ;;  %12262 = vmatmul.mubr.msk.bf16.vlgmr.msra.gmra.mrb[200].mxu0 %vm776_vm1, %v9556_v35  ;;  %v12039_v0 = vpop.f32.mrb[161].mxu0  ;;  %v8058_v7 = vadd.f32 %v14621_v61, %v8016_v15 }
0x14dd   : > { %v7957_v63 = vadd.f32 %v7956_v45, %v7955_v2  ;;  %v8019_v4 = vpop.f32.mrb[162].mxu0  ;;  %12266 = vmatpush3.bf16.msra.mxu0 %v15173_v56  ;;  %12269 = vmatprep.mubr.msk.bf16.mxu0 %vm12803_vm0, %v15912_v6  ;;  %v7967_v31 = vsel %vm5536_vm4, %v7965_v21, 0.0  ;;  %v9557_v19 = vunpack.c.l.bf16 %v9556_v35  ;;  %v9560_v56 = vsub.f32 %v9539_v57, %v9558_v44 }
0x14de   : > { %v7968_v48 = vsel %vm5536_vm4, %v7966_v28, 0.0  ;;  %v8061_v49 = vadd.f32 %v14627_v37, %v8019_v4  ;;  %v12040_v3 = vpop.f32.mrb[163].mxu0  ;;  %12267 = vmatprep.subr.bf16.mxu0 %v15912_v6 }
0x14df   : > { %v7958_v27 = vrot.slane %v7957_v63, 4  ;;  %v7969_v34 = vadd.f32 %v7968_v48, %v7967_v31  ;;  %v9559_v58 = vsub.f32 %v9538_v24, %v9557_v19 }
0x14e1   : > { %v7959_v13 = vadd.f32 %v7958_v27, %v7957_v63  ;;  %v7970_v61 = vrot.slane %v7969_v34, 4  ;;  %12268 = vmatpush3.bf16.msra.mxu0 %v15212_v39  ;;  %v9561_v35 = vpack.c.bf16 %v9560_v56, %v9559_v58 }
0x14e2   : > { %12273 = vmatprep.subr.bf16.mxu0 %v15912_v6 }
0x14e3   : > { %v7960_v12 = vrot.slane %v7959_v13, 2  ;;  %v7971_v25 = vadd.f32 %v7970_v61, %v7969_v34  ;;  %v8101_v23 = vpop.f32.mrb[164].mxu0 }
0x14e4   : > { %v8108_v50 = vadd.f32 %v8101_v23, %v8058_v7  ;;  %v12055_v17 = vpop.f32.mrb[165].mxu0 }
0x14e5   : > { %v7961_v37 = vadd.f32 %v7960_v12, %v7959_v13  ;;  %v7972_v60 = vrot.slane %v7971_v25, 2  ;;  %v8104_v38 = vpop.f32.mrb[166].mxu0 }
0x14e6   : > { %v8110_v43 = vadd.f32 %v8108_v50, %v14898_v42  ;;  %v8109_v33 = vadd.f32 %v8104_v38, %v8061_v49  ;;  %v12056_v62 = vpop.f32.mrb[167].mxu0 }
0x14e7   : > { %v7962_v47 = vrot.slane %v7961_v37, 1  ;;  %v7973_v16 = vadd.f32 %v7972_v60, %v7971_v25 }
0x14e8   : > { %8112 = vst.msk [vmem:[#allocation2 + $0x20] sm:$0xff] %vm776_vm1, %v8110_v43  ;;  %v8111_v39 = vadd.f32 %v8109_v33, %v14905_v36  ;;  %12270 = vmatmul.mubr.msk.bf16.vlgmr.msra.gmra.mrb[200].mxu0 %vm776_vm1, %v9561_v35 }
0x14e9   : > { %v7963_v24 = vadd.f32 %v7962_v47, %v7961_v37  ;;  %v7974_v57 = vrot.slane %v7973_v16, 1  ;;  %12277 = vmatprep.mubr.msk.bf16.mxu0 %vm12803_vm0, %v15912_v6 }
0x14ea   : > { %8113 = vst.msk [vmem:[#allocation2 + $0x28] sm:$0xff] %vm776_vm1, %v8111_v39 }
0x14eb   : > { %v7964_v42 = vadd.f32 %v7963_v24, %v15248_v8  ;;  %v7975_v32 = vadd.f32 %v7974_v57, %v7973_v16  ;;  %v8258_v46 = vpop.f32.mrb[168].mxu0 }
0x14ec   : > { %v12075_v18 = vpop.f32.mrb[169].mxu0 }
0x14ed   : > { %v7976_v10 = vadd.f32 %v7975_v32, %v15251_v20  ;;  %v8261_v11 = vpop.f32.mrb[170].mxu0  ;;  %v9021_v18 = vld [vmem:[%s15810_s13] sm:$0xff] }
0x14ee   : > { %v12076_v41 = vpop.f32.mrb[171].mxu0 }
0x14ef   : > { %v9023_v41 = vld [vmem:[%s15810_s13 + $0x10] sm:$0xff] }
0x14f3   : > { %v8299_v14 = vpop.f32.mrb[172].mxu0 }
0x14f4   : > { %v8300_v36 = vadd.f32 %v8299_v14, %v8258_v46  ;;  %v12083_v59 = vpop.f32.mrb[173].mxu0 }
0x14f5   : > { %v8302_v21 = vpop.f32.mrb[174].mxu0 }
0x14f6   : > { %v8353_v22 = vadd.f32 %v15018_v30, %v8300_v36  ;;  %v8303_v15 = vadd.f32 %v8302_v21, %v8261_v11  ;;  %v12084_v2 = vpop.f32.mrb[175].mxu0  ;;  %v9022_v11 = vld [vmem:[%s15810_s13 + $0x8] sm:$0xff] }
0x14f7   : > { %v15336_v14 = vpack.c.bf16 %v9022_v11, %v9021_v18 }
0x14f8   : > { %v15299_v45 = vadd.f32 %v8353_v22, %v15921_v55  ;;  %v8354_v8 = vadd.f32 %v15022_v51, %v8303_v15 }
0x14f9   : > { %v9027_v36 = vunpack.c.l.bf16 %v15336_v14  ;;  %v9028_v59 = vunpack.c.h.bf16 %v15336_v14 }
0x14fa   : > { %v8367_v28 = vmul.f32 %v15299_v45, %v15299_v45  ;;  %v8379_v20 = vmax.f32 %v15267_v26, %v15299_v45  ;;  %v15307_v0 = vadd.f32 %v8354_v8, %v15923_v1  ;;  %v8357_v30 = vsel %vm5536_vm4, %v15299_v45, 0.0 }
0x14fb   : > { %v8418_v44 = vpop.f32.mrb[176].mxu0  ;;  %v9031_v15 = vsub.f32 %v9021_v18, %v9027_v36  ;;  %v9032_v2 = vsub.f32 %v9022_v11, %v9028_v59 }
0x14fc   : > { %v8358_v63 = vsel %vm5536_vm4, %v15307_v0, 0.0  ;;  %v8368_v7 = vmul.f32 %v15307_v0, %v15307_v0  ;;  %v8380_v51 = vmax.f32 %v15275_v9, %v15307_v0  ;;  %v12099_v4 = vpop.f32.mrb[177].mxu0  ;;  %v8460_v48 = vadd.f32 %v15029_v54, %v8418_v44  ;;  %v8512_v54 = vld [vmem:[#allocation2 + $0x20] sm:$0xff] }
0x14fd   : > { %v8359_v31 = vadd.f32 %v8358_v63, %v8357_v30  ;;  %v8421_v49 = vpop.f32.mrb[178].mxu0  ;;  %v8369_v3 = vsel %vm5536_vm4, %v8367_v28, 0.0  ;;  %v9035_v44 = vpack.c.bf16 %v9032_v2, %v9031_v15 }
0x14fe   : > { %v8370_v19 = vsel %vm5536_vm4, %v8368_v7, 0.0  ;;  %v8463_v27 = vadd.f32 %v15033_v5, %v8421_v49  ;;  %v12100_v34 = vpop.f32.mrb[179].mxu0  ;;  %v8513_v5 = vld [vmem:[#allocation2 + $0x28] sm:$0xff] }
0x14ff   : > { %v8360_v13 = vrot.slane %v8359_v31, 4  ;;  %v8371_v61 = vadd.f32 %v8370_v19, %v8369_v3  ;;  %12178 = vmatpush3.bf16.msra.mxu1 %v9035_v44 }
0x1500   : > { %12179 = vmatprep.subr.bf16.mxu1 %v15912_v6 }
0x1501   : > { %v8361_v56 = vadd.f32 %v8360_v13, %v8359_v31  ;;  %v8372_v58 = vrot.slane %v8371_v61, 4 }
0x1503   : > { %v8362_v12 = vrot.slane %v8361_v56, 2  ;;  %v8373_v25 = vadd.f32 %v8372_v58, %v8371_v61  ;;  %v8503_v23 = vpop.f32.mrb[180].mxu0 }
0x1504   : > { %v8510_v50 = vadd.f32 %v8503_v23, %v8460_v48  ;;  %v12115_v17 = vpop.f32.mrb[181].mxu0 }
0x1505   : > { %v8363_v37 = vadd.f32 %v8362_v12, %v8361_v56  ;;  %v8374_v60 = vrot.slane %v8373_v25, 2  ;;  %v8506_v38 = vpop.f32.mrb[182].mxu0 }
0x1506   : > { %v8514_v43 = vadd.f32 %v8512_v54, %v8510_v50  ;;  %v8511_v33 = vadd.f32 %v8506_v38, %v8463_v27  ;;  %v12116_v62 = vpop.f32.mrb[183].mxu0  ;;  %v15356_v38 = vld [vmem:[#allocation2 + $0x18] sm:$0xff] }
0x1507   : > { %v8364_v35 = vrot.slane %v8363_v37, 1  ;;  %v8375_v47 = vadd.f32 %v8374_v60, %v8373_v25  ;;  %v8963_v36 = vsel %vm776_vm1, %v15356_v38, 0.0 }
0x1508   : > { %8516 = vst.msk [vmem:[#allocation2 + $0x20] sm:$0xff] %vm776_vm1, %v8514_v43  ;;  %v8515_v16 = vadd.f32 %v8513_v5, %v8511_v33 }
0x1509   : > { %v8365_v39 = vadd.f32 %v8364_v35, %v8363_v37  ;;  %v8376_v24 = vrot.slane %v8375_v47, 1 }
0x150a   : > { %8517 = vst.msk [vmem:[#allocation2 + $0x28] sm:$0xff] %vm776_vm1, %v8515_v16 }
0x150b   : > { %v8377_v57 = vadd.f32 %v8376_v24, %v8375_v47  ;;  %v15323_v32 = vadd.f32 %v8365_v39, %v7964_v42  ;;  %v9024_v42 = vld [vmem:[%s15810_s13 + $0x18] sm:$0xff]  ;;  %v15369_v24 = vld [vmem:[#allocation2] sm:$0xff] }
0x150d   : > { %v15325_v46 = vadd.f32 %v8377_v57, %v7976_v10  ;;  %v15341_v10 = vpack.c.bf16 %v9024_v42, %v9023_v41  ;;  %v8973_v57 = vmul.f32 %v15356_v38, %v15356_v38 }
0x150f   : > { %v9029_v21 = vunpack.c.l.bf16 %v15341_v10  ;;  %v9030_v22 = vunpack.c.h.bf16 %v15341_v10  ;;  %v8975_v44 = vsel %vm776_vm1, %v8973_v57, 0.0 }
0x1511   : > { %v9033_v8 = vsub.f32 %v9023_v41, %v9029_v21  ;;  %v9034_v28 = vsub.f32 %v9024_v42, %v9030_v22  ;;  %v8948_v21 = vmul.f32 %v15369_v24, %v15369_v24 }
0x1513   : > { %v9036_v30 = vpack.c.bf16 %v9034_v28, %v9033_v8 }
0x1515   : > { %12180 = vmatpush3.bf16.msra.mxu1 %v9036_v30 }
0x1516   : > { %12185 = vmatprep.subr.bf16.mxu1 %v15912_v6 }
0x1582   : > { %v8662_v63 = vpop.f32.mrb[184].mxu0 }
0x1583   : > { %v12135_v7 = vpop.f32.mrb[185].mxu0 }
0x1584   : > { %v8665_v4 = vpop.f32.mrb[186].mxu0 }
0x1585   : > { %v12136_v31 = vpop.f32.mrb[187].mxu0 }
0x1589   : > { %v8750_v48 = vpop.f32.mrb[148].mxu1 }
0x158a   : > { %v12151_v49 = vpop.f32.mrb[149].mxu1 }
0x158b   : > { %v8703_v3 = vpop.f32.mrb[188].mxu0  ;;  %v8753_v19 = vpop.f32.mrb[150].mxu1 }
0x158c   : > { %v8704_v27 = vadd.f32 %v8703_v3, %v8662_v63  ;;  %v12143_v34 = vpop.f32.mrb[189].mxu0  ;;  %v12152_v13 = vpop.f32.mrb[151].mxu1 }
0x158d   : > { %v8706_v61 = vpop.f32.mrb[190].mxu0  ;;  %v8916_v13 = vld [vmem:[#allocation2 + $0x20] sm:$0xff] }
0x158e   : > { %v8757_v56 = vadd.f32 %v8750_v48, %v8704_v27  ;;  %v8707_v58 = vadd.f32 %v8706_v61, %v8665_v4  ;;  %v12144_v12 = vpop.f32.mrb[191].mxu0  ;;  %v8938_v4 = vsel %vm776_vm1, %v15369_v24, 0.0 }
0x1590   : > { %v8759_v25 = vadd.f32 %v8757_v56, %v15921_v55  ;;  %v8758_v23 = vadd.f32 %v8753_v19, %v8707_v58  ;;  %v8950_v56 = vsel %vm776_vm1, %v8948_v21, 0.0 }
0x1591   : > { %v8863_v50 = vpop.f32.mrb[152].mxu1 }
0x1592   : > { %v8771_v17 = vmul.f32 %v8759_v25, %v8759_v25  ;;  %v15353_v37 = vmax.f32 %v8379_v20, %v8759_v25  ;;  %v8760_v60 = vadd.f32 %v8758_v23, %v15923_v1  ;;  %v12167_v54 = vpop.f32.mrb[153].mxu1  ;;  %v8761_v62 = vsel %vm5536_vm4, %v8759_v25, 0.0  ;;  %v15365_v20 = vld [vmem:[#allocation2 + $0x8] sm:$0xff]  ;;  %v15367_v1 = vld [vmem:[#allocation2 + $0x10] sm:$0xff] }
0x1593   : > { %v8822_v43 = vpop.f32.mrb[192].mxu0  ;;  %v8866_v33 = vpop.f32.mrb[154].mxu1  ;;  %v8949_v42 = vmul.f32 %v15365_v20, %v15365_v20  ;;  %v8972_v59 = vmul.f32 %v15367_v1, %v15367_v1  ;;  %v8939_v2 = vsel %vm776_vm1, %v15365_v20, 0.0  ;;  %v8962_v8 = vsel %vm776_vm1, %v15367_v1, 0.0 }
0x1594   : > { %v8762_v35 = vsel %vm5536_vm4, %v8760_v60, 0.0  ;;  %v8772_v55 = vmul.f32 %v8760_v60, %v8760_v60  ;;  %v15363_v47 = vmax.f32 %v8380_v51, %v8760_v60  ;;  %v12159_v26 = vpop.f32.mrb[193].mxu0  ;;  %v12168_v45 = vpop.f32.mrb[155].mxu1  ;;  %v8864_v16 = vadd.f32 %v8863_v50, %v8822_v43  ;;  %v8917_v43 = vld [vmem:[#allocation2 + $0x28] sm:$0xff] }
0x1595   : > { %v8763_v5 = vadd.f32 %v8762_v35, %v8761_v62  ;;  %v8825_v39 = vpop.f32.mrb[194].mxu0  ;;  %v8773_v18 = vsel %vm5536_vm4, %v8771_v17, 0.0  ;;  %v8964_v28 = vadd.f32 %v8963_v36, %v8962_v8  ;;  %v8951_v31 = vsel %vm776_vm1, %v8949_v42, 0.0 }
0x1596   : > { %v8774_v9 = vsel %vm5536_vm4, %v8772_v55, 0.0  ;;  %v8867_v0 = vadd.f32 %v8866_v33, %v8825_v39  ;;  %v12160_v51 = vpop.f32.mrb[195].mxu0  ;;  %v8940_v3 = vadd.f32 %v8939_v2, %v8938_v4  ;;  %v8974_v19 = vsel %vm776_vm1, %v8972_v59, 0.0 }
0x1597   : > { %v8764_v11 = vrot.slane %v8763_v5, 4  ;;  %v8775_v41 = vadd.f32 %v8774_v9, %v8773_v18  ;;  %v8976_v58 = vadd.f32 %v8975_v44, %v8974_v19  ;;  %v8952_v50 = vadd.f32 %v8951_v31, %v8950_v56 }
0x1598   : > { %v8965_v17 = vrot.slane %v8964_v28, 4  ;;  %v8941_v62 = vrot.slane %v8940_v3, 4 }
0x1599   : > { %v8765_v22 = vadd.f32 %v8764_v11, %v8763_v5  ;;  %v8776_v15 = vrot.slane %v8775_v41, 4  ;;  %v8977_v26 = vrot.slane %v8976_v58, 4  ;;  %v8953_v45 = vrot.slane %v8952_v50, 4 }
0x159a   : > { %v8966_v5 = vadd.f32 %v8965_v17, %v8964_v28  ;;  %v8942_v57 = vadd.f32 %v8941_v62, %v8940_v3 }
0x159b   : > { %v8766_v30 = vrot.slane %v8765_v22, 2  ;;  %v8777_v63 = vadd.f32 %v8776_v15, %v8775_v41  ;;  %v8907_v7 = vpop.f32.mrb[196].mxu0  ;;  %v8954_v51 = vadd.f32 %v8953_v45, %v8952_v50 }
0x159c   : > { %v8914_v48 = vadd.f32 %v8907_v7, %v8864_v16  ;;  %v12175_v49 = vpop.f32.mrb[197].mxu0  ;;  %v8967_v11 = vrot.slane %v8966_v5, 2 }
0x159d   : > { %v8767_v27 = vadd.f32 %v8766_v30, %v8765_v22  ;;  %v8778_v34 = vrot.slane %v8777_v63, 2  ;;  %v8910_v61 = vpop.f32.mrb[198].mxu0  ;;  %v8955_v30 = vrot.slane %v8954_v51, 2 }
0x159e   : > { %v8918_v12 = vadd.f32 %v8916_v13, %v8914_v48  ;;  %v8915_v25 = vadd.f32 %v8910_v61, %v8867_v0  ;;  %v12176_v23 = vpop.f32.mrb[199].mxu0  ;;  %v8978_v0 = vadd.f32 %v8977_v26, %v8976_v58 }
0x159f   : > { %v8768_v60 = vrot.slane %v8767_v27, 1  ;;  %v8779_v54 = vadd.f32 %v8778_v34, %v8777_v63  ;;  %v8956_v19 = vadd.f32 %v8955_v30, %v8954_v51 }
0x15a0   : > { %8920 = vst.msk [vmem:[#allocation2 + $0x20] sm:$0xff] %vm776_vm1, %v8918_v12  ;;  %v8919_v33 = vadd.f32 %v8917_v43, %v8915_v25 }
0x15a1   : > { %v8769_v35 = vadd.f32 %v8768_v60, %v8767_v27  ;;  %v8780_v55 = vrot.slane %v8779_v54, 1  ;;  %v8957_v25 = vrot.slane %v8956_v19, 1 }
0x15a2   : > { %8921 = vst.msk [vmem:[#allocation2 + $0x28] sm:$0xff] %vm776_vm1, %v8919_v33 }
0x15a3   : > { %v8770_v16 = vadd.f32 %v8769_v35, %v15323_v32  ;;  %v8781_v39 = vadd.f32 %v8780_v55, %v8779_v54  ;;  %v8943_v32 = vrot.slane %v8942_v57, 2  ;;  %v8958_v35 = vadd.f32 %v8957_v25, %v8956_v19 }
0x15a5   : > { %v8782_v18 = vadd.f32 %v8781_v39, %v15325_v46  ;;  %v8922_v9 = vmul.f32 0.0069444445, %v8770_v16  ;;  %v8979_v46 = vrot.slane %v8978_v0, 2  ;;  %v8944_v7 = vadd.f32 %v8943_v32, %v8942_v57 }
0x15a7   : > { %v8923_v41 = vmul.f32 0.0069444445, %v8782_v18  ;;  %v8924_v42 = vmul.f32 %v8922_v9, %v8922_v9  ;;  %v8929_v36 = vsub.f32 %v15363_v47, %v8922_v9  ;;  %v15398_v59 = vld [vmem:[#allocation2 + $0x20] sm:$0xff]  ;;  %v8928_v21 = vsub.f32 %v15353_v37, %v8922_v9 }
0x15a8   : > { %v8996_v22 = vmul.f32 %v15398_v59, %v15398_v59  ;;  %v8986_v28 = vsel %vm776_vm1, %v15398_v59, 0.0  ;;  %v8968_v37 = vadd.f32 %v8967_v11, %v8966_v5  ;;  %v8980_v48 = vadd.f32 %v8979_v46, %v8978_v0 }
0x15a9   : > { %v8925_v15 = vsub.f32 %v8923_v41, %v8924_v42  ;;  %v15403_v2 = vld [vmem:[#allocation2 + $0x28] sm:$0xff]  ;;  %v8945_v61 = vrot.slane %v8944_v7, 1 }
0x15aa   : > { %v8997_v8 = vmul.f32 %v15403_v2, %v15403_v2  ;;  %v8987_v47 = vsel %vm776_vm1, %v15403_v2, 0.0  ;;  %v8998_v4 = vsel %vm776_vm1, %v8996_v22, 0.0  ;;  %v8969_v27 = vrot.slane %v8968_v37, 1 }
0x15ab   : > { %v8926_v44 = vadd.f32 1e-05, %v8925_v15  ;;  %v8988_v63 = vadd.f32 %v8987_v47, %v8986_v28  ;;  %v8981_v56 = vrot.slane %v8980_v48, 1  ;;  %v8946_v60 = vadd.f32 %v8945_v61, %v8944_v7 }
0x15ac   : > { %v8999_v31 = vsel %vm776_vm1, %v8997_v8, 0.0  ;;  %v8970_v23 = vadd.f32 %v8969_v27, %v8968_v37 }
0x15ad   : > { %12707 = vrsqrt.f32 %v8926_v44  ;;  %v8989_v49 = vrot.slane %v8988_v63, 4  ;;  %v9000_v3 = vadd.f32 %v8999_v31, %v8998_v4  ;;  %v8982_v54 = vadd.f32 %v8981_v56, %v8980_v48 }
0x15ae   : > { %v8971_v55 = vadd.f32 %v8970_v23, %v8946_v60  ;;  %v10600_v60 = vld [vmem:[%s15810_s13 + $0x28] sm:$0xff] }
0x15af   : > { %v8990_v34 = vadd.f32 %v8989_v49, %v8988_v63  ;;  %v9001_v13 = vrot.slane %v9000_v3, 4  ;;  %v8983_v39 = vadd.f32 %v8982_v54, %v8958_v35 }
0x15b1   : > { %v8991_v58 = vrot.slane %v8990_v34, 2  ;;  %v9002_v12 = vadd.f32 %v9001_v13, %v9000_v3 }
0x15b3   : > { %v8992_v50 = vadd.f32 %v8991_v58, %v8990_v34  ;;  %v9003_v17 = vrot.slane %v9002_v12, 2 }
0x15b5   : > { %v8993_v43 = vrot.slane %v8992_v50, 1  ;;  %v9004_v33 = vadd.f32 %v9003_v17, %v9002_v12  ;;  %v10599_v17 = vld [vmem:[%s15810_s13 + $0x20] sm:$0xff] }
0x15b6   : > { %v9193_v54 = vpack.c.bf16 %v10600_v60, %v10599_v17 }
0x15b7   : > { %v12708_v62 = vpop.eup %12707  ;;  %v8994_v26 = vadd.f32 %v8993_v43, %v8992_v50  ;;  %v9005_v45 = vrot.slane %v9004_v33, 1  ;;  %v10601_v43 = vld [vmem:[%s15810_s13 + $0x30] sm:$0xff] }
0x15b8   : > { %v8931_v5 = vmul.f32 %v12708_v62, %v8929_v36  ;;  %v8930_v16 = vmul.f32 %v12708_v62, %v8928_v21  ;;  %v9195_v62 = vunpack.c.l.bf16 %v9193_v54  ;;  %v9196_v35 = vunpack.c.h.bf16 %v9193_v54 }
0x15b9   : > { %v8995_v57 = vadd.f32 %v8994_v26, %v8971_v55  ;;  %v9006_v18 = vadd.f32 %v9005_v45, %v9004_v33  ;;  %v10602_v33 = vld [vmem:[%s15810_s13 + $0x38] sm:$0xff] }
0x15ba   : > { %v8933_v9 = vmul.f32 0.2, %v8931_v5  ;;  %v8932_v0 = vmul.f32 0.2, %v8930_v16  ;;  %v9194_v55 = vpack.c.bf16 %v10602_v33, %v10601_v43 }
0x15bb   : > { %v15413_v51 = vpop.f32.mrb[200].mxu0  ;;  %v9007_v11 = vadd.f32 %v9006_v18, %v8983_v39  ;;  %v15415_v41 = vmul.f32 0.020833334, %v8995_v57 }
0x15bc   : > { %v12271_v42 = vpop.f32.mrb[201].mxu0  ;;  %v8934_v22 = vmax.f32 %v8930_v16, %v8932_v0  ;;  %v8935_v32 = vmax.f32 %v8931_v5, %v8933_v9  ;;  %v9199_v5 = vsub.f32 %v10599_v17, %v9195_v62  ;;  %v9200_v16 = vsub.f32 %v10600_v60, %v9196_v35  ;;  %v15526_v17 = vld [vmem:[%s15819_s22] sm:$0xff]  ;;  %v15531_v60 = vld [vmem:[%s15819_s22 + $0x8] sm:$0xff]  ;;  %v15583_v35 = vld [vmem:[%s15819_s22 + $0x38] sm:$0xff] }
0x15bd   : > { %v15417_v15 = vpop.f32.mrb[202].mxu0  ;;  %v9009_v46 = vmul.f32 0.020833334, %v9007_v11  ;;  %v9010_v36 = vmul.f32 %v15415_v41, %v15415_v41  ;;  %v9344_v8 = vsub.f32 %v15398_v59, %v15415_v41  ;;  %v9345_v28 = vsub.f32 %v15403_v2, %v15415_v41  ;;  %v15562_v62 = vld [vmem:[%s15819_s22 + $0x20] sm:$0xff] }
0x15be   : > { %v12272_v21 = vpop.f32.mrb[203].mxu0  ;;  %v15425_v44 = vpack.c.bf16 %v8935_v32, %v8934_v22  ;;  %v9015_v59 = vsub.f32 %v15369_v24, %v15415_v41  ;;  %v9016_v2 = vsub.f32 %v15365_v20, %v15415_v41  ;;  %v9197_v39 = vunpack.c.l.bf16 %v9194_v55 }
0x15bf   : > { %v9011_v47 = vsub.f32 %v9009_v46, %v9010_v36  ;;  %v9198_v57 = vunpack.c.h.bf16 %v9194_v55 }
0x15c0   : > { %v10087_v37 = vunpack.c.l.bf16 %v15425_v44  ;;  %v10088_v63 = vunpack.c.h.bf16 %v15425_v44  ;;  %v9201_v0 = vsub.f32 %v10601_v43, %v9197_v39  ;;  %v15545_v43 = vld [vmem:[%s15819_s22 + $0x18] sm:$0xff] }
0x15c1   : > { %v9012_v30 = vadd.f32 1e-05, %v9011_v47  ;;  %v9202_v11 = vsub.f32 %v10602_v33, %v9198_v57  ;;  %v10608_v47 = vld [vmem:[%s15810_s13 + $0x50] sm:$0xff] }
0x15c2   : > { %v15429_v7 = vsub.f32 %v8934_v22, %v10087_v37  ;;  %v15431_v4 = vsub.f32 %v8935_v32, %v10088_v63  ;;  %v9182_v22 = vsub.f32 %v15367_v1, %v15415_v41  ;;  %v10607_v1 = vld [vmem:[%s15810_s13 + $0x48] sm:$0xff] }
0x15c3   : > { %12709 = vrsqrt.f32 %v9012_v30  ;;  %v9204_v32 = vpack.c.bf16 %v9202_v11, %v9201_v0  ;;  %v10609_v30 = vld [vmem:[%s15810_s13 + $0x58] sm:$0xff] }
0x15c4   : > { %v10091_v31 = vpack.c.bf16 %v15431_v4, %v15429_v7  ;;  %v9707_v7 = vld [vmem:[%s15817_s20 + $0x10] sm:$0xff]  ;;  %v9708_v4 = vld [vmem:[%s15817_s20 + $0x18] sm:$0xff] }
0x15cd   : > { %v12710_v48 = vpop.eup %12709 }
0x15ce   : > { %v9017_v49 = vmul.f32 %v12710_v48, %v9015_v59  ;;  %v9018_v3 = vmul.f32 %v12710_v48, %v9016_v2  ;;  %v9346_v19 = vmul.f32 %v12710_v48, %v9344_v8  ;;  %v9347_v27 = vmul.f32 %v12710_v48, %v9345_v28 }
0x15cf   : > { %v9184_v46 = vmul.f32 %v12710_v48, %v9182_v22  ;;  %v9356_v59 = vpack.c.bf16 %v10609_v30, %v10608_v47 }
0x15d0   : > { %v9019_v34 = vmax.f32 %v9017_v49, 0.0  ;;  %v9020_v13 = vmax.f32 %v9018_v3, 0.0  ;;  %v9348_v61 = vmax.f32 %v9346_v19, 0.0  ;;  %v9349_v56 = vmax.f32 %v9347_v27, 0.0 }
0x15d1   : > { %v9186_v21 = vmax.f32 %v9184_v46, 0.0  ;;  %v9359_v19 = vunpack.c.l.bf16 %v9356_v59  ;;  %v9360_v27 = vunpack.c.h.bf16 %v9356_v59 }
0x15d2   : > { %v9037_v58 = vpack.c.bf16 %v9020_v13, %v9019_v34  ;;  %v15439_v12 = vpack.c.bf16 %v9349_v56, %v9348_v61 }
0x15d4   : > { %12182 = vmatmul.mubr.msk.bf16.vlgmr.msra.gmra.mrb[156].mxu1 %vm776_vm1, %v9037_v58  ;;  %v9368_v20 = vunpack.c.l.bf16 %v15439_v12  ;;  %v9369_v24 = vunpack.c.h.bf16 %v15439_v12  ;;  %v9038_v26 = vunpack.c.l.bf16 %v9037_v58  ;;  %v9039_v45 = vunpack.c.h.bf16 %v9037_v58 }
0x15d5   : > { %12186 = vmatpush3.bf16.msra.mxu1 %v15336_v14  ;;  %12189 = vmatprep.mubr.msk.bf16.mxu1 %vm12803_vm0, %v15912_v6 }
0x15d6   : > { %12187 = vmatprep.subr.bf16.mxu1 %v15912_v6  ;;  %v15448_v25 = vsub.f32 %v9348_v61, %v9368_v20  ;;  %v15450_v23 = vsub.f32 %v9349_v56, %v9369_v24  ;;  %v9040_v18 = vsub.f32 %v9019_v34, %v9038_v26  ;;  %v9041_v9 = vsub.f32 %v9020_v13, %v9039_v45  ;;  %v9705_v26 = vld [vmem:[%s15817_s20] sm:$0xff]  ;;  %v9706_v45 = vld [vmem:[%s15817_s20 + $0x8] sm:$0xff] }
0x15d7   : > { %v9363_v56 = vsub.f32 %v10608_v47, %v9359_v19 }
0x15d8   : > { %v9372_v50 = vpack.c.bf16 %v15450_v23, %v15448_v25  ;;  %v9042_v42 = vpack.c.bf16 %v9041_v9, %v9040_v18  ;;  %v15567_v25 = vld [vmem:[%s15819_s22 + $0x28] sm:$0xff]  ;;  %v15624_v18 = vpack.c.bf16 %v9708_v4, %v9707_v7 }
0x15d9   : > { %12188 = vmatpush3.bf16.msra.mxu1 %v15341_v10  ;;  %v15572_v23 = vpack.c.bf16 %v15567_v25, %v15562_v62 }
0x15da   : > { %12193 = vmatprep.subr.bf16.mxu1 %v15912_v6  ;;  %v9714_v0 = vunpack.c.h.bf16 %v15624_v18 }
0x15e0   : > { %12190 = vmatmul.mubr.msk.bf16.vlgmr.msra.gmra.mrb[156].mxu1 %vm776_vm1, %v9037_v58  ;;  %v9364_v58 = vsub.f32 %v10609_v30, %v9360_v27 }
0x15e1   : > { %12194 = vmatpush3.bf16.msra.mxu1 %v15336_v14  ;;  %12197 = vmatprep.mubr.msk.bf16.mxu1 %vm12803_vm0, %v15912_v6  ;;  %v9203_v14 = vpack.c.bf16 %v9200_v16, %v9199_v5  ;;  %v15614_v5 = vpack.c.bf16 %v9706_v45, %v9705_v26 }
0x15e2   : > { %12195 = vmatprep.subr.bf16.mxu1 %v15912_v6  ;;  %v9366_v24 = vpack.c.bf16 %v9364_v58, %v9363_v56 }
0x15e3   : > { %v9711_v16 = vunpack.c.l.bf16 %v15614_v5  ;;  %v9712_v39 = vunpack.c.h.bf16 %v15614_v5 }
0x15e5   : > { %12196 = vmatpush3.bf16.msra.mxu1 %v15341_v10  ;;  %v9183_v10 = vsub.f32 %v15356_v38, %v15415_v41  ;;  %v10606_v38 = vld [vmem:[%s15810_s13 + $0x40] sm:$0xff]  ;;  %v9716_v57 = vsub.f32 %v9706_v45, %v9712_v39 }
0x15e6   : > { %12201 = vmatprep.subr.bf16.mxu1 %v15912_v6  ;;  %v9355_v41 = vpack.c.bf16 %v10607_v1, %v10606_v38 }
0x15e7   : > { %v9185_v36 = vmul.f32 %v12710_v48, %v9183_v10  ;;  %v10598_v10 = vld [vmem:[%s15811_s14] ss:$0 sm:$0xff] }
0x15e8   : > { %v9357_v37 = vunpack.c.l.bf16 %v9355_v41  ;;  %v9358_v63 = vunpack.c.h.bf16 %v9355_v41 }
0x15e9   : > { %v9187_v8 = vmax.f32 %v9185_v36, 0.0 }
0x15ea   : > { %v9361_v49 = vsub.f32 %v10606_v38, %v9357_v37  ;;  %v9362_v3 = vsub.f32 %v10607_v1, %v9358_v63 }
0x15eb   : > { %v9205_v28 = vpack.c.bf16 %v9187_v8, %v9186_v21 }
0x15ec   : > { %12198 = vmatmul.mubr.msk.bf16.vlgmr.msra.gmra.mrb[156].mxu1 %vm776_vm1, %v9042_v42  ;;  %v9365_v61 = vpack.c.bf16 %v9362_v3, %v9361_v49  ;;  %v9718_v42 = vsub.f32 %v9708_v4, %v9714_v0 }
0x15ed   : > { %12202 = vmatpush3.bf16.msra.mxu1 %v9203_v14  ;;  %12205 = vmatprep.mubr.msk.bf16.mxu1 %vm12803_vm0, %v15912_v6  ;;  %v9206_v2 = vunpack.c.l.bf16 %v9205_v28  ;;  %v9207_v48 = vunpack.c.h.bf16 %v9205_v28  ;;  %v9713_v14 = vunpack.c.l.bf16 %v15624_v18 }
0x15ee   : > { %12203 = vmatprep.subr.bf16.mxu1 %v15912_v6 }
0x15ef   : > { %v9208_v34 = vsub.f32 %v9186_v21, %v9206_v2  ;;  %v9209_v13 = vsub.f32 %v9187_v8, %v9207_v48  ;;  %v9717_v11 = vsub.f32 %v9707_v7, %v9713_v14 }
0x15f1   : > { %12204 = vmatpush3.bf16.msra.mxu1 %v9204_v32  ;;  %v9210_v20 = vpack.c.bf16 %v9209_v13, %v9208_v34  ;;  %v9720_v22 = vpack.c.bf16 %v9718_v42, %v9717_v11 }
0x15f2   : > { %12209 = vmatprep.subr.bf16.mxu1 %v15912_v6 }
0x15f8   : > { %12206 = vmatmul.mubr.msk.bf16.vlgmr.msra.gmra.mrb[156].mxu1 %vm776_vm1, %v9205_v28 }
0x15f9   : > { %12210 = vmatpush3.bf16.msra.mxu1 %v9193_v54  ;;  %12213 = vmatprep.mubr.msk.bf16.mxu1 %vm12803_vm0, %v15912_v6 }
0x15fa   : > { %12211 = vmatprep.subr.bf16.mxu1 %v15912_v6 }
0x15fd   : > { %12212 = vmatpush3.bf16.msra.mxu1 %v9194_v55 }
0x15fe   : > { %12217 = vmatprep.subr.bf16.mxu1 %v15912_v6 }
0x1604   : > { %12214 = vmatmul.mubr.msk.bf16.vlgmr.msra.gmra.mrb[156].mxu1 %vm776_vm1, %v9205_v28 }
0x1605   : > { %12218 = vmatpush3.bf16.msra.mxu1 %v9193_v54  ;;  %12221 = vmatprep.mubr.msk.bf16.mxu1 %vm12803_vm0, %v15912_v6  ;;  %v15540_v54 = vld [vmem:[%s15819_s22 + $0x10] sm:$0xff] }
0x1606   : > { %12219 = vmatprep.subr.bf16.mxu1 %v15912_v6  ;;  %v15554_v33 = vpack.c.bf16 %v15545_v43, %v15540_v54 }
0x1609   : > { %12220 = vmatpush3.bf16.msra.mxu1 %v9194_v55 }
0x160a   : > { %12225 = vmatprep.subr.bf16.mxu1 %v15912_v6 }
0x1610   : > { %12222 = vmatmul.mubr.msk.bf16.vlgmr.msra.gmra.mrb[156].mxu1 %vm776_vm1, %v9210_v20 }
0x1611   : > { %12226 = vmatpush3.bf16.msra.mxu1 %v9365_v61  ;;  %12229 = vmatprep.mubr.msk.bf16.mxu1 %vm12803_vm0, %v15912_v6 }
0x1612   : > { %12227 = vmatprep.subr.bf16.mxu1 %v15912_v6 }
0x1615   : > { %12228 = vmatpush3.bf16.msra.mxu1 %v9366_v24 }
0x1616   : > { %12233 = vmatprep.subr.bf16.mxu1 %v15912_v6 }
0x161c   : > { %12230 = vmatmul.mubr.msk.bf16.vlgmr.msra.gmra.mrb[156].mxu1 %vm776_vm1, %v15439_v12 }
0x161d   : > { %12234 = vmatpush3.bf16.msra.mxu1 %v9355_v41  ;;  %12237 = vmatprep.mubr.msk.bf16.mxu1 %vm12803_vm0, %v15912_v6 }
0x161e   : > { %12235 = vmatprep.subr.bf16.mxu1 %v15912_v6 }
0x1621   : > { %12236 = vmatpush3.bf16.msra.mxu1 %v9356_v59 }
0x1622   : > { %12241 = vmatprep.subr.bf16.mxu1 %v15912_v6 }
0x1628   : > { %12238 = vmatmul.mubr.msk.bf16.vlgmr.msra.gmra.mrb[156].mxu1 %vm776_vm1, %v15439_v12  ;;  %v15535_v12 = vpack.c.bf16 %v15531_v60, %v15526_v17 }
0x1629   : > { %12242 = vmatpush3.bf16.msra.mxu1 %v9355_v41  ;;  %12245 = vmatprep.mubr.msk.bf16.mxu1 %vm12803_vm0, %v15912_v6 }
0x162a   : > { %12243 = vmatprep.subr.bf16.mxu1 %v15912_v6 }
0x162d   : > { %12244 = vmatpush3.bf16.msra.mxu1 %v9356_v59 }
0x162e   : > { %12333 = vmatprep.subr.bf16.mxu1 %v15912_v6 }
0x1634   : > { %12246 = vmatmul.mubr.msk.bf16.vlgmr.msra.gmra.mrb[156].mxu1 %vm776_vm1, %v9372_v50  ;;  %v15578_v50 = vld [vmem:[%s15819_s22 + $0x30] sm:$0xff] }
0x1635   : > { %12334 = vmatpush3.bf16.msra.mxu1 %v15535_v12  ;;  %12341 = vmatprep.mubr.msk.bf16.mxu1 %vm12803_vm0, %v15912_v6  ;;  %v15588_v55 = vpack.c.bf16 %v15583_v35, %v15578_v50 }
0x1636   : > { %12335 = vmatprep.subr.bf16.mxu1 %v15912_v6 }
0x1639   : > { %12336 = vmatpush3.bf16.msra.mxu1 %v15554_v33 }
0x163a   : > { %12337 = vmatprep.subr.bf16.mxu1 %v15912_v6 }
0x163d   : > { %12338 = vmatpush3.bf16.msra.mxu1 %v15572_v23 }
0x163e   : > { %12339 = vmatprep.subr.bf16.mxu1 %v15912_v6 }
0x1641   : > { %12340 = vmatpush3.bf16.msra.mxu1 %v15588_v55 }
0x1642   : > { %12345 = vmatprep.subr.bf16.mxu1 %v15912_v6 }
0x1644   : > { %12342 = vmatmul.mubr.msk.bf16.vlgmr.msra.gmra.mrb[160].mxu1 %vm5536_vm4, %v15425_v44 }
0x1645   : > { %12346 = vmatpush3.bf16.msra.mxu1 %v15535_v12  ;;  %12353 = vmatprep.mubr.msk.bf16.mxu1 %vm12803_vm0, %v15912_v6 }
0x1646   : > { %12347 = vmatprep.subr.bf16.mxu1 %v15912_v6 }
0x1649   : > { %12348 = vmatpush3.bf16.msra.mxu1 %v15554_v33 }
0x164a   : > { %12349 = vmatprep.subr.bf16.mxu1 %v15912_v6 }
0x164d   : > { %12350 = vmatpush3.bf16.msra.mxu1 %v15572_v23 }
0x164e   : > { %12351 = vmatprep.subr.bf16.mxu1 %v15912_v6 }
0x1651   : > { %12352 = vmatpush3.bf16.msra.mxu1 %v15588_v55 }
0x1654   : > { %12354 = vmatmul.mubr.msk.bf16.vlgmr.msra.gmra.mrb[160].mxu1 %vm5536_vm4, %v10091_v31  ;;  %v9715_v31 = vsub.f32 %v9705_v26, %v9711_v16 }
0x1656   : > { %v9719_v9 = vpack.c.bf16 %v9716_v57, %v9715_v31 }
0x1658   : > { %12274 = vmatpush3.bf16.msra.mxu0 %v9719_v9 }
0x1659   : > { %12275 = vmatprep.subr.bf16.mxu0 %v15912_v6 }
0x165c   : > { %12276 = vmatpush3.bf16.msra.mxu0 %v9720_v22 }
0x165d   : > { %12281 = vmatprep.subr.bf16.mxu0 %v15912_v6 }
0x1707   : > { %v9495_v32 = vpop.f32.mrb[156].mxu1 }
0x1708   : > { %v12363_v46 = vadd.f32 %v10598_v10, %v9495_v32  ;;  %v12247_v36 = vpop.f32.mrb[157].mxu1 }
0x1709   : > { %v9498_v21 = vpop.f32.mrb[158].mxu1 }
0x170a   : > { %v9515_v8 = vmul.f32 %v12363_v46, %v12363_v46  ;;  %v12364_v28 = vadd.f32 %v10598_v10, %v9498_v21  ;;  %v12248_v38 = vpop.f32.mrb[159].mxu1  ;;  %v9506_v1 = vsel %vm776_vm1, %v12363_v46, 0.0 }
0x170c   : > { %v9507_v41 = vsel %vm776_vm1, %v12364_v28, 0.0  ;;  %v9516_v47 = vmul.f32 %v12364_v28, %v12364_v28  ;;  %v9517_v37 = vsel %vm776_vm1, %v9515_v8, 0.0 }
0x170d   : > { %v9508_v30 = vadd.f32 %v9507_v41, %v9506_v1  ;;  %v9906_v41 = vld [vmem:[%s15818_s21 + $0x18] sm:$0xff] }
0x170e   : > { %v9518_v63 = vsel %vm776_vm1, %v9516_v47, 0.0 }
0x170f   : > { %v9509_v59 = vrot.slane %v9508_v30, 4  ;;  %v9519_v2 = vadd.f32 %v9518_v63, %v9517_v37 }
0x1711   : > { %v9510_v48 = vadd.f32 %v9509_v59, %v9508_v30  ;;  %v9520_v49 = vrot.slane %v9519_v2, 4 }
0x1713   : > { %v9511_v3 = vrot.slane %v9510_v48, 2  ;;  %v9521_v19 = vadd.f32 %v9520_v49, %v9519_v2 }
0x1715   : > { %v9512_v27 = vadd.f32 %v9511_v3, %v9510_v48  ;;  %v9522_v34 = vrot.slane %v9521_v19, 2 }
0x1717   : > { %v9513_v13 = vrot.slane %v9512_v27, 1  ;;  %v9523_v61 = vadd.f32 %v9522_v34, %v9521_v19  ;;  %v10067_v34 = vunpack.c.h.bf16 %v15535_v12 }
0x1719   : > { %v9514_v56 = vadd.f32 %v9513_v13, %v9512_v27  ;;  %v9524_v58 = vrot.slane %v9523_v61, 1  ;;  %v10066_v27 = vunpack.c.l.bf16 %v15535_v12  ;;  %v10068_v13 = vunpack.c.l.bf16 %v15554_v33 }
0x171a   : > { %v10070_v12 = vunpack.c.l.bf16 %v15572_v23 }
0x171b   : > { %v9525_v20 = vadd.f32 %v9524_v58, %v9523_v61  ;;  %v9526_v24 = vmul.f32 0.0625, %v9514_v56  ;;  %v10069_v61 = vunpack.c.h.bf16 %v15554_v33  ;;  %v10074_v56 = vsub.f32 %v15526_v17, %v10066_v27 }
0x171c   : > { %v10075_v58 = vsub.f32 %v15531_v60, %v10067_v34  ;;  %v10078_v17 = vsub.f32 %v15562_v62, %v10070_v12 }
0x171d   : > { %v9527_v26 = vmul.f32 0.0625, %v9525_v20  ;;  %v9528_v45 = vmul.f32 %v9526_v24, %v9526_v24  ;;  %v9532_v16 = vsub.f32 %v12363_v46, %v9526_v24  ;;  %v9533_v39 = vsub.f32 %v12364_v28, %v9526_v24 }
0x171e   : > { %v10076_v20 = vsub.f32 %v15540_v54, %v10068_v13  ;;  %v10077_v24 = vsub.f32 %v15545_v43, %v10069_v61  ;;  %v10073_v54 = vunpack.c.h.bf16 %v15588_v55 }
0x171f   : > { %v9529_v7 = vsub.f32 %v9527_v26, %v9528_v45  ;;  %v10082_v26 = vpack.c.bf16 %v10075_v58, %v10074_v56  ;;  %v10071_v45 = vunpack.c.h.bf16 %v15572_v23 }
0x1720   : > { %v10083_v33 = vpack.c.bf16 %v10077_v24, %v10076_v20 }
0x1721   : > { %v9530_v4 = vadd.f32 1e-05, %v9529_v7  ;;  %v10079_v60 = vsub.f32 %v15567_v25, %v10071_v45  ;;  %v10081_v7 = vsub.f32 %v15583_v35, %v10073_v54 }
0x1723   : > { %12711 = vrsqrt.f32 %v9530_v4  ;;  %v10084_v43 = vpack.c.bf16 %v10079_v60, %v10078_v17 }
0x1727   : > { %v15637_v31 = vpop.f32.mrb[160].mxu1 }
0x1728   : > { %v12355_v57 = vpop.f32.mrb[161].mxu1 }
0x1729   : > { %v15639_v9 = vpop.f32.mrb[162].mxu1 }
0x172a   : > { %v12356_v14 = vpop.f32.mrb[163].mxu1 }
0x172d   : > { %v12712_v0 = vpop.eup %12711 }
0x172e   : > { %v9534_v11 = vmul.f32 %v12712_v0, %v9532_v16  ;;  %v9535_v42 = vmul.f32 %v12712_v0, %v9533_v39  ;;  %v15953_v16 = vld [vmem:[#allocation14_spill] sm:$0xff]  ;;  %v10072_v39 = vunpack.c.l.bf16 %v15588_v55 }
0x1730   : > { %v9536_v22 = vmax.f32 %v9534_v11, 0.0  ;;  %v9537_v10 = vmax.f32 %v9535_v42, 0.0  ;;  %v10080_v23 = vsub.f32 %v15578_v50, %v10072_v39 }
0x1732   : > { %v9703_v32 = vadd.f32 %v9536_v22, %v4894_v29  ;;  %v9704_v46 = vadd.f32 %v9537_v10, %v4895_v52  ;;  %v9907_v29 = vpack.c.bf16 %v9904_v53, %v9903_v40  ;;  %v9905_v52 = vld [vmem:[%s15818_s21 + $0x10] sm:$0xff]  ;;  %v10085_v62 = vpack.c.bf16 %v10081_v7, %v10080_v23 }
0x1733   : > { %v9908_v37 = vpack.c.bf16 %v9906_v41, %v9905_v52 }
0x1734   : > { %v9721_v36 = vpack.c.bf16 %v9704_v46, %v9703_v32  ;;  %v9909_v47 = vunpack.c.l.bf16 %v9907_v29  ;;  %v9910_v30 = vunpack.c.h.bf16 %v9907_v29 }
0x1735   : > { %v9911_v2 = vunpack.c.l.bf16 %v9908_v37  ;;  %v9912_v48 = vunpack.c.h.bf16 %v9908_v37 }
0x1736   : > { %v9723_v21 = vunpack.c.h.bf16 %v9721_v36  ;;  %12278 = vmatmul.mubr.msk.bf16.vlgmr.msra.gmra.mrb[204].mxu0 %vm776_vm1, %v9721_v36  ;;  %v9722_v8 = vunpack.c.l.bf16 %v9721_v36  ;;  %v9913_v63 = vsub.f32 %v9903_v40, %v9909_v47  ;;  %v9914_v59 = vsub.f32 %v9904_v53, %v9910_v30 }
0x1737   : > { %12282 = vmatpush3.bf16.msra.mxu0 %v15614_v5  ;;  %12285 = vmatprep.mubr.msk.bf16.mxu0 %vm12803_vm0, %v15912_v6  ;;  %v9915_v3 = vsub.f32 %v9905_v52, %v9911_v2  ;;  %v9916_v19 = vsub.f32 %v9906_v41, %v9912_v48 }
0x1738   : > { %v9725_v28 = vsub.f32 %v9704_v46, %v9723_v21  ;;  %12283 = vmatprep.subr.bf16.mxu0 %v15912_v6  ;;  %v9724_v38 = vsub.f32 %v9703_v32, %v9722_v8  ;;  %v9917_v49 = vpack.c.bf16 %v9914_v59, %v9913_v63  ;;  %v15954_v46 = vld [vmem:[#allocation11_spill] sm:$0xff]  ;;  %v15955_v21 = vld [vmem:[#allocation12_spill] sm:$0xff] }
0x173a   : > { %v9726_v1 = vpack.c.bf16 %v9725_v28, %v9724_v38 }
0x173b   : > { %12284 = vmatpush3.bf16.msra.mxu0 %v15624_v18 }
0x173c   : > { %12289 = vmatprep.subr.bf16.mxu0 %v15912_v6 }
0x1742   : > { %12286 = vmatmul.mubr.msk.bf16.vlgmr.msra.gmra.mrb[204].mxu0 %vm776_vm1, %v9721_v36 }
0x1743   : > { %12290 = vmatpush3.bf16.msra.mxu0 %v15614_v5  ;;  %12293 = vmatprep.mubr.msk.bf16.mxu0 %vm12803_vm0, %v15912_v6  ;;  %v9918_v5 = vpack.c.bf16 %v9916_v19, %v9915_v3 }
0x1744   : > { %12291 = vmatprep.subr.bf16.mxu0 %v15912_v6 }
0x1747   : > { %12292 = vmatpush3.bf16.msra.mxu0 %v15624_v18  ;;  %v15952_v18 = vld [vmem:[#allocation13_spill] sm:$0xff] }
0x1748   : > { %12297 = vmatprep.subr.bf16.mxu0 %v15912_v6 }
0x174e   : > { %12294 = vmatmul.mubr.msk.bf16.vlgmr.msra.gmra.mrb[204].mxu0 %vm776_vm1, %v9726_v1 }
0x174f   : > { %12298 = vmatpush3.bf16.msra.mxu0 %v9917_v49  ;;  %12301 = vmatprep.mubr.msk.bf16.mxu0 %vm12803_vm0, %v15912_v6 }
0x1750   : > { %12299 = vmatprep.subr.bf16.mxu0 %v15912_v6 }
0x1753   : > { %12300 = vmatpush3.bf16.msra.mxu0 %v9918_v5 }
0x1754   : > { %12305 = vmatprep.subr.bf16.mxu0 %v15912_v6 }
0x1756   : > { %12302 = vmatmul.mubr.msk.bf16.vlgmr.msra.gmra.mrb[208].mxu0 %vm776_vm1, %v15952_v18 }
0x1757   : > { %12306 = vmatpush3.bf16.msra.mxu0 %v9907_v29  ;;  %12309 = vmatprep.mubr.msk.bf16.mxu0 %vm12803_vm0, %v15912_v6 }
0x1758   : > { %12307 = vmatprep.subr.bf16.mxu0 %v15912_v6 }
0x175b   : > { %12308 = vmatpush3.bf16.msra.mxu0 %v9908_v37 }
0x175c   : > { %12313 = vmatprep.subr.bf16.mxu0 %v15912_v6 }
0x1762   : > { %12310 = vmatmul.mubr.msk.bf16.vlgmr.msra.gmra.mrb[208].mxu0 %vm776_vm1, %v15952_v18 }
0x1763   : > { %12314 = vmatpush3.bf16.msra.mxu0 %v9907_v29  ;;  %12317 = vmatprep.mubr.msk.bf16.mxu0 %vm12803_vm0, %v15912_v6 }
0x1764   : > { %12315 = vmatprep.subr.bf16.mxu0 %v15912_v6 }
0x1767   : > { %12316 = vmatpush3.bf16.msra.mxu0 %v9908_v37 }
0x1768   : > { %12321 = vmatprep.subr.bf16.mxu0 %v15912_v6 }
0x176e   : > { %12318 = vmatmul.mubr.msk.bf16.vlgmr.msra.gmra.mrb[208].mxu0 %vm776_vm1, %v15953_v16 }
0x176f   : > { %12322 = vmatpush3.bf16.msra.mxu0 %v10082_v26  ;;  %12329 = vmatprep.mubr.msk.bf16.mxu0 %vm12803_vm0, %v15912_v6  ;;  %vm10233_vm0 = vcmask 1048320  }
0x1770   : > { %12323 = vmatprep.subr.bf16.mxu0 %v15912_v6 }
0x1773   : > { %12324 = vmatpush3.bf16.msra.mxu0 %v10083_v33 }
0x1774   : > { %12325 = vmatprep.subr.bf16.mxu0 %v15912_v6 }
0x1777   : > { %12326 = vmatpush3.bf16.msra.mxu0 %v10084_v43 }
0x1778   : > { %12327 = vmatprep.subr.bf16.mxu0 %v15912_v6 }
0x177b   : > { %12328 = vmatpush3.bf16.msra.mxu0 %v10085_v62 }
0x177e   : > { %12330 = vmatmul.mubr.msk.bf16.vlgmr.msra.gmra.mrb[212].mxu0 %vm5536_vm4, %v15425_v44 }
0x1821   : > { %v9849_v25 = vpop.f32.mrb[204].mxu0 }
0x1822   : > { %v12295_v55 = vpop.f32.mrb[205].mxu0 }
0x1823   : > { %v9852_v4 = vpop.f32.mrb[206].mxu0 }
0x1824   : > { %v12296_v57 = vpop.f32.mrb[207].mxu0 }
0x1841   : > { %v10035_v14 = vpop.f32.mrb[208].mxu0 }
0x1842   : > { %10046 = vrot.lane.b32.xlu1 %v10035_v14, %s15884_s6  ;;  %v12319_v50 = vpop.f32.mrb[209].mxu0 }
0x1843   : > { %v10038_v0 = vpop.f32.mrb[210].mxu0 }
0x1844   : > { %10048 = vrot.lane.b32.xlu0 %v10038_v0, %s15884_s6  ;;  %v12320_v35 = vpop.f32.mrb[211].mxu0 }
0x1851   : > { %v10129_v11 = vpop.f32.mrb[212].mxu0 }
0x1852   : > { %v12365_v42 = vadd.f32 %v15637_v31, %v10129_v11  ;;  %v12331_v6 = vpop.f32.mrb[213].mxu0 }
0x1853   : > { %v10132_v22 = vpop.f32.mrb[214].mxu0 }
0x1854   : > { %v12366_v10 = vadd.f32 %v15639_v9, %v10132_v22  ;;  %10225 = vrot.lane.b32.xlu1 %v12365_v42, %s15884_s6  ;;  %v12332_v44 = vpop.f32.mrb[215].mxu0 }
0x1856   : > { %10227 = vrot.lane.b32.xlu0 %v12366_v10, %s15884_s6 }
0x1858   : > { %9695 = vrot.lane.b32.xlu1 %v15413_v51, %s12806_s27 }
0x185a   : > { %9697 = vrot.lane.b32.xlu0 %v15417_v15, %s12806_s27 }
0x185c   : > { %9860 = vrot.lane.b32.xlu1 %v9849_v25, %s12806_s27 }
0x185e   : > { %9862 = vrot.lane.b32.xlu0 %v9852_v4, %s12806_s27 }
0x18b4   : > { %v10047_v31 = vpop.permute.xlu1 %10046 }
0x18b5   : > { %v10052_v9 = vadd.f32 %v10047_v31, %v15954_v46 }
0x18b6   : > { %v10049_v32 = vpop.permute.xlu0 %10048 }
0x18b7   : > { %v10053_v8 = vadd.f32 %v10049_v32, %v15955_v21 }
0x18c6   : > { %v10226_v36 = vpop.permute.xlu1 %10225 }
0x18c7   : > { %v15727_v28 = vadd.f32 %v10226_v36, %v10052_v9 }
0x18c8   : > { %v10228_v38 = vpop.permute.xlu0 %10227 }
0x18c9   : > { %v10243_v51 = vmul.f32 %v15727_v28, %v15727_v28  ;;  %v15731_v1 = vadd.f32 %v10228_v38, %v10053_v8  ;;  %v10234_v40 = vsel %vm10233_vm0, %v15727_v28, 0.0 }
0x18ca   : > { %v9696_v15 = vpop.permute.xlu1 %9695 }
0x18cb   : > { %v10235_v53 = vsel %vm10233_vm0, %v15731_v1, 0.0  ;;  %v10244_v29 = vmul.f32 %v15731_v1, %v15731_v1  ;;  %v10245_v47 = vsel %vm10233_vm0, %v10243_v51, 0.0  ;;  %v9701_v37 = vadd.f32 %v9696_v15, %v15954_v46 }
0x18cc   : > { %v10236_v52 = vadd.f32 %v10235_v53, %v10234_v40  ;;  %v9698_v41 = vpop.permute.xlu0 %9697 }
0x18cd   : > { %v10246_v30 = vsel %vm10233_vm0, %v10244_v29, 0.0  ;;  %v9702_v48 = vadd.f32 %v9698_v41, %v15955_v21 }
0x18ce   : > { %v10237_v63 = vrot.slane %v10236_v52, 4  ;;  %v10247_v59 = vadd.f32 %v10246_v30, %v10245_v47  ;;  %v9861_v2 = vpop.permute.xlu1 %9860 }
0x18cf   : > { %v9866_v49 = vadd.f32 %v9861_v2, %v9701_v37 }
0x18d0   : > { %v10238_v3 = vadd.f32 %v10237_v63, %v10236_v52  ;;  %v10248_v19 = vrot.slane %v10247_v59, 4  ;;  %v9863_v5 = vpop.permute.xlu0 %9862 }
0x18d1   : > { %v9878_v18 = vmul.f32 %v9866_v49, %v9866_v49  ;;  %v9867_v27 = vadd.f32 %v9863_v5, %v9702_v48  ;;  %v9869_v61 = vsel %vm9868_vm13, %v9866_v49, 0.0 }
0x18d2   : > { %v10239_v34 = vrot.slane %v10238_v3, 2  ;;  %v10249_v13 = vadd.f32 %v10248_v19, %v10247_v59 }
0x18d3   : > { %v9870_v56 = vsel %vm9868_vm13, %v9867_v27, 0.0  ;;  %v9879_v58 = vmul.f32 %v9867_v27, %v9867_v27  ;;  %v9880_v12 = vsel %vm9868_vm13, %v9878_v18, 0.0 }
0x18d4   : > { %v10240_v20 = vadd.f32 %v10239_v34, %v10238_v3  ;;  %v10250_v24 = vrot.slane %v10249_v13, 2  ;;  %v9871_v26 = vadd.f32 %v9870_v56, %v9869_v61 }
0x18d5   : > { %v9881_v45 = vsel %vm9868_vm13, %v9879_v58, 0.0 }
0x18d6   : > { %v10241_v16 = vrot.slane %v10240_v20, 1  ;;  %v10251_v33 = vadd.f32 %v10250_v24, %v10249_v13  ;;  %v9872_v17 = vrot.slane %v9871_v26, 4  ;;  %v9882_v60 = vadd.f32 %v9881_v45, %v9880_v12 }
0x18d8   : > { %v10242_v39 = vadd.f32 %v10241_v16, %v10240_v20  ;;  %v10252_v54 = vrot.slane %v10251_v33, 1  ;;  %v9873_v43 = vadd.f32 %v9872_v17, %v9871_v26  ;;  %v9883_v23 = vrot.slane %v9882_v60, 4 }
0x18da   : > { %v10253_v7 = vadd.f32 %v10252_v54, %v10251_v33  ;;  %v10254_v62 = vmul.f32 0.0625, %v10242_v39  ;;  %v9874_v25 = vrot.slane %v9873_v43, 2  ;;  %v9884_v55 = vadd.f32 %v9883_v23, %v9882_v60 }
0x18dc   : > { %v10255_v4 = vmul.f32 0.0625, %v10253_v7  ;;  %v10256_v57 = vmul.f32 %v10254_v62, %v10254_v62  ;;  %v10261_v14 = vsub.f32 %v15731_v1, %v10254_v62  ;;  %v9875_v50 = vadd.f32 %v9874_v25, %v9873_v43 }
0x18dd   : > { %v9885_v0 = vrot.slane %v9884_v55, 2  ;;  %v10260_v35 = vsub.f32 %v15727_v28, %v10254_v62 }
0x18de   : > { %v10257_v11 = vsub.f32 %v10255_v4, %v10256_v57  ;;  %v9876_v42 = vrot.slane %v9875_v50, 1 }
0x18df   : > { %v9886_v6 = vadd.f32 %v9885_v0, %v9884_v55 }
0x18e0   : > { %v10258_v22 = vadd.f32 1e-05, %v10257_v11  ;;  %v9877_v10 = vadd.f32 %v9876_v42, %v9875_v50 }
0x18e1   : > { %v9887_v44 = vrot.slane %v9886_v6, 1 }
0x18e2   : > { %12713 = vrsqrt.f32 %v10258_v22  ;;  %v9889_v31 = vmul.f32 0.0625, %v9877_v10 }
0x18e3   : > { %v9888_v32 = vadd.f32 %v9887_v44, %v9886_v6 }
0x18e4   : > { %v9891_v46 = vmul.f32 %v9889_v31, %v9889_v31  ;;  %v9896_v9 = vsub.f32 %v9867_v27, %v9889_v31  ;;  %v9895_v36 = vsub.f32 %v9866_v49, %v9889_v31 }
0x18e5   : > { %v9890_v21 = vmul.f32 0.0625, %v9888_v32 }
0x18e7   : > { %v9892_v8 = vsub.f32 %v9890_v21, %v9891_v46 }
0x18e9   : > { %v9893_v38 = vadd.f32 1e-05, %v9892_v8 }
0x18eb   : > { %12715 = vrsqrt.f32 %v9893_v38 }
0x18ec   : > { %v12714_v51 = vpop.eup %12713 }
0x18ed   : > { %v10263_v1 = vmul.f32 %v12714_v51, %v10261_v14  ;;  %v10262_v15 = vmul.f32 %v12714_v51, %v10260_v35 }
0x18ef   : > { %v10265_v28 = vmul.f32 0.2, %v10263_v1  ;;  %v10264_v40 = vmul.f32 0.2, %v10262_v15 }
0x18f1   : > { %v10267_v53 = vmax.f32 %v10263_v1, %v10265_v28  ;;  %v10266_v29 = vmax.f32 %v10262_v15, %v10264_v40 }
0x18f3   : > { %10272 = vrot.lane.b32.xlu0 %v10267_v53, %s15884_s6  ;;  %10270 = vrot.lane.b32.xlu1 %v10266_v29, %s15884_s6  ;;  %s733_s6 = scalar_lea.vmem [#allocation3], %s10392_s24 }
0x18f4   : > { %s10302_s29 = sshll.u32 %s733_s6, 4  ;;  %s15747_s29 = int_to_ptr.vmem [resolvable:$true] %s10302_s29 }
0x18f5   : > { %v12716_v52 = vpop.eup %12715  ;;  %s12737_s26 = scalar_lea.vmem %s15747_s29, 256 }
0x18f6   : > { %v9897_v41 = vmul.f32 %v12716_v52, %v9895_v36  ;;  %v9898_v47 = vmul.f32 %v12716_v52, %v9896_v9  ;;  %p12738_p11 = scmp.ne.s32.totalorder %s15747_s29, %s12737_s26 }
0x18f8   : > { %v9899_v30 = vmul.f32 0.2, %v9897_v41  ;;  %v9900_v37 = vmul.f32 0.2, %v9898_v47  ;;  %p12739_p12 = pnand %p12738_p11, %p12968_p5 }
0x18fa   : > { %v9901_v63 = vmax.f32 %v9897_v41, %v9899_v30  ;;  %v9902_v59 = vmax.f32 %v9898_v47, %v9900_v37  ;;  %p12740_p13 = pneg %p12739_p12 }
0x1965   : > { %v10271_v2 = vpop.permute.xlu1 %10270  ;;  %v10273_v48 = vpop.permute.xlu0 %10272 }
0x1966   : > { %v10276_v49 = vadd.f32 %v10271_v2, %v9901_v63  ;;  %v10277_v3 = vadd.f32 %v10273_v48, %v9902_v59 }
0x1968   : > { %10280 = vrot.lane.b32.xlu1 %v10276_v49, %s12806_s27  ;;  %10282 = vrot.lane.b32.xlu0 %v10277_v3, %s12806_s27  ;;  %s12741_s27 = sshll.u32 %s12807_s5, 4  ;;  %s12742_s27 = int_to_ptr.vmem [resolvable:$false] %s12741_s27 }
0x1969   : > { %s12743_s24 = scalar_lea.vmem %s12742_s27, 512  ;;  %p12744_p0 = scmp.lt.s32.totalorder %s15747_s29, %s12742_s27 }
0x196a   : > { %p12745_p1 = scmp.lt.s32.totalorder %s12743_s24, %s12737_s26 }
0x196c   : > { %p12746_p2 = por %p12745_p1, %p12744_p0 }
0x196e   : > { %p12747_p3 = pnand %p12746_p2, %p12740_p13 }
0x19da   : > { %v10281_v19 = vpop.permute.xlu1 %10280  ;;  %v10283_v5 = vpop.permute.xlu0 %10282 }
0x19db   : > { %10286 = vst.msk [vmem:[%s733_s6] sm:$0xff] %vm776_vm1, %v10281_v19  ;;  %10287 = vst.msk [vmem:[%s733_s6 + $0x8] sm:$0xff] %vm776_vm1, %v10283_v5 }
0x19dc   : > { %12750 = shalt.err (!%p12747_p3)
}
0x19dd   : > { %s12751_s28 = scalar_lea.hbm %s15752_s1, 256  ;;  %s12755_s3 = scalar_lea.hbm %s15820_s23, 512 }
0x19de   : > { %p12752_p4 = scmp.ne.s32.totalorder %s15752_s1, %s12751_s28  ;;  %p12756_p9 = scmp.lt.u32.totalorder %s15752_s1, %s15820_s23 }
0x19df   : > { %p12757_p10 = scmp.lt.u32.totalorder %s12755_s3, %s12751_s28  ;;  %p12759_p12 = scmp.lt.u32.totalorder %s12751_s28, %s15752_s1 }
0x19e0   : > { %p12753_p7 = pnand %p12752_p4, %p12968_p5 }
0x19e1   : > { %p12758_p11 = por %p12757_p10, %p12756_p9 }
0x19e2   : > { %p12754_p8 = pneg %p12753_p7 }
0x19e3   : > { %p12760_p13 = por %p12759_p12, %p12758_p11 }
0x19e5   : > { %p12761_p0 = pnand %p12760_p13, %p12754_p8 }
0x19e7   : > { %12764 = shalt.err (!%p12761_p0)
}
0x19e8   : > { %s12808_s26 = smov 128   ;;  %s12809_s27 = smov 8  }
0x19e9   : > { %12648 = dma.vmem_to_hbm [thread:$0]  (%p12968_p5), %s15747_s29, 256, %s15752_s1, %s15756_s0, %s12808_s26, %s12808_s26, %s12809_s27  }
0x19ea PF: > { %s15956_s24 = sld [smem:[#allocation6_spill]]  ;;  %p12654_p1 = scmp.ge.s32.totalorder %s12799_s25, 2 }
0x19ec   : > { %p12651_p2 = pnand %p12654_p1, %p12972_p6 }
0x19f0   : > { %s10317_s4 = sand.u32 1, %s15956_s24  }
0x19f1   : > { %s10318_s28 = scalar_lea.sflag [#allocation4], %s10317_s4 }
0x19f2   : > { %12782 = dma.done.wait (!%p12651_p2), %s10318_s28, 256  }
0x19f3   : > { %12784 = vsyncadd (!%p12651_p2), %s10318_s28, 4294967040  ;;  %s15958_s25 = sld [smem:[#allocation8_spill]]  ;;  %s15959_s3 = sld [smem:[#allocation7_spill]] }
0x19f4   : > { %s15960_s24 = sld [smem:[#allocation9_spill]]  ;;  %s15961_s4 = smov %s12791_s30 }
0x19f9   : > { %p33_p3 = scmp.ge.s32.totalorder %s15958_s25, 4   ;;  %s15962_s30 = smov %s15959_s3 }
0x19fb   :  { %35 = sbr.rel (!%p33_p3) target bundleno = 12 (0xc), region = 167 }
0x1a02   :  { %10323 = vsyncpa [#allocation4], 1 }
0x1a03   :  { %10325 = vsyncpa [#allocation4 + $0x1], 1 }

</bundles_post_ra>
